<compile_context>
chip_gen: v5e
topology: v5e:2x2
jax: 0.10.0
libtpu: 0.0.40
codegen_flags: <defaults>
</compile_context>

<pallas_src>
import functools

import jax
import jax.numpy as jnp
from jax import lax
from jax.experimental import pallas as pl
from jax.experimental.pallas import tpu as pltpu

LANE = 128
EPS = 1e-5


def _round_up(x, m):
    return (x + m - 1) // m * m


# ----------------------------- index maps ----------------------------------

def _img_map(n):        # one image per grid step
    return (n, 0, 0)


def _const3(n):         # whole-array (broadcast) 3-D operand
    return (0, 0, 0)


def _const2(n):         # whole-array (broadcast) 2-D operand
    return (0, 0)


# ----------------------------- Pallas kernels -------------------------------

def _conv3x3_taps(xb, wt_ref, b_ref, wp):
    """Sum of 9 tap matmuls on one image.

    xb:      (Cin, P) bf16 zero-padded activation (borders and lane tail == 0)
    wt_ref:  (9, Cout, Cin) bf16, tap (kh, kw) at index kh*3+kw
             (== torch_weight[:, :, kh, kw])
    b_ref:   (Cout, 1) f32
    Returns (Cout, P) f32 pre-activation.  The spatial shift of each tap is a
    static lane rotation of that tap's matmul result (roll commutes with the
    left matmul); wrapped lanes only affect border pixels, masked downstream.
    """
    p = xb.shape[-1]
    cout = wt_ref.shape[1]
    acc = jnp.zeros((cout, p), jnp.float32)
    for kh in range(3):
        for kw in range(3):
            d = (kh - 1) * wp + (kw - 1)
            t = jnp.dot(wt_ref[kh * 3 + kw], xb,
                        preferred_element_type=jnp.float32)
            if d != 0:
                t = pltpu.roll(t, shift=(-d) % p, axis=1)
            acc = acc + t
    return acc + b_ref[...]


def _store_with_stats(acc, mask_ref, y_ref, s1_ref, s2_ref):
    m = mask_ref[...]                                   # (1, P), 1.0 on valid
    y_ref[0] = acc
    ym = acc * m
    s1_ref[0] = jnp.sum(ym, axis=-1, keepdims=True)      # (Cout, 1) sum
    s2_ref[0] = jnp.sum(ym * acc, axis=-1, keepdims=True)  # (Cout, 1) sum sq


def conv3x3_stats_kernel(x_ref, wt_ref, b_ref, mask_ref,
                         y_ref, s1_ref, s2_ref, *, wp):
    # Input is an already-ready bf16 activation slab (zero borders).
    acc = _conv3x3_taps(x_ref[0], wt_ref, b_ref, wp)
    _store_with_stats(acc, mask_ref, y_ref, s1_ref, s2_ref)


def conv3x3_fused_bn_kernel(yin_ref, scale_ref, shift_ref, wt_ref, b_ref,
                            mask_ref, y_ref, s1_ref, s2_ref, *, wp):
    # Input is the previous conv's f32 pre-activation; apply its BatchNorm
    # (precomputed scale/shift) + ReLU + border mask here, then convolve.
    x = jnp.maximum(yin_ref[0] * scale_ref[...] + shift_ref[...], 0.0)
    x = x * mask_ref[...]
    acc = _conv3x3_taps(x.astype(jnp.bfloat16), wt_ref, b_ref, wp)
    _store_with_stats(acc, mask_ref, y_ref, s1_ref, s2_ref)


def bn_relu_kernel(y_ref, scale_ref, shift_ref, mask_ref, o_ref):
    a = jnp.maximum(y_ref[0] * scale_ref[...] + shift_ref[...], 0.0)
    o_ref[0] = (a * mask_ref[...]).astype(o_ref.dtype)


def bn_relu_res_kernel(y_ref, scale_ref, shift_ref, res_ref, mask_ref, o_ref):
    # Residual added AFTER the ReLU: x = relu(bn(conv(x))) + identity.
    a = jnp.maximum(y_ref[0] * scale_ref[...] + shift_ref[...], 0.0)
    a = a + res_ref[0].astype(jnp.float32)
    o_ref[0] = (a * mask_ref[...]).astype(o_ref.dtype)


def pointwise_conv_kernel(x_ref, w_ref, b_ref, o_ref):
    # 1x1 "change channel" conv: w (Cout, Cin) @ x (Cin, HW) + b.
    y = jnp.dot(w_ref[...], x_ref[0], preferred_element_type=jnp.float32)
    o_ref[0] = (y + b_ref[...]).astype(o_ref.dtype)


def head_kernel(x_ref, w_ref, b_ref, o_ref):
    # Output conv covers the full remaining spatial extent -> plain matmul,
    # fused with log_softmax over channels (f32 math).
    y = jnp.dot(x_ref[...], w_ref[...], preferred_element_type=jnp.float32)
    y = y + b_ref[...]
    z = y - jnp.max(y, axis=-1, keepdims=True)
    o_ref[...] = z - jnp.log(jnp.sum(jnp.exp(z), axis=-1, keepdims=True))


# --------------------------- pallas_call wrappers ---------------------------

_PAR = pltpu.CompilerParams(dimension_semantics=("parallel",))


def conv3x3_pass1(x_slab, wt9, b, mask, hw, fused_bn=None):
    """Pass 1 of a conv layer: conv + bias (+ fused BN/ReLU of the previous
    conv) and per-image BN statistics."""
    n, cin, p = x_slab.shape
    cout = wt9.shape[1]
    wp = hw[1] + 2
    out_shape = (jax.ShapeDtypeStruct((n, cout, p), jnp.float32),
                 jax.ShapeDtypeStruct((n, cout, 1), jnp.float32),
                 jax.ShapeDtypeStruct((n, cout, 1), jnp.float32))
    out_specs = (pl.BlockSpec((1, cout, p), _img_map),
                 pl.BlockSpec((1, cout, 1), _img_map),
                 pl.BlockSpec((1, cout, 1), _img_map))
    if fused_bn is None:
        kern = functools.partial(conv3x3_stats_kernel, wp=wp)
        in_specs = [pl.BlockSpec((1, cin, p), _img_map),
                    pl.BlockSpec(wt9.shape, _const3),
                    pl.BlockSpec(b.shape, _const2),
                    pl.BlockSpec(mask.shape, _const2)]
        args = (x_slab, wt9, b, mask)
    else:
        scale, shift = fused_bn
        kern = functools.partial(conv3x3_fused_bn_kernel, wp=wp)
        in_specs = [pl.BlockSpec((1, cin, p), _img_map),
                    pl.BlockSpec(scale.shape, _const2),
                    pl.BlockSpec(shift.shape, _const2),
                    pl.BlockSpec(wt9.shape, _const3),
                    pl.BlockSpec(b.shape, _const2),
                    pl.BlockSpec(mask.shape, _const2)]
        args = (x_slab, scale, shift, wt9, b, mask)
    return pl.pallas_call(kern, grid=(n,), in_specs=in_specs,
                          out_specs=out_specs, out_shape=out_shape,
                          compiler_params=_PAR)(*args)


def bn_relu_pass2(y, scale, shift, mask, residual=None):
    n, c, p = y.shape
    out_shape = jax.ShapeDtypeStruct((n, c, p), jnp.bfloat16)
    out_specs = pl.BlockSpec((1, c, p), _img_map)
    if residual is None:
        in_specs = [pl.BlockSpec((1, c, p), _img_map),
                    pl.BlockSpec(scale.shape, _const2),
                    pl.BlockSpec(shift.shape, _const2),
                    pl.BlockSpec(mask.shape, _const2)]
        return pl.pallas_call(bn_relu_kernel, grid=(n,), in_specs=in_specs,
                              out_specs=out_specs, out_shape=out_shape,
                              compiler_params=_PAR)(y, scale, shift, mask)
    in_specs = [pl.BlockSpec((1, c, p), _img_map),
                pl.BlockSpec(scale.shape, _const2),
                pl.BlockSpec(shift.shape, _const2),
                pl.BlockSpec((1, c, p), _img_map),
                pl.BlockSpec(mask.shape, _const2)]
    return pl.pallas_call(bn_relu_res_kernel, grid=(n,), in_specs=in_specs,
                          out_specs=out_specs, out_shape=out_shape,
                          compiler_params=_PAR)(y, scale, shift, residual, mask)


def change_conv(x_slab, w, b):
    n, cin, p = x_slab.shape
    cout = w.shape[0]
    return pl.pallas_call(
        pointwise_conv_kernel, grid=(n,),
        in_specs=[pl.BlockSpec((1, cin, p), _img_map),
                  pl.BlockSpec(w.shape, _const2),
                  pl.BlockSpec(b.shape, _const2)],
        out_specs=pl.BlockSpec((1, cout, p), _img_map),
        out_shape=jax.ShapeDtypeStruct((n, cout, p), jnp.bfloat16),
        compiler_params=_PAR)(x_slab, w, b)


def head_call(xf, w, b):
    n = xf.shape[0]
    cout = w.shape[-1]
    # True single-block call (no grid): (N, feat) @ (feat, Cout) is tiny.
    return pl.pallas_call(
        head_kernel,
        out_shape=jax.ShapeDtypeStruct((n, cout), jnp.float32))(xf, w, b)


# ------------------------------- JAX glue -----------------------------------

def _bn_scale_shift(s1, s2, gamma, beta, count):
    # One-pass batch statistics: mean = s/R, var = ss/R - mean^2 (biased).
    ssum = jnp.sum(s1, axis=0)                 # (C, 1)
    ssq = jnp.sum(s2, axis=0)                  # (C, 1)
    mean = ssum / count
    var = jnp.maximum(ssq / count - mean * mean, 0.0)
    scale = gamma * lax.rsqrt(var + EPS)
    shift = beta - mean * scale
    return scale, shift


def _to_padded_slab(img):
    # (N, C, H, W) -> (N, C, Ppad) bf16 with SAME-conv zero border + lane pad.
    n, c, h, w = img.shape
    hp, wp = h + 2, w + 2
    ppad = _round_up(hp * wp, LANE)
    xs = jnp.pad(img, ((0, 0), (0, 0), (1, 1), (1, 1))).reshape(n, c, hp * wp)
    xs = jnp.pad(xs, ((0, 0), (0, 0), (0, ppad - hp * wp)))
    return xs.astype(jnp.bfloat16)


def _valid_mask(h, w):
    hp, wp = h + 2, w + 2
    ppad = _round_up(hp * wp, LANE)
    m = jnp.pad(jnp.ones((h, w), jnp.float32), ((1, 1), (1, 1)))
    return jnp.pad(m.reshape(1, hp * wp), ((0, 0), (0, ppad - hp * wp)))


def _pool_from_slab(slab, h, w):
    # TODO(synk): 2x2 max-pool kept as XLA glue (crop + reshape + max); fusing
    # it into the preceding Pallas pass would need an in-kernel lane regather.
    n, c, _ = slab.shape
    hp, wp = h + 2, w + 2
    img = slab[:, :, :hp * wp].reshape(n, c, hp, wp)[:, :, 1:h + 1, 1:w + 1]
    return jnp.max(img.reshape(n, c, h // 2, 2, w // 2, 2), axis=(3, 5))


def model_d_forward(params, x_nchw):
    x = x_nchw.astype(jnp.float32)
    n, _, h, w = x.shape

    # ---- start_net: conv3x3 + BN + ReLU + maxpool ----
    sp = params["start"]
    mask = _valid_mask(h, w)
    xs = _to_padded_slab(x)
    y, s1, s2 = conv3x3_pass1(xs, sp["wt"].astype(jnp.bfloat16), sp["b"],
                              mask, (h, w))
    scale, shift = _bn_scale_shift(s1, s2, sp["gamma"], sp["beta"], n * h * w)
    act = bn_relu_pass2(y, scale, shift, mask)
    x_img = _pool_from_slab(act, h, w)
    h, w = h // 2, w // 2

    # ---- residual blocks ----
    for idx, blk in enumerate(params["blocks"]):
        c = x_img.shape[1]
        mask = _valid_mask(h, w)
        ident = _to_padded_slab(x_img)              # block input == residual
        y1, a1, a2 = conv3x3_pass1(ident, blk[0]["wt"].astype(jnp.bfloat16),
                                   blk[0]["b"], mask, (h, w))
        sc1, sh1 = _bn_scale_shift(a1, a2, blk[0]["gamma"], blk[0]["beta"],
                                   n * h * w)
        # conv2 with conv1's BN + ReLU fused into its input path.
        y2, b1, b2 = conv3x3_pass1(y1, blk[1]["wt"].astype(jnp.bfloat16),
                                   blk[1]["b"], mask, (h, w),
                                   fused_bn=(sc1, sh1))
        sc2, sh2 = _bn_scale_shift(b1, b2, blk[1]["gamma"], blk[1]["beta"],
                                   n * h * w)
        act = bn_relu_pass2(y2, sc2, sh2, mask, residual=ident)
        x_img = _pool_from_slab(act, h, w)
        h, w = h // 2, w // 2
        ch = params["change"][idx]
        x_slab = change_conv(x_img.reshape(n, c, h * w),
                             ch["w"].astype(jnp.bfloat16), ch["b"])
        x_img = x_slab.reshape(n, ch["w"].shape[0], h, w)

    # ---- output_net: full-spatial conv (== matmul) + log_softmax ----
    feat = x_img.shape[1] * h * w
    xf = x_img.reshape(n, feat)                     # features in (c, h, w) order
    logp = head_call(xf, params["out"]["w"].astype(jnp.bfloat16),
                     params["out"]["b"])
    return logp.reshape(n, -1, 1, 1)                # (N, Cout, 1, 1) like PyTorch


# ----------------------------- parameter init -------------------------------

def init_params(key, in_channel, block_channels, output_channel, image_size):
    keys = iter(jax.random.split(key, 32))

    def conv3x3_params(cin, cout):
        std = (2.0 / (9 * cin)) ** 0.5
        return dict(
            # tap-major layout: wt[kh*3+kw] == torch_weight[:, :, kh, kw]
            wt=std * jax.random.normal(next(keys), (9, cout, cin), jnp.float32),
            b=0.01 * jax.random.normal(next(keys), (cout, 1), jnp.float32),
            gamma=jnp.ones((cout, 1), jnp.float32),
            beta=jnp.zeros((cout, 1), jnp.float32))

    params = {"start": conv3x3_params(in_channel, block_channels[0]),
              "blocks": [], "change": []}
    for idx, c in enumerate(block_channels):
        params["blocks"].append([conv3x3_params(c, c), conv3x3_params(c, c)])
        cout = block_channels[idx + 1] if idx + 1 < len(block_channels) else 64
        params["change"].append(dict(
            w=(c ** -0.5) * jax.random.normal(next(keys), (cout, c), jnp.float32),
            b=0.01 * jax.random.normal(next(keys), (cout, 1), jnp.float32)))
    fs = image_size // (2 ** (len(block_channels) + 1))
    feat = 64 * fs * fs
    params["out"] = dict(
        w=(feat ** -0.5) * jax.random.normal(next(keys), (feat, output_channel),
                                             jnp.float32),
        b=0.01 * jax.random.normal(next(keys), (1, output_channel), jnp.float32))
    return params


# ---------------------------------- main -------------------------------------

if __name__ == "__main__":
    key = jax.random.PRNGKey(0)
    kp, kx = jax.random.split(key)

    # Small, self-consistent configuration (same structure as ModelD defaults).
    image_size, in_channel = 32, 3
    block_channels, output_channel = (8, 16, 32), 6
    batch = 2

    params = init_params(kp, in_channel, block_channels, output_channel,
                         image_size)
    x = jax.random.normal(kx, (batch, in_channel, image_size, image_size),
                          jnp.float32)

    fwd = jax.jit(functools.partial(model_d_forward, params))
    out = fwd(x)
    jax.block_until_ready(out)

    assert out.shape == (batch, output_channel, 1, 1)
    # log_softmax sanity: exp(out) sums to 1 over channels.
    s = jnp.sum(jnp.exp(out[:, :, 0, 0]), axis=1)
    assert bool(jnp.all(jnp.abs(s - 1.0) < 1e-3))
    print("KERNEL_OK")
</pallas_src>

<mosaic_0001>
module attributes {stable_mosaic.version = 11 : i64} {
  func.func @conv3x3_stats_kernel(%arg0: i32, %arg1: memref<1x3x1280xbf16, #tpu.memory_space<vmem>>, %arg2: memref<9x8x3xbf16, #tpu.memory_space<vmem>>, %arg3: memref<8x1xf32, #tpu.memory_space<vmem>>, %arg4: memref<1x1280xf32, #tpu.memory_space<vmem>>, %arg5: memref<1x8x1280xf32, #tpu.memory_space<vmem>>, %arg6: memref<1x8x1xf32, #tpu.memory_space<vmem>>, %arg7: memref<1x8x1xf32, #tpu.memory_space<vmem>>) attributes {dimension_semantics = [#tpu.dimension_semantics<parallel>], iteration_bounds = array<i64: 2>, scalar_prefetch = 0 : i64, scratch_operands = 0 : i64, tpu.core_type = #tpu.core_type<tc>, window_params = [{transform_indices = @transform_0, window_bounds = array<i64: 1, 3, 1280>}, {pipeline_mode = #tpu.pipeline_mode<synchronous>, transform_indices = @transform_1, window_bounds = array<i64: 9, 8, 3>}, {pipeline_mode = #tpu.pipeline_mode<synchronous>, transform_indices = @transform_2, window_bounds = array<i64: 8, 1>}, {pipeline_mode = #tpu.pipeline_mode<synchronous>, transform_indices = @transform_3, window_bounds = array<i64: 1, 1280>}, {transform_indices = @transform_4, window_bounds = array<i64: 1, 8, 1280>}, {transform_indices = @transform_5, window_bounds = array<i64: 1, 8, 1>}, {transform_indices = @transform_6, window_bounds = array<i64: 1, 8, 1>}]} {
    %c0 = arith.constant 0 : index
    %c0_0 = arith.constant 0 : index
    %c0_1 = arith.constant 0 : index
    %0 = vector.load %arg1[%c0, %c0_0, %c0_1] : memref<1x3x1280xbf16, #tpu.memory_space<vmem>>, vector<1x3x1280xbf16>
    %1 = vector.shape_cast %0 : vector<1x3x1280xbf16> to vector<3x1280xbf16>
    %cst = arith.constant 0.000000e+00 : f32
    %2 = vector.broadcast %cst : f32 to vector<8x1280xf32>
    %c0_2 = arith.constant 0 : index
    %c0_3 = arith.constant 0 : index
    %c0_4 = arith.constant 0 : index
    %3 = vector.load %arg2[%c0_2, %c0_3, %c0_4] : memref<9x8x3xbf16, #tpu.memory_space<vmem>>, vector<1x8x3xbf16>
    %4 = vector.shape_cast %3 : vector<1x8x3xbf16> to vector<8x3xbf16>
    %cst_5 = arith.constant dense<0.000000e+00> : vector<8x1280xf32>
    %5 = tpu.matmul %4, %1, %cst_5 {dimension_numbers = #tpu.dot_dimension_numbers<[1], [0], [0], [1], [0, 0, 1, 1], [], []>} : vector<8x3xbf16>, vector<3x1280xbf16>, vector<8x1280xf32> -> vector<8x1280xf32>
    %c35_i32 = arith.constant 35 : i32
    %6 = tpu.dynamic_rotate %5 by %c35_i32 dim 1 : vector<8x1280xf32>, i32 -> vector<8x1280xf32>
    %7 = arith.addf %2, %6 : vector<8x1280xf32>
    %c1 = arith.constant 1 : index
    %c0_6 = arith.constant 0 : index
    %c0_7 = arith.constant 0 : index
    %8 = vector.load %arg2[%c1, %c0_6, %c0_7] : memref<9x8x3xbf16, #tpu.memory_space<vmem>>, vector<1x8x3xbf16>
    %9 = vector.shape_cast %8 : vector<1x8x3xbf16> to vector<8x3xbf16>
    %cst_8 = arith.constant dense<0.000000e+00> : vector<8x1280xf32>
    %10 = tpu.matmul %9, %1, %cst_8 {dimension_numbers = #tpu.dot_dimension_numbers<[1], [0], [0], [1], [0, 0, 1, 1], [], []>} : vector<8x3xbf16>, vector<3x1280xbf16>, vector<8x1280xf32> -> vector<8x1280xf32>
    %c34_i32 = arith.constant 34 : i32
    %11 = tpu.dynamic_rotate %10 by %c34_i32 dim 1 : vector<8x1280xf32>, i32 -> vector<8x1280xf32>
    %12 = arith.addf %7, %11 : vector<8x1280xf32>
    %c2 = arith.constant 2 : index
    %c0_9 = arith.constant 0 : index
    %c0_10 = arith.constant 0 : index
    %13 = vector.load %arg2[%c2, %c0_9, %c0_10] : memref<9x8x3xbf16, #tpu.memory_space<vmem>>, vector<1x8x3xbf16>
    %14 = vector.shape_cast %13 : vector<1x8x3xbf16> to vector<8x3xbf16>
    %cst_11 = arith.constant dense<0.000000e+00> : vector<8x1280xf32>
    %15 = tpu.matmul %14, %1, %cst_11 {dimension_numbers = #tpu.dot_dimension_numbers<[1], [0], [0], [1], [0, 0, 1, 1], [], []>} : vector<8x3xbf16>, vector<3x1280xbf16>, vector<8x1280xf32> -> vector<8x1280xf32>
    %c33_i32 = arith.constant 33 : i32
    %16 = tpu.dynamic_rotate %15 by %c33_i32 dim 1 : vector<8x1280xf32>, i32 -> vector<8x1280xf32>
    %17 = arith.addf %12, %16 : vector<8x1280xf32>
    %c3 = arith.constant 3 : index
    %c0_12 = arith.constant 0 : index
    %c0_13 = arith.constant 0 : index
    %18 = vector.load %arg2[%c3, %c0_12, %c0_13] : memref<9x8x3xbf16, #tpu.memory_space<vmem>>, vector<1x8x3xbf16>
    %19 = vector.shape_cast %18 : vector<1x8x3xbf16> to vector<8x3xbf16>
    %cst_14 = arith.constant dense<0.000000e+00> : vector<8x1280xf32>
    %20 = tpu.matmul %19, %1, %cst_14 {dimension_numbers = #tpu.dot_dimension_numbers<[1], [0], [0], [1], [0, 0, 1, 1], [], []>} : vector<8x3xbf16>, vector<3x1280xbf16>, vector<8x1280xf32> -> vector<8x1280xf32>
    %c1_i32 = arith.constant 1 : i32
    %21 = tpu.dynamic_rotate %20 by %c1_i32 dim 1 : vector<8x1280xf32>, i32 -> vector<8x1280xf32>
    %22 = arith.addf %17, %21 : vector<8x1280xf32>
    %c4 = arith.constant 4 : index
    %c0_15 = arith.constant 0 : index
    %c0_16 = arith.constant 0 : index
    %23 = vector.load %arg2[%c4, %c0_15, %c0_16] : memref<9x8x3xbf16, #tpu.memory_space<vmem>>, vector<1x8x3xbf16>
    %24 = vector.shape_cast %23 : vector<1x8x3xbf16> to vector<8x3xbf16>
    %cst_17 = arith.constant dense<0.000000e+00> : vector<8x1280xf32>
    %25 = tpu.matmul %24, %1, %cst_17 {dimension_numbers = #tpu.dot_dimension_numbers<[1], [0], [0], [1], [0, 0, 1, 1], [], []>} : vector<8x3xbf16>, vector<3x1280xbf16>, vector<8x1280xf32> -> vector<8x1280xf32>
    %26 = arith.addf %22, %25 : vector<8x1280xf32>
    %c5 = arith.constant 5 : index
    %c0_18 = arith.constant 0 : index
    %c0_19 = arith.constant 0 : index
    %27 = vector.load %arg2[%c5, %c0_18, %c0_19] : memref<9x8x3xbf16, #tpu.memory_space<vmem>>, vector<1x8x3xbf16>
    %28 = vector.shape_cast %27 : vector<1x8x3xbf16> to vector<8x3xbf16>
    %cst_20 = arith.constant dense<0.000000e+00> : vector<8x1280xf32>
    %29 = tpu.matmul %28, %1, %cst_20 {dimension_numbers = #tpu.dot_dimension_numbers<[1], [0], [0], [1], [0, 0, 1, 1], [], []>} : vector<8x3xbf16>, vector<3x1280xbf16>, vector<8x1280xf32> -> vector<8x1280xf32>
    %c1279_i32 = arith.constant 1279 : i32
    %30 = tpu.dynamic_rotate %29 by %c1279_i32 dim 1 : vector<8x1280xf32>, i32 -> vector<8x1280xf32>
    %31 = arith.addf %26, %30 : vector<8x1280xf32>
    %c6 = arith.constant 6 : index
    %c0_21 = arith.constant 0 : index
    %c0_22 = arith.constant 0 : index
    %32 = vector.load %arg2[%c6, %c0_21, %c0_22] : memref<9x8x3xbf16, #tpu.memory_space<vmem>>, vector<1x8x3xbf16>
    %33 = vector.shape_cast %32 : vector<1x8x3xbf16> to vector<8x3xbf16>
    %cst_23 = arith.constant dense<0.000000e+00> : vector<8x1280xf32>
    %34 = tpu.matmul %33, %1, %cst_23 {dimension_numbers = #tpu.dot_dimension_numbers<[1], [0], [0], [1], [0, 0, 1, 1], [], []>} : vector<8x3xbf16>, vector<3x1280xbf16>, vector<8x1280xf32> -> vector<8x1280xf32>
    %c1247_i32 = arith.constant 1247 : i32
    %35 = tpu.dynamic_rotate %34 by %c1247_i32 dim 1 : vector<8x1280xf32>, i32 -> vector<8x1280xf32>
    %36 = arith.addf %31, %35 : vector<8x1280xf32>
    %c7 = arith.constant 7 : index
    %c0_24 = arith.constant 0 : index
    %c0_25 = arith.constant 0 : index
    %37 = vector.load %arg2[%c7, %c0_24, %c0_25] : memref<9x8x3xbf16, #tpu.memory_space<vmem>>, vector<1x8x3xbf16>
    %38 = vector.shape_cast %37 : vector<1x8x3xbf16> to vector<8x3xbf16>
    %cst_26 = arith.constant dense<0.000000e+00> : vector<8x1280xf32>
    %39 = tpu.matmul %38, %1, %cst_26 {dimension_numbers = #tpu.dot_dimension_numbers<[1], [0], [0], [1], [0, 0, 1, 1], [], []>} : vector<8x3xbf16>, vector<3x1280xbf16>, vector<8x1280xf32> -> vector<8x1280xf32>
    %c1246_i32 = arith.constant 1246 : i32
    %40 = tpu.dynamic_rotate %39 by %c1246_i32 dim 1 : vector<8x1280xf32>, i32 -> vector<8x1280xf32>
    %41 = arith.addf %36, %40 : vector<8x1280xf32>
    %c8 = arith.constant 8 : index
    %c0_27 = arith.constant 0 : index
    %c0_28 = arith.constant 0 : index
    %42 = vector.load %arg2[%c8, %c0_27, %c0_28] : memref<9x8x3xbf16, #tpu.memory_space<vmem>>, vector<1x8x3xbf16>
    %43 = vector.shape_cast %42 : vector<1x8x3xbf16> to vector<8x3xbf16>
    %cst_29 = arith.constant dense<0.000000e+00> : vector<8x1280xf32>
    %44 = tpu.matmul %43, %1, %cst_29 {dimension_numbers = #tpu.dot_dimension_numbers<[1], [0], [0], [1], [0, 0, 1, 1], [], []>} : vector<8x3xbf16>, vector<3x1280xbf16>, vector<8x1280xf32> -> vector<8x1280xf32>
    %c1245_i32 = arith.constant 1245 : i32
    %45 = tpu.dynamic_rotate %44 by %c1245_i32 dim 1 : vector<8x1280xf32>, i32 -> vector<8x1280xf32>
    %46 = arith.addf %41, %45 : vector<8x1280xf32>
    %c0_30 = arith.constant 0 : index
    %c0_31 = arith.constant 0 : index
    %47 = vector.load %arg3[%c0_30, %c0_31] : memref<8x1xf32, #tpu.memory_space<vmem>>, vector<8x1xf32>
    %48 = vector.broadcast %47 : vector<8x1xf32> to vector<8x1280xf32>
    %49 = arith.addf %46, %48 : vector<8x1280xf32>
    %c0_32 = arith.constant 0 : index
    %c0_33 = arith.constant 0 : index
    %50 = vector.load %arg4[%c0_32, %c0_33] : memref<1x1280xf32, #tpu.memory_space<vmem>>, vector<1x1280xf32>
    %c0_34 = arith.constant 0 : index
    %c0_35 = arith.constant 0 : index
    %c0_36 = arith.constant 0 : index
    %51 = vector.load %arg5[%c0_34, %c0_35, %c0_36] : memref<1x8x1280xf32, #tpu.memory_space<vmem>>, vector<1x8x1280xf32>
    %52 = vector.shape_cast %51 : vector<1x8x1280xf32> to vector<8x1280xf32>
    %53 = vector.shape_cast %49 : vector<8x1280xf32> to vector<1x8x1280xf32>
    tpu.vector_store %arg5[%c0_34, %c0_35, %c0_36], %53 {strides = array<i32>} : memref<1x8x1280xf32, #tpu.memory_space<vmem>>, vector<1x8x1280xf32>,
    %54 = vector.broadcast %50 : vector<1x1280xf32> to vector<8x1280xf32>
    %55 = arith.mulf %49, %54 : vector<8x1280xf32>
    %cst_37 = arith.constant dense<0.000000e+00> : vector<8xf32>
    %56 = vector.multi_reduction <add>, %55, %cst_37 [1] : vector<8x1280xf32> to vector<8xf32>
    %57 = vector.shape_cast %56 : vector<8xf32> to vector<8x1xf32>
    %c0_38 = arith.constant 0 : index
    %c0_39 = arith.constant 0 : index
    %c0_40 = arith.constant 0 : index
    %58 = vector.load %arg6[%c0_38, %c0_39, %c0_40] : memref<1x8x1xf32, #tpu.memory_space<vmem>>, vector<1x8x1xf32>
    %59 = vector.shape_cast %58 : vector<1x8x1xf32> to vector<8x1xf32>
    %60 = vector.shape_cast %57 : vector<8x1xf32> to vector<1x8x1xf32>
    tpu.vector_store %arg6[%c0_38, %c0_39, %c0_40], %60 {strides = array<i32>} : memref<1x8x1xf32, #tpu.memory_space<vmem>>, vector<1x8x1xf32>,
    %61 = arith.mulf %55, %49 : vector<8x1280xf32>
    %cst_41 = arith.constant dense<0.000000e+00> : vector<8xf32>
    %62 = vector.multi_reduction <add>, %61, %cst_41 [1] : vector<8x1280xf32> to vector<8xf32>
    %63 = vector.shape_cast %62 : vector<8xf32> to vector<8x1xf32>
    %c0_42 = arith.constant 0 : index
    %c0_43 = arith.constant 0 : index
    %c0_44 = arith.constant 0 : index
    %64 = vector.load %arg7[%c0_42, %c0_43, %c0_44] : memref<1x8x1xf32, #tpu.memory_space<vmem>>, vector<1x8x1xf32>
    %65 = vector.shape_cast %64 : vector<1x8x1xf32> to vector<8x1xf32>
    %66 = vector.shape_cast %63 : vector<8x1xf32> to vector<1x8x1xf32>
    tpu.vector_store %arg7[%c0_42, %c0_43, %c0_44], %66 {strides = array<i32>} : memref<1x8x1xf32, #tpu.memory_space<vmem>>, vector<1x8x1xf32>,
    return
  }
  func.func @transform_0(%arg0: i32) -> (i32, i32, i32) {
    %c0_i32 = arith.constant 0 : i32
    %c0_i32_0 = arith.constant 0 : i32
    %c0_i32_1 = arith.constant 0 : i32
    return %arg0, %c0_i32, %c0_i32_0 : i32, i32, i32
  }
  func.func @transform_1(%arg0: i32) -> (i32, i32, i32) {
    %c0_i32 = arith.constant 0 : i32
    %c0_i32_0 = arith.constant 0 : i32
    %c0_i32_1 = arith.constant 0 : i32
    %c0_i32_2 = arith.constant 0 : i32
    return %c0_i32, %c0_i32_0, %c0_i32_1 : i32, i32, i32
  }
  func.func @transform_2(%arg0: i32) -> (i32, i32) {
    %c0_i32 = arith.constant 0 : i32
    %c0_i32_0 = arith.constant 0 : i32
    %c0_i32_1 = arith.constant 0 : i32
    return %c0_i32, %c0_i32_0 : i32, i32
  }
  func.func @transform_3(%arg0: i32) -> (i32, i32) {
    %c0_i32 = arith.constant 0 : i32
    %c0_i32_0 = arith.constant 0 : i32
    %c0_i32_1 = arith.constant 0 : i32
    return %c0_i32, %c0_i32_0 : i32, i32
  }
  func.func @transform_4(%arg0: i32) -> (i32, i32, i32) {
    %c0_i32 = arith.constant 0 : i32
    %c0_i32_0 = arith.constant 0 : i32
    %c0_i32_1 = arith.constant 0 : i32
    return %arg0, %c0_i32, %c0_i32_0 : i32, i32, i32
  }
  func.func @transform_5(%arg0: i32) -> (i32, i32, i32) {
    %c0_i32 = arith.constant 0 : i32
    %c0_i32_0 = arith.constant 0 : i32
    %c0_i32_1 = arith.constant 0 : i32
    return %arg0, %c0_i32, %c0_i32_0 : i32, i32, i32
  }
  func.func @transform_6(%arg0: i32) -> (i32, i32, i32) {
    %c0_i32 = arith.constant 0 : i32
    %c0_i32_0 = arith.constant 0 : i32
    %c0_i32_1 = arith.constant 0 : i32
    return %arg0, %c0_i32, %c0_i32_0 : i32, i32, i32
  }
}

module attributes {stable_mosaic.version = 11 : i64} {
  func.func @bn_relu_kernel(%arg0: i32, %arg1: memref<1x8x1280xf32, #tpu.memory_space<vmem>>, %arg2: memref<8x1xf32, #tpu.memory_space<vmem>>, %arg3: memref<8x1xf32, #tpu.memory_space<vmem>>, %arg4: memref<1x1280xf32, #tpu.memory_space<vmem>>, %arg5: memref<1x8x1280xbf16, #tpu.memory_space<vmem>>) attributes {dimension_semantics = [#tpu.dimension_semantics<parallel>], iteration_bounds = array<i64: 2>, scalar_prefetch = 0 : i64, scratch_operands = 0 : i64, tpu.core_type = #tpu.core_type<tc>, window_params = [{transform_indices = @transform_0, window_bounds = array<i64: 1, 8, 1280>}, {pipeline_mode = #tpu.pipeline_mode<synchronous>, transform_indices = @transform_1, window_bounds = array<i64: 8, 1>}, {pipeline_mode = #tpu.pipeline_mode<synchronous>, transform_indices = @transform_2, window_bounds = array<i64: 8, 1>}, {pipeline_mode = #tpu.pipeline_mode<synchronous>, transform_indices = @transform_3, window_bounds = array<i64: 1, 1280>}, {transform_indices = @transform_4, window_bounds = array<i64: 1, 8, 1280>}]} {
    %c0 = arith.constant 0 : index
    %c0_0 = arith.constant 0 : index
    %c0_1 = arith.constant 0 : index
    %0 = vector.load %arg1[%c0, %c0_0, %c0_1] : memref<1x8x1280xf32, #tpu.memory_space<vmem>>, vector<1x8x1280xf32>
    %1 = vector.shape_cast %0 : vector<1x8x1280xf32> to vector<8x1280xf32>
    %c0_2 = arith.constant 0 : index
    %c0_3 = arith.constant 0 : index
    %2 = vector.load %arg2[%c0_2, %c0_3] : memref<8x1xf32, #tpu.memory_space<vmem>>, vector<8x1xf32>
    %3 = vector.broadcast %2 : vector<8x1xf32> to vector<8x1280xf32>
    %4 = arith.mulf %1, %3 : vector<8x1280xf32>
    %c0_4 = arith.constant 0 : index
    %c0_5 = arith.constant 0 : index
    %5 = vector.load %arg3[%c0_4, %c0_5] : memref<8x1xf32, #tpu.memory_space<vmem>>, vector<8x1xf32>
    %6 = vector.broadcast %5 : vector<8x1xf32> to vector<8x1280xf32>
    %7 = arith.addf %4, %6 : vector<8x1280xf32>
    %cst = arith.constant 0.000000e+00 : f32
    %8 = vector.broadcast %cst : f32 to vector<8x1280xf32>
    %9 = arith.maximumf %7, %8 : vector<8x1280xf32>
    %c0_6 = arith.constant 0 : index
    %c0_7 = arith.constant 0 : index
    %10 = vector.load %arg4[%c0_6, %c0_7] : memref<1x1280xf32, #tpu.memory_space<vmem>>, vector<1x1280xf32>
    %11 = vector.broadcast %10 : vector<1x1280xf32> to vector<8x1280xf32>
    %12 = arith.mulf %9, %11 : vector<8x1280xf32>
    %13 = arith.truncf %12 : vector<8x1280xf32> to vector<8x1280xbf16>
    %c0_8 = arith.constant 0 : index
    %c0_9 = arith.constant 0 : index
    %c0_10 = arith.constant 0 : index
    %14 = vector.load %arg5[%c0_8, %c0_9, %c0_10] : memref<1x8x1280xbf16, #tpu.memory_space<vmem>>, vector<1x8x1280xbf16>
    %15 = vector.shape_cast %14 : vector<1x8x1280xbf16> to vector<8x1280xbf16>
    %16 = vector.shape_cast %13 : vector<8x1280xbf16> to vector<1x8x1280xbf16>
    tpu.vector_store %arg5[%c0_8, %c0_9, %c0_10], %16 {strides = array<i32>} : memref<1x8x1280xbf16, #tpu.memory_space<vmem>>, vector<1x8x1280xbf16>,
    return
  }
  func.func @transform_0(%arg0: i32) -> (i32, i32, i32) {
    %c0_i32 = arith.constant 0 : i32
    %c0_i32_0 = arith.constant 0 : i32
    %c0_i32_1 = arith.constant 0 : i32
    return %arg0, %c0_i32, %c0_i32_0 : i32, i32, i32
  }
  func.func @transform_1(%arg0: i32) -> (i32, i32) {
    %c0_i32 = arith.constant 0 : i32
    %c0_i32_0 = arith.constant 0 : i32
    %c0_i32_1 = arith.constant 0 : i32
    return %c0_i32, %c0_i32_0 : i32, i32
  }
  func.func @transform_2(%arg0: i32) -> (i32, i32) {
    %c0_i32 = arith.constant 0 : i32
    %c0_i32_0 = arith.constant 0 : i32
    %c0_i32_1 = arith.constant 0 : i32
    return %c0_i32, %c0_i32_0 : i32, i32
  }
  func.func @transform_3(%arg0: i32) -> (i32, i32) {
    %c0_i32 = arith.constant 0 : i32
    %c0_i32_0 = arith.constant 0 : i32
    %c0_i32_1 = arith.constant 0 : i32
    return %c0_i32, %c0_i32_0 : i32, i32
  }
  func.func @transform_4(%arg0: i32) -> (i32, i32, i32) {
    %c0_i32 = arith.constant 0 : i32
    %c0_i32_0 = arith.constant 0 : i32
    %c0_i32_1 = arith.constant 0 : i32
    return %arg0, %c0_i32, %c0_i32_0 : i32, i32, i32
  }
}

module attributes {stable_mosaic.version = 11 : i64} {
  func.func @conv3x3_stats_kernel(%arg0: i32, %arg1: memref<1x8x384xbf16, #tpu.memory_space<vmem>>, %arg2: memref<9x8x8xbf16, #tpu.memory_space<vmem>>, %arg3: memref<8x1xf32, #tpu.memory_space<vmem>>, %arg4: memref<1x384xf32, #tpu.memory_space<vmem>>, %arg5: memref<1x8x384xf32, #tpu.memory_space<vmem>>, %arg6: memref<1x8x1xf32, #tpu.memory_space<vmem>>, %arg7: memref<1x8x1xf32, #tpu.memory_space<vmem>>) attributes {dimension_semantics = [#tpu.dimension_semantics<parallel>], iteration_bounds = array<i64: 2>, scalar_prefetch = 0 : i64, scratch_operands = 0 : i64, tpu.core_type = #tpu.core_type<tc>, window_params = [{transform_indices = @transform_0, window_bounds = array<i64: 1, 8, 384>}, {pipeline_mode = #tpu.pipeline_mode<synchronous>, transform_indices = @transform_1, window_bounds = array<i64: 9, 8, 8>}, {pipeline_mode = #tpu.pipeline_mode<synchronous>, transform_indices = @transform_2, window_bounds = array<i64: 8, 1>}, {pipeline_mode = #tpu.pipeline_mode<synchronous>, transform_indices = @transform_3, window_bounds = array<i64: 1, 384>}, {transform_indices = @transform_4, window_bounds = array<i64: 1, 8, 384>}, {transform_indices = @transform_5, window_bounds = array<i64: 1, 8, 1>}, {transform_indices = @transform_6, window_bounds = array<i64: 1, 8, 1>}]} {
    %c0 = arith.constant 0 : index
    %c0_0 = arith.constant 0 : index
    %c0_1 = arith.constant 0 : index
    %0 = vector.load %arg1[%c0, %c0_0, %c0_1] : memref<1x8x384xbf16, #tpu.memory_space<vmem>>, vector<1x8x384xbf16>
    %1 = vector.shape_cast %0 : vector<1x8x384xbf16> to vector<8x384xbf16>
    %cst = arith.constant 0.000000e+00 : f32
    %2 = vector.broadcast %cst : f32 to vector<8x384xf32>
    %c0_2 = arith.constant 0 : index
    %c0_3 = arith.constant 0 : index
    %c0_4 = arith.constant 0 : index
    %3 = vector.load %arg2[%c0_2, %c0_3, %c0_4] : memref<9x8x8xbf16, #tpu.memory_space<vmem>>, vector<1x8x8xbf16>
    %4 = vector.shape_cast %3 : vector<1x8x8xbf16> to vector<8x8xbf16>
    %cst_5 = arith.constant dense<0.000000e+00> : vector<8x384xf32>
    %5 = tpu.matmul %4, %1, %cst_5 {dimension_numbers = #tpu.dot_dimension_numbers<[1], [0], [0], [1], [0, 0, 1, 1], [], []>} : vector<8x8xbf16>, vector<8x384xbf16>, vector<8x384xf32> -> vector<8x384xf32>
    %c19_i32 = arith.constant 19 : i32
    %6 = tpu.dynamic_rotate %5 by %c19_i32 dim 1 : vector<8x384xf32>, i32 -> vector<8x384xf32>
    %7 = arith.addf %2, %6 : vector<8x384xf32>
    %c1 = arith.constant 1 : index
    %c0_6 = arith.constant 0 : index
    %c0_7 = arith.constant 0 : index
    %8 = vector.load %arg2[%c1, %c0_6, %c0_7] : memref<9x8x8xbf16, #tpu.memory_space<vmem>>, vector<1x8x8xbf16>
    %9 = vector.shape_cast %8 : vector<1x8x8xbf16> to vector<8x8xbf16>
    %cst_8 = arith.constant dense<0.000000e+00> : vector<8x384xf32>
    %10 = tpu.matmul %9, %1, %cst_8 {dimension_numbers = #tpu.dot_dimension_numbers<[1], [0], [0], [1], [0, 0, 1, 1], [], []>} : vector<8x8xbf16>, vector<8x384xbf16>, vector<8x384xf32> -> vector<8x384xf32>
    %c18_i32 = arith.constant 18 : i32
    %11 = tpu.dynamic_rotate %10 by %c18_i32 dim 1 : vector<8x384xf32>, i32 -> vector<8x384xf32>
    %12 = arith.addf %7, %11 : vector<8x384xf32>
    %c2 = arith.constant 2 : index
    %c0_9 = arith.constant 0 : index
    %c0_10 = arith.constant 0 : index
    %13 = vector.load %arg2[%c2, %c0_9, %c0_10] : memref<9x8x8xbf16, #tpu.memory_space<vmem>>, vector<1x8x8xbf16>
    %14 = vector.shape_cast %13 : vector<1x8x8xbf16> to vector<8x8xbf16>
    %cst_11 = arith.constant dense<0.000000e+00> : vector<8x384xf32>
    %15 = tpu.matmul %14, %1, %cst_11 {dimension_numbers = #tpu.dot_dimension_numbers<[1], [0], [0], [1], [0, 0, 1, 1], [], []>} : vector<8x8xbf16>, vector<8x384xbf16>, vector<8x384xf32> -> vector<8x384xf32>
    %c17_i32 = arith.constant 17 : i32
    %16 = tpu.dynamic_rotate %15 by %c17_i32 dim 1 : vector<8x384xf32>, i32 -> vector<8x384xf32>
    %17 = arith.addf %12, %16 : vector<8x384xf32>
    %c3 = arith.constant 3 : index
    %c0_12 = arith.constant 0 : index
    %c0_13 = arith.constant 0 : index
    %18 = vector.load %arg2[%c3, %c0_12, %c0_13] : memref<9x8x8xbf16, #tpu.memory_space<vmem>>, vector<1x8x8xbf16>
    %19 = vector.shape_cast %18 : vector<1x8x8xbf16> to vector<8x8xbf16>
    %cst_14 = arith.constant dense<0.000000e+00> : vector<8x384xf32>
    %20 = tpu.matmul %19, %1, %cst_14 {dimension_numbers = #tpu.dot_dimension_numbers<[1], [0], [0], [1], [0, 0, 1, 1], [], []>} : vector<8x8xbf16>, vector<8x384xbf16>, vector<8x384xf32> -> vector<8x384xf32>
    %c1_i32 = arith.constant 1 : i32
    %21 = tpu.dynamic_rotate %20 by %c1_i32 dim 1 : vector<8x384xf32>, i32 -> vector<8x384xf32>
    %22 = arith.addf %17, %21 : vector<8x384xf32>
    %c4 = arith.constant 4 : index
    %c0_15 = arith.constant 0 : index
    %c0_16 = arith.constant 0 : index
    %23 = vector.load %arg2[%c4, %c0_15, %c0_16] : memref<9x8x8xbf16, #tpu.memory_space<vmem>>, vector<1x8x8xbf16>
    %24 = vector.shape_cast %23 : vector<1x8x8xbf16> to vector<8x8xbf16>
    %cst_17 = arith.constant dense<0.000000e+00> : vector<8x384xf32>
    %25 = tpu.matmul %24, %1, %cst_17 {dimension_numbers = #tpu.dot_dimension_numbers<[1], [0], [0], [1], [0, 0, 1, 1], [], []>} : vector<8x8xbf16>, vector<8x384xbf16>, vector<8x384xf32> -> vector<8x384xf32>
    %26 = arith.addf %22, %25 : vector<8x384xf32>
    %c5 = arith.constant 5 : index
    %c0_18 = arith.constant 0 : index
    %c0_19 = arith.constant 0 : index
    %27 = vector.load %arg2[%c5, %c0_18, %c0_19] : memref<9x8x8xbf16, #tpu.memory_space<vmem>>, vector<1x8x8xbf16>
    %28 = vector.shape_cast %27 : vector<1x8x8xbf16> to vector<8x8xbf16>
    %cst_20 = arith.constant dense<0.000000e+00> : vector<8x384xf32>
    %29 = tpu.matmul %28, %1, %cst_20 {dimension_numbers = #tpu.dot_dimension_numbers<[1], [0], [0], [1], [0, 0, 1, 1], [], []>} : vector<8x8xbf16>, vector<8x384xbf16>, vector<8x384xf32> -> vector<8x384xf32>
    %c383_i32 = arith.constant 383 : i32
    %30 = tpu.dynamic_rotate %29 by %c383_i32 dim 1 : vector<8x384xf32>, i32 -> vector<8x384xf32>
    %31 = arith.addf %26, %30 : vector<8x384xf32>
    %c6 = arith.constant 6 : index
    %c0_21 = arith.constant 0 : index
    %c0_22 = arith.constant 0 : index
    %32 = vector.load %arg2[%c6, %c0_21, %c0_22] : memref<9x8x8xbf16, #tpu.memory_space<vmem>>, vector<1x8x8xbf16>
    %33 = vector.shape_cast %32 : vector<1x8x8xbf16> to vector<8x8xbf16>
    %cst_23 = arith.constant dense<0.000000e+00> : vector<8x384xf32>
    %34 = tpu.matmul %33, %1, %cst_23 {dimension_numbers = #tpu.dot_dimension_numbers<[1], [0], [0], [1], [0, 0, 1, 1], [], []>} : vector<8x8xbf16>, vector<8x384xbf16>, vector<8x384xf32> -> vector<8x384xf32>
    %c367_i32 = arith.constant 367 : i32
    %35 = tpu.dynamic_rotate %34 by %c367_i32 dim 1 : vector<8x384xf32>, i32 -> vector<8x384xf32>
    %36 = arith.addf %31, %35 : vector<8x384xf32>
    %c7 = arith.constant 7 : index
    %c0_24 = arith.constant 0 : index
    %c0_25 = arith.constant 0 : index
    %37 = vector.load %arg2[%c7, %c0_24, %c0_25] : memref<9x8x8xbf16, #tpu.memory_space<vmem>>, vector<1x8x8xbf16>
    %38 = vector.shape_cast %37 : vector<1x8x8xbf16> to vector<8x8xbf16>
    %cst_26 = arith.constant dense<0.000000e+00> : vector<8x384xf32>
    %39 = tpu.matmul %38, %1, %cst_26 {dimension_numbers = #tpu.dot_dimension_numbers<[1], [0], [0], [1], [0, 0, 1, 1], [], []>} : vector<8x8xbf16>, vector<8x384xbf16>, vector<8x384xf32> -> vector<8x384xf32>
    %c366_i32 = arith.constant 366 : i32
    %40 = tpu.dynamic_rotate %39 by %c366_i32 dim 1 : vector<8x384xf32>, i32 -> vector<8x384xf32>
    %41 = arith.addf %36, %40 : vector<8x384xf32>
    %c8 = arith.constant 8 : index
    %c0_27 = arith.constant 0 : index
    %c0_28 = arith.constant 0 : index
    %42 = vector.load %arg2[%c8, %c0_27, %c0_28] : memref<9x8x8xbf16, #tpu.memory_space<vmem>>, vector<1x8x8xbf16>
    %43 = vector.shape_cast %42 : vector<1x8x8xbf16> to vector<8x8xbf16>
    %cst_29 = arith.constant dense<0.000000e+00> : vector<8x384xf32>
    %44 = tpu.matmul %43, %1, %cst_29 {dimension_numbers = #tpu.dot_dimension_numbers<[1], [0], [0], [1], [0, 0, 1, 1], [], []>} : vector<8x8xbf16>, vector<8x384xbf16>, vector<8x384xf32> -> vector<8x384xf32>
    %c365_i32 = arith.constant 365 : i32
    %45 = tpu.dynamic_rotate %44 by %c365_i32 dim 1 : vector<8x384xf32>, i32 -> vector<8x384xf32>
    %46 = arith.addf %41, %45 : vector<8x384xf32>
    %c0_30 = arith.constant 0 : index
    %c0_31 = arith.constant 0 : index
    %47 = vector.load %arg3[%c0_30, %c0_31] : memref<8x1xf32, #tpu.memory_space<vmem>>, vector<8x1xf32>
    %48 = vector.broadcast %47 : vector<8x1xf32> to vector<8x384xf32>
    %49 = arith.addf %46, %48 : vector<8x384xf32>
    %c0_32 = arith.constant 0 : index
    %c0_33 = arith.constant 0 : index
    %50 = vector.load %arg4[%c0_32, %c0_33] : memref<1x384xf32, #tpu.memory_space<vmem>>, vector<1x384xf32>
    %c0_34 = arith.constant 0 : index
    %c0_35 = arith.constant 0 : index
    %c0_36 = arith.constant 0 : index
    %51 = vector.load %arg5[%c0_34, %c0_35, %c0_36] : memref<1x8x384xf32, #tpu.memory_space<vmem>>, vector<1x8x384xf32>
    %52 = vector.shape_cast %51 : vector<1x8x384xf32> to vector<8x384xf32>
    %53 = vector.shape_cast %49 : vector<8x384xf32> to vector<1x8x384xf32>
    tpu.vector_store %arg5[%c0_34, %c0_35, %c0_36], %53 {strides = array<i32>} : memref<1x8x384xf32, #tpu.memory_space<vmem>>, vector<1x8x384xf32>,
    %54 = vector.broadcast %50 : vector<1x384xf32> to vector<8x384xf32>
    %55 = arith.mulf %49, %54 : vector<8x384xf32>
    %cst_37 = arith.constant dense<0.000000e+00> : vector<8xf32>
    %56 = vector.multi_reduction <add>, %55, %cst_37 [1] : vector<8x384xf32> to vector<8xf32>
    %57 = vector.shape_cast %56 : vector<8xf32> to vector<8x1xf32>
    %c0_38 = arith.constant 0 : index
    %c0_39 = arith.constant 0 : index
    %c0_40 = arith.constant 0 : index
    %58 = vector.load %arg6[%c0_38, %c0_39, %c0_40] : memref<1x8x1xf32, #tpu.memory_space<vmem>>, vector<1x8x1xf32>
    %59 = vector.shape_cast %58 : vector<1x8x1xf32> to vector<8x1xf32>
    %60 = vector.shape_cast %57 : vector<8x1xf32> to vector<1x8x1xf32>
    tpu.vector_store %arg6[%c0_38, %c0_39, %c0_40], %60 {strides = array<i32>} : memref<1x8x1xf32, #tpu.memory_space<vmem>>, vector<1x8x1xf32>,
    %61 = arith.mulf %55, %49 : vector<8x384xf32>
    %cst_41 = arith.constant dense<0.000000e+00> : vector<8xf32>
    %62 = vector.multi_reduction <add>, %61, %cst_41 [1] : vector<8x384xf32> to vector<8xf32>
    %63 = vector.shape_cast %62 : vector<8xf32> to vector<8x1xf32>
    %c0_42 = arith.constant 0 : index
    %c0_43 = arith.constant 0 : index
    %c0_44 = arith.constant 0 : index
    %64 = vector.load %arg7[%c0_42, %c0_43, %c0_44] : memref<1x8x1xf32, #tpu.memory_space<vmem>>, vector<1x8x1xf32>
    %65 = vector.shape_cast %64 : vector<1x8x1xf32> to vector<8x1xf32>
    %66 = vector.shape_cast %63 : vector<8x1xf32> to vector<1x8x1xf32>
    tpu.vector_store %arg7[%c0_42, %c0_43, %c0_44], %66 {strides = array<i32>} : memref<1x8x1xf32, #tpu.memory_space<vmem>>, vector<1x8x1xf32>,
    return
  }
  func.func @transform_0(%arg0: i32) -> (i32, i32, i32) {
    %c0_i32 = arith.constant 0 : i32
    %c0_i32_0 = arith.constant 0 : i32
    %c0_i32_1 = arith.constant 0 : i32
    return %arg0, %c0_i32, %c0_i32_0 : i32, i32, i32
  }
  func.func @transform_1(%arg0: i32) -> (i32, i32, i32) {
    %c0_i32 = arith.constant 0 : i32
    %c0_i32_0 = arith.constant 0 : i32
    %c0_i32_1 = arith.constant 0 : i32
    %c0_i32_2 = arith.constant 0 : i32
    return %c0_i32, %c0_i32_0, %c0_i32_1 : i32, i32, i32
  }
  func.func @transform_2(%arg0: i32) -> (i32, i32) {
    %c0_i32 = arith.constant 0 : i32
    %c0_i32_0 = arith.constant 0 : i32
    %c0_i32_1 = arith.constant 0 : i32
    return %c0_i32, %c0_i32_0 : i32, i32
  }
  func.func @transform_3(%arg0: i32) -> (i32, i32) {
    %c0_i32 = arith.constant 0 : i32
    %c0_i32_0 = arith.constant 0 : i32
    %c0_i32_1 = arith.constant 0 : i32
    return %c0_i32, %c0_i32_0 : i32, i32
  }
  func.func @transform_4(%arg0: i32) -> (i32, i32, i32) {
    %c0_i32 = arith.constant 0 : i32
    %c0_i32_0 = arith.constant 0 : i32
    %c0_i32_1 = arith.constant 0 : i32
    return %arg0, %c0_i32, %c0_i32_0 : i32, i32, i32
  }
  func.func @transform_5(%arg0: i32) -> (i32, i32, i32) {
    %c0_i32 = arith.constant 0 : i32
    %c0_i32_0 = arith.constant 0 : i32
    %c0_i32_1 = arith.constant 0 : i32
    return %arg0, %c0_i32, %c0_i32_0 : i32, i32, i32
  }
  func.func @transform_6(%arg0: i32) -> (i32, i32, i32) {
    %c0_i32 = arith.constant 0 : i32
    %c0_i32_0 = arith.constant 0 : i32
    %c0_i32_1 = arith.constant 0 : i32
    return %arg0, %c0_i32, %c0_i32_0 : i32, i32, i32
  }
}

module attributes {stable_mosaic.version = 11 : i64} {
  func.func @bn_relu_res_kernel(%arg0: i32, %arg1: memref<1x8x384xf32, #tpu.memory_space<vmem>>, %arg2: memref<8x1xf32, #tpu.memory_space<vmem>>, %arg3: memref<8x1xf32, #tpu.memory_space<vmem>>, %arg4: memref<1x8x384xbf16, #tpu.memory_space<vmem>>, %arg5: memref<1x384xf32, #tpu.memory_space<vmem>>, %arg6: memref<1x8x384xbf16, #tpu.memory_space<vmem>>) attributes {dimension_semantics = [#tpu.dimension_semantics<parallel>], iteration_bounds = array<i64: 2>, scalar_prefetch = 0 : i64, scratch_operands = 0 : i64, tpu.core_type = #tpu.core_type<tc>, window_params = [{transform_indices = @transform_0, window_bounds = array<i64: 1, 8, 384>}, {pipeline_mode = #tpu.pipeline_mode<synchronous>, transform_indices = @transform_1, window_bounds = array<i64: 8, 1>}, {pipeline_mode = #tpu.pipeline_mode<synchronous>, transform_indices = @transform_2, window_bounds = array<i64: 8, 1>}, {transform_indices = @transform_3, window_bounds = array<i64: 1, 8, 384>}, {pipeline_mode = #tpu.pipeline_mode<synchronous>, transform_indices = @transform_4, window_bounds = array<i64: 1, 384>}, {transform_indices = @transform_5, window_bounds = array<i64: 1, 8, 384>}]} {
    %c0 = arith.constant 0 : index
    %c0_0 = arith.constant 0 : index
    %c0_1 = arith.constant 0 : index
    %0 = vector.load %arg1[%c0, %c0_0, %c0_1] : memref<1x8x384xf32, #tpu.memory_space<vmem>>, vector<1x8x384xf32>
    %1 = vector.shape_cast %0 : vector<1x8x384xf32> to vector<8x384xf32>
    %c0_2 = arith.constant 0 : index
    %c0_3 = arith.constant 0 : index
    %2 = vector.load %arg2[%c0_2, %c0_3] : memref<8x1xf32, #tpu.memory_space<vmem>>, vector<8x1xf32>
    %3 = vector.broadcast %2 : vector<8x1xf32> to vector<8x384xf32>
    %4 = arith.mulf %1, %3 : vector<8x384xf32>
    %c0_4 = arith.constant 0 : index
    %c0_5 = arith.constant 0 : index
    %5 = vector.load %arg3[%c0_4, %c0_5] : memref<8x1xf32, #tpu.memory_space<vmem>>, vector<8x1xf32>
    %6 = vector.broadcast %5 : vector<8x1xf32> to vector<8x384xf32>
    %7 = arith.addf %4, %6 : vector<8x384xf32>
    %cst = arith.constant 0.000000e+00 : f32
    %8 = vector.broadcast %cst : f32 to vector<8x384xf32>
    %9 = arith.maximumf %7, %8 : vector<8x384xf32>
    %c0_6 = arith.constant 0 : index
    %c0_7 = arith.constant 0 : index
    %c0_8 = arith.constant 0 : index
    %10 = vector.load %arg4[%c0_6, %c0_7, %c0_8] : memref<1x8x384xbf16, #tpu.memory_space<vmem>>, vector<1x8x384xbf16>
    %11 = vector.shape_cast %10 : vector<1x8x384xbf16> to vector<8x384xbf16>
    %12 = arith.extf %11 : vector<8x384xbf16> to vector<8x384xf32>
    %13 = arith.addf %9, %12 : vector<8x384xf32>
    %c0_9 = arith.constant 0 : index
    %c0_10 = arith.constant 0 : index
    %14 = vector.load %arg5[%c0_9, %c0_10] : memref<1x384xf32, #tpu.memory_space<vmem>>, vector<1x384xf32>
    %15 = vector.broadcast %14 : vector<1x384xf32> to vector<8x384xf32>
    %16 = arith.mulf %13, %15 : vector<8x384xf32>
    %17 = arith.truncf %16 : vector<8x384xf32> to vector<8x384xbf16>
    %c0_11 = arith.constant 0 : index
    %c0_12 = arith.constant 0 : index
    %c0_13 = arith.constant 0 : index
    %18 = vector.load %arg6[%c0_11, %c0_12, %c0_13] : memref<1x8x384xbf16, #tpu.memory_space<vmem>>, vector<1x8x384xbf16>
    %19 = vector.shape_cast %18 : vector<1x8x384xbf16> to vector<8x384xbf16>
    %20 = vector.shape_cast %17 : vector<8x384xbf16> to vector<1x8x384xbf16>
    tpu.vector_store %arg6[%c0_11, %c0_12, %c0_13], %20 {strides = array<i32>} : memref<1x8x384xbf16, #tpu.memory_space<vmem>>, vector<1x8x384xbf16>,
    return
  }
  func.func @transform_0(%arg0: i32) -> (i32, i32, i32) {
    %c0_i32 = arith.constant 0 : i32
    %c0_i32_0 = arith.constant 0 : i32
    %c0_i32_1 = arith.constant 0 : i32
    return %arg0, %c0_i32, %c0_i32_0 : i32, i32, i32
  }
  func.func @transform_1(%arg0: i32) -> (i32, i32) {
    %c0_i32 = arith.constant 0 : i32
    %c0_i32_0 = arith.constant 0 : i32
    %c0_i32_1 = arith.constant 0 : i32
    return %c0_i32, %c0_i32_0 : i32, i32
  }
  func.func @transform_2(%arg0: i32) -> (i32, i32) {
    %c0_i32 = arith.constant 0 : i32
    %c0_i32_0 = arith.constant 0 : i32
    %c0_i32_1 = arith.constant 0 : i32
    return %c0_i32, %c0_i32_0 : i32, i32
  }
  func.func @transform_3(%arg0: i32) -> (i32, i32, i32) {
    %c0_i32 = arith.constant 0 : i32
    %c0_i32_0 = arith.constant 0 : i32
    %c0_i32_1 = arith.constant 0 : i32
    return %arg0, %c0_i32, %c0_i32_0 : i32, i32, i32
  }
  func.func @transform_4(%arg0: i32) -> (i32, i32) {
    %c0_i32 = arith.constant 0 : i32
    %c0_i32_0 = arith.constant 0 : i32
    %c0_i32_1 = arith.constant 0 : i32
    return %c0_i32, %c0_i32_0 : i32, i32
  }
  func.func @transform_5(%arg0: i32) -> (i32, i32, i32) {
    %c0_i32 = arith.constant 0 : i32
    %c0_i32_0 = arith.constant 0 : i32
    %c0_i32_1 = arith.constant 0 : i32
    return %arg0, %c0_i32, %c0_i32_0 : i32, i32, i32
  }
}

module attributes {stable_mosaic.version = 11 : i64} {
  func.func @conv3x3_fused_bn_kernel(%arg0: i32, %arg1: memref<1x8x384xf32, #tpu.memory_space<vmem>>, %arg2: memref<8x1xf32, #tpu.memory_space<vmem>>, %arg3: memref<8x1xf32, #tpu.memory_space<vmem>>, %arg4: memref<9x8x8xbf16, #tpu.memory_space<vmem>>, %arg5: memref<8x1xf32, #tpu.memory_space<vmem>>, %arg6: memref<1x384xf32, #tpu.memory_space<vmem>>, %arg7: memref<1x8x384xf32, #tpu.memory_space<vmem>>, %arg8: memref<1x8x1xf32, #tpu.memory_space<vmem>>, %arg9: memref<1x8x1xf32, #tpu.memory_space<vmem>>) attributes {dimension_semantics = [#tpu.dimension_semantics<parallel>], iteration_bounds = array<i64: 2>, scalar_prefetch = 0 : i64, scratch_operands = 0 : i64, tpu.core_type = #tpu.core_type<tc>, window_params = [{transform_indices = @transform_0, window_bounds = array<i64: 1, 8, 384>}, {pipeline_mode = #tpu.pipeline_mode<synchronous>, transform_indices = @transform_1, window_bounds = array<i64: 8, 1>}, {pipeline_mode = #tpu.pipeline_mode<synchronous>, transform_indices = @transform_2, window_bounds = array<i64: 8, 1>}, {pipeline_mode = #tpu.pipeline_mode<synchronous>, transform_indices = @transform_3, window_bounds = array<i64: 9, 8, 8>}, {pipeline_mode = #tpu.pipeline_mode<synchronous>, transform_indices = @transform_4, window_bounds = array<i64: 8, 1>}, {pipeline_mode = #tpu.pipeline_mode<synchronous>, transform_indices = @transform_5, window_bounds = array<i64: 1, 384>}, {transform_indices = @transform_6, window_bounds = array<i64: 1, 8, 384>}, {transform_indices = @transform_7, window_bounds = array<i64: 1, 8, 1>}, {transform_indices = @transform_8, window_bounds = array<i64: 1, 8, 1>}]} {
    %c0 = arith.constant 0 : index
    %c0_0 = arith.constant 0 : index
    %c0_1 = arith.constant 0 : index
    %0 = vector.load %arg1[%c0, %c0_0, %c0_1] : memref<1x8x384xf32, #tpu.memory_space<vmem>>, vector<1x8x384xf32>
    %1 = vector.shape_cast %0 : vector<1x8x384xf32> to vector<8x384xf32>
    %c0_2 = arith.constant 0 : index
    %c0_3 = arith.constant 0 : index
    %2 = vector.load %arg2[%c0_2, %c0_3] : memref<8x1xf32, #tpu.memory_space<vmem>>, vector<8x1xf32>
    %3 = vector.broadcast %2 : vector<8x1xf32> to vector<8x384xf32>
    %4 = arith.mulf %1, %3 : vector<8x384xf32>
    %c0_4 = arith.constant 0 : index
    %c0_5 = arith.constant 0 : index
    %5 = vector.load %arg3[%c0_4, %c0_5] : memref<8x1xf32, #tpu.memory_space<vmem>>, vector<8x1xf32>
    %6 = vector.broadcast %5 : vector<8x1xf32> to vector<8x384xf32>
    %7 = arith.addf %4, %6 : vector<8x384xf32>
    %cst = arith.constant 0.000000e+00 : f32
    %8 = vector.broadcast %cst : f32 to vector<8x384xf32>
    %9 = arith.maximumf %7, %8 : vector<8x384xf32>
    %c0_6 = arith.constant 0 : index
    %c0_7 = arith.constant 0 : index
    %10 = vector.load %arg6[%c0_6, %c0_7] : memref<1x384xf32, #tpu.memory_space<vmem>>, vector<1x384xf32>
    %11 = vector.broadcast %10 : vector<1x384xf32> to vector<8x384xf32>
    %12 = arith.mulf %9, %11 : vector<8x384xf32>
    %13 = arith.truncf %12 : vector<8x384xf32> to vector<8x384xbf16>
    %cst_8 = arith.constant 0.000000e+00 : f32
    %14 = vector.broadcast %cst_8 : f32 to vector<8x384xf32>
    %c0_9 = arith.constant 0 : index
    %c0_10 = arith.constant 0 : index
    %c0_11 = arith.constant 0 : index
    %15 = vector.load %arg4[%c0_9, %c0_10, %c0_11] : memref<9x8x8xbf16, #tpu.memory_space<vmem>>, vector<1x8x8xbf16>
    %16 = vector.shape_cast %15 : vector<1x8x8xbf16> to vector<8x8xbf16>
    %cst_12 = arith.constant dense<0.000000e+00> : vector<8x384xf32>
    %17 = tpu.matmul %16, %13, %cst_12 {dimension_numbers = #tpu.dot_dimension_numbers<[1], [0], [0], [1], [0, 0, 1, 1], [], []>} : vector<8x8xbf16>, vector<8x384xbf16>, vector<8x384xf32> -> vector<8x384xf32>
    %c19_i32 = arith.constant 19 : i32
    %18 = tpu.dynamic_rotate %17 by %c19_i32 dim 1 : vector<8x384xf32>, i32 -> vector<8x384xf32>
    %19 = arith.addf %14, %18 : vector<8x384xf32>
    %c1 = arith.constant 1 : index
    %c0_13 = arith.constant 0 : index
    %c0_14 = arith.constant 0 : index
    %20 = vector.load %arg4[%c1, %c0_13, %c0_14] : memref<9x8x8xbf16, #tpu.memory_space<vmem>>, vector<1x8x8xbf16>
    %21 = vector.shape_cast %20 : vector<1x8x8xbf16> to vector<8x8xbf16>
    %cst_15 = arith.constant dense<0.000000e+00> : vector<8x384xf32>
    %22 = tpu.matmul %21, %13, %cst_15 {dimension_numbers = #tpu.dot_dimension_numbers<[1], [0], [0], [1], [0, 0, 1, 1], [], []>} : vector<8x8xbf16>, vector<8x384xbf16>, vector<8x384xf32> -> vector<8x384xf32>
    %c18_i32 = arith.constant 18 : i32
    %23 = tpu.dynamic_rotate %22 by %c18_i32 dim 1 : vector<8x384xf32>, i32 -> vector<8x384xf32>
    %24 = arith.addf %19, %23 : vector<8x384xf32>
    %c2 = arith.constant 2 : index
    %c0_16 = arith.constant 0 : index
    %c0_17 = arith.constant 0 : index
    %25 = vector.load %arg4[%c2, %c0_16, %c0_17] : memref<9x8x8xbf16, #tpu.memory_space<vmem>>, vector<1x8x8xbf16>
    %26 = vector.shape_cast %25 : vector<1x8x8xbf16> to vector<8x8xbf16>
    %cst_18 = arith.constant dense<0.000000e+00> : vector<8x384xf32>
    %27 = tpu.matmul %26, %13, %cst_18 {dimension_numbers = #tpu.dot_dimension_numbers<[1], [0], [0], [1], [0, 0, 1, 1], [], []>} : vector<8x8xbf16>, vector<8x384xbf16>, vector<8x384xf32> -> vector<8x384xf32>
    %c17_i32 = arith.constant 17 : i32
    %28 = tpu.dynamic_rotate %27 by %c17_i32 dim 1 : vector<8x384xf32>, i32 -> vector<8x384xf32>
    %29 = arith.addf %24, %28 : vector<8x384xf32>
    %c3 = arith.constant 3 : index
    %c0_19 = arith.constant 0 : index
    %c0_20 = arith.constant 0 : index
    %30 = vector.load %arg4[%c3, %c0_19, %c0_20] : memref<9x8x8xbf16, #tpu.memory_space<vmem>>, vector<1x8x8xbf16>
    %31 = vector.shape_cast %30 : vector<1x8x8xbf16> to vector<8x8xbf16>
    %cst_21 = arith.constant dense<0.000000e+00> : vector<8x384xf32>
    %32 = tpu.matmul %31, %13, %cst_21 {dimension_numbers = #tpu.dot_dimension_numbers<[1], [0], [0], [1], [0, 0, 1, 1], [], []>} : vector<8x8xbf16>, vector<8x384xbf16>, vector<8x384xf32> -> vector<8x384xf32>
    %c1_i32 = arith.constant 1 : i32
    %33 = tpu.dynamic_rotate %32 by %c1_i32 dim 1 : vector<8x384xf32>, i32 -> vector<8x384xf32>
    %34 = arith.addf %29, %33 : vector<8x384xf32>
    %c4 = arith.constant 4 : index
    %c0_22 = arith.constant 0 : index
    %c0_23 = arith.constant 0 : index
    %35 = vector.load %arg4[%c4, %c0_22, %c0_23] : memref<9x8x8xbf16, #tpu.memory_space<vmem>>, vector<1x8x8xbf16>
    %36 = vector.shape_cast %35 : vector<1x8x8xbf16> to vector<8x8xbf16>
    %cst_24 = arith.constant dense<0.000000e+00> : vector<8x384xf32>
    %37 = tpu.matmul %36, %13, %cst_24 {dimension_numbers = #tpu.dot_dimension_numbers<[1], [0], [0], [1], [0, 0, 1, 1], [], []>} : vector<8x8xbf16>, vector<8x384xbf16>, vector<8x384xf32> -> vector<8x384xf32>
    %38 = arith.addf %34, %37 : vector<8x384xf32>
    %c5 = arith.constant 5 : index
    %c0_25 = arith.constant 0 : index
    %c0_26 = arith.constant 0 : index
    %39 = vector.load %arg4[%c5, %c0_25, %c0_26] : memref<9x8x8xbf16, #tpu.memory_space<vmem>>, vector<1x8x8xbf16>
    %40 = vector.shape_cast %39 : vector<1x8x8xbf16> to vector<8x8xbf16>
    %cst_27 = arith.constant dense<0.000000e+00> : vector<8x384xf32>
    %41 = tpu.matmul %40, %13, %cst_27 {dimension_numbers = #tpu.dot_dimension_numbers<[1], [0], [0], [1], [0, 0, 1, 1], [], []>} : vector<8x8xbf16>, vector<8x384xbf16>, vector<8x384xf32> -> vector<8x384xf32>
    %c383_i32 = arith.constant 383 : i32
    %42 = tpu.dynamic_rotate %41 by %c383_i32 dim 1 : vector<8x384xf32>, i32 -> vector<8x384xf32>
    %43 = arith.addf %38, %42 : vector<8x384xf32>
    %c6 = arith.constant 6 : index
    %c0_28 = arith.constant 0 : index
    %c0_29 = arith.constant 0 : index
    %44 = vector.load %arg4[%c6, %c0_28, %c0_29] : memref<9x8x8xbf16, #tpu.memory_space<vmem>>, vector<1x8x8xbf16>
    %45 = vector.shape_cast %44 : vector<1x8x8xbf16> to vector<8x8xbf16>
    %cst_30 = arith.constant dense<0.000000e+00> : vector<8x384xf32>
    %46 = tpu.matmul %45, %13, %cst_30 {dimension_numbers = #tpu.dot_dimension_numbers<[1], [0], [0], [1], [0, 0, 1, 1], [], []>} : vector<8x8xbf16>, vector<8x384xbf16>, vector<8x384xf32> -> vector<8x384xf32>
    %c367_i32 = arith.constant 367 : i32
    %47 = tpu.dynamic_rotate %46 by %c367_i32 dim 1 : vector<8x384xf32>, i32 -> vector<8x384xf32>
    %48 = arith.addf %43, %47 : vector<8x384xf32>
    %c7 = arith.constant 7 : index
    %c0_31 = arith.constant 0 : index
    %c0_32 = arith.constant 0 : index
    %49 = vector.load %arg4[%c7, %c0_31, %c0_32] : memref<9x8x8xbf16, #tpu.memory_space<vmem>>, vector<1x8x8xbf16>
    %50 = vector.shape_cast %49 : vector<1x8x8xbf16> to vector<8x8xbf16>
    %cst_33 = arith.constant dense<0.000000e+00> : vector<8x384xf32>
    %51 = tpu.matmul %50, %13, %cst_33 {dimension_numbers = #tpu.dot_dimension_numbers<[1], [0], [0], [1], [0, 0, 1, 1], [], []>} : vector<8x8xbf16>, vector<8x384xbf16>, vector<8x384xf32> -> vector<8x384xf32>
    %c366_i32 = arith.constant 366 : i32
    %52 = tpu.dynamic_rotate %51 by %c366_i32 dim 1 : vector<8x384xf32>, i32 -> vector<8x384xf32>
    %53 = arith.addf %48, %52 : vector<8x384xf32>
    %c8 = arith.constant 8 : index
    %c0_34 = arith.constant 0 : index
    %c0_35 = arith.constant 0 : index
    %54 = vector.load %arg4[%c8, %c0_34, %c0_35] : memref<9x8x8xbf16, #tpu.memory_space<vmem>>, vector<1x8x8xbf16>
    %55 = vector.shape_cast %54 : vector<1x8x8xbf16> to vector<8x8xbf16>
    %cst_36 = arith.constant dense<0.000000e+00> : vector<8x384xf32>
    %56 = tpu.matmul %55, %13, %cst_36 {dimension_numbers = #tpu.dot_dimension_numbers<[1], [0], [0], [1], [0, 0, 1, 1], [], []>} : vector<8x8xbf16>, vector<8x384xbf16>, vector<8x384xf32> -> vector<8x384xf32>
    %c365_i32 = arith.constant 365 : i32
    %57 = tpu.dynamic_rotate %56 by %c365_i32 dim 1 : vector<8x384xf32>, i32 -> vector<8x384xf32>
    %58 = arith.addf %53, %57 : vector<8x384xf32>
    %c0_37 = arith.constant 0 : index
    %c0_38 = arith.constant 0 : index
    %59 = vector.load %arg5[%c0_37, %c0_38] : memref<8x1xf32, #tpu.memory_space<vmem>>, vector<8x1xf32>
    %60 = vector.broadcast %59 : vector<8x1xf32> to vector<8x384xf32>
    %61 = arith.addf %58, %60 : vector<8x384xf32>
    %c0_39 = arith.constant 0 : index
    %c0_40 = arith.constant 0 : index
    %62 = vector.load %arg6[%c0_39, %c0_40] : memref<1x384xf32, #tpu.memory_space<vmem>>, vector<1x384xf32>
    %c0_41 = arith.constant 0 : index
    %c0_42 = arith.constant 0 : index
    %c0_43 = arith.constant 0 : index
    %63 = vector.load %arg7[%c0_41, %c0_42, %c0_43] : memref<1x8x384xf32, #tpu.memory_space<vmem>>, vector<1x8x384xf32>
    %64 = vector.shape_cast %63 : vector<1x8x384xf32> to vector<8x384xf32>
    %65 = vector.shape_cast %61 : vector<8x384xf32> to vector<1x8x384xf32>
    tpu.vector_store %arg7[%c0_41, %c0_42, %c0_43], %65 {strides = array<i32>} : memref<1x8x384xf32, #tpu.memory_space<vmem>>, vector<1x8x384xf32>,
    %66 = vector.broadcast %62 : vector<1x384xf32> to vector<8x384xf32>
    %67 = arith.mulf %61, %66 : vector<8x384xf32>
    %cst_44 = arith.constant dense<0.000000e+00> : vector<8xf32>
    %68 = vector.multi_reduction <add>, %67, %cst_44 [1] : vector<8x384xf32> to vector<8xf32>
    %69 = vector.shape_cast %68 : vector<8xf32> to vector<8x1xf32>
    %c0_45 = arith.constant 0 : index
    %c0_46 = arith.constant 0 : index
    %c0_47 = arith.constant 0 : index
    %70 = vector.load %arg8[%c0_45, %c0_46, %c0_47] : memref<1x8x1xf32, #tpu.memory_space<vmem>>, vector<1x8x1xf32>
    %71 = vector.shape_cast %70 : vector<1x8x1xf32> to vector<8x1xf32>
    %72 = vector.shape_cast %69 : vector<8x1xf32> to vector<1x8x1xf32>
    tpu.vector_store %arg8[%c0_45, %c0_46, %c0_47], %72 {strides = array<i32>} : memref<1x8x1xf32, #tpu.memory_space<vmem>>, vector<1x8x1xf32>,
    %73 = arith.mulf %67, %61 : vector<8x384xf32>
    %cst_48 = arith.constant dense<0.000000e+00> : vector<8xf32>
    %74 = vector.multi_reduction <add>, %73, %cst_48 [1] : vector<8x384xf32> to vector<8xf32>
    %75 = vector.shape_cast %74 : vector<8xf32> to vector<8x1xf32>
    %c0_49 = arith.constant 0 : index
    %c0_50 = arith.constant 0 : index
    %c0_51 = arith.constant 0 : index
    %76 = vector.load %arg9[%c0_49, %c0_50, %c0_51] : memref<1x8x1xf32, #tpu.memory_space<vmem>>, vector<1x8x1xf32>
    %77 = vector.shape_cast %76 : vector<1x8x1xf32> to vector<8x1xf32>
    %78 = vector.shape_cast %75 : vector<8x1xf32> to vector<1x8x1xf32>
    tpu.vector_store %arg9[%c0_49, %c0_50, %c0_51], %78 {strides = array<i32>} : memref<1x8x1xf32, #tpu.memory_space<vmem>>, vector<1x8x1xf32>,
    return
  }
  func.func @transform_0(%arg0: i32) -> (i32, i32, i32) {
    %c0_i32 = arith.constant 0 : i32
    %c0_i32_0 = arith.constant 0 : i32
    %c0_i32_1 = arith.constant 0 : i32
    return %arg0, %c0_i32, %c0_i32_0 : i32, i32, i32
  }
  func.func @transform_1(%arg0: i32) -> (i32, i32) {
    %c0_i32 = arith.constant 0 : i32
    %c0_i32_0 = arith.constant 0 : i32
    %c0_i32_1 = arith.constant 0 : i32
    return %c0_i32, %c0_i32_0 : i32, i32
  }
  func.func @transform_2(%arg0: i32) -> (i32, i32) {
    %c0_i32 = arith.constant 0 : i32
    %c0_i32_0 = arith.constant 0 : i32
    %c0_i32_1 = arith.constant 0 : i32
    return %c0_i32, %c0_i32_0 : i32, i32
  }
  func.func @transform_3(%arg0: i32) -> (i32, i32, i32) {
    %c0_i32 = arith.constant 0 : i32
    %c0_i32_0 = arith.constant 0 : i32
    %c0_i32_1 = arith.constant 0 : i32
    %c0_i32_2 = arith.constant 0 : i32
    return %c0_i32, %c0_i32_0, %c0_i32_1 : i32, i32, i32
  }
  func.func @transform_4(%arg0: i32) -> (i32, i32) {
    %c0_i32 = arith.constant 0 : i32
    %c0_i32_0 = arith.constant 0 : i32
    %c0_i32_1 = arith.constant 0 : i32
    return %c0_i32, %c0_i32_0 : i32, i32
  }
  func.func @transform_5(%arg0: i32) -> (i32, i32) {
    %c0_i32 = arith.constant 0 : i32
    %c0_i32_0 = arith.constant 0 : i32
    %c0_i32_1 = arith.constant 0 : i32
    return %c0_i32, %c0_i32_0 : i32, i32
  }
  func.func @transform_6(%arg0: i32) -> (i32, i32, i32) {
    %c0_i32 = arith.constant 0 : i32
    %c0_i32_0 = arith.constant 0 : i32
    %c0_i32_1 = arith.constant 0 : i32
    return %arg0, %c0_i32, %c0_i32_0 : i32, i32, i32
  }
  func.func @transform_7(%arg0: i32) -> (i32, i32, i32) {
    %c0_i32 = arith.constant 0 : i32
    %c0_i32_0 = arith.constant 0 : i32
    %c0_i32_1 = arith.constant 0 : i32
    return %arg0, %c0_i32, %c0_i32_0 : i32, i32, i32
  }
  func.func @transform_8(%arg0: i32) -> (i32, i32, i32) {
    %c0_i32 = arith.constant 0 : i32
    %c0_i32_0 = arith.constant 0 : i32
    %c0_i32_1 = arith.constant 0 : i32
    return %arg0, %c0_i32, %c0_i32_0 : i32, i32, i32
  }
}

module attributes {stable_mosaic.version = 11 : i64} {
  func.func @pointwise_conv_kernel(%arg0: i32, %arg1: memref<1x8x64xbf16, #tpu.memory_space<vmem>>, %arg2: memref<16x8xbf16, #tpu.memory_space<vmem>>, %arg3: memref<16x1xf32, #tpu.memory_space<vmem>>, %arg4: memref<1x16x64xbf16, #tpu.memory_space<vmem>>) attributes {dimension_semantics = [#tpu.dimension_semantics<parallel>], iteration_bounds = array<i64: 2>, scalar_prefetch = 0 : i64, scratch_operands = 0 : i64, tpu.core_type = #tpu.core_type<tc>, window_params = [{transform_indices = @transform_0, window_bounds = array<i64: 1, 8, 64>}, {pipeline_mode = #tpu.pipeline_mode<synchronous>, transform_indices = @transform_1, window_bounds = array<i64: 16, 8>}, {pipeline_mode = #tpu.pipeline_mode<synchronous>, transform_indices = @transform_2, window_bounds = array<i64: 16, 1>}, {transform_indices = @transform_3, window_bounds = array<i64: 1, 16, 64>}]} {
    %c0 = arith.constant 0 : index
    %c0_0 = arith.constant 0 : index
    %0 = vector.load %arg2[%c0, %c0_0] : memref<16x8xbf16, #tpu.memory_space<vmem>>, vector<16x8xbf16>
    %c0_1 = arith.constant 0 : index
    %c0_2 = arith.constant 0 : index
    %c0_3 = arith.constant 0 : index
    %1 = vector.load %arg1[%c0_1, %c0_2, %c0_3] : memref<1x8x64xbf16, #tpu.memory_space<vmem>>, vector<1x8x64xbf16>
    %2 = vector.shape_cast %1 : vector<1x8x64xbf16> to vector<8x64xbf16>
    %cst = arith.constant dense<0.000000e+00> : vector<16x64xf32>
    %3 = tpu.matmul %0, %2, %cst {dimension_numbers = #tpu.dot_dimension_numbers<[1], [0], [0], [1], [0, 0, 1, 1], [], []>} : vector<16x8xbf16>, vector<8x64xbf16>, vector<16x64xf32> -> vector<16x64xf32>
    %c0_4 = arith.constant 0 : index
    %c0_5 = arith.constant 0 : index
    %4 = vector.load %arg3[%c0_4, %c0_5] : memref<16x1xf32, #tpu.memory_space<vmem>>, vector<16x1xf32>
    %5 = vector.broadcast %4 : vector<16x1xf32> to vector<16x64xf32>
    %6 = arith.addf %3, %5 : vector<16x64xf32>
    %7 = arith.truncf %6 : vector<16x64xf32> to vector<16x64xbf16>
    %c0_6 = arith.constant 0 : index
    %c0_7 = arith.constant 0 : index
    %c0_8 = arith.constant 0 : index
    %8 = vector.load %arg4[%c0_6, %c0_7, %c0_8] : memref<1x16x64xbf16, #tpu.memory_space<vmem>>, vector<1x16x64xbf16>
    %9 = vector.shape_cast %8 : vector<1x16x64xbf16> to vector<16x64xbf16>
    %10 = vector.shape_cast %7 : vector<16x64xbf16> to vector<1x16x64xbf16>
    tpu.vector_store %arg4[%c0_6, %c0_7, %c0_8], %10 {strides = array<i32>} : memref<1x16x64xbf16, #tpu.memory_space<vmem>>, vector<1x16x64xbf16>,
    return
  }
  func.func @transform_0(%arg0: i32) -> (i32, i32, i32) {
    %c0_i32 = arith.constant 0 : i32
    %c0_i32_0 = arith.constant 0 : i32
    %c0_i32_1 = arith.constant 0 : i32
    return %arg0, %c0_i32, %c0_i32_0 : i32, i32, i32
  }
  func.func @transform_1(%arg0: i32) -> (i32, i32) {
    %c0_i32 = arith.constant 0 : i32
    %c0_i32_0 = arith.constant 0 : i32
    %c0_i32_1 = arith.constant 0 : i32
    return %c0_i32, %c0_i32_0 : i32, i32
  }
  func.func @transform_2(%arg0: i32) -> (i32, i32) {
    %c0_i32 = arith.constant 0 : i32
    %c0_i32_0 = arith.constant 0 : i32
    %c0_i32_1 = arith.constant 0 : i32
    return %c0_i32, %c0_i32_0 : i32, i32
  }
  func.func @transform_3(%arg0: i32) -> (i32, i32, i32) {
    %c0_i32 = arith.constant 0 : i32
    %c0_i32_0 = arith.constant 0 : i32
    %c0_i32_1 = arith.constant 0 : i32
    return %arg0, %c0_i32, %c0_i32_0 : i32, i32, i32
  }
}

module attributes {stable_mosaic.version = 11 : i64} {
  func.func @conv3x3_stats_kernel(%arg0: i32, %arg1: memref<1x16x128xbf16, #tpu.memory_space<vmem>>, %arg2: memref<9x16x16xbf16, #tpu.memory_space<vmem>>, %arg3: memref<16x1xf32, #tpu.memory_space<vmem>>, %arg4: memref<1x128xf32, #tpu.memory_space<vmem>>, %arg5: memref<1x16x128xf32, #tpu.memory_space<vmem>>, %arg6: memref<1x16x1xf32, #tpu.memory_space<vmem>>, %arg7: memref<1x16x1xf32, #tpu.memory_space<vmem>>) attributes {dimension_semantics = [#tpu.dimension_semantics<parallel>], iteration_bounds = array<i64: 2>, scalar_prefetch = 0 : i64, scratch_operands = 0 : i64, tpu.core_type = #tpu.core_type<tc>, window_params = [{transform_indices = @transform_0, window_bounds = array<i64: 1, 16, 128>}, {pipeline_mode = #tpu.pipeline_mode<synchronous>, transform_indices = @transform_1, window_bounds = array<i64: 9, 16, 16>}, {pipeline_mode = #tpu.pipeline_mode<synchronous>, transform_indices = @transform_2, window_bounds = array<i64: 16, 1>}, {pipeline_mode = #tpu.pipeline_mode<synchronous>, transform_indices = @transform_3, window_bounds = array<i64: 1, 128>}, {transform_indices = @transform_4, window_bounds = array<i64: 1, 16, 128>}, {transform_indices = @transform_5, window_bounds = array<i64: 1, 16, 1>}, {transform_indices = @transform_6, window_bounds = array<i64: 1, 16, 1>}]} {
    %c0 = arith.constant 0 : index
    %c0_0 = arith.constant 0 : index
    %c0_1 = arith.constant 0 : index
    %0 = vector.load %arg1[%c0, %c0_0, %c0_1] : memref<1x16x128xbf16, #tpu.memory_space<vmem>>, vector<1x16x128xbf16>
    %1 = vector.shape_cast %0 : vector<1x16x128xbf16> to vector<16x128xbf16>
    %cst = arith.constant 0.000000e+00 : f32
    %2 = vector.broadcast %cst : f32 to vector<16x128xf32>
    %c0_2 = arith.constant 0 : index
    %c0_3 = arith.constant 0 : index
    %c0_4 = arith.constant 0 : index
    %3 = vector.load %arg2[%c0_2, %c0_3, %c0_4] : memref<9x16x16xbf16, #tpu.memory_space<vmem>>, vector<1x16x16xbf16>
    %4 = vector.shape_cast %3 : vector<1x16x16xbf16> to vector<16x16xbf16>
    %cst_5 = arith.constant dense<0.000000e+00> : vector<16x128xf32>
    %5 = tpu.matmul %4, %1, %cst_5 {dimension_numbers = #tpu.dot_dimension_numbers<[1], [0], [0], [1], [0, 0, 1, 1], [], []>} : vector<16x16xbf16>, vector<16x128xbf16>, vector<16x128xf32> -> vector<16x128xf32>
    %c11_i32 = arith.constant 11 : i32
    %6 = tpu.dynamic_rotate %5 by %c11_i32 dim 1 : vector<16x128xf32>, i32 -> vector<16x128xf32>
    %7 = arith.addf %2, %6 : vector<16x128xf32>
    %c1 = arith.constant 1 : index
    %c0_6 = arith.constant 0 : index
    %c0_7 = arith.constant 0 : index
    %8 = vector.load %arg2[%c1, %c0_6, %c0_7] : memref<9x16x16xbf16, #tpu.memory_space<vmem>>, vector<1x16x16xbf16>
    %9 = vector.shape_cast %8 : vector<1x16x16xbf16> to vector<16x16xbf16>
    %cst_8 = arith.constant dense<0.000000e+00> : vector<16x128xf32>
    %10 = tpu.matmul %9, %1, %cst_8 {dimension_numbers = #tpu.dot_dimension_numbers<[1], [0], [0], [1], [0, 0, 1, 1], [], []>} : vector<16x16xbf16>, vector<16x128xbf16>, vector<16x128xf32> -> vector<16x128xf32>
    %c10_i32 = arith.constant 10 : i32
    %11 = tpu.dynamic_rotate %10 by %c10_i32 dim 1 : vector<16x128xf32>, i32 -> vector<16x128xf32>
    %12 = arith.addf %7, %11 : vector<16x128xf32>
    %c2 = arith.constant 2 : index
    %c0_9 = arith.constant 0 : index
    %c0_10 = arith.constant 0 : index
    %13 = vector.load %arg2[%c2, %c0_9, %c0_10] : memref<9x16x16xbf16, #tpu.memory_space<vmem>>, vector<1x16x16xbf16>
    %14 = vector.shape_cast %13 : vector<1x16x16xbf16> to vector<16x16xbf16>
    %cst_11 = arith.constant dense<0.000000e+00> : vector<16x128xf32>
    %15 = tpu.matmul %14, %1, %cst_11 {dimension_numbers = #tpu.dot_dimension_numbers<[1], [0], [0], [1], [0, 0, 1, 1], [], []>} : vector<16x16xbf16>, vector<16x128xbf16>, vector<16x128xf32> -> vector<16x128xf32>
    %c9_i32 = arith.constant 9 : i32
    %16 = tpu.dynamic_rotate %15 by %c9_i32 dim 1 : vector<16x128xf32>, i32 -> vector<16x128xf32>
    %17 = arith.addf %12, %16 : vector<16x128xf32>
    %c3 = arith.constant 3 : index
    %c0_12 = arith.constant 0 : index
    %c0_13 = arith.constant 0 : index
    %18 = vector.load %arg2[%c3, %c0_12, %c0_13] : memref<9x16x16xbf16, #tpu.memory_space<vmem>>, vector<1x16x16xbf16>
    %19 = vector.shape_cast %18 : vector<1x16x16xbf16> to vector<16x16xbf16>
    %cst_14 = arith.constant dense<0.000000e+00> : vector<16x128xf32>
    %20 = tpu.matmul %19, %1, %cst_14 {dimension_numbers = #tpu.dot_dimension_numbers<[1], [0], [0], [1], [0, 0, 1, 1], [], []>} : vector<16x16xbf16>, vector<16x128xbf16>, vector<16x128xf32> -> vector<16x128xf32>
    %c1_i32 = arith.constant 1 : i32
    %21 = tpu.dynamic_rotate %20 by %c1_i32 dim 1 : vector<16x128xf32>, i32 -> vector<16x128xf32>
    %22 = arith.addf %17, %21 : vector<16x128xf32>
    %c4 = arith.constant 4 : index
    %c0_15 = arith.constant 0 : index
    %c0_16 = arith.constant 0 : index
    %23 = vector.load %arg2[%c4, %c0_15, %c0_16] : memref<9x16x16xbf16, #tpu.memory_space<vmem>>, vector<1x16x16xbf16>
    %24 = vector.shape_cast %23 : vector<1x16x16xbf16> to vector<16x16xbf16>
    %cst_17 = arith.constant dense<0.000000e+00> : vector<16x128xf32>
    %25 = tpu.matmul %24, %1, %cst_17 {dimension_numbers = #tpu.dot_dimension_numbers<[1], [0], [0], [1], [0, 0, 1, 1], [], []>} : vector<16x16xbf16>, vector<16x128xbf16>, vector<16x128xf32> -> vector<16x128xf32>
    %26 = arith.addf %22, %25 : vector<16x128xf32>
    %c5 = arith.constant 5 : index
    %c0_18 = arith.constant 0 : index
    %c0_19 = arith.constant 0 : index
    %27 = vector.load %arg2[%c5, %c0_18, %c0_19] : memref<9x16x16xbf16, #tpu.memory_space<vmem>>, vector<1x16x16xbf16>
    %28 = vector.shape_cast %27 : vector<1x16x16xbf16> to vector<16x16xbf16>
    %cst_20 = arith.constant dense<0.000000e+00> : vector<16x128xf32>
    %29 = tpu.matmul %28, %1, %cst_20 {dimension_numbers = #tpu.dot_dimension_numbers<[1], [0], [0], [1], [0, 0, 1, 1], [], []>} : vector<16x16xbf16>, vector<16x128xbf16>, vector<16x128xf32> -> vector<16x128xf32>
    %c127_i32 = arith.constant 127 : i32
    %30 = tpu.dynamic_rotate %29 by %c127_i32 dim 1 : vector<16x128xf32>, i32 -> vector<16x128xf32>
    %31 = arith.addf %26, %30 : vector<16x128xf32>
    %c6 = arith.constant 6 : index
    %c0_21 = arith.constant 0 : index
    %c0_22 = arith.constant 0 : index
    %32 = vector.load %arg2[%c6, %c0_21, %c0_22] : memref<9x16x16xbf16, #tpu.memory_space<vmem>>, vector<1x16x16xbf16>
    %33 = vector.shape_cast %32 : vector<1x16x16xbf16> to vector<16x16xbf16>
    %cst_23 = arith.constant dense<0.000000e+00> : vector<16x128xf32>
    %34 = tpu.matmul %33, %1, %cst_23 {dimension_numbers = #tpu.dot_dimension_numbers<[1], [0], [0], [1], [0, 0, 1, 1], [], []>} : vector<16x16xbf16>, vector<16x128xbf16>, vector<16x128xf32> -> vector<16x128xf32>
    %c119_i32 = arith.constant 119 : i32
    %35 = tpu.dynamic_rotate %34 by %c119_i32 dim 1 : vector<16x128xf32>, i32 -> vector<16x128xf32>
    %36 = arith.addf %31, %35 : vector<16x128xf32>
    %c7 = arith.constant 7 : index
    %c0_24 = arith.constant 0 : index
    %c0_25 = arith.constant 0 : index
    %37 = vector.load %arg2[%c7, %c0_24, %c0_25] : memref<9x16x16xbf16, #tpu.memory_space<vmem>>, vector<1x16x16xbf16>
    %38 = vector.shape_cast %37 : vector<1x16x16xbf16> to vector<16x16xbf16>
    %cst_26 = arith.constant dense<0.000000e+00> : vector<16x128xf32>
    %39 = tpu.matmul %38, %1, %cst_26 {dimension_numbers = #tpu.dot_dimension_numbers<[1], [0], [0], [1], [0, 0, 1, 1], [], []>} : vector<16x16xbf16>, vector<16x128xbf16>, vector<16x128xf32> -> vector<16x128xf32>
    %c118_i32 = arith.constant 118 : i32
    %40 = tpu.dynamic_rotate %39 by %c118_i32 dim 1 : vector<16x128xf32>, i32 -> vector<16x128xf32>
    %41 = arith.addf %36, %40 : vector<16x128xf32>
    %c8 = arith.constant 8 : index
    %c0_27 = arith.constant 0 : index
    %c0_28 = arith.constant 0 : index
    %42 = vector.load %arg2[%c8, %c0_27, %c0_28] : memref<9x16x16xbf16, #tpu.memory_space<vmem>>, vector<1x16x16xbf16>
    %43 = vector.shape_cast %42 : vector<1x16x16xbf16> to vector<16x16xbf16>
    %cst_29 = arith.constant dense<0.000000e+00> : vector<16x128xf32>
    %44 = tpu.matmul %43, %1, %cst_29 {dimension_numbers = #tpu.dot_dimension_numbers<[1], [0], [0], [1], [0, 0, 1, 1], [], []>} : vector<16x16xbf16>, vector<16x128xbf16>, vector<16x128xf32> -> vector<16x128xf32>
    %c117_i32 = arith.constant 117 : i32
    %45 = tpu.dynamic_rotate %44 by %c117_i32 dim 1 : vector<16x128xf32>, i32 -> vector<16x128xf32>
    %46 = arith.addf %41, %45 : vector<16x128xf32>
    %c0_30 = arith.constant 0 : index
    %c0_31 = arith.constant 0 : index
    %47 = vector.load %arg3[%c0_30, %c0_31] : memref<16x1xf32, #tpu.memory_space<vmem>>, vector<16x1xf32>
    %48 = vector.broadcast %47 : vector<16x1xf32> to vector<16x128xf32>
    %49 = arith.addf %46, %48 : vector<16x128xf32>
    %c0_32 = arith.constant 0 : index
    %c0_33 = arith.constant 0 : index
    %50 = vector.load %arg4[%c0_32, %c0_33] : memref<1x128xf32, #tpu.memory_space<vmem>>, vector<1x128xf32>
    %c0_34 = arith.constant 0 : index
    %c0_35 = arith.constant 0 : index
    %c0_36 = arith.constant 0 : index
    %51 = vector.load %arg5[%c0_34, %c0_35, %c0_36] : memref<1x16x128xf32, #tpu.memory_space<vmem>>, vector<1x16x128xf32>
    %52 = vector.shape_cast %51 : vector<1x16x128xf32> to vector<16x128xf32>
    %53 = vector.shape_cast %49 : vector<16x128xf32> to vector<1x16x128xf32>
    tpu.vector_store %arg5[%c0_34, %c0_35, %c0_36], %53 {strides = array<i32>} : memref<1x16x128xf32, #tpu.memory_space<vmem>>, vector<1x16x128xf32>,
    %54 = vector.broadcast %50 : vector<1x128xf32> to vector<16x128xf32>
    %55 = arith.mulf %49, %54 : vector<16x128xf32>
    %cst_37 = arith.constant dense<0.000000e+00> : vector<16xf32>
    %56 = vector.multi_reduction <add>, %55, %cst_37 [1] : vector<16x128xf32> to vector<16xf32>
    %57 = vector.shape_cast %56 : vector<16xf32> to vector<16x1xf32>
    %c0_38 = arith.constant 0 : index
    %c0_39 = arith.constant 0 : index
    %c0_40 = arith.constant 0 : index
    %58 = vector.load %arg6[%c0_38, %c0_39, %c0_40] : memref<1x16x1xf32, #tpu.memory_space<vmem>>, vector<1x16x1xf32>
    %59 = vector.shape_cast %58 : vector<1x16x1xf32> to vector<16x1xf32>
    %60 = vector.shape_cast %57 : vector<16x1xf32> to vector<1x16x1xf32>
    tpu.vector_store %arg6[%c0_38, %c0_39, %c0_40], %60 {strides = array<i32>} : memref<1x16x1xf32, #tpu.memory_space<vmem>>, vector<1x16x1xf32>,
    %61 = arith.mulf %55, %49 : vector<16x128xf32>
    %cst_41 = arith.constant dense<0.000000e+00> : vector<16xf32>
    %62 = vector.multi_reduction <add>, %61, %cst_41 [1] : vector<16x128xf32> to vector<16xf32>
    %63 = vector.shape_cast %62 : vector<16xf32> to vector<16x1xf32>
    %c0_42 = arith.constant 0 : index
    %c0_43 = arith.constant 0 : index
    %c0_44 = arith.constant 0 : index
    %64 = vector.load %arg7[%c0_42, %c0_43, %c0_44] : memref<1x16x1xf32, #tpu.memory_space<vmem>>, vector<1x16x1xf32>
    %65 = vector.shape_cast %64 : vector<1x16x1xf32> to vector<16x1xf32>
    %66 = vector.shape_cast %63 : vector<16x1xf32> to vector<1x16x1xf32>
    tpu.vector_store %arg7[%c0_42, %c0_43, %c0_44], %66 {strides = array<i32>} : memref<1x16x1xf32, #tpu.memory_space<vmem>>, vector<1x16x1xf32>,
    return
  }
  func.func @transform_0(%arg0: i32) -> (i32, i32, i32) {
    %c0_i32 = arith.constant 0 : i32
    %c0_i32_0 = arith.constant 0 : i32
    %c0_i32_1 = arith.constant 0 : i32
    return %arg0, %c0_i32, %c0_i32_0 : i32, i32, i32
  }
  func.func @transform_1(%arg0: i32) -> (i32, i32, i32) {
    %c0_i32 = arith.constant 0 : i32
    %c0_i32_0 = arith.constant 0 : i32
    %c0_i32_1 = arith.constant 0 : i32
    %c0_i32_2 = arith.constant 0 : i32
    return %c0_i32, %c0_i32_0, %c0_i32_1 : i32, i32, i32
  }
  func.func @transform_2(%arg0: i32) -> (i32, i32) {
    %c0_i32 = arith.constant 0 : i32
    %c0_i32_0 = arith.constant 0 : i32
    %c0_i32_1 = arith.constant 0 : i32
    return %c0_i32, %c0_i32_0 : i32, i32
  }
  func.func @transform_3(%arg0: i32) -> (i32, i32) {
    %c0_i32 = arith.constant 0 : i32
    %c0_i32_0 = arith.constant 0 : i32
    %c0_i32_1 = arith.constant 0 : i32
    return %c0_i32, %c0_i32_0 : i32, i32
  }
  func.func @transform_4(%arg0: i32) -> (i32, i32, i32) {
    %c0_i32 = arith.constant 0 : i32
    %c0_i32_0 = arith.constant 0 : i32
    %c0_i32_1 = arith.constant 0 : i32
    return %arg0, %c0_i32, %c0_i32_0 : i32, i32, i32
  }
  func.func @transform_5(%arg0: i32) -> (i32, i32, i32) {
    %c0_i32 = arith.constant 0 : i32
    %c0_i32_0 = arith.constant 0 : i32
    %c0_i32_1 = arith.constant 0 : i32
    return %arg0, %c0_i32, %c0_i32_0 : i32, i32, i32
  }
  func.func @transform_6(%arg0: i32) -> (i32, i32, i32) {
    %c0_i32 = arith.constant 0 : i32
    %c0_i32_0 = arith.constant 0 : i32
    %c0_i32_1 = arith.constant 0 : i32
    return %arg0, %c0_i32, %c0_i32_0 : i32, i32, i32
  }
}

module attributes {stable_mosaic.version = 11 : i64} {
  func.func @conv3x3_fused_bn_kernel(%arg0: i32, %arg1: memref<1x16x128xf32, #tpu.memory_space<vmem>>, %arg2: memref<16x1xf32, #tpu.memory_space<vmem>>, %arg3: memref<16x1xf32, #tpu.memory_space<vmem>>, %arg4: memref<9x16x16xbf16, #tpu.memory_space<vmem>>, %arg5: memref<16x1xf32, #tpu.memory_space<vmem>>, %arg6: memref<1x128xf32, #tpu.memory_space<vmem>>, %arg7: memref<1x16x128xf32, #tpu.memory_space<vmem>>, %arg8: memref<1x16x1xf32, #tpu.memory_space<vmem>>, %arg9: memref<1x16x1xf32, #tpu.memory_space<vmem>>) attributes {dimension_semantics = [#tpu.dimension_semantics<parallel>], iteration_bounds = array<i64: 2>, scalar_prefetch = 0 : i64, scratch_operands = 0 : i64, tpu.core_type = #tpu.core_type<tc>, window_params = [{transform_indices = @transform_0, window_bounds = array<i64: 1, 16, 128>}, {pipeline_mode = #tpu.pipeline_mode<synchronous>, transform_indices = @transform_1, window_bounds = array<i64: 16, 1>}, {pipeline_mode = #tpu.pipeline_mode<synchronous>, transform_indices = @transform_2, window_bounds = array<i64: 16, 1>}, {pipeline_mode = #tpu.pipeline_mode<synchronous>, transform_indices = @transform_3, window_bounds = array<i64: 9, 16, 16>}, {pipeline_mode = #tpu.pipeline_mode<synchronous>, transform_indices = @transform_4, window_bounds = array<i64: 16, 1>}, {pipeline_mode = #tpu.pipeline_mode<synchronous>, transform_indices = @transform_5, window_bounds = array<i64: 1, 128>}, {transform_indices = @transform_6, window_bounds = array<i64: 1, 16, 128>}, {transform_indices = @transform_7, window_bounds = array<i64: 1, 16, 1>}, {transform_indices = @transform_8, window_bounds = array<i64: 1, 16, 1>}]} {
    %c0 = arith.constant 0 : index
    %c0_0 = arith.constant 0 : index
    %c0_1 = arith.constant 0 : index
    %0 = vector.load %arg1[%c0, %c0_0, %c0_1] : memref<1x16x128xf32, #tpu.memory_space<vmem>>, vector<1x16x128xf32>
    %1 = vector.shape_cast %0 : vector<1x16x128xf32> to vector<16x128xf32>
    %c0_2 = arith.constant 0 : index
    %c0_3 = arith.constant 0 : index
    %2 = vector.load %arg2[%c0_2, %c0_3] : memref<16x1xf32, #tpu.memory_space<vmem>>, vector<16x1xf32>
    %3 = vector.broadcast %2 : vector<16x1xf32> to vector<16x128xf32>
    %4 = arith.mulf %1, %3 : vector<16x128xf32>
    %c0_4 = arith.constant 0 : index
    %c0_5 = arith.constant 0 : index
    %5 = vector.load %arg3[%c0_4, %c0_5] : memref<16x1xf32, #tpu.memory_space<vmem>>, vector<16x1xf32>
    %6 = vector.broadcast %5 : vector<16x1xf32> to vector<16x128xf32>
    %7 = arith.addf %4, %6 : vector<16x128xf32>
    %cst = arith.constant 0.000000e+00 : f32
    %8 = vector.broadcast %cst : f32 to vector<16x128xf32>
    %9 = arith.maximumf %7, %8 : vector<16x128xf32>
    %c0_6 = arith.constant 0 : index
    %c0_7 = arith.constant 0 : index
    %10 = vector.load %arg6[%c0_6, %c0_7] : memref<1x128xf32, #tpu.memory_space<vmem>>, vector<1x128xf32>
    %11 = vector.broadcast %10 : vector<1x128xf32> to vector<16x128xf32>
    %12 = arith.mulf %9, %11 : vector<16x128xf32>
    %13 = arith.truncf %12 : vector<16x128xf32> to vector<16x128xbf16>
    %cst_8 = arith.constant 0.000000e+00 : f32
    %14 = vector.broadcast %cst_8 : f32 to vector<16x128xf32>
    %c0_9 = arith.constant 0 : index
    %c0_10 = arith.constant 0 : index
    %c0_11 = arith.constant 0 : index
    %15 = vector.load %arg4[%c0_9, %c0_10, %c0_11] : memref<9x16x16xbf16, #tpu.memory_space<vmem>>, vector<1x16x16xbf16>
    %16 = vector.shape_cast %15 : vector<1x16x16xbf16> to vector<16x16xbf16>
    %cst_12 = arith.constant dense<0.000000e+00> : vector<16x128xf32>
    %17 = tpu.matmul %16, %13, %cst_12 {dimension_numbers = #tpu.dot_dimension_numbers<[1], [0], [0], [1], [0, 0, 1, 1], [], []>} : vector<16x16xbf16>, vector<16x128xbf16>, vector<16x128xf32> -> vector<16x128xf32>
    %c11_i32 = arith.constant 11 : i32
    %18 = tpu.dynamic_rotate %17 by %c11_i32 dim 1 : vector<16x128xf32>, i32 -> vector<16x128xf32>
    %19 = arith.addf %14, %18 : vector<16x128xf32>
    %c1 = arith.constant 1 : index
    %c0_13 = arith.constant 0 : index
    %c0_14 = arith.constant 0 : index
    %20 = vector.load %arg4[%c1, %c0_13, %c0_14] : memref<9x16x16xbf16, #tpu.memory_space<vmem>>, vector<1x16x16xbf16>
    %21 = vector.shape_cast %20 : vector<1x16x16xbf16> to vector<16x16xbf16>
    %cst_15 = arith.constant dense<0.000000e+00> : vector<16x128xf32>
    %22 = tpu.matmul %21, %13, %cst_15 {dimension_numbers = #tpu.dot_dimension_numbers<[1], [0], [0], [1], [0, 0, 1, 1], [], []>} : vector<16x16xbf16>, vector<16x128xbf16>, vector<16x128xf32> -> vector<16x128xf32>
    %c10_i32 = arith.constant 10 : i32
    %23 = tpu.dynamic_rotate %22 by %c10_i32 dim 1 : vector<16x128xf32>, i32 -> vector<16x128xf32>
    %24 = arith.addf %19, %23 : vector<16x128xf32>
    %c2 = arith.constant 2 : index
    %c0_16 = arith.constant 0 : index
    %c0_17 = arith.constant 0 : index
    %25 = vector.load %arg4[%c2, %c0_16, %c0_17] : memref<9x16x16xbf16, #tpu.memory_space<vmem>>, vector<1x16x16xbf16>
    %26 = vector.shape_cast %25 : vector<1x16x16xbf16> to vector<16x16xbf16>
    %cst_18 = arith.constant dense<0.000000e+00> : vector<16x128xf32>
    %27 = tpu.matmul %26, %13, %cst_18 {dimension_numbers = #tpu.dot_dimension_numbers<[1], [0], [0], [1], [0, 0, 1, 1], [], []>} : vector<16x16xbf16>, vector<16x128xbf16>, vector<16x128xf32> -> vector<16x128xf32>
    %c9_i32 = arith.constant 9 : i32
    %28 = tpu.dynamic_rotate %27 by %c9_i32 dim 1 : vector<16x128xf32>, i32 -> vector<16x128xf32>
    %29 = arith.addf %24, %28 : vector<16x128xf32>
    %c3 = arith.constant 3 : index
    %c0_19 = arith.constant 0 : index
    %c0_20 = arith.constant 0 : index
    %30 = vector.load %arg4[%c3, %c0_19, %c0_20] : memref<9x16x16xbf16, #tpu.memory_space<vmem>>, vector<1x16x16xbf16>
    %31 = vector.shape_cast %30 : vector<1x16x16xbf16> to vector<16x16xbf16>
    %cst_21 = arith.constant dense<0.000000e+00> : vector<16x128xf32>
    %32 = tpu.matmul %31, %13, %cst_21 {dimension_numbers = #tpu.dot_dimension_numbers<[1], [0], [0], [1], [0, 0, 1, 1], [], []>} : vector<16x16xbf16>, vector<16x128xbf16>, vector<16x128xf32> -> vector<16x128xf32>
    %c1_i32 = arith.constant 1 : i32
    %33 = tpu.dynamic_rotate %32 by %c1_i32 dim 1 : vector<16x128xf32>, i32 -> vector<16x128xf32>
    %34 = arith.addf %29, %33 : vector<16x128xf32>
    %c4 = arith.constant 4 : index
    %c0_22 = arith.constant 0 : index
    %c0_23 = arith.constant 0 : index
    %35 = vector.load %arg4[%c4, %c0_22, %c0_23] : memref<9x16x16xbf16, #tpu.memory_space<vmem>>, vector<1x16x16xbf16>
    %36 = vector.shape_cast %35 : vector<1x16x16xbf16> to vector<16x16xbf16>
    %cst_24 = arith.constant dense<0.000000e+00> : vector<16x128xf32>
    %37 = tpu.matmul %36, %13, %cst_24 {dimension_numbers = #tpu.dot_dimension_numbers<[1], [0], [0], [1], [0, 0, 1, 1], [], []>} : vector<16x16xbf16>, vector<16x128xbf16>, vector<16x128xf32> -> vector<16x128xf32>
    %38 = arith.addf %34, %37 : vector<16x128xf32>
    %c5 = arith.constant 5 : index
    %c0_25 = arith.constant 0 : index
    %c0_26 = arith.constant 0 : index
    %39 = vector.load %arg4[%c5, %c0_25, %c0_26] : memref<9x16x16xbf16, #tpu.memory_space<vmem>>, vector<1x16x16xbf16>
    %40 = vector.shape_cast %39 : vector<1x16x16xbf16> to vector<16x16xbf16>
    %cst_27 = arith.constant dense<0.000000e+00> : vector<16x128xf32>
    %41 = tpu.matmul %40, %13, %cst_27 {dimension_numbers = #tpu.dot_dimension_numbers<[1], [0], [0], [1], [0, 0, 1, 1], [], []>} : vector<16x16xbf16>, vector<16x128xbf16>, vector<16x128xf32> -> vector<16x128xf32>
    %c127_i32 = arith.constant 127 : i32
    %42 = tpu.dynamic_rotate %41 by %c127_i32 dim 1 : vector<16x128xf32>, i32 -> vector<16x128xf32>
    %43 = arith.addf %38, %42 : vector<16x128xf32>
    %c6 = arith.constant 6 : index
    %c0_28 = arith.constant 0 : index
    %c0_29 = arith.constant 0 : index
    %44 = vector.load %arg4[%c6, %c0_28, %c0_29] : memref<9x16x16xbf16, #tpu.memory_space<vmem>>, vector<1x16x16xbf16>
    %45 = vector.shape_cast %44 : vector<1x16x16xbf16> to vector<16x16xbf16>
    %cst_30 = arith.constant dense<0.000000e+00> : vector<16x128xf32>
    %46 = tpu.matmul %45, %13, %cst_30 {dimension_numbers = #tpu.dot_dimension_numbers<[1], [0], [0], [1], [0, 0, 1, 1], [], []>} : vector<16x16xbf16>, vector<16x128xbf16>, vector<16x128xf32> -> vector<16x128xf32>
    %c119_i32 = arith.constant 119 : i32
    %47 = tpu.dynamic_rotate %46 by %c119_i32 dim 1 : vector<16x128xf32>, i32 -> vector<16x128xf32>
    %48 = arith.addf %43, %47 : vector<16x128xf32>
    %c7 = arith.constant 7 : index
    %c0_31 = arith.constant 0 : index
    %c0_32 = arith.constant 0 : index
    %49 = vector.load %arg4[%c7, %c0_31, %c0_32] : memref<9x16x16xbf16, #tpu.memory_space<vmem>>, vector<1x16x16xbf16>
    %50 = vector.shape_cast %49 : vector<1x16x16xbf16> to vector<16x16xbf16>
    %cst_33 = arith.constant dense<0.000000e+00> : vector<16x128xf32>
    %51 = tpu.matmul %50, %13, %cst_33 {dimension_numbers = #tpu.dot_dimension_numbers<[1], [0], [0], [1], [0, 0, 1, 1], [], []>} : vector<16x16xbf16>, vector<16x128xbf16>, vector<16x128xf32> -> vector<16x128xf32>
    %c118_i32 = arith.constant 118 : i32
    %52 = tpu.dynamic_rotate %51 by %c118_i32 dim 1 : vector<16x128xf32>, i32 -> vector<16x128xf32>
    %53 = arith.addf %48, %52 : vector<16x128xf32>
    %c8 = arith.constant 8 : index
    %c0_34 = arith.constant 0 : index
    %c0_35 = arith.constant 0 : index
    %54 = vector.load %arg4[%c8, %c0_34, %c0_35] : memref<9x16x16xbf16, #tpu.memory_space<vmem>>, vector<1x16x16xbf16>
    %55 = vector.shape_cast %54 : vector<1x16x16xbf16> to vector<16x16xbf16>
    %cst_36 = arith.constant dense<0.000000e+00> : vector<16x128xf32>
    %56 = tpu.matmul %55, %13, %cst_36 {dimension_numbers = #tpu.dot_dimension_numbers<[1], [0], [0], [1], [0, 0, 1, 1], [], []>} : vector<16x16xbf16>, vector<16x128xbf16>, vector<16x128xf32> -> vector<16x128xf32>
    %c117_i32 = arith.constant 117 : i32
    %57 = tpu.dynamic_rotate %56 by %c117_i32 dim 1 : vector<16x128xf32>, i32 -> vector<16x128xf32>
    %58 = arith.addf %53, %57 : vector<16x128xf32>
    %c0_37 = arith.constant 0 : index
    %c0_38 = arith.constant 0 : index
    %59 = vector.load %arg5[%c0_37, %c0_38] : memref<16x1xf32, #tpu.memory_space<vmem>>, vector<16x1xf32>
    %60 = vector.broadcast %59 : vector<16x1xf32> to vector<16x128xf32>
    %61 = arith.addf %58, %60 : vector<16x128xf32>
    %c0_39 = arith.constant 0 : index
    %c0_40 = arith.constant 0 : index
    %62 = vector.load %arg6[%c0_39, %c0_40] : memref<1x128xf32, #tpu.memory_space<vmem>>, vector<1x128xf32>
    %c0_41 = arith.constant 0 : index
    %c0_42 = arith.constant 0 : index
    %c0_43 = arith.constant 0 : index
    %63 = vector.load %arg7[%c0_41, %c0_42, %c0_43] : memref<1x16x128xf32, #tpu.memory_space<vmem>>, vector<1x16x128xf32>
    %64 = vector.shape_cast %63 : vector<1x16x128xf32> to vector<16x128xf32>
    %65 = vector.shape_cast %61 : vector<16x128xf32> to vector<1x16x128xf32>
    tpu.vector_store %arg7[%c0_41, %c0_42, %c0_43], %65 {strides = array<i32>} : memref<1x16x128xf32, #tpu.memory_space<vmem>>, vector<1x16x128xf32>,
    %66 = vector.broadcast %62 : vector<1x128xf32> to vector<16x128xf32>
    %67 = arith.mulf %61, %66 : vector<16x128xf32>
    %cst_44 = arith.constant dense<0.000000e+00> : vector<16xf32>
    %68 = vector.multi_reduction <add>, %67, %cst_44 [1] : vector<16x128xf32> to vector<16xf32>
    %69 = vector.shape_cast %68 : vector<16xf32> to vector<16x1xf32>
    %c0_45 = arith.constant 0 : index
    %c0_46 = arith.constant 0 : index
    %c0_47 = arith.constant 0 : index
    %70 = vector.load %arg8[%c0_45, %c0_46, %c0_47] : memref<1x16x1xf32, #tpu.memory_space<vmem>>, vector<1x16x1xf32>
    %71 = vector.shape_cast %70 : vector<1x16x1xf32> to vector<16x1xf32>
    %72 = vector.shape_cast %69 : vector<16x1xf32> to vector<1x16x1xf32>
    tpu.vector_store %arg8[%c0_45, %c0_46, %c0_47], %72 {strides = array<i32>} : memref<1x16x1xf32, #tpu.memory_space<vmem>>, vector<1x16x1xf32>,
    %73 = arith.mulf %67, %61 : vector<16x128xf32>
    %cst_48 = arith.constant dense<0.000000e+00> : vector<16xf32>
    %74 = vector.multi_reduction <add>, %73, %cst_48 [1] : vector<16x128xf32> to vector<16xf32>
    %75 = vector.shape_cast %74 : vector<16xf32> to vector<16x1xf32>
    %c0_49 = arith.constant 0 : index
    %c0_50 = arith.constant 0 : index
    %c0_51 = arith.constant 0 : index
    %76 = vector.load %arg9[%c0_49, %c0_50, %c0_51] : memref<1x16x1xf32, #tpu.memory_space<vmem>>, vector<1x16x1xf32>
    %77 = vector.shape_cast %76 : vector<1x16x1xf32> to vector<16x1xf32>
    %78 = vector.shape_cast %75 : vector<16x1xf32> to vector<1x16x1xf32>
    tpu.vector_store %arg9[%c0_49, %c0_50, %c0_51], %78 {strides = array<i32>} : memref<1x16x1xf32, #tpu.memory_space<vmem>>, vector<1x16x1xf32>,
    return
  }
  func.func @transform_0(%arg0: i32) -> (i32, i32, i32) {
    %c0_i32 = arith.constant 0 : i32
    %c0_i32_0 = arith.constant 0 : i32
    %c0_i32_1 = arith.constant 0 : i32
    return %arg0, %c0_i32, %c0_i32_0 : i32, i32, i32
  }
  func.func @transform_1(%arg0: i32) -> (i32, i32) {
    %c0_i32 = arith.constant 0 : i32
    %c0_i32_0 = arith.constant 0 : i32
    %c0_i32_1 = arith.constant 0 : i32
    return %c0_i32, %c0_i32_0 : i32, i32
  }
  func.func @transform_2(%arg0: i32) -> (i32, i32) {
    %c0_i32 = arith.constant 0 : i32
    %c0_i32_0 = arith.constant 0 : i32
    %c0_i32_1 = arith.constant 0 : i32
    return %c0_i32, %c0_i32_0 : i32, i32
  }
  func.func @transform_3(%arg0: i32) -> (i32, i32, i32) {
    %c0_i32 = arith.constant 0 : i32
    %c0_i32_0 = arith.constant 0 : i32
    %c0_i32_1 = arith.constant 0 : i32
    %c0_i32_2 = arith.constant 0 : i32
    return %c0_i32, %c0_i32_0, %c0_i32_1 : i32, i32, i32
  }
  func.func @transform_4(%arg0: i32) -> (i32, i32) {
    %c0_i32 = arith.constant 0 : i32
    %c0_i32_0 = arith.constant 0 : i32
    %c0_i32_1 = arith.constant 0 : i32
    return %c0_i32, %c0_i32_0 : i32, i32
  }
  func.func @transform_5(%arg0: i32) -> (i32, i32) {
    %c0_i32 = arith.constant 0 : i32
    %c0_i32_0 = arith.constant 0 : i32
    %c0_i32_1 = arith.constant 0 : i32
    return %c0_i32, %c0_i32_0 : i32, i32
  }
  func.func @transform_6(%arg0: i32) -> (i32, i32, i32) {
    %c0_i32 = arith.constant 0 : i32
    %c0_i32_0 = arith.constant 0 : i32
    %c0_i32_1 = arith.constant 0 : i32
    return %arg0, %c0_i32, %c0_i32_0 : i32, i32, i32
  }
  func.func @transform_7(%arg0: i32) -> (i32, i32, i32) {
    %c0_i32 = arith.constant 0 : i32
    %c0_i32_0 = arith.constant 0 : i32
    %c0_i32_1 = arith.constant 0 : i32
    return %arg0, %c0_i32, %c0_i32_0 : i32, i32, i32
  }
  func.func @transform_8(%arg0: i32) -> (i32, i32, i32) {
    %c0_i32 = arith.constant 0 : i32
    %c0_i32_0 = arith.constant 0 : i32
    %c0_i32_1 = arith.constant 0 : i32
    return %arg0, %c0_i32, %c0_i32_0 : i32, i32, i32
  }
}

module attributes {stable_mosaic.version = 11 : i64} {
  func.func @bn_relu_res_kernel(%arg0: i32, %arg1: memref<1x16x128xf32, #tpu.memory_space<vmem>>, %arg2: memref<16x1xf32, #tpu.memory_space<vmem>>, %arg3: memref<16x1xf32, #tpu.memory_space<vmem>>, %arg4: memref<1x16x128xbf16, #tpu.memory_space<vmem>>, %arg5: memref<1x128xf32, #tpu.memory_space<vmem>>, %arg6: memref<1x16x128xbf16, #tpu.memory_space<vmem>>) attributes {dimension_semantics = [#tpu.dimension_semantics<parallel>], iteration_bounds = array<i64: 2>, scalar_prefetch = 0 : i64, scratch_operands = 0 : i64, tpu.core_type = #tpu.core_type<tc>, window_params = [{transform_indices = @transform_0, window_bounds = array<i64: 1, 16, 128>}, {pipeline_mode = #tpu.pipeline_mode<synchronous>, transform_indices = @transform_1, window_bounds = array<i64: 16, 1>}, {pipeline_mode = #tpu.pipeline_mode<synchronous>, transform_indices = @transform_2, window_bounds = array<i64: 16, 1>}, {transform_indices = @transform_3, window_bounds = array<i64: 1, 16, 128>}, {pipeline_mode = #tpu.pipeline_mode<synchronous>, transform_indices = @transform_4, window_bounds = array<i64: 1, 128>}, {transform_indices = @transform_5, window_bounds = array<i64: 1, 16, 128>}]} {
    %c0 = arith.constant 0 : index
    %c0_0 = arith.constant 0 : index
    %c0_1 = arith.constant 0 : index
    %0 = vector.load %arg1[%c0, %c0_0, %c0_1] : memref<1x16x128xf32, #tpu.memory_space<vmem>>, vector<1x16x128xf32>
    %1 = vector.shape_cast %0 : vector<1x16x128xf32> to vector<16x128xf32>
    %c0_2 = arith.constant 0 : index
    %c0_3 = arith.constant 0 : index
    %2 = vector.load %arg2[%c0_2, %c0_3] : memref<16x1xf32, #tpu.memory_space<vmem>>, vector<16x1xf32>
    %3 = vector.broadcast %2 : vector<16x1xf32> to vector<16x128xf32>
    %4 = arith.mulf %1, %3 : vector<16x128xf32>
    %c0_4 = arith.constant 0 : index
    %c0_5 = arith.constant 0 : index
    %5 = vector.load %arg3[%c0_4, %c0_5] : memref<16x1xf32, #tpu.memory_space<vmem>>, vector<16x1xf32>
    %6 = vector.broadcast %5 : vector<16x1xf32> to vector<16x128xf32>
    %7 = arith.addf %4, %6 : vector<16x128xf32>
    %cst = arith.constant 0.000000e+00 : f32
    %8 = vector.broadcast %cst : f32 to vector<16x128xf32>
    %9 = arith.maximumf %7, %8 : vector<16x128xf32>
    %c0_6 = arith.constant 0 : index
    %c0_7 = arith.constant 0 : index
    %c0_8 = arith.constant 0 : index
    %10 = vector.load %arg4[%c0_6, %c0_7, %c0_8] : memref<1x16x128xbf16, #tpu.memory_space<vmem>>, vector<1x16x128xbf16>
    %11 = vector.shape_cast %10 : vector<1x16x128xbf16> to vector<16x128xbf16>
    %12 = arith.extf %11 : vector<16x128xbf16> to vector<16x128xf32>
    %13 = arith.addf %9, %12 : vector<16x128xf32>
    %c0_9 = arith.constant 0 : index
    %c0_10 = arith.constant 0 : index
    %14 = vector.load %arg5[%c0_9, %c0_10] : memref<1x128xf32, #tpu.memory_space<vmem>>, vector<1x128xf32>
    %15 = vector.broadcast %14 : vector<1x128xf32> to vector<16x128xf32>
    %16 = arith.mulf %13, %15 : vector<16x128xf32>
    %17 = arith.truncf %16 : vector<16x128xf32> to vector<16x128xbf16>
    %c0_11 = arith.constant 0 : index
    %c0_12 = arith.constant 0 : index
    %c0_13 = arith.constant 0 : index
    %18 = vector.load %arg6[%c0_11, %c0_12, %c0_13] : memref<1x16x128xbf16, #tpu.memory_space<vmem>>, vector<1x16x128xbf16>
    %19 = vector.shape_cast %18 : vector<1x16x128xbf16> to vector<16x128xbf16>
    %20 = vector.shape_cast %17 : vector<16x128xbf16> to vector<1x16x128xbf16>
    tpu.vector_store %arg6[%c0_11, %c0_12, %c0_13], %20 {strides = array<i32>} : memref<1x16x128xbf16, #tpu.memory_space<vmem>>, vector<1x16x128xbf16>,
    return
  }
  func.func @transform_0(%arg0: i32) -> (i32, i32, i32) {
    %c0_i32 = arith.constant 0 : i32
    %c0_i32_0 = arith.constant 0 : i32
    %c0_i32_1 = arith.constant 0 : i32
    return %arg0, %c0_i32, %c0_i32_0 : i32, i32, i32
  }
  func.func @transform_1(%arg0: i32) -> (i32, i32) {
    %c0_i32 = arith.constant 0 : i32
    %c0_i32_0 = arith.constant 0 : i32
    %c0_i32_1 = arith.constant 0 : i32
    return %c0_i32, %c0_i32_0 : i32, i32
  }
  func.func @transform_2(%arg0: i32) -> (i32, i32) {
    %c0_i32 = arith.constant 0 : i32
    %c0_i32_0 = arith.constant 0 : i32
    %c0_i32_1 = arith.constant 0 : i32
    return %c0_i32, %c0_i32_0 : i32, i32
  }
  func.func @transform_3(%arg0: i32) -> (i32, i32, i32) {
    %c0_i32 = arith.constant 0 : i32
    %c0_i32_0 = arith.constant 0 : i32
    %c0_i32_1 = arith.constant 0 : i32
    return %arg0, %c0_i32, %c0_i32_0 : i32, i32, i32
  }
  func.func @transform_4(%arg0: i32) -> (i32, i32) {
    %c0_i32 = arith.constant 0 : i32
    %c0_i32_0 = arith.constant 0 : i32
    %c0_i32_1 = arith.constant 0 : i32
    return %c0_i32, %c0_i32_0 : i32, i32
  }
  func.func @transform_5(%arg0: i32) -> (i32, i32, i32) {
    %c0_i32 = arith.constant 0 : i32
    %c0_i32_0 = arith.constant 0 : i32
    %c0_i32_1 = arith.constant 0 : i32
    return %arg0, %c0_i32, %c0_i32_0 : i32, i32, i32
  }
}

module attributes {stable_mosaic.version = 11 : i64} {
  func.func @pointwise_conv_kernel(%arg0: i32, %arg1: memref<1x16x16xbf16, #tpu.memory_space<vmem>>, %arg2: memref<32x16xbf16, #tpu.memory_space<vmem>>, %arg3: memref<32x1xf32, #tpu.memory_space<vmem>>, %arg4: memref<1x32x16xbf16, #tpu.memory_space<vmem>>) attributes {dimension_semantics = [#tpu.dimension_semantics<parallel>], iteration_bounds = array<i64: 2>, scalar_prefetch = 0 : i64, scratch_operands = 0 : i64, tpu.core_type = #tpu.core_type<tc>, window_params = [{transform_indices = @transform_0, window_bounds = array<i64: 1, 16, 16>}, {pipeline_mode = #tpu.pipeline_mode<synchronous>, transform_indices = @transform_1, window_bounds = array<i64: 32, 16>}, {pipeline_mode = #tpu.pipeline_mode<synchronous>, transform_indices = @transform_2, window_bounds = array<i64: 32, 1>}, {transform_indices = @transform_3, window_bounds = array<i64: 1, 32, 16>}]} {
    %c0 = arith.constant 0 : index
    %c0_0 = arith.constant 0 : index
    %0 = vector.load %arg2[%c0, %c0_0] : memref<32x16xbf16, #tpu.memory_space<vmem>>, vector<32x16xbf16>
    %c0_1 = arith.constant 0 : index
    %c0_2 = arith.constant 0 : index
    %c0_3 = arith.constant 0 : index
    %1 = vector.load %arg1[%c0_1, %c0_2, %c0_3] : memref<1x16x16xbf16, #tpu.memory_space<vmem>>, vector<1x16x16xbf16>
    %2 = vector.shape_cast %1 : vector<1x16x16xbf16> to vector<16x16xbf16>
    %cst = arith.constant dense<0.000000e+00> : vector<32x16xf32>
    %3 = tpu.matmul %0, %2, %cst {dimension_numbers = #tpu.dot_dimension_numbers<[1], [0], [0], [1], [0, 0, 1, 1], [], []>} : vector<32x16xbf16>, vector<16x16xbf16>, vector<32x16xf32> -> vector<32x16xf32>
    %c0_4 = arith.constant 0 : index
    %c0_5 = arith.constant 0 : index
    %4 = vector.load %arg3[%c0_4, %c0_5] : memref<32x1xf32, #tpu.memory_space<vmem>>, vector<32x1xf32>
    %5 = vector.broadcast %4 : vector<32x1xf32> to vector<32x16xf32>
    %6 = arith.addf %3, %5 : vector<32x16xf32>
    %7 = arith.truncf %6 : vector<32x16xf32> to vector<32x16xbf16>
    %c0_6 = arith.constant 0 : index
    %c0_7 = arith.constant 0 : index
    %c0_8 = arith.constant 0 : index
    %8 = vector.load %arg4[%c0_6, %c0_7, %c0_8] : memref<1x32x16xbf16, #tpu.memory_space<vmem>>, vector<1x32x16xbf16>
    %9 = vector.shape_cast %8 : vector<1x32x16xbf16> to vector<32x16xbf16>
    %10 = vector.shape_cast %7 : vector<32x16xbf16> to vector<1x32x16xbf16>
    tpu.vector_store %arg4[%c0_6, %c0_7, %c0_8], %10 {strides = array<i32>} : memref<1x32x16xbf16, #tpu.memory_space<vmem>>, vector<1x32x16xbf16>,
    return
  }
  func.func @transform_0(%arg0: i32) -> (i32, i32, i32) {
    %c0_i32 = arith.constant 0 : i32
    %c0_i32_0 = arith.constant 0 : i32
    %c0_i32_1 = arith.constant 0 : i32
    return %arg0, %c0_i32, %c0_i32_0 : i32, i32, i32
  }
  func.func @transform_1(%arg0: i32) -> (i32, i32) {
    %c0_i32 = arith.constant 0 : i32
    %c0_i32_0 = arith.constant 0 : i32
    %c0_i32_1 = arith.constant 0 : i32
    return %c0_i32, %c0_i32_0 : i32, i32
  }
  func.func @transform_2(%arg0: i32) -> (i32, i32) {
    %c0_i32 = arith.constant 0 : i32
    %c0_i32_0 = arith.constant 0 : i32
    %c0_i32_1 = arith.constant 0 : i32
    return %c0_i32, %c0_i32_0 : i32, i32
  }
  func.func @transform_3(%arg0: i32) -> (i32, i32, i32) {
    %c0_i32 = arith.constant 0 : i32
    %c0_i32_0 = arith.constant 0 : i32
    %c0_i32_1 = arith.constant 0 : i32
    return %arg0, %c0_i32, %c0_i32_0 : i32, i32, i32
  }
}

module attributes {stable_mosaic.version = 11 : i64} {
  func.func @conv3x3_stats_kernel(%arg0: i32, %arg1: memref<1x32x128xbf16, #tpu.memory_space<vmem>>, %arg2: memref<9x32x32xbf16, #tpu.memory_space<vmem>>, %arg3: memref<32x1xf32, #tpu.memory_space<vmem>>, %arg4: memref<1x128xf32, #tpu.memory_space<vmem>>, %arg5: memref<1x32x128xf32, #tpu.memory_space<vmem>>, %arg6: memref<1x32x1xf32, #tpu.memory_space<vmem>>, %arg7: memref<1x32x1xf32, #tpu.memory_space<vmem>>) attributes {dimension_semantics = [#tpu.dimension_semantics<parallel>], iteration_bounds = array<i64: 2>, scalar_prefetch = 0 : i64, scratch_operands = 0 : i64, tpu.core_type = #tpu.core_type<tc>, window_params = [{transform_indices = @transform_0, window_bounds = array<i64: 1, 32, 128>}, {pipeline_mode = #tpu.pipeline_mode<synchronous>, transform_indices = @transform_1, window_bounds = array<i64: 9, 32, 32>}, {pipeline_mode = #tpu.pipeline_mode<synchronous>, transform_indices = @transform_2, window_bounds = array<i64: 32, 1>}, {pipeline_mode = #tpu.pipeline_mode<synchronous>, transform_indices = @transform_3, window_bounds = array<i64: 1, 128>}, {transform_indices = @transform_4, window_bounds = array<i64: 1, 32, 128>}, {transform_indices = @transform_5, window_bounds = array<i64: 1, 32, 1>}, {transform_indices = @transform_6, window_bounds = array<i64: 1, 32, 1>}]} {
    %c0 = arith.constant 0 : index
    %c0_0 = arith.constant 0 : index
    %c0_1 = arith.constant 0 : index
    %0 = vector.load %arg1[%c0, %c0_0, %c0_1] : memref<1x32x128xbf16, #tpu.memory_space<vmem>>, vector<1x32x128xbf16>
    %1 = vector.shape_cast %0 : vector<1x32x128xbf16> to vector<32x128xbf16>
    %cst = arith.constant 0.000000e+00 : f32
    %2 = vector.broadcast %cst : f32 to vector<32x128xf32>
    %c0_2 = arith.constant 0 : index
    %c0_3 = arith.constant 0 : index
    %c0_4 = arith.constant 0 : index
    %3 = vector.load %arg2[%c0_2, %c0_3, %c0_4] : memref<9x32x32xbf16, #tpu.memory_space<vmem>>, vector<1x32x32xbf16>
    %4 = vector.shape_cast %3 : vector<1x32x32xbf16> to vector<32x32xbf16>
    %cst_5 = arith.constant dense<0.000000e+00> : vector<32x128xf32>
    %5 = tpu.matmul %4, %1, %cst_5 {dimension_numbers = #tpu.dot_dimension_numbers<[1], [0], [0], [1], [0, 0, 1, 1], [], []>} : vector<32x32xbf16>, vector<32x128xbf16>, vector<32x128xf32> -> vector<32x128xf32>
    %c7_i32 = arith.constant 7 : i32
    %6 = tpu.dynamic_rotate %5 by %c7_i32 dim 1 : vector<32x128xf32>, i32 -> vector<32x128xf32>
    %7 = arith.addf %2, %6 : vector<32x128xf32>
    %c1 = arith.constant 1 : index
    %c0_6 = arith.constant 0 : index
    %c0_7 = arith.constant 0 : index
    %8 = vector.load %arg2[%c1, %c0_6, %c0_7] : memref<9x32x32xbf16, #tpu.memory_space<vmem>>, vector<1x32x32xbf16>
    %9 = vector.shape_cast %8 : vector<1x32x32xbf16> to vector<32x32xbf16>
    %cst_8 = arith.constant dense<0.000000e+00> : vector<32x128xf32>
    %10 = tpu.matmul %9, %1, %cst_8 {dimension_numbers = #tpu.dot_dimension_numbers<[1], [0], [0], [1], [0, 0, 1, 1], [], []>} : vector<32x32xbf16>, vector<32x128xbf16>, vector<32x128xf32> -> vector<32x128xf32>
    %c6_i32 = arith.constant 6 : i32
    %11 = tpu.dynamic_rotate %10 by %c6_i32 dim 1 : vector<32x128xf32>, i32 -> vector<32x128xf32>
    %12 = arith.addf %7, %11 : vector<32x128xf32>
    %c2 = arith.constant 2 : index
    %c0_9 = arith.constant 0 : index
    %c0_10 = arith.constant 0 : index
    %13 = vector.load %arg2[%c2, %c0_9, %c0_10] : memref<9x32x32xbf16, #tpu.memory_space<vmem>>, vector<1x32x32xbf16>
    %14 = vector.shape_cast %13 : vector<1x32x32xbf16> to vector<32x32xbf16>
    %cst_11 = arith.constant dense<0.000000e+00> : vector<32x128xf32>
    %15 = tpu.matmul %14, %1, %cst_11 {dimension_numbers = #tpu.dot_dimension_numbers<[1], [0], [0], [1], [0, 0, 1, 1], [], []>} : vector<32x32xbf16>, vector<32x128xbf16>, vector<32x128xf32> -> vector<32x128xf32>
    %c5_i32 = arith.constant 5 : i32
    %16 = tpu.dynamic_rotate %15 by %c5_i32 dim 1 : vector<32x128xf32>, i32 -> vector<32x128xf32>
    %17 = arith.addf %12, %16 : vector<32x128xf32>
    %c3 = arith.constant 3 : index
    %c0_12 = arith.constant 0 : index
    %c0_13 = arith.constant 0 : index
    %18 = vector.load %arg2[%c3, %c0_12, %c0_13] : memref<9x32x32xbf16, #tpu.memory_space<vmem>>, vector<1x32x32xbf16>
    %19 = vector.shape_cast %18 : vector<1x32x32xbf16> to vector<32x32xbf16>
    %cst_14 = arith.constant dense<0.000000e+00> : vector<32x128xf32>
    %20 = tpu.matmul %19, %1, %cst_14 {dimension_numbers = #tpu.dot_dimension_numbers<[1], [0], [0], [1], [0, 0, 1, 1], [], []>} : vector<32x32xbf16>, vector<32x128xbf16>, vector<32x128xf32> -> vector<32x128xf32>
    %c1_i32 = arith.constant 1 : i32
    %21 = tpu.dynamic_rotate %20 by %c1_i32 dim 1 : vector<32x128xf32>, i32 -> vector<32x128xf32>
    %22 = arith.addf %17, %21 : vector<32x128xf32>
    %c4 = arith.constant 4 : index
    %c0_15 = arith.constant 0 : index
    %c0_16 = arith.constant 0 : index
    %23 = vector.load %arg2[%c4, %c0_15, %c0_16] : memref<9x32x32xbf16, #tpu.memory_space<vmem>>, vector<1x32x32xbf16>
    %24 = vector.shape_cast %23 : vector<1x32x32xbf16> to vector<32x32xbf16>
    %cst_17 = arith.constant dense<0.000000e+00> : vector<32x128xf32>
    %25 = tpu.matmul %24, %1, %cst_17 {dimension_numbers = #tpu.dot_dimension_numbers<[1], [0], [0], [1], [0, 0, 1, 1], [], []>} : vector<32x32xbf16>, vector<32x128xbf16>, vector<32x128xf32> -> vector<32x128xf32>
    %26 = arith.addf %22, %25 : vector<32x128xf32>
    %c5 = arith.constant 5 : index
    %c0_18 = arith.constant 0 : index
    %c0_19 = arith.constant 0 : index
    %27 = vector.load %arg2[%c5, %c0_18, %c0_19] : memref<9x32x32xbf16, #tpu.memory_space<vmem>>, vector<1x32x32xbf16>
    %28 = vector.shape_cast %27 : vector<1x32x32xbf16> to vector<32x32xbf16>
    %cst_20 = arith.constant dense<0.000000e+00> : vector<32x128xf32>
    %29 = tpu.matmul %28, %1, %cst_20 {dimension_numbers = #tpu.dot_dimension_numbers<[1], [0], [0], [1], [0, 0, 1, 1], [], []>} : vector<32x32xbf16>, vector<32x128xbf16>, vector<32x128xf32> -> vector<32x128xf32>
    %c127_i32 = arith.constant 127 : i32
    %30 = tpu.dynamic_rotate %29 by %c127_i32 dim 1 : vector<32x128xf32>, i32 -> vector<32x128xf32>
    %31 = arith.addf %26, %30 : vector<32x128xf32>
    %c6 = arith.constant 6 : index
    %c0_21 = arith.constant 0 : index
    %c0_22 = arith.constant 0 : index
    %32 = vector.load %arg2[%c6, %c0_21, %c0_22] : memref<9x32x32xbf16, #tpu.memory_space<vmem>>, vector<1x32x32xbf16>
    %33 = vector.shape_cast %32 : vector<1x32x32xbf16> to vector<32x32xbf16>
    %cst_23 = arith.constant dense<0.000000e+00> : vector<32x128xf32>
    %34 = tpu.matmul %33, %1, %cst_23 {dimension_numbers = #tpu.dot_dimension_numbers<[1], [0], [0], [1], [0, 0, 1, 1], [], []>} : vector<32x32xbf16>, vector<32x128xbf16>, vector<32x128xf32> -> vector<32x128xf32>
    %c123_i32 = arith.constant 123 : i32
    %35 = tpu.dynamic_rotate %34 by %c123_i32 dim 1 : vector<32x128xf32>, i32 -> vector<32x128xf32>
    %36 = arith.addf %31, %35 : vector<32x128xf32>
    %c7 = arith.constant 7 : index
    %c0_24 = arith.constant 0 : index
    %c0_25 = arith.constant 0 : index
    %37 = vector.load %arg2[%c7, %c0_24, %c0_25] : memref<9x32x32xbf16, #tpu.memory_space<vmem>>, vector<1x32x32xbf16>
    %38 = vector.shape_cast %37 : vector<1x32x32xbf16> to vector<32x32xbf16>
    %cst_26 = arith.constant dense<0.000000e+00> : vector<32x128xf32>
    %39 = tpu.matmul %38, %1, %cst_26 {dimension_numbers = #tpu.dot_dimension_numbers<[1], [0], [0], [1], [0, 0, 1, 1], [], []>} : vector<32x32xbf16>, vector<32x128xbf16>, vector<32x128xf32> -> vector<32x128xf32>
    %c122_i32 = arith.constant 122 : i32
    %40 = tpu.dynamic_rotate %39 by %c122_i32 dim 1 : vector<32x128xf32>, i32 -> vector<32x128xf32>
    %41 = arith.addf %36, %40 : vector<32x128xf32>
    %c8 = arith.constant 8 : index
    %c0_27 = arith.constant 0 : index
    %c0_28 = arith.constant 0 : index
    %42 = vector.load %arg2[%c8, %c0_27, %c0_28] : memref<9x32x32xbf16, #tpu.memory_space<vmem>>, vector<1x32x32xbf16>
    %43 = vector.shape_cast %42 : vector<1x32x32xbf16> to vector<32x32xbf16>
    %cst_29 = arith.constant dense<0.000000e+00> : vector<32x128xf32>
    %44 = tpu.matmul %43, %1, %cst_29 {dimension_numbers = #tpu.dot_dimension_numbers<[1], [0], [0], [1], [0, 0, 1, 1], [], []>} : vector<32x32xbf16>, vector<32x128xbf16>, vector<32x128xf32> -> vector<32x128xf32>
    %c121_i32 = arith.constant 121 : i32
    %45 = tpu.dynamic_rotate %44 by %c121_i32 dim 1 : vector<32x128xf32>, i32 -> vector<32x128xf32>
    %46 = arith.addf %41, %45 : vector<32x128xf32>
    %c0_30 = arith.constant 0 : index
    %c0_31 = arith.constant 0 : index
    %47 = vector.load %arg3[%c0_30, %c0_31] : memref<32x1xf32, #tpu.memory_space<vmem>>, vector<32x1xf32>
    %48 = vector.broadcast %47 : vector<32x1xf32> to vector<32x128xf32>
    %49 = arith.addf %46, %48 : vector<32x128xf32>
    %c0_32 = arith.constant 0 : index
    %c0_33 = arith.constant 0 : index
    %50 = vector.load %arg4[%c0_32, %c0_33] : memref<1x128xf32, #tpu.memory_space<vmem>>, vector<1x128xf32>
    %c0_34 = arith.constant 0 : index
    %c0_35 = arith.constant 0 : index
    %c0_36 = arith.constant 0 : index
    %51 = vector.load %arg5[%c0_34, %c0_35, %c0_36] : memref<1x32x128xf32, #tpu.memory_space<vmem>>, vector<1x32x128xf32>
    %52 = vector.shape_cast %51 : vector<1x32x128xf32> to vector<32x128xf32>
    %53 = vector.shape_cast %49 : vector<32x128xf32> to vector<1x32x128xf32>
    tpu.vector_store %arg5[%c0_34, %c0_35, %c0_36], %53 {strides = array<i32>} : memref<1x32x128xf32, #tpu.memory_space<vmem>>, vector<1x32x128xf32>,
    %54 = vector.broadcast %50 : vector<1x128xf32> to vector<32x128xf32>
    %55 = arith.mulf %49, %54 : vector<32x128xf32>
    %cst_37 = arith.constant dense<0.000000e+00> : vector<32xf32>
    %56 = vector.multi_reduction <add>, %55, %cst_37 [1] : vector<32x128xf32> to vector<32xf32>
    %57 = vector.shape_cast %56 : vector<32xf32> to vector<32x1xf32>
    %c0_38 = arith.constant 0 : index
    %c0_39 = arith.constant 0 : index
    %c0_40 = arith.constant 0 : index
    %58 = vector.load %arg6[%c0_38, %c0_39, %c0_40] : memref<1x32x1xf32, #tpu.memory_space<vmem>>, vector<1x32x1xf32>
    %59 = vector.shape_cast %58 : vector<1x32x1xf32> to vector<32x1xf32>
    %60 = vector.shape_cast %57 : vector<32x1xf32> to vector<1x32x1xf32>
    tpu.vector_store %arg6[%c0_38, %c0_39, %c0_40], %60 {strides = array<i32>} : memref<1x32x1xf32, #tpu.memory_space<vmem>>, vector<1x32x1xf32>,
    %61 = arith.mulf %55, %49 : vector<32x128xf32>
    %cst_41 = arith.constant dense<0.000000e+00> : vector<32xf32>
    %62 = vector.multi_reduction <add>, %61, %cst_41 [1] : vector<32x128xf32> to vector<32xf32>
    %63 = vector.shape_cast %62 : vector<32xf32> to vector<32x1xf32>
    %c0_42 = arith.constant 0 : index
    %c0_43 = arith.constant 0 : index
    %c0_44 = arith.constant 0 : index
    %64 = vector.load %arg7[%c0_42, %c0_43, %c0_44] : memref<1x32x1xf32, #tpu.memory_space<vmem>>, vector<1x32x1xf32>
    %65 = vector.shape_cast %64 : vector<1x32x1xf32> to vector<32x1xf32>
    %66 = vector.shape_cast %63 : vector<32x1xf32> to vector<1x32x1xf32>
    tpu.vector_store %arg7[%c0_42, %c0_43, %c0_44], %66 {strides = array<i32>} : memref<1x32x1xf32, #tpu.memory_space<vmem>>, vector<1x32x1xf32>,
    return
  }
  func.func @transform_0(%arg0: i32) -> (i32, i32, i32) {
    %c0_i32 = arith.constant 0 : i32
    %c0_i32_0 = arith.constant 0 : i32
    %c0_i32_1 = arith.constant 0 : i32
    return %arg0, %c0_i32, %c0_i32_0 : i32, i32, i32
  }
  func.func @transform_1(%arg0: i32) -> (i32, i32, i32) {
    %c0_i32 = arith.constant 0 : i32
    %c0_i32_0 = arith.constant 0 : i32
    %c0_i32_1 = arith.constant 0 : i32
    %c0_i32_2 = arith.constant 0 : i32
    return %c0_i32, %c0_i32_0, %c0_i32_1 : i32, i32, i32
  }
  func.func @transform_2(%arg0: i32) -> (i32, i32) {
    %c0_i32 = arith.constant 0 : i32
    %c0_i32_0 = arith.constant 0 : i32
    %c0_i32_1 = arith.constant 0 : i32
    return %c0_i32, %c0_i32_0 : i32, i32
  }
  func.func @transform_3(%arg0: i32) -> (i32, i32) {
    %c0_i32 = arith.constant 0 : i32
    %c0_i32_0 = arith.constant 0 : i32
    %c0_i32_1 = arith.constant 0 : i32
    return %c0_i32, %c0_i32_0 : i32, i32
  }
  func.func @transform_4(%arg0: i32) -> (i32, i32, i32) {
    %c0_i32 = arith.constant 0 : i32
    %c0_i32_0 = arith.constant 0 : i32
    %c0_i32_1 = arith.constant 0 : i32
    return %arg0, %c0_i32, %c0_i32_0 : i32, i32, i32
  }
  func.func @transform_5(%arg0: i32) -> (i32, i32, i32) {
    %c0_i32 = arith.constant 0 : i32
    %c0_i32_0 = arith.constant 0 : i32
    %c0_i32_1 = arith.constant 0 : i32
    return %arg0, %c0_i32, %c0_i32_0 : i32, i32, i32
  }
  func.func @transform_6(%arg0: i32) -> (i32, i32, i32) {
    %c0_i32 = arith.constant 0 : i32
    %c0_i32_0 = arith.constant 0 : i32
    %c0_i32_1 = arith.constant 0 : i32
    return %arg0, %c0_i32, %c0_i32_0 : i32, i32, i32
  }
}

module attributes {stable_mosaic.version = 11 : i64} {
  func.func @bn_relu_res_kernel(%arg0: i32, %arg1: memref<1x32x128xf32, #tpu.memory_space<vmem>>, %arg2: memref<32x1xf32, #tpu.memory_space<vmem>>, %arg3: memref<32x1xf32, #tpu.memory_space<vmem>>, %arg4: memref<1x32x128xbf16, #tpu.memory_space<vmem>>, %arg5: memref<1x128xf32, #tpu.memory_space<vmem>>, %arg6: memref<1x32x128xbf16, #tpu.memory_space<vmem>>) attributes {dimension_semantics = [#tpu.dimension_semantics<parallel>], iteration_bounds = array<i64: 2>, scalar_prefetch = 0 : i64, scratch_operands = 0 : i64, tpu.core_type = #tpu.core_type<tc>, window_params = [{transform_indices = @transform_0, window_bounds = array<i64: 1, 32, 128>}, {pipeline_mode = #tpu.pipeline_mode<synchronous>, transform_indices = @transform_1, window_bounds = array<i64: 32, 1>}, {pipeline_mode = #tpu.pipeline_mode<synchronous>, transform_indices = @transform_2, window_bounds = array<i64: 32, 1>}, {transform_indices = @transform_3, window_bounds = array<i64: 1, 32, 128>}, {pipeline_mode = #tpu.pipeline_mode<synchronous>, transform_indices = @transform_4, window_bounds = array<i64: 1, 128>}, {transform_indices = @transform_5, window_bounds = array<i64: 1, 32, 128>}]} {
    %c0 = arith.constant 0 : index
    %c0_0 = arith.constant 0 : index
    %c0_1 = arith.constant 0 : index
    %0 = vector.load %arg1[%c0, %c0_0, %c0_1] : memref<1x32x128xf32, #tpu.memory_space<vmem>>, vector<1x32x128xf32>
    %1 = vector.shape_cast %0 : vector<1x32x128xf32> to vector<32x128xf32>
    %c0_2 = arith.constant 0 : index
    %c0_3 = arith.constant 0 : index
    %2 = vector.load %arg2[%c0_2, %c0_3] : memref<32x1xf32, #tpu.memory_space<vmem>>, vector<32x1xf32>
    %3 = vector.broadcast %2 : vector<32x1xf32> to vector<32x128xf32>
    %4 = arith.mulf %1, %3 : vector<32x128xf32>
    %c0_4 = arith.constant 0 : index
    %c0_5 = arith.constant 0 : index
    %5 = vector.load %arg3[%c0_4, %c0_5] : memref<32x1xf32, #tpu.memory_space<vmem>>, vector<32x1xf32>
    %6 = vector.broadcast %5 : vector<32x1xf32> to vector<32x128xf32>
    %7 = arith.addf %4, %6 : vector<32x128xf32>
    %cst = arith.constant 0.000000e+00 : f32
    %8 = vector.broadcast %cst : f32 to vector<32x128xf32>
    %9 = arith.maximumf %7, %8 : vector<32x128xf32>
    %c0_6 = arith.constant 0 : index
    %c0_7 = arith.constant 0 : index
    %c0_8 = arith.constant 0 : index
    %10 = vector.load %arg4[%c0_6, %c0_7, %c0_8] : memref<1x32x128xbf16, #tpu.memory_space<vmem>>, vector<1x32x128xbf16>
    %11 = vector.shape_cast %10 : vector<1x32x128xbf16> to vector<32x128xbf16>
    %12 = arith.extf %11 : vector<32x128xbf16> to vector<32x128xf32>
    %13 = arith.addf %9, %12 : vector<32x128xf32>
    %c0_9 = arith.constant 0 : index
    %c0_10 = arith.constant 0 : index
    %14 = vector.load %arg5[%c0_9, %c0_10] : memref<1x128xf32, #tpu.memory_space<vmem>>, vector<1x128xf32>
    %15 = vector.broadcast %14 : vector<1x128xf32> to vector<32x128xf32>
    %16 = arith.mulf %13, %15 : vector<32x128xf32>
    %17 = arith.truncf %16 : vector<32x128xf32> to vector<32x128xbf16>
    %c0_11 = arith.constant 0 : index
    %c0_12 = arith.constant 0 : index
    %c0_13 = arith.constant 0 : index
    %18 = vector.load %arg6[%c0_11, %c0_12, %c0_13] : memref<1x32x128xbf16, #tpu.memory_space<vmem>>, vector<1x32x128xbf16>
    %19 = vector.shape_cast %18 : vector<1x32x128xbf16> to vector<32x128xbf16>
    %20 = vector.shape_cast %17 : vector<32x128xbf16> to vector<1x32x128xbf16>
    tpu.vector_store %arg6[%c0_11, %c0_12, %c0_13], %20 {strides = array<i32>} : memref<1x32x128xbf16, #tpu.memory_space<vmem>>, vector<1x32x128xbf16>,
    return
  }
  func.func @transform_0(%arg0: i32) -> (i32, i32, i32) {
    %c0_i32 = arith.constant 0 : i32
    %c0_i32_0 = arith.constant 0 : i32
    %c0_i32_1 = arith.constant 0 : i32
    return %arg0, %c0_i32, %c0_i32_0 : i32, i32, i32
  }
  func.func @transform_1(%arg0: i32) -> (i32, i32) {
    %c0_i32 = arith.constant 0 : i32
    %c0_i32_0 = arith.constant 0 : i32
    %c0_i32_1 = arith.constant 0 : i32
    return %c0_i32, %c0_i32_0 : i32, i32
  }
  func.func @transform_2(%arg0: i32) -> (i32, i32) {
    %c0_i32 = arith.constant 0 : i32
    %c0_i32_0 = arith.constant 0 : i32
    %c0_i32_1 = arith.constant 0 : i32
    return %c0_i32, %c0_i32_0 : i32, i32
  }
  func.func @transform_3(%arg0: i32) -> (i32, i32, i32) {
    %c0_i32 = arith.constant 0 : i32
    %c0_i32_0 = arith.constant 0 : i32
    %c0_i32_1 = arith.constant 0 : i32
    return %arg0, %c0_i32, %c0_i32_0 : i32, i32, i32
  }
  func.func @transform_4(%arg0: i32) -> (i32, i32) {
    %c0_i32 = arith.constant 0 : i32
    %c0_i32_0 = arith.constant 0 : i32
    %c0_i32_1 = arith.constant 0 : i32
    return %c0_i32, %c0_i32_0 : i32, i32
  }
  func.func @transform_5(%arg0: i32) -> (i32, i32, i32) {
    %c0_i32 = arith.constant 0 : i32
    %c0_i32_0 = arith.constant 0 : i32
    %c0_i32_1 = arith.constant 0 : i32
    return %arg0, %c0_i32, %c0_i32_0 : i32, i32, i32
  }
}

module attributes {stable_mosaic.version = 11 : i64} {
  func.func @conv3x3_fused_bn_kernel(%arg0: i32, %arg1: memref<1x32x128xf32, #tpu.memory_space<vmem>>, %arg2: memref<32x1xf32, #tpu.memory_space<vmem>>, %arg3: memref<32x1xf32, #tpu.memory_space<vmem>>, %arg4: memref<9x32x32xbf16, #tpu.memory_space<vmem>>, %arg5: memref<32x1xf32, #tpu.memory_space<vmem>>, %arg6: memref<1x128xf32, #tpu.memory_space<vmem>>, %arg7: memref<1x32x128xf32, #tpu.memory_space<vmem>>, %arg8: memref<1x32x1xf32, #tpu.memory_space<vmem>>, %arg9: memref<1x32x1xf32, #tpu.memory_space<vmem>>) attributes {dimension_semantics = [#tpu.dimension_semantics<parallel>], iteration_bounds = array<i64: 2>, scalar_prefetch = 0 : i64, scratch_operands = 0 : i64, tpu.core_type = #tpu.core_type<tc>, window_params = [{transform_indices = @transform_0, window_bounds = array<i64: 1, 32, 128>}, {pipeline_mode = #tpu.pipeline_mode<synchronous>, transform_indices = @transform_1, window_bounds = array<i64: 32, 1>}, {pipeline_mode = #tpu.pipeline_mode<synchronous>, transform_indices = @transform_2, window_bounds = array<i64: 32, 1>}, {pipeline_mode = #tpu.pipeline_mode<synchronous>, transform_indices = @transform_3, window_bounds = array<i64: 9, 32, 32>}, {pipeline_mode = #tpu.pipeline_mode<synchronous>, transform_indices = @transform_4, window_bounds = array<i64: 32, 1>}, {pipeline_mode = #tpu.pipeline_mode<synchronous>, transform_indices = @transform_5, window_bounds = array<i64: 1, 128>}, {transform_indices = @transform_6, window_bounds = array<i64: 1, 32, 128>}, {transform_indices = @transform_7, window_bounds = array<i64: 1, 32, 1>}, {transform_indices = @transform_8, window_bounds = array<i64: 1, 32, 1>}]} {
    %c0 = arith.constant 0 : index
    %c0_0 = arith.constant 0 : index
    %c0_1 = arith.constant 0 : index
    %0 = vector.load %arg1[%c0, %c0_0, %c0_1] : memref<1x32x128xf32, #tpu.memory_space<vmem>>, vector<1x32x128xf32>
    %1 = vector.shape_cast %0 : vector<1x32x128xf32> to vector<32x128xf32>
    %c0_2 = arith.constant 0 : index
    %c0_3 = arith.constant 0 : index
    %2 = vector.load %arg2[%c0_2, %c0_3] : memref<32x1xf32, #tpu.memory_space<vmem>>, vector<32x1xf32>
    %3 = vector.broadcast %2 : vector<32x1xf32> to vector<32x128xf32>
    %4 = arith.mulf %1, %3 : vector<32x128xf32>
    %c0_4 = arith.constant 0 : index
    %c0_5 = arith.constant 0 : index
    %5 = vector.load %arg3[%c0_4, %c0_5] : memref<32x1xf32, #tpu.memory_space<vmem>>, vector<32x1xf32>
    %6 = vector.broadcast %5 : vector<32x1xf32> to vector<32x128xf32>
    %7 = arith.addf %4, %6 : vector<32x128xf32>
    %cst = arith.constant 0.000000e+00 : f32
    %8 = vector.broadcast %cst : f32 to vector<32x128xf32>
    %9 = arith.maximumf %7, %8 : vector<32x128xf32>
    %c0_6 = arith.constant 0 : index
    %c0_7 = arith.constant 0 : index
    %10 = vector.load %arg6[%c0_6, %c0_7] : memref<1x128xf32, #tpu.memory_space<vmem>>, vector<1x128xf32>
    %11 = vector.broadcast %10 : vector<1x128xf32> to vector<32x128xf32>
    %12 = arith.mulf %9, %11 : vector<32x128xf32>
    %13 = arith.truncf %12 : vector<32x128xf32> to vector<32x128xbf16>
    %cst_8 = arith.constant 0.000000e+00 : f32
    %14 = vector.broadcast %cst_8 : f32 to vector<32x128xf32>
    %c0_9 = arith.constant 0 : index
    %c0_10 = arith.constant 0 : index
    %c0_11 = arith.constant 0 : index
    %15 = vector.load %arg4[%c0_9, %c0_10, %c0_11] : memref<9x32x32xbf16, #tpu.memory_space<vmem>>, vector<1x32x32xbf16>
    %16 = vector.shape_cast %15 : vector<1x32x32xbf16> to vector<32x32xbf16>
    %cst_12 = arith.constant dense<0.000000e+00> : vector<32x128xf32>
    %17 = tpu.matmul %16, %13, %cst_12 {dimension_numbers = #tpu.dot_dimension_numbers<[1], [0], [0], [1], [0, 0, 1, 1], [], []>} : vector<32x32xbf16>, vector<32x128xbf16>, vector<32x128xf32> -> vector<32x128xf32>
    %c7_i32 = arith.constant 7 : i32
    %18 = tpu.dynamic_rotate %17 by %c7_i32 dim 1 : vector<32x128xf32>, i32 -> vector<32x128xf32>
    %19 = arith.addf %14, %18 : vector<32x128xf32>
    %c1 = arith.constant 1 : index
    %c0_13 = arith.constant 0 : index
    %c0_14 = arith.constant 0 : index
    %20 = vector.load %arg4[%c1, %c0_13, %c0_14] : memref<9x32x32xbf16, #tpu.memory_space<vmem>>, vector<1x32x32xbf16>
    %21 = vector.shape_cast %20 : vector<1x32x32xbf16> to vector<32x32xbf16>
    %cst_15 = arith.constant dense<0.000000e+00> : vector<32x128xf32>
    %22 = tpu.matmul %21, %13, %cst_15 {dimension_numbers = #tpu.dot_dimension_numbers<[1], [0], [0], [1], [0, 0, 1, 1], [], []>} : vector<32x32xbf16>, vector<32x128xbf16>, vector<32x128xf32> -> vector<32x128xf32>
    %c6_i32 = arith.constant 6 : i32
    %23 = tpu.dynamic_rotate %22 by %c6_i32 dim 1 : vector<32x128xf32>, i32 -> vector<32x128xf32>
    %24 = arith.addf %19, %23 : vector<32x128xf32>
    %c2 = arith.constant 2 : index
    %c0_16 = arith.constant 0 : index
    %c0_17 = arith.constant 0 : index
    %25 = vector.load %arg4[%c2, %c0_16, %c0_17] : memref<9x32x32xbf16, #tpu.memory_space<vmem>>, vector<1x32x32xbf16>
    %26 = vector.shape_cast %25 : vector<1x32x32xbf16> to vector<32x32xbf16>
    %cst_18 = arith.constant dense<0.000000e+00> : vector<32x128xf32>
    %27 = tpu.matmul %26, %13, %cst_18 {dimension_numbers = #tpu.dot_dimension_numbers<[1], [0], [0], [1], [0, 0, 1, 1], [], []>} : vector<32x32xbf16>, vector<32x128xbf16>, vector<32x128xf32> -> vector<32x128xf32>
    %c5_i32 = arith.constant 5 : i32
    %28 = tpu.dynamic_rotate %27 by %c5_i32 dim 1 : vector<32x128xf32>, i32 -> vector<32x128xf32>
    %29 = arith.addf %24, %28 : vector<32x128xf32>
    %c3 = arith.constant 3 : index
    %c0_19 = arith.constant 0 : index
    %c0_20 = arith.constant 0 : index
    %30 = vector.load %arg4[%c3, %c0_19, %c0_20] : memref<9x32x32xbf16, #tpu.memory_space<vmem>>, vector<1x32x32xbf16>
    %31 = vector.shape_cast %30 : vector<1x32x32xbf16> to vector<32x32xbf16>
    %cst_21 = arith.constant dense<0.000000e+00> : vector<32x128xf32>
    %32 = tpu.matmul %31, %13, %cst_21 {dimension_numbers = #tpu.dot_dimension_numbers<[1], [0], [0], [1], [0, 0, 1, 1], [], []>} : vector<32x32xbf16>, vector<32x128xbf16>, vector<32x128xf32> -> vector<32x128xf32>
    %c1_i32 = arith.constant 1 : i32
    %33 = tpu.dynamic_rotate %32 by %c1_i32 dim 1 : vector<32x128xf32>, i32 -> vector<32x128xf32>
    %34 = arith.addf %29, %33 : vector<32x128xf32>
    %c4 = arith.constant 4 : index
    %c0_22 = arith.constant 0 : index
    %c0_23 = arith.constant 0 : index
    %35 = vector.load %arg4[%c4, %c0_22, %c0_23] : memref<9x32x32xbf16, #tpu.memory_space<vmem>>, vector<1x32x32xbf16>
    %36 = vector.shape_cast %35 : vector<1x32x32xbf16> to vector<32x32xbf16>
    %cst_24 = arith.constant dense<0.000000e+00> : vector<32x128xf32>
    %37 = tpu.matmul %36, %13, %cst_24 {dimension_numbers = #tpu.dot_dimension_numbers<[1], [0], [0], [1], [0, 0, 1, 1], [], []>} : vector<32x32xbf16>, vector<32x128xbf16>, vector<32x128xf32> -> vector<32x128xf32>
    %38 = arith.addf %34, %37 : vector<32x128xf32>
    %c5 = arith.constant 5 : index
    %c0_25 = arith.constant 0 : index
    %c0_26 = arith.constant 0 : index
    %39 = vector.load %arg4[%c5, %c0_25, %c0_26] : memref<9x32x32xbf16, #tpu.memory_space<vmem>>, vector<1x32x32xbf16>
    %40 = vector.shape_cast %39 : vector<1x32x32xbf16> to vector<32x32xbf16>
    %cst_27 = arith.constant dense<0.000000e+00> : vector<32x128xf32>
    %41 = tpu.matmul %40, %13, %cst_27 {dimension_numbers = #tpu.dot_dimension_numbers<[1], [0], [0], [1], [0, 0, 1, 1], [], []>} : vector<32x32xbf16>, vector<32x128xbf16>, vector<32x128xf32> -> vector<32x128xf32>
    %c127_i32 = arith.constant 127 : i32
    %42 = tpu.dynamic_rotate %41 by %c127_i32 dim 1 : vector<32x128xf32>, i32 -> vector<32x128xf32>
    %43 = arith.addf %38, %42 : vector<32x128xf32>
    %c6 = arith.constant 6 : index
    %c0_28 = arith.constant 0 : index
    %c0_29 = arith.constant 0 : index
    %44 = vector.load %arg4[%c6, %c0_28, %c0_29] : memref<9x32x32xbf16, #tpu.memory_space<vmem>>, vector<1x32x32xbf16>
    %45 = vector.shape_cast %44 : vector<1x32x32xbf16> to vector<32x32xbf16>
    %cst_30 = arith.constant dense<0.000000e+00> : vector<32x128xf32>
    %46 = tpu.matmul %45, %13, %cst_30 {dimension_numbers = #tpu.dot_dimension_numbers<[1], [0], [0], [1], [0, 0, 1, 1], [], []>} : vector<32x32xbf16>, vector<32x128xbf16>, vector<32x128xf32> -> vector<32x128xf32>
    %c123_i32 = arith.constant 123 : i32
    %47 = tpu.dynamic_rotate %46 by %c123_i32 dim 1 : vector<32x128xf32>, i32 -> vector<32x128xf32>
    %48 = arith.addf %43, %47 : vector<32x128xf32>
    %c7 = arith.constant 7 : index
    %c0_31 = arith.constant 0 : index
    %c0_32 = arith.constant 0 : index
    %49 = vector.load %arg4[%c7, %c0_31, %c0_32] : memref<9x32x32xbf16, #tpu.memory_space<vmem>>, vector<1x32x32xbf16>
    %50 = vector.shape_cast %49 : vector<1x32x32xbf16> to vector<32x32xbf16>
    %cst_33 = arith.constant dense<0.000000e+00> : vector<32x128xf32>
    %51 = tpu.matmul %50, %13, %cst_33 {dimension_numbers = #tpu.dot_dimension_numbers<[1], [0], [0], [1], [0, 0, 1, 1], [], []>} : vector<32x32xbf16>, vector<32x128xbf16>, vector<32x128xf32> -> vector<32x128xf32>
    %c122_i32 = arith.constant 122 : i32
    %52 = tpu.dynamic_rotate %51 by %c122_i32 dim 1 : vector<32x128xf32>, i32 -> vector<32x128xf32>
    %53 = arith.addf %48, %52 : vector<32x128xf32>
    %c8 = arith.constant 8 : index
    %c0_34 = arith.constant 0 : index
    %c0_35 = arith.constant 0 : index
    %54 = vector.load %arg4[%c8, %c0_34, %c0_35] : memref<9x32x32xbf16, #tpu.memory_space<vmem>>, vector<1x32x32xbf16>
    %55 = vector.shape_cast %54 : vector<1x32x32xbf16> to vector<32x32xbf16>
    %cst_36 = arith.constant dense<0.000000e+00> : vector<32x128xf32>
    %56 = tpu.matmul %55, %13, %cst_36 {dimension_numbers = #tpu.dot_dimension_numbers<[1], [0], [0], [1], [0, 0, 1, 1], [], []>} : vector<32x32xbf16>, vector<32x128xbf16>, vector<32x128xf32> -> vector<32x128xf32>
    %c121_i32 = arith.constant 121 : i32
    %57 = tpu.dynamic_rotate %56 by %c121_i32 dim 1 : vector<32x128xf32>, i32 -> vector<32x128xf32>
    %58 = arith.addf %53, %57 : vector<32x128xf32>
    %c0_37 = arith.constant 0 : index
    %c0_38 = arith.constant 0 : index
    %59 = vector.load %arg5[%c0_37, %c0_38] : memref<32x1xf32, #tpu.memory_space<vmem>>, vector<32x1xf32>
    %60 = vector.broadcast %59 : vector<32x1xf32> to vector<32x128xf32>
    %61 = arith.addf %58, %60 : vector<32x128xf32>
    %c0_39 = arith.constant 0 : index
    %c0_40 = arith.constant 0 : index
    %62 = vector.load %arg6[%c0_39, %c0_40] : memref<1x128xf32, #tpu.memory_space<vmem>>, vector<1x128xf32>
    %c0_41 = arith.constant 0 : index
    %c0_42 = arith.constant 0 : index
    %c0_43 = arith.constant 0 : index
    %63 = vector.load %arg7[%c0_41, %c0_42, %c0_43] : memref<1x32x128xf32, #tpu.memory_space<vmem>>, vector<1x32x128xf32>
    %64 = vector.shape_cast %63 : vector<1x32x128xf32> to vector<32x128xf32>
    %65 = vector.shape_cast %61 : vector<32x128xf32> to vector<1x32x128xf32>
    tpu.vector_store %arg7[%c0_41, %c0_42, %c0_43], %65 {strides = array<i32>} : memref<1x32x128xf32, #tpu.memory_space<vmem>>, vector<1x32x128xf32>,
    %66 = vector.broadcast %62 : vector<1x128xf32> to vector<32x128xf32>
    %67 = arith.mulf %61, %66 : vector<32x128xf32>
    %cst_44 = arith.constant dense<0.000000e+00> : vector<32xf32>
    %68 = vector.multi_reduction <add>, %67, %cst_44 [1] : vector<32x128xf32> to vector<32xf32>
    %69 = vector.shape_cast %68 : vector<32xf32> to vector<32x1xf32>
    %c0_45 = arith.constant 0 : index
    %c0_46 = arith.constant 0 : index
    %c0_47 = arith.constant 0 : index
    %70 = vector.load %arg8[%c0_45, %c0_46, %c0_47] : memref<1x32x1xf32, #tpu.memory_space<vmem>>, vector<1x32x1xf32>
    %71 = vector.shape_cast %70 : vector<1x32x1xf32> to vector<32x1xf32>
    %72 = vector.shape_cast %69 : vector<32x1xf32> to vector<1x32x1xf32>
    tpu.vector_store %arg8[%c0_45, %c0_46, %c0_47], %72 {strides = array<i32>} : memref<1x32x1xf32, #tpu.memory_space<vmem>>, vector<1x32x1xf32>,
    %73 = arith.mulf %67, %61 : vector<32x128xf32>
    %cst_48 = arith.constant dense<0.000000e+00> : vector<32xf32>
    %74 = vector.multi_reduction <add>, %73, %cst_48 [1] : vector<32x128xf32> to vector<32xf32>
    %75 = vector.shape_cast %74 : vector<32xf32> to vector<32x1xf32>
    %c0_49 = arith.constant 0 : index
    %c0_50 = arith.constant 0 : index
    %c0_51 = arith.constant 0 : index
    %76 = vector.load %arg9[%c0_49, %c0_50, %c0_51] : memref<1x32x1xf32, #tpu.memory_space<vmem>>, vector<1x32x1xf32>
    %77 = vector.shape_cast %76 : vector<1x32x1xf32> to vector<32x1xf32>
    %78 = vector.shape_cast %75 : vector<32x1xf32> to vector<1x32x1xf32>
    tpu.vector_store %arg9[%c0_49, %c0_50, %c0_51], %78 {strides = array<i32>} : memref<1x32x1xf32, #tpu.memory_space<vmem>>, vector<1x32x1xf32>,
    return
  }
  func.func @transform_0(%arg0: i32) -> (i32, i32, i32) {
    %c0_i32 = arith.constant 0 : i32
    %c0_i32_0 = arith.constant 0 : i32
    %c0_i32_1 = arith.constant 0 : i32
    return %arg0, %c0_i32, %c0_i32_0 : i32, i32, i32
  }
  func.func @transform_1(%arg0: i32) -> (i32, i32) {
    %c0_i32 = arith.constant 0 : i32
    %c0_i32_0 = arith.constant 0 : i32
    %c0_i32_1 = arith.constant 0 : i32
    return %c0_i32, %c0_i32_0 : i32, i32
  }
  func.func @transform_2(%arg0: i32) -> (i32, i32) {
    %c0_i32 = arith.constant 0 : i32
    %c0_i32_0 = arith.constant 0 : i32
    %c0_i32_1 = arith.constant 0 : i32
    return %c0_i32, %c0_i32_0 : i32, i32
  }
  func.func @transform_3(%arg0: i32) -> (i32, i32, i32) {
    %c0_i32 = arith.constant 0 : i32
    %c0_i32_0 = arith.constant 0 : i32
    %c0_i32_1 = arith.constant 0 : i32
    %c0_i32_2 = arith.constant 0 : i32
    return %c0_i32, %c0_i32_0, %c0_i32_1 : i32, i32, i32
  }
  func.func @transform_4(%arg0: i32) -> (i32, i32) {
    %c0_i32 = arith.constant 0 : i32
    %c0_i32_0 = arith.constant 0 : i32
    %c0_i32_1 = arith.constant 0 : i32
    return %c0_i32, %c0_i32_0 : i32, i32
  }
  func.func @transform_5(%arg0: i32) -> (i32, i32) {
    %c0_i32 = arith.constant 0 : i32
    %c0_i32_0 = arith.constant 0 : i32
    %c0_i32_1 = arith.constant 0 : i32
    return %c0_i32, %c0_i32_0 : i32, i32
  }
  func.func @transform_6(%arg0: i32) -> (i32, i32, i32) {
    %c0_i32 = arith.constant 0 : i32
    %c0_i32_0 = arith.constant 0 : i32
    %c0_i32_1 = arith.constant 0 : i32
    return %arg0, %c0_i32, %c0_i32_0 : i32, i32, i32
  }
  func.func @transform_7(%arg0: i32) -> (i32, i32, i32) {
    %c0_i32 = arith.constant 0 : i32
    %c0_i32_0 = arith.constant 0 : i32
    %c0_i32_1 = arith.constant 0 : i32
    return %arg0, %c0_i32, %c0_i32_0 : i32, i32, i32
  }
  func.func @transform_8(%arg0: i32) -> (i32, i32, i32) {
    %c0_i32 = arith.constant 0 : i32
    %c0_i32_0 = arith.constant 0 : i32
    %c0_i32_1 = arith.constant 0 : i32
    return %arg0, %c0_i32, %c0_i32_0 : i32, i32, i32
  }
}

module attributes {stable_mosaic.version = 11 : i64} {
  func.func @pointwise_conv_kernel(%arg0: i32, %arg1: memref<1x32x4xbf16, #tpu.memory_space<vmem>>, %arg2: memref<64x32xbf16, #tpu.memory_space<vmem>>, %arg3: memref<64x1xf32, #tpu.memory_space<vmem>>, %arg4: memref<1x64x4xbf16, #tpu.memory_space<vmem>>) attributes {dimension_semantics = [#tpu.dimension_semantics<parallel>], iteration_bounds = array<i64: 2>, scalar_prefetch = 0 : i64, scratch_operands = 0 : i64, tpu.core_type = #tpu.core_type<tc>, window_params = [{transform_indices = @transform_0, window_bounds = array<i64: 1, 32, 4>}, {pipeline_mode = #tpu.pipeline_mode<synchronous>, transform_indices = @transform_1, window_bounds = array<i64: 64, 32>}, {pipeline_mode = #tpu.pipeline_mode<synchronous>, transform_indices = @transform_2, window_bounds = array<i64: 64, 1>}, {transform_indices = @transform_3, window_bounds = array<i64: 1, 64, 4>}]} {
    %c0 = arith.constant 0 : index
    %c0_0 = arith.constant 0 : index
    %0 = vector.load %arg2[%c0, %c0_0] : memref<64x32xbf16, #tpu.memory_space<vmem>>, vector<64x32xbf16>
    %c0_1 = arith.constant 0 : index
    %c0_2 = arith.constant 0 : index
    %c0_3 = arith.constant 0 : index
    %1 = vector.load %arg1[%c0_1, %c0_2, %c0_3] : memref<1x32x4xbf16, #tpu.memory_space<vmem>>, vector<1x32x4xbf16>
    %2 = vector.shape_cast %1 : vector<1x32x4xbf16> to vector<32x4xbf16>
    %cst = arith.constant dense<0.000000e+00> : vector<64x4xf32>
    %3 = tpu.matmul %0, %2, %cst {dimension_numbers = #tpu.dot_dimension_numbers<[1], [0], [0], [1], [0, 0, 1, 1], [], []>} : vector<64x32xbf16>, vector<32x4xbf16>, vector<64x4xf32> -> vector<64x4xf32>
    %c0_4 = arith.constant 0 : index
    %c0_5 = arith.constant 0 : index
    %4 = vector.load %arg3[%c0_4, %c0_5] : memref<64x1xf32, #tpu.memory_space<vmem>>, vector<64x1xf32>
    %5 = vector.broadcast %4 : vector<64x1xf32> to vector<64x4xf32>
    %6 = arith.addf %3, %5 : vector<64x4xf32>
    %7 = arith.truncf %6 : vector<64x4xf32> to vector<64x4xbf16>
    %c0_6 = arith.constant 0 : index
    %c0_7 = arith.constant 0 : index
    %c0_8 = arith.constant 0 : index
    %8 = vector.load %arg4[%c0_6, %c0_7, %c0_8] : memref<1x64x4xbf16, #tpu.memory_space<vmem>>, vector<1x64x4xbf16>
    %9 = vector.shape_cast %8 : vector<1x64x4xbf16> to vector<64x4xbf16>
    %10 = vector.shape_cast %7 : vector<64x4xbf16> to vector<1x64x4xbf16>
    tpu.vector_store %arg4[%c0_6, %c0_7, %c0_8], %10 {strides = array<i32>} : memref<1x64x4xbf16, #tpu.memory_space<vmem>>, vector<1x64x4xbf16>,
    return
  }
  func.func @transform_0(%arg0: i32) -> (i32, i32, i32) {
    %c0_i32 = arith.constant 0 : i32
    %c0_i32_0 = arith.constant 0 : i32
    %c0_i32_1 = arith.constant 0 : i32
    return %arg0, %c0_i32, %c0_i32_0 : i32, i32, i32
  }
  func.func @transform_1(%arg0: i32) -> (i32, i32) {
    %c0_i32 = arith.constant 0 : i32
    %c0_i32_0 = arith.constant 0 : i32
    %c0_i32_1 = arith.constant 0 : i32
    return %c0_i32, %c0_i32_0 : i32, i32
  }
  func.func @transform_2(%arg0: i32) -> (i32, i32) {
    %c0_i32 = arith.constant 0 : i32
    %c0_i32_0 = arith.constant 0 : i32
    %c0_i32_1 = arith.constant 0 : i32
    return %c0_i32, %c0_i32_0 : i32, i32
  }
  func.func @transform_3(%arg0: i32) -> (i32, i32, i32) {
    %c0_i32 = arith.constant 0 : i32
    %c0_i32_0 = arith.constant 0 : i32
    %c0_i32_1 = arith.constant 0 : i32
    return %arg0, %c0_i32, %c0_i32_0 : i32, i32, i32
  }
}

module attributes {stable_mosaic.version = 11 : i64} {
  func.func @head_kernel(%arg0: memref<2x256xbf16, #tpu.memory_space<vmem>>, %arg1: memref<256x6xbf16, #tpu.memory_space<vmem>>, %arg2: memref<1x6xf32, #tpu.memory_space<vmem>>, %arg3: memref<2x6xf32, #tpu.memory_space<vmem>>) attributes {dimension_semantics = [], scalar_prefetch = 0 : i64, scratch_operands = 0 : i64, tpu.core_type = #tpu.core_type<tc>} {
    %c0 = arith.constant 0 : index
    %c0_0 = arith.constant 0 : index
    %0 = vector.load %arg0[%c0, %c0_0] : memref<2x256xbf16, #tpu.memory_space<vmem>>, vector<2x256xbf16>
    %c0_1 = arith.constant 0 : index
    %c0_2 = arith.constant 0 : index
    %1 = vector.load %arg1[%c0_1, %c0_2] : memref<256x6xbf16, #tpu.memory_space<vmem>>, vector<256x6xbf16>
    %cst = arith.constant dense<0.000000e+00> : vector<2x6xf32>
    %2 = tpu.matmul %0, %1, %cst {dimension_numbers = #tpu.dot_dimension_numbers<[1], [0], [0], [1], [0, 0, 1, 1], [], []>} : vector<2x256xbf16>, vector<256x6xbf16>, vector<2x6xf32> -> vector<2x6xf32>
    %c0_3 = arith.constant 0 : index
    %c0_4 = arith.constant 0 : index
    %3 = vector.load %arg2[%c0_3, %c0_4] : memref<1x6xf32, #tpu.memory_space<vmem>>, vector<1x6xf32>
    %4 = vector.broadcast %3 : vector<1x6xf32> to vector<2x6xf32>
    %5 = arith.addf %2, %4 : vector<2x6xf32>
    %cst_5 = arith.constant dense<0xFF800000> : vector<2xf32>
    %6 = vector.multi_reduction <maximumf>, %5, %cst_5 [1] : vector<2x6xf32> to vector<2xf32>
    %7 = vector.shape_cast %6 : vector<2xf32> to vector<2x1xf32>
    %8 = vector.broadcast %7 : vector<2x1xf32> to vector<2x6xf32>
    %9 = arith.subf %5, %8 : vector<2x6xf32>
    %10 = math.exp %9 : vector<2x6xf32>
    %cst_6 = arith.constant dense<0.000000e+00> : vector<2xf32>
    %11 = vector.multi_reduction <add>, %10, %cst_6 [1] : vector<2x6xf32> to vector<2xf32>
    %12 = vector.shape_cast %11 : vector<2xf32> to vector<2x1xf32>
    %13 = math.log %12 : vector<2x1xf32>
    %14 = vector.broadcast %13 : vector<2x1xf32> to vector<2x6xf32>
    %15 = arith.subf %9, %14 : vector<2x6xf32>
    %c0_7 = arith.constant 0 : index
    %c0_8 = arith.constant 0 : index
    %16 = vector.load %arg3[%c0_7, %c0_8] : memref<2x6xf32, #tpu.memory_space<vmem>>, vector<2x6xf32>
    tpu.vector_store %arg3[%c0_7, %c0_8], %15 {strides = array<i32>} : memref<2x6xf32, #tpu.memory_space<vmem>>, vector<2x6xf32>,
    return
  }
}

</mosaic_0001>

<bundles_post_ra>
// kernel: model_d_forward.16
= control target key start
LH: loop header
LB: loop body
LE: loop exit
PB: predicated region body
PF: predicated region fallthrough
CT: control target
= control target key end

     0   :  { %s404_s15 = smov 0   ;;  %s451_s0 = inlined_call_operand.vmem [shape: f32[2,8,1280], index: 0, kind: input, shape index: {}]   ;;  %s452_s1 = inlined_call_operand.vmem [shape: f32[8,1], index: 1, kind: input, shape index: {}]   ;;  %s453_s2 = inlined_call_operand.vmem [shape: f32[8,1], index: 2, kind: input, shape index: {}]   ;;  %s454_s3 = inlined_call_operand.vmem [shape: f32[1,1280], index: 3, kind: input, shape index: {}]   ;;  %s455_s4 = inlined_call_operand.vmem [shape: bf16[2,8,1280], index: 4, kind: output, shape index: {}]  }
   0x1 LB: > { %s349_s16 = sadd.s32 4294967295, %s376_s15   ;;  %p353_p0 = scmp.ge.s32.totalorder %s376_s15, 1  ;;  %s376_s15 = sphi %s404_s15, %s14_s15  }
   0x2   : > { %p162_p1 = scmp.lt.s32.totalorder %s376_s15, 3 }
   0x4   : > { %p163_p2 = pnand %p353_p0, %p162_p1 }
   0x5   : > { %p188_p3 = scmp.lt.s32.totalorder (!%p163_p2), %s349_s16, 1 }
   0x6   : > { %166 = sbr.rel (%p163_p2) target bundleno = 150 (0x96), region = 36 }
   0xb   : > { %v208_v0 = vld [vmem:[%s452_s1] sm:$0xff]  ;;  %v378_v1 = vmov 0   ;;  %s457_s16 = smov (!%p188_p3, %s349_s16), 1  ;;  %v432_v5 = vld [vmem:[%s454_s3 + $0x8] sm:$0x3] }
   0xc   : > { %369 = vset.pattern.permute.xlu0 %v378_v1  ;;  %v224_v2 = vld [vmem:[%s453_s2] sm:$0xff]  ;;  %s358_s21 = smul.u32 80, %s457_s16  ;;  %v262_v24 = vperm.slane %v432_v5, 0  ;;  %v263_v25 = vperm.slane %v432_v5, 1 }
   0xd   : > { %211 = vperm.xlu0 %369, %v208_v0   ;;  %v427_v4 = vld [vmem:[%s454_s3] sm:$0xff]  ;;  %s359_s29 = smul.u32 40, %s457_s16 }
   0xe   : > { %s192_s24 = scalar_lea.vmem %s451_s0, %s358_s21  ;;  %v254_v7 = vperm.slane %v427_v4, 0  ;;  %v255_v8 = vperm.slane %v427_v4, 1  ;;  %v256_v12 = vperm.slane %v427_v4, 2  ;;  %v257_v13 = vperm.slane %v427_v4, 3 }
   0xf   : > { %v198_v6 = vld [vmem:[%s192_s24] sm:$0xff]  ;;  %v199_v9 = vld [vmem:[%s192_s24 + $0x8] sm:$0xff]  ;;  %v200_v10 = vld [vmem:[%s192_s24 + $0x10] sm:$0xff]  ;;  %v258_v14 = vperm.slane %v427_v4, 4  ;;  %v259_v18 = vperm.slane %v427_v4, 5  ;;  %v260_v19 = vperm.slane %v427_v4, 6  ;;  %s197_s6 = scalar_lea.vmem %s455_s4, %s359_s29 }
  0x10   : > { %v201_v11 = vld [vmem:[%s192_s24 + $0x18] sm:$0xff]  ;;  %v202_v15 = vld [vmem:[%s192_s24 + $0x20] sm:$0xff]  ;;  %v203_v16 = vld [vmem:[%s192_s24 + $0x28] sm:$0xff]  ;;  %v261_v20 = vperm.slane %v427_v4, 7 }
  0x11   : > { %v204_v17 = vld [vmem:[%s192_s24 + $0x30] sm:$0xff]  ;;  %v205_v21 = vld [vmem:[%s192_s24 + $0x38] sm:$0xff]  ;;  %v206_v22 = vld [vmem:[%s192_s24 + $0x40] sm:$0xff] }
  0x12   : > { %v207_v23 = vld [vmem:[%s192_s24 + $0x48] sm:$0xff] }
  0x15   : > { %227 = vperm.xlu0 %369, %v224_v2  }
  0x7f   : > { %v212_v3 = vpop.permute.xlu0 %211 }
  0x80   : > { %v214_v26 = vmul.f32 %v212_v3, %v198_v6  ;;  %v215_v27 = vmul.f32 %v212_v3, %v199_v9  ;;  %v216_v28 = vmul.f32 %v212_v3, %v200_v10  ;;  %v217_v29 = vmul.f32 %v212_v3, %v201_v11 }
  0x81   : > { %v218_v30 = vmul.f32 %v212_v3, %v202_v15  ;;  %v219_v31 = vmul.f32 %v212_v3, %v203_v16  ;;  %v220_v33 = vmul.f32 %v212_v3, %v204_v17  ;;  %v221_v34 = vmul.f32 %v212_v3, %v205_v21 }
  0x82   : > { %v222_v35 = vmul.f32 %v212_v3, %v206_v22  ;;  %v223_v36 = vmul.f32 %v212_v3, %v207_v23 }
  0x87   : > { %v228_v32 = vpop.permute.xlu0 %227 }
  0x88   : > { %v230_v37 = vadd.f32 %v228_v32, %v214_v26  ;;  %v231_v38 = vadd.f32 %v228_v32, %v215_v27  ;;  %v232_v39 = vadd.f32 %v228_v32, %v216_v28  ;;  %v233_v40 = vadd.f32 %v228_v32, %v217_v29 }
  0x89   : > { %v234_v41 = vadd.f32 %v228_v32, %v218_v30  ;;  %v235_v42 = vadd.f32 %v228_v32, %v219_v31  ;;  %v236_v43 = vadd.f32 %v228_v32, %v220_v33  ;;  %v237_v44 = vadd.f32 %v228_v32, %v221_v34 }
  0x8a   : > { %v238_v45 = vadd.f32 %v228_v32, %v222_v35  ;;  %v239_v46 = vadd.f32 %v228_v32, %v223_v36  ;;  %v240_v47 = vmax.f32 %v230_v37, 0.0  ;;  %v241_v48 = vmax.f32 %v231_v38, 0.0 }
  0x8b   : > { %v242_v49 = vmax.f32 %v232_v39, 0.0  ;;  %v243_v50 = vmax.f32 %v233_v40, 0.0  ;;  %v244_v51 = vmax.f32 %v234_v41, 0.0  ;;  %v245_v52 = vmax.f32 %v235_v42, 0.0 }
  0x8c   : > { %v246_v53 = vmax.f32 %v236_v43, 0.0  ;;  %v247_v54 = vmax.f32 %v237_v44, 0.0  ;;  %v248_v55 = vmax.f32 %v238_v45, 0.0  ;;  %v249_v56 = vmax.f32 %v239_v46, 0.0 }
  0x8d   : > { %v274_v57 = vmul.f32 %v254_v7, %v240_v47  ;;  %v275_v58 = vmul.f32 %v255_v8, %v241_v48  ;;  %v276_v59 = vmul.f32 %v256_v12, %v242_v49  ;;  %v277_v60 = vmul.f32 %v257_v13, %v243_v50 }
  0x8e   : > { %v278_v61 = vmul.f32 %v258_v14, %v244_v51  ;;  %v279_v62 = vmul.f32 %v259_v18, %v245_v52  ;;  %v280_v63 = vmul.f32 %v260_v19, %v246_v53  ;;  %v281_v0 = vmul.f32 %v261_v20, %v247_v54 }
  0x8f   : > { %v282_v1 = vmul.f32 %v262_v24, %v248_v55  ;;  %v283_v2 = vmul.f32 %v263_v25, %v249_v56  ;;  %v284_v3 = vpack.c.bf16 %v275_v58, %v274_v57  ;;  %v285_v4 = vpack.c.bf16 %v277_v60, %v276_v59 }
  0x90   : > { %v286_v5 = vpack.c.bf16 %v279_v62, %v278_v61  ;;  %v287_v6 = vpack.c.bf16 %v281_v0, %v280_v63 }
  0x91   : > { %v288_v9 = vpack.c.bf16 %v283_v2, %v282_v1  ;;  %289 = vst [vmem:[%s197_s6] sm:$0xff] %v284_v3 }
  0x92   : > { %290 = vst [vmem:[%s197_s6 + $0x8] sm:$0xff] %v285_v4 }
  0x93   : > { %291 = vst [vmem:[%s197_s6 + $0x10] sm:$0xff] %v286_v5 }
  0x94   : > { %292 = vst [vmem:[%s197_s6 + $0x18] sm:$0xff] %v287_v6 }
  0x95   : > { %293 = vst [vmem:[%s197_s6 + $0x20] sm:$0xff] %v288_v9 }
  0x96 PF: > { %s14_s15 = sadd.s32 1, %s376_s15  }
  0x97   : > { %p11_p4 = scmp.ge.s32.totalorder %s14_s15, 4  }
  0x99   :  { %13 = sbr.rel (!%p11_p4) target bundleno = 1 (0x1), region = 66 }

// kernel: model_d_forward.15
= control target key start
LH: loop header
LB: loop body
LE: loop exit
PB: predicated region body
PF: predicated region fallthrough
CT: control target
= control target key end

     0   :  { %s2541_s21 = smov 0   ;;  %s3387_s0 = inlined_call_operand.vmem [shape: bf16[2,3,1280], index: 0, kind: input, shape index: {}]   ;;  %s3388_s1 = inlined_call_operand.vmem [shape: bf16[9,8,3], index: 1, kind: input, shape index: {}]   ;;  %s3389_s2 = inlined_call_operand.vmem [shape: f32[8,1], index: 2, kind: input, shape index: {}]   ;;  %s3390_s3 = inlined_call_operand.vmem [shape: f32[1,1280], index: 3, kind: input, shape index: {}]   ;;  %s3391_s4 = inlined_call_operand.vmem [shape: f32[2,8,1280], index: 4, kind: output, shape index: {0}]   ;;  %s3392_s5 = inlined_call_operand.vmem [shape: f32[2,8,1], index: 5, kind: output, shape index: {1}]   ;;  %s3393_s6 = inlined_call_operand.vmem [shape: f32[2,8,1], index: 6, kind: output, shape index: {2}]  }
   0x1 LB: > { %s2357_s22 = sadd.s32 4294967295, %s2494_s21   ;;  %p2361_p0 = scmp.ge.s32.totalorder %s2494_s21, 1  ;;  %s2494_s21 = sphi %s2541_s21, %s17_s21  }
   0x2   : > { %p217_p1 = scmp.lt.s32.totalorder %s2494_s21, 3 }
   0x4   : > { %p218_p2 = pnand %p2361_p0, %p217_p1 }
   0x5   : > { %p255_p3 = scmp.lt.s32.totalorder (!%p218_p2), %s2357_s22, 1  ;;  %s2498_s13 = smov (!%p218_p2), 35  }
   0x6   : > { %221 = sbr.rel (%p218_p2) target bundleno = 754 (0x2f2), region = 36  ;;  %s2499_s16 = smov (!%p218_p2), 34  }
   0x7   : > { %s2500_s19 = smov (!%p218_p2), 33   ;;  %s2501_s24 = smov (!%p218_p2), 1  }
   0x8   : > { %s2502_s29 = smov (!%p218_p2), 127   ;;  %s2503_s30 = smov (!%p218_p2), 95  }
   0x9   : > { %s2504_s7 = smov (!%p218_p2), 94   ;;  %s2505_s8 = smov (!%p218_p2), 93  }
   0xb   : > { %s3395_s22 = smov (!%p255_p3, %s2357_s22), 1  ;;  %vm299_vm0 = vcmask 1040384   ;;  %vm300_vm1 = vcmask 1041408   ;;  %v2496_v2 = vmov 65535   ;;  %vm295_vm2 = vcmask 23552  }
   0xc   : > { %s2466_s23 = smul.u32 20, %s3395_s22  ;;  %v301_v3 = vsel %vm299_vm0, 4294967295, %v2496_v2  ;;  %v2570_v12 = vld [vmem:[%s3388_s1] sm:$0xf]  ;;  %v2376_v43 = vld [vmem:[%s3388_s1 + $0x4] sm:$0xf] }
   0xd   : > { %v2561_v4 = vsel %vm300_vm1, %v301_v3, 0  ;;  %s2467_s9 = smul.u32 80, %s3395_s22  ;;  %s2364_s17 = sshll.u32 %s3395_s22, 3  ;;  %vm2216_vm11 = vcmask 7168  }
   0xe   : > { %s259_s26 = scalar_lea.vmem %s3387_s0, %s2466_s23  ;;  %s268_s20 = scalar_lea.vmem %s3392_s5, %s2364_s17 }
   0xf   : > { %v2555_v0 = vld [vmem:[%s259_s26] sm:$0xff]  ;;  %v2557_v1 = vld [vmem:[%s259_s26 + $0x8] sm:$0xff]  ;;  %v2563_v7 = vld [vmem:[%s259_s26 + $0x10] sm:$0xf]  ;;  %s3269_s12 = scalar_lea.vmem %s3391_s4, %s2467_s9  ;;  %s272_s25 = scalar_lea.vmem %s3393_s6, %s2364_s17 }
  0x10   : > { %279 = vst [vmem:[#allocation1] ss:$4 sm:$0xff] %v2555_v0 }
  0x11   : > { %282 = vst [vmem:[#allocation1 + $0x20] ss:$4 sm:$0xff] %v2557_v1 }
  0x17   : > { %v283_v5 = vld.sshfl [vmem:[#allocation1] sm:$0xff pattern:$0x73625140]  ;;  %v284_v6 = vld.sshfl [vmem:[#allocation1 + $0x8] sm:$0xff pattern:$0x73625140] }
  0x18   : > { %v303_v8 = vand.u32 %v2561_v4, %v283_v5  ;;  %v305_v9 = vand.u32 %v2561_v4, %v284_v6  ;;  %v285_v10 = vld.sshfl [vmem:[#allocation1 + $0x10] sm:$0xff pattern:$0x73625140]  ;;  %v286_v11 = vld.sshfl [vmem:[#allocation1 + $0x18] sm:$0xff pattern:$0x73625140] }
  0x19   : > { %v307_v13 = vand.u32 %v2561_v4, %v285_v10  ;;  %v309_v14 = vand.u32 %v2561_v4, %v286_v11  ;;  %v287_v15 = vld.sshfl [vmem:[#allocation1 + $0x20] sm:$0xff pattern:$0x73625140]  ;;  %v289_v16 = vld.sshfl [vmem:[#allocation1 + $0x30] sm:$0xff pattern:$0x73625140] }
  0x1a   : > { %330 = vmatpush.bf16.msra.mxu0 %v303_v8  ;;  %343 = vmatpush.bf16.msra.mxu1 %v305_v9  ;;  %v311_v17 = vand.u32 %v2561_v4, %v287_v15  ;;  %v315_v18 = vand.u32 %v2561_v4, %v289_v16  ;;  %v288_v19 = vld.sshfl [vmem:[#allocation1 + $0x28] sm:$0xff pattern:$0x73625140]  ;;  %v290_v20 = vld.sshfl [vmem:[#allocation1 + $0x38] sm:$0xff pattern:$0x73625140] }
  0x1b   : > { %356 = vmatpush.bf16.msra.mxu2 %v307_v13  ;;  %369 = vmatpush.bf16.msra.mxu3 %v309_v14  ;;  %v313_v21 = vand.u32 %v2561_v4, %v288_v19  ;;  %v317_v22 = vand.u32 %v2561_v4, %v290_v20  ;;  %500 = vst [vmem:[#allocation1 + $0x20] ss:$4 sm:$0xff] %v2557_v1  ;;  %v2387_v8 = vld [vmem:[%s3388_s1 + $0x8] sm:$0xf] }
  0x1c   : > { %292 = vst [vmem:[#allocation1] ss:$4 sm:$0xff] %v2563_v7 }
  0x1d   : > { %2366 = vmatmul.msk.bf16.vlgmr.msra.gmra.mxu0 %vm295_vm2, %v2570_v12  ;;  %2367 = vmatmul.msk.bf16.vlgmr.msra.gmra.mxu1 %vm295_vm2, %v2570_v12 }
  0x1e   : > { %382 = vmatpush.bf16.msrb.mxu0 %v311_v17  ;;  %2368 = vmatmul.msk.bf16.vlgmr.msra.gmra.mxu2 %vm295_vm2, %v2570_v12 }
  0x1f   : > { %408 = vmatpush.bf16.msrb.mxu2 %v315_v18  ;;  %2369 = vmatmul.msk.bf16.vlgmr.msra.gmra.mxu3 %vm295_vm2, %v2570_v12 }
  0x20   : > { %395 = vmatpush.bf16.msrb.mxu1 %v313_v21  ;;  %421 = vmatpush.bf16.msrb.mxu3 %v317_v22  ;;  %v2145_v22 = vld [vmem:[%s3389_s2] sm:$0xff] }
  0x22   : > { %v505_v27 = vld.sshfl [vmem:[#allocation1 + $0x20] sm:$0xff pattern:$0x73625140]  ;;  %v506_v28 = vld.sshfl [vmem:[#allocation1 + $0x28] sm:$0xff pattern:$0x73625140] }
  0x23   : > { %v293_v23 = vld.sshfl [vmem:[#allocation1] sm:$0xff pattern:$0x73625140]  ;;  %v294_v24 = vld.sshfl [vmem:[#allocation1 + $0x8] sm:$0xff pattern:$0x73625140]  ;;  %v523_v34 = vand.u32 %v505_v27, %v2561_v4  ;;  %v525_v38 = vand.u32 %v506_v28, %v2561_v4 }
  0x24   : > { %v319_v25 = vand.u32 %v2561_v4, %v293_v23  ;;  %498 = vst [vmem:[#allocation1] ss:$4 sm:$0xff] %v2555_v0  ;;  %v321_v26 = vand.u32 %v2561_v4, %v294_v24  ;;  %v507_v39 = vld.sshfl [vmem:[#allocation1 + $0x30] sm:$0xff pattern:$0x73625140]  ;;  %v2497_v24 = vmov 0  }
  0x25   : > { %v508_v40 = vld.sshfl [vmem:[#allocation1 + $0x38] sm:$0xff pattern:$0x73625140]  ;;  %v527_v44 = vand.u32 %v507_v39, %v2561_v4  ;;  %2486 = vset.pattern.permute.xlu2 %v2497_v24  ;;  %2487 = vset.pattern.permute.xlu0 %v2497_v24  ;;  %v2398_v27 = vld [vmem:[%s3388_s1 + $0xc] sm:$0xf] }
  0x26   : > { %434 = vmatpush.bf16.msra.mxu0 %v319_v25  ;;  %447 = vmatpush.bf16.msra.mxu1 %v321_v26  ;;  %710 = vst [vmem:[#allocation1 + $0x20] ss:$4 sm:$0xff] %v2557_v1  ;;  %v529_v46 = vand.u32 %v508_v40, %v2561_v4 }
  0x27   : > { %2148 = vperm.xlu2 %2486, %v2145_v22  }
  0x2b   : > { %v501_v29 = vld.sshfl [vmem:[#allocation1] sm:$0xff pattern:$0x73625140]  ;;  %v502_v30 = vld.sshfl [vmem:[#allocation1 + $0x8] sm:$0xff pattern:$0x73625140] }
  0x2c   : > { %v515_v31 = vand.u32 %v501_v29, %v2561_v4  ;;  %v517_v32 = vand.u32 %v502_v30, %v2561_v4  ;;  %v503_v33 = vld.sshfl [vmem:[#allocation1 + $0x10] sm:$0xff pattern:$0x73625140]  ;;  %v504_v35 = vld.sshfl [vmem:[#allocation1 + $0x18] sm:$0xff pattern:$0x73625140] }
  0x2d   : > { %2370 = vmatmul.msk.bf16.vlgmr.msrb.gmra.mxu0 %vm295_vm2, %v2570_v12  ;;  %2371 = vmatmul.msk.bf16.vlgmr.msrb.gmra.mxu1 %vm295_vm2, %v2570_v12  ;;  %v519_v36 = vand.u32 %v503_v33, %v2561_v4  ;;  %v521_v37 = vand.u32 %v504_v35, %v2561_v4  ;;  %509 = vst [vmem:[#allocation1] ss:$4 sm:$0xff] %v2563_v7  ;;  %v715_v56 = vld.sshfl [vmem:[#allocation1 + $0x20] sm:$0xff pattern:$0x73625140] }
  0x2e   : > { %2372 = vmatmul.msk.bf16.vlgmr.msrb.gmra.mxu2 %vm295_vm2, %v2570_v12  ;;  %555 = vmatpush.bf16.msra.mxu3 %v517_v32  ;;  %v717_v57 = vld.sshfl [vmem:[#allocation1 + $0x30] sm:$0xff pattern:$0x73625140]  ;;  %v716_v58 = vld.sshfl [vmem:[#allocation1 + $0x28] sm:$0xff pattern:$0x73625140]  ;;  %v733_v60 = vand.u32 %v715_v56, %v2561_v4 }
  0x2f   : > { %2373 = vmatmul.msk.bf16.vlgmr.msrb.gmra.mxu3 %vm295_vm2, %v2570_v12  ;;  %542 = vmatpush.bf16.msra.mxu2 %v515_v31  ;;  %v718_v59 = vld.sshfl [vmem:[#allocation1 + $0x38] sm:$0xff pattern:$0x73625140]  ;;  %v737_v61 = vand.u32 %v717_v57, %v2561_v4  ;;  %v735_v62 = vand.u32 %v716_v58, %v2561_v4 }
  0x30   : > { %568 = vmatpush.bf16.msrb.mxu0 %v519_v36  ;;  %581 = vmatpush.bf16.msrb.mxu1 %v521_v37  ;;  %920 = vst [vmem:[#allocation1 + $0x20] ss:$4 sm:$0xff] %v2557_v1  ;;  %v739_v63 = vand.u32 %v718_v59, %v2561_v4 }
  0x32   : > { %607 = vmatpush.bf16.msrb.mxu3 %v525_v38 }
  0x33   : > { %594 = vmatpush.bf16.msrb.mxu2 %v523_v34 }
  0x34   : > { %v510_v41 = vld.sshfl [vmem:[#allocation1] sm:$0xff pattern:$0x73625140]  ;;  %v511_v42 = vld.sshfl [vmem:[#allocation1 + $0x8] sm:$0xff pattern:$0x73625140] }
  0x35   : > { %708 = vst [vmem:[#allocation1] ss:$4 sm:$0xff] %v2555_v0  ;;  %v531_v45 = vand.u32 %v510_v41, %v2561_v4  ;;  %v533_v47 = vand.u32 %v511_v42, %v2561_v4 }
  0x37   : > { %v925_v15 = vld.sshfl [vmem:[#allocation1 + $0x20] sm:$0xff pattern:$0x73625140]  ;;  %v926_v16 = vld.sshfl [vmem:[#allocation1 + $0x28] sm:$0xff pattern:$0x73625140] }
  0x38   : > { %v943_v18 = vand.u32 %v925_v15, %v2561_v4  ;;  %v945_v20 = vand.u32 %v926_v16, %v2561_v4  ;;  %v927_v21 = vld.sshfl [vmem:[#allocation1 + $0x30] sm:$0xff pattern:$0x73625140]  ;;  %v928_v25 = vld.sshfl [vmem:[#allocation1 + $0x38] sm:$0xff pattern:$0x73625140] }
  0x39   : > { %1130 = vst [vmem:[#allocation1 + $0x20] ss:$4 sm:$0xff] %v2557_v1  ;;  %v947_v28 = vand.u32 %v927_v21, %v2561_v4  ;;  %v949_v30 = vand.u32 %v928_v25, %v2561_v4 }
  0x3c   : > { %v711_v48 = vld.sshfl [vmem:[#allocation1] sm:$0xff pattern:$0x73625140]  ;;  %v713_v49 = vld.sshfl [vmem:[#allocation1 + $0x10] sm:$0xff pattern:$0x73625140] }
  0x3d   : > { %2374 = vmatmul.msk.bf16.vlgmr.msra.gmra.mxu0 %vm295_vm2, %v2570_v12  ;;  %2375 = vmatmul.msk.bf16.vlgmr.msra.gmra.mxu1 %vm295_vm2, %v2570_v12  ;;  %v712_v50 = vld.sshfl [vmem:[#allocation1 + $0x8] sm:$0xff pattern:$0x73625140]  ;;  %v714_v51 = vld.sshfl [vmem:[#allocation1 + $0x18] sm:$0xff pattern:$0x73625140]  ;;  %v725_v52 = vand.u32 %v711_v48, %v2561_v4  ;;  %v729_v53 = vand.u32 %v713_v49, %v2561_v4 }
  0x3e   : > { %2377 = vmatmul.msk.bf16.vlgmr.msra.gmra.mxu2 %vm295_vm2, %v2376_v43  ;;  %620 = vmatpush.bf16.msra.mxu0 %v527_v44  ;;  %719 = vst [vmem:[#allocation1] ss:$4 sm:$0xff] %v2563_v7  ;;  %v727_v54 = vand.u32 %v712_v50, %v2561_v4  ;;  %v731_v55 = vand.u32 %v714_v51, %v2561_v4 }
  0x3f   : > { %2378 = vmatmul.msk.bf16.vlgmr.msra.gmra.mxu3 %vm295_vm2, %v2376_v43  ;;  %646 = vmatpush.bf16.msra.mxu2 %v531_v45 }
  0x40   : > { %633 = vmatpush.bf16.msra.mxu1 %v529_v46  ;;  %659 = vmatpush.bf16.msra.mxu3 %v533_v47  ;;  %v1135_v44 = vld.sshfl [vmem:[#allocation1 + $0x20] sm:$0xff pattern:$0x73625140]  ;;  %v1137_v45 = vld.sshfl [vmem:[#allocation1 + $0x30] sm:$0xff pattern:$0x73625140] }
  0x41   : > { %v1136_v48 = vld.sshfl [vmem:[#allocation1 + $0x28] sm:$0xff pattern:$0x73625140]  ;;  %v1138_v49 = vld.sshfl [vmem:[#allocation1 + $0x38] sm:$0xff pattern:$0x73625140] }
  0x42   : > { %1309 = vst [vmem:[#allocation1 + $0x20] ss:$4 sm:$0xff] %v2557_v1  ;;  %v1155_v56 = vand.u32 %v1136_v48, %v2561_v4  ;;  %v1159_v57 = vand.u32 %v1138_v49, %v2561_v4 }
  0x45   : > { %v720_v2 = vld.sshfl [vmem:[#allocation1] sm:$0xff pattern:$0x73625140]  ;;  %v721_v3 = vld.sshfl [vmem:[#allocation1 + $0x8] sm:$0xff pattern:$0x73625140] }
  0x46   : > { %918 = vst [vmem:[#allocation1] ss:$4 sm:$0xff] %v2555_v0  ;;  %v741_v9 = vand.u32 %v720_v2, %v2561_v4  ;;  %v743_v11 = vand.u32 %v721_v3, %v2561_v4 }
  0x49   : > { %v1314_v21 = vld.sshfl [vmem:[#allocation1 + $0x20] sm:$0xff pattern:$0x73625140]  ;;  %v1315_v24 = vld.sshfl [vmem:[#allocation1 + $0x28] sm:$0xff pattern:$0x73625140] }
  0x4d   : > { %2379 = vmatmul.msk.bf16.vlgmr.msrb.gmra.mxu0 %vm295_vm2, %v2376_v43  ;;  %2380 = vmatmul.msk.bf16.vlgmr.msrb.gmra.mxu1 %vm295_vm2, %v2376_v43  ;;  %v921_v5 = vld.sshfl [vmem:[#allocation1] sm:$0xff pattern:$0x73625140]  ;;  %v922_v6 = vld.sshfl [vmem:[#allocation1 + $0x8] sm:$0xff pattern:$0x73625140] }
  0x4e   : > { %2381 = vmatmul.msk.bf16.vlgmr.msrb.gmra.mxu2 %vm295_vm2, %v2376_v43  ;;  %752 = vmatpush.bf16.msrb.mxu0 %v725_v52  ;;  %v935_v10 = vand.u32 %v921_v5, %v2561_v4  ;;  %v937_v12 = vand.u32 %v922_v6, %v2561_v4  ;;  %v923_v13 = vld.sshfl [vmem:[#allocation1 + $0x10] sm:$0xff pattern:$0x73625140]  ;;  %v924_v14 = vld.sshfl [vmem:[#allocation1 + $0x18] sm:$0xff pattern:$0x73625140] }
  0x4f   : > { %2382 = vmatmul.msk.bf16.vlgmr.msrb.gmra.mxu3 %vm295_vm2, %v2376_v43  ;;  %778 = vmatpush.bf16.msrb.mxu2 %v729_v53  ;;  %929 = vst [vmem:[#allocation1] ss:$4 sm:$0xff] %v2563_v7  ;;  %v939_v17 = vand.u32 %v923_v13, %v2561_v4  ;;  %v941_v19 = vand.u32 %v924_v14, %v2561_v4 }
  0x50   : > { %765 = vmatpush.bf16.msrb.mxu1 %v727_v54  ;;  %791 = vmatpush.bf16.msrb.mxu3 %v731_v55  ;;  %v1153_v54 = vand.u32 %v1135_v44, %v2561_v4  ;;  %v1157_v55 = vand.u32 %v1137_v45, %v2561_v4 }
  0x56   : > { %v930_v23 = vld.sshfl [vmem:[#allocation1] sm:$0xff pattern:$0x73625140]  ;;  %v931_v26 = vld.sshfl [vmem:[#allocation1 + $0x8] sm:$0xff pattern:$0x73625140] }
  0x57   : > { %1128 = vst [vmem:[#allocation1] ss:$4 sm:$0xff] %v2555_v0  ;;  %v951_v29 = vand.u32 %v930_v23, %v2561_v4  ;;  %v953_v31 = vand.u32 %v931_v26, %v2561_v4 }
  0x5d   : > { %2383 = vmatmul.msk.bf16.vlgmr.msra.gmra.mxu0 %vm295_vm2, %v2376_v43  ;;  %2384 = vmatmul.msk.bf16.vlgmr.msra.gmra.mxu1 %vm295_vm2, %v2376_v43 }
  0x5e   : > { %2385 = vmatmul.msk.bf16.vlgmr.msra.gmra.mxu2 %vm295_vm2, %v2376_v43  ;;  %804 = vmatpush.bf16.msra.mxu0 %v733_v60  ;;  %v1131_v32 = vld.sshfl [vmem:[#allocation1] sm:$0xff pattern:$0x73625140]  ;;  %v1133_v33 = vld.sshfl [vmem:[#allocation1 + $0x10] sm:$0xff pattern:$0x73625140] }
  0x5f   : > { %2386 = vmatmul.msk.bf16.vlgmr.msra.gmra.mxu3 %vm295_vm2, %v2376_v43  ;;  %830 = vmatpush.bf16.msra.mxu2 %v737_v61  ;;  %v1132_v34 = vld.sshfl [vmem:[#allocation1 + $0x8] sm:$0xff pattern:$0x73625140]  ;;  %v1134_v35 = vld.sshfl [vmem:[#allocation1 + $0x18] sm:$0xff pattern:$0x73625140]  ;;  %v1145_v38 = vand.u32 %v1131_v32, %v2561_v4  ;;  %v1149_v39 = vand.u32 %v1133_v33, %v2561_v4 }
  0x60   : > { %817 = vmatpush.bf16.msra.mxu1 %v735_v62  ;;  %843 = vmatpush.bf16.msra.mxu3 %v739_v63  ;;  %1139 = vst [vmem:[#allocation1] ss:$4 sm:$0xff] %v2563_v7  ;;  %v1147_v40 = vand.u32 %v1132_v34, %v2561_v4  ;;  %v1151_v41 = vand.u32 %v1134_v35, %v2561_v4  ;;  %v1316_v33 = vld.sshfl [vmem:[#allocation1 + $0x30] sm:$0xff pattern:$0x73625140] }
  0x61   : > { %v1336_v44 = vand.u32 %v1316_v33, %v2561_v4 }
  0x67   : > { %v1140_v58 = vld.sshfl [vmem:[#allocation1] sm:$0xff pattern:$0x73625140]  ;;  %v1141_v59 = vld.sshfl [vmem:[#allocation1 + $0x8] sm:$0xff pattern:$0x73625140] }
  0x68   : > { %1307 = vst [vmem:[#allocation1] ss:$4 sm:$0xff] %v2555_v0  ;;  %v1163_v13 = vand.u32 %v1141_v59, %v2561_v4 }
  0x6d   : > { %2388 = vmatmul.msk.bf16.vlgmr.msrb.gmra.mxu0 %vm295_vm2, %v2387_v8  ;;  %2389 = vmatmul.msk.bf16.vlgmr.msrb.gmra.mxu1 %vm295_vm2, %v2387_v8 }
  0x6e   : > { %2390 = vmatmul.msk.bf16.vlgmr.msrb.gmra.mxu2 %vm295_vm2, %v2387_v8  ;;  %856 = vmatpush.bf16.msrb.mxu0 %v741_v9 }
  0x6f   : > { %2391 = vmatmul.msk.bf16.vlgmr.msrb.gmra.mxu3 %vm295_vm2, %v2387_v8  ;;  %962 = vmatpush.bf16.msrb.mxu2 %v935_v10  ;;  %v1310_v2 = vld.sshfl [vmem:[#allocation1] sm:$0xff pattern:$0x73625140]  ;;  %v1311_v6 = vld.sshfl [vmem:[#allocation1 + $0x8] sm:$0xff pattern:$0x73625140] }
  0x70   : > { %869 = vmatpush.bf16.msrb.mxu1 %v743_v11  ;;  %975 = vmatpush.bf16.msrb.mxu3 %v937_v12  ;;  %v2706_v10 = vld [vmem:[%s3388_s1 + $0x10] sm:$0xf]  ;;  %v1161_v11 = vand.u32 %v1140_v58, %v2561_v4  ;;  %v1324_v12 = vand.u32 %v1310_v2, %v2561_v4  ;;  %v1326_v14 = vand.u32 %v1311_v6, %v2561_v4 }
  0x7d   : > { %2392 = vmatmul.msk.bf16.vlgmr.msra.gmra.mxu0 %vm295_vm2, %v2387_v8  ;;  %2393 = vmatmul.msk.bf16.vlgmr.msra.gmra.mxu1 %vm295_vm2, %v2387_v8 }
  0x7e   : > { %2394 = vmatmul.msk.bf16.vlgmr.msra.gmra.mxu2 %vm295_vm2, %v2387_v8  ;;  %988 = vmatpush.bf16.msra.mxu0 %v939_v17 }
  0x7f   : > { %2395 = vmatmul.msk.bf16.vlgmr.msra.gmra.mxu3 %vm295_vm2, %v2387_v8  ;;  %1014 = vmatpush.bf16.msra.mxu2 %v943_v18 }
  0x80   : > { %1001 = vmatpush.bf16.msra.mxu1 %v941_v19  ;;  %1027 = vmatpush.bf16.msra.mxu3 %v945_v20  ;;  %v1312_v19 = vld.sshfl [vmem:[#allocation1 + $0x10] sm:$0xff pattern:$0x73625140]  ;;  %v1313_v20 = vld.sshfl [vmem:[#allocation1 + $0x18] sm:$0xff pattern:$0x73625140] }
  0x81   : > { %1318 = vst [vmem:[#allocation1] ss:$4 sm:$0xff] %v2563_v7 }
  0x8d   : > { %2396 = vmatmul.msk.bf16.vlgmr.msrb.gmra.mxu0 %vm295_vm2, %v2387_v8  ;;  %2397 = vmatmul.msk.bf16.vlgmr.msrb.gmra.mxu1 %vm295_vm2, %v2387_v8 }
  0x8e   : > { %2399 = vmatmul.msk.bf16.vlgmr.msrb.gmra.mxu2 %vm295_vm2, %v2398_v27  ;;  %1040 = vmatpush.bf16.msrb.mxu0 %v947_v28  ;;  %v1332_v28 = vand.u32 %v1314_v21, %v2561_v4 }
  0x8f   : > { %2400 = vmatmul.msk.bf16.vlgmr.msrb.gmra.mxu3 %vm295_vm2, %v2398_v27  ;;  %1066 = vmatpush.bf16.msrb.mxu2 %v951_v29  ;;  %v1330_v29 = vand.u32 %v1313_v20, %v2561_v4 }
  0x90   : > { %1053 = vmatpush.bf16.msrb.mxu1 %v949_v30  ;;  %1079 = vmatpush.bf16.msrb.mxu3 %v953_v31  ;;  %v1334_v30 = vand.u32 %v1315_v24, %v2561_v4 }
  0x9a   : > { %v332_v36 = vpop.f32.mrf.mxu0  ;;  %v345_v37 = vpop.f32.mrf.mxu1 }
  0x9b   : > { %453 = vrot.lane.b32.xlu0 %v332_v36, %s2498_s13  ;;  %v1319_v36 = vld.sshfl [vmem:[#allocation1] sm:$0xff pattern:$0x73625140] }
  0x9c   : > { %v1340_v45 = vand.u32 %v1319_v36, %v2561_v4  ;;  %v2806_v36 = vld [vmem:[%s3388_s1 + $0x18] sm:$0xf] }
  0x9d   : > { %2401 = vmatmul.msk.bf16.vlgmr.msra.gmra.mxu0 %vm295_vm2, %v2398_v27  ;;  %2402 = vmatmul.msk.bf16.vlgmr.msra.gmra.mxu1 %vm295_vm2, %v2398_v27 }
  0x9e   : > { %2403 = vmatmul.msk.bf16.vlgmr.msra.gmra.mxu2 %vm295_vm2, %v2398_v27  ;;  %1172 = vmatpush.bf16.msra.mxu0 %v1145_v38  ;;  %v1320_v38 = vld.sshfl [vmem:[#allocation1 + $0x8] sm:$0xff pattern:$0x73625140] }
  0x9f   : > { %2404 = vmatmul.msk.bf16.vlgmr.msra.gmra.mxu3 %vm295_vm2, %v2398_v27  ;;  %1198 = vmatpush.bf16.msra.mxu2 %v1149_v39  ;;  %1517 = vst [vmem:[#allocation1] ss:$4 sm:$0xff] %v2555_v0 }
  0xa0   : > { %1185 = vmatpush.bf16.msra.mxu1 %v1147_v40  ;;  %1211 = vmatpush.bf16.msra.mxu3 %v1151_v41 }
  0xa1   : > { %v358_v42 = vpop.f32.mrf.mxu2 }
  0xa2   : > { %v371_v43 = vpop.f32.mrf.mxu3  ;;  %457 = vrot.lane.b32.xlu1 %v358_v42, %s2498_s13  ;;  %v334_v46 = vpop.f32.mrf.mxu0 }
  0xa3   : > { %v347_v47 = vpop.f32.mrf.mxu1  ;;  %455 = vrot.lane.b32.xlu0 %v345_v37, %s2498_s13  ;;  %v1317_v37 = vld.sshfl [vmem:[#allocation1 + $0x38] sm:$0xff pattern:$0x73625140] }
  0xa4   : > { %1519 = vst [vmem:[#allocation1 + $0x20] ss:$4 sm:$0xff] %v2557_v1  ;;  %v1338_v46 = vand.u32 %v1317_v37, %v2561_v4  ;;  %v1342_v47 = vand.u32 %v1320_v38, %v2561_v4 }
  0xa9   : > { %v360_v50 = vpop.f32.mrf.mxu2 }
  0xaa   : > { %v373_v51 = vpop.f32.mrf.mxu3  ;;  %459 = vrot.lane.b32.xlu1 %v371_v43, %s2498_s13  ;;  %v384_v52 = vpop.f32.mrf.mxu0  ;;  %v2747_v43 = vld [vmem:[%s3388_s1 + $0x14] sm:$0xf] }
  0xab   : > { %v397_v53 = vpop.f32.mrf.mxu1  ;;  %461 = vrot.lane.b32.xlu2 %v384_v52, %s2498_s13  ;;  %v1520_v52 = vld.sshfl [vmem:[#allocation1] sm:$0xff pattern:$0x73625140] }
  0xad   : > { %2405 = vmatmul.msk.bf16.vlgmr.msrb.gmra.mxu0 %vm295_vm2, %v2398_v27  ;;  %2406 = vmatmul.msk.bf16.vlgmr.msrb.gmra.mxu1 %vm295_vm2, %v2398_v27 }
  0xae   : > { %2407 = vmatmul.msk.bf16.vlgmr.msrb.gmra.mxu2 %vm295_vm2, %v2398_v27  ;;  %1224 = vmatpush.bf16.msrb.mxu0 %v1153_v54  ;;  %v1521_v54 = vld.sshfl [vmem:[#allocation1 + $0x8] sm:$0xff pattern:$0x73625140] }
  0xaf   : > { %2408 = vmatmul.msk.bf16.vlgmr.msrb.gmra.mxu3 %vm295_vm2, %v2398_v27  ;;  %1250 = vmatpush.bf16.msrb.mxu2 %v1157_v55  ;;  %v1328_v27 = vand.u32 %v1312_v19, %v2561_v4  ;;  %v1523_v55 = vld.sshfl [vmem:[#allocation1 + $0x18] sm:$0xff pattern:$0x73625140] }
  0xb0   : > { %1237 = vmatpush.bf16.msrb.mxu1 %v1155_v56  ;;  %1263 = vmatpush.bf16.msrb.mxu3 %v1159_v57 }
  0xb1   : > { %v410_v60 = vpop.f32.mrf.mxu2 }
  0xb2   : > { %v423_v61 = vpop.f32.mrf.mxu3  ;;  %465 = vrot.lane.b32.xlu0 %v410_v60, %s2498_s13  ;;  %v386_v62 = vpop.f32.mrf.mxu0  ;;  %v1534_v60 = vand.u32 %v1520_v52, %v2561_v4 }
  0xb3   : > { %467 = vrot.lane.b32.xlu1 %v423_v61, %s2498_s13  ;;  %v399_v63 = vpop.f32.mrf.mxu1  ;;  %463 = vrot.lane.b32.xlu2 %v397_v53, %s2498_s13  ;;  %v1522_v53 = vld.sshfl [vmem:[#allocation1 + $0x10] sm:$0xff pattern:$0x73625140]  ;;  %v1536_v62 = vand.u32 %v1521_v54, %v2561_v4 }
  0xb4   : > { %1528 = vst [vmem:[#allocation1] ss:$4 sm:$0xff] %v2563_v7  ;;  %v1538_v61 = vand.u32 %v1522_v53, %v2561_v4  ;;  %v1540_v63 = vand.u32 %v1523_v55, %v2561_v4 }
  0xb9   : > { %v412_v3 = vpop.f32.mrf.mxu2 }
  0xba   : > { %v425_v5 = vpop.f32.mrf.mxu3  ;;  %v436_v8 = vpop.f32.mrf.mxu0 }
  0xbb   : > { %v449_v9 = vpop.f32.mrf.mxu1  ;;  %469 = vrot.lane.b32.xlu2 %v436_v8, %s2498_s13  ;;  %v1524_v8 = vld.sshfl [vmem:[#allocation1 + $0x20] sm:$0xff pattern:$0x73625140] }
  0xbc   : > { %471 = vrot.lane.b32.xlu0 %v449_v9, %s2498_s13  ;;  %v1526_v9 = vld.sshfl [vmem:[#allocation1 + $0x30] sm:$0xff pattern:$0x73625140]  ;;  %v1529_v21 = vld.sshfl [vmem:[#allocation1] sm:$0xff pattern:$0x73625140] }
  0xbd   : > { %2410 = vmatmul.msk.bf16.vlgmr.msra.gmra.mxu0 %vm295_vm2, %v2706_v10  ;;  %2411 = vmatmul.msk.bf16.vlgmr.msra.gmra.mxu1 %vm295_vm2, %v2706_v10  ;;  %v1550_v37 = vand.u32 %v1529_v21, %v2561_v4 }
  0xbe   : > { %2412 = vmatmul.msk.bf16.vlgmr.msra.gmra.mxu2 %vm295_vm2, %v2706_v10  ;;  %1276 = vmatpush.bf16.msra.mxu0 %v1161_v11  ;;  %v1527_v11 = vld.sshfl [vmem:[#allocation1 + $0x38] sm:$0xff pattern:$0x73625140] }
  0xbf   : > { %2413 = vmatmul.msk.bf16.vlgmr.msra.gmra.mxu3 %vm295_vm2, %v2706_v10  ;;  %1351 = vmatpush.bf16.msra.mxu2 %v1324_v12  ;;  %v1548_v20 = vand.u32 %v1527_v11, %v2561_v4 }
  0xc0   : > { %1289 = vmatpush.bf16.msra.mxu1 %v1163_v13  ;;  %1364 = vmatpush.bf16.msra.mxu3 %v1326_v14 }
  0xc1   : > { %v544_v15 = vpop.f32.mrf.mxu2 }
  0xc2   : > { %v557_v16 = vpop.f32.mrf.mxu3  ;;  %665 = vrot.lane.b32.xlu1 %v544_v15, %s2499_s16  ;;  %v438_v17 = vpop.f32.mrf.mxu0 }
  0xc3   : > { %v451_v18 = vpop.f32.mrf.mxu1  ;;  %667 = vrot.lane.b32.xlu2 %v557_v16, %s2499_s16  ;;  %v2784_v16 = vpop.permute.xlu2 %2148  ;;  %v1542_v17 = vand.u32 %v1524_v8, %v2561_v4 }
  0xc4   : > { %v1546_v18 = vand.u32 %v1526_v9, %v2561_v4 }
  0xc9   : > { %v546_v22 = vpop.f32.mrf.mxu2 }
  0xca   : > { %v559_v23 = vpop.f32.mrf.mxu3  ;;  %v570_v25 = vpop.f32.mrf.mxu0  ;;  %v1530_v22 = vld.sshfl [vmem:[#allocation1 + $0x8] sm:$0xff pattern:$0x73625140] }
  0xcb   : > { %v583_v26 = vpop.f32.mrf.mxu1  ;;  %669 = vrot.lane.b32.xlu0 %v570_v25, %s2499_s16  ;;  %1727 = vst [vmem:[#allocation1] ss:$4 sm:$0xff] %v2555_v0 }
  0xcc   : > { %671 = vrot.lane.b32.xlu1 %v583_v26, %s2499_s16 }
  0xcd   : > { %2414 = vmatmul.msk.bf16.vlgmr.msrb.gmra.mxu0 %vm295_vm2, %v2706_v10  ;;  %2415 = vmatmul.msk.bf16.vlgmr.msrb.gmra.mxu1 %vm295_vm2, %v2706_v10 }
  0xce   : > { %2416 = vmatmul.msk.bf16.vlgmr.msrb.gmra.mxu2 %vm295_vm2, %v2706_v10  ;;  %1377 = vmatpush.bf16.msrb.mxu0 %v1328_v27  ;;  %v473_v27 = vlaneseq }
  0xcf   : > { %2417 = vmatmul.msk.bf16.vlgmr.msrb.gmra.mxu3 %vm295_vm2, %v2706_v10  ;;  %1403 = vmatpush.bf16.msrb.mxu2 %v1332_v28 }
  0xd0   : > { %1390 = vmatpush.bf16.msrb.mxu1 %v1330_v29  ;;  %1416 = vmatpush.bf16.msrb.mxu3 %v1334_v30  ;;  %v2801_v29 = vand.u32 127, %v473_v27 }
  0xd1   : > { %v596_v31 = vpop.f32.mrf.mxu2 }
  0xd2   : > { %v609_v32 = vpop.f32.mrf.mxu3  ;;  %v572_v34 = vpop.f32.mrf.mxu0  ;;  %673 = vrot.lane.b32.xlu2 %v596_v31, %s2499_s16  ;;  %v1730_v30 = vld.sshfl [vmem:[#allocation1] sm:$0xff pattern:$0x73625140]  ;;  %v1731_v33 = vld.sshfl [vmem:[#allocation1 + $0x8] sm:$0xff pattern:$0x73625140] }
  0xd3   : > { %v585_v35 = vpop.f32.mrf.mxu1  ;;  %675 = vrot.lane.b32.xlu0 %v609_v32, %s2499_s16  ;;  %vm475_vm3 = vcmp.lt.s32.totalorder %v2801_v29, 35  ;;  %v1744_v38 = vand.u32 %v1730_v30, %v2561_v4  ;;  %v1732_v52 = vld.sshfl [vmem:[#allocation1 + $0x10] sm:$0xff pattern:$0x73625140]  ;;  %vm685_vm4 = vcmp.lt.s32.totalorder %v2801_v29, 34  ;;  %vm895_vm5 = vcmp.lt.s32.totalorder %v2801_v29, 33 }
  0xd4   : > { %v1733_v53 = vld.sshfl [vmem:[#allocation1 + $0x18] sm:$0xff pattern:$0x73625140]  ;;  %vm1105_vm6 = vcmp.lt.s32.totalorder %v2801_v29, 1  ;;  %vm1494_vm7 = vcmp.lt.s32.totalorder %v2801_v29, 127  ;;  %vm1704_vm8 = vcmp.lt.s32.totalorder %v2801_v29, 95 }
  0xd5   : > { %1738 = vst [vmem:[#allocation1] ss:$4 sm:$0xff] %v2563_v7  ;;  %vm1914_vm9 = vcmp.lt.s32.totalorder %v2801_v29, 94  ;;  %vm2124_vm10 = vcmp.lt.s32.totalorder %v2801_v29, 93 }
  0xd9   : > { %v598_v39 = vpop.f32.mrf.mxu2 }
  0xda   : > { %v611_v40 = vpop.f32.mrf.mxu3  ;;  %v622_v41 = vpop.f32.mrf.mxu0  ;;  %v1552_v39 = vand.u32 %v1530_v22, %v2561_v4 }
  0xdb   : > { %v635_v42 = vpop.f32.mrf.mxu1  ;;  %677 = vrot.lane.b32.xlu1 %v622_v41, %s2499_s16  ;;  %v1746_v40 = vand.u32 %v1731_v33, %v2561_v4 }
  0xdc   : > { %679 = vrot.lane.b32.xlu2 %v635_v42, %s2499_s16 }
  0xdd   : > { %2418 = vmatmul.msk.bf16.vlgmr.msra.gmra.mxu0 %vm295_vm2, %v2706_v10  ;;  %2419 = vmatmul.msk.bf16.vlgmr.msra.gmra.mxu1 %vm295_vm2, %v2706_v10  ;;  %v1525_v10 = vld.sshfl [vmem:[#allocation1 + $0x28] sm:$0xff pattern:$0x73625140] }
  0xde   : > { %2421 = vmatmul.msk.bf16.vlgmr.msra.gmra.mxu2 %vm295_vm2, %v2747_v43  ;;  %1429 = vmatpush.bf16.msra.mxu0 %v1336_v44  ;;  %1729 = vst [vmem:[#allocation1 + $0x20] ss:$4 sm:$0xff] %v2557_v1  ;;  %v1544_v19 = vand.u32 %v1525_v10, %v2561_v4 }
  0xdf   : > { %2422 = vmatmul.msk.bf16.vlgmr.msra.gmra.mxu3 %vm295_vm2, %v2747_v43  ;;  %1455 = vmatpush.bf16.msra.mxu2 %v1340_v45 }
  0xe0   : > { %1442 = vmatpush.bf16.msra.mxu1 %v1338_v46  ;;  %1468 = vmatpush.bf16.msra.mxu3 %v1342_v47 }
  0xe1   : > { %v648_v48 = vpop.f32.mrf.mxu2 }
  0xe2   : > { %v661_v49 = vpop.f32.mrf.mxu3  ;;  %681 = vrot.lane.b32.xlu0 %v648_v48, %s2499_s16  ;;  %v624_v50 = vpop.f32.mrf.mxu0 }
  0xe3   : > { %v637_v51 = vpop.f32.mrf.mxu1  ;;  %683 = vrot.lane.b32.xlu1 %v661_v49, %s2499_s16 }
  0xe5   : > { %v1734_v54 = vld.sshfl [vmem:[#allocation1 + $0x20] sm:$0xff pattern:$0x73625140]  ;;  %v1737_v21 = vld.sshfl [vmem:[#allocation1 + $0x38] sm:$0xff pattern:$0x73625140] }
  0xe9   : > { %v650_v56 = vpop.f32.mrf.mxu2 }
  0xea   : > { %v663_v57 = vpop.f32.mrf.mxu3  ;;  %v754_v58 = vpop.f32.mrf.mxu0 }
  0xeb   : > { %v767_v59 = vpop.f32.mrf.mxu1  ;;  %875 = vrot.lane.b32.xlu2 %v754_v58, %s2500_s19  ;;  %v1735_v57 = vld.sshfl [vmem:[#allocation1 + $0x28] sm:$0xff pattern:$0x73625140] }
  0xec   : > { %877 = vrot.lane.b32.xlu0 %v767_v59, %s2500_s19 }
  0xed   : > { %2423 = vmatmul.msk.bf16.vlgmr.msrb.gmra.mxu0 %vm295_vm2, %v2747_v43  ;;  %2424 = vmatmul.msk.bf16.vlgmr.msrb.gmra.mxu1 %vm295_vm2, %v2747_v43 }
  0xee   : > { %2425 = vmatmul.msk.bf16.vlgmr.msrb.gmra.mxu2 %vm295_vm2, %v2747_v43  ;;  %1561 = vmatpush.bf16.msrb.mxu0 %v1534_v60  ;;  %v1748_v60 = vand.u32 %v1732_v52, %v2561_v4 }
  0xef   : > { %2426 = vmatmul.msk.bf16.vlgmr.msrb.gmra.mxu3 %vm295_vm2, %v2747_v43  ;;  %1587 = vmatpush.bf16.msrb.mxu2 %v1538_v61  ;;  %v1752_v61 = vand.u32 %v1734_v54, %v2561_v4 }
  0xf0   : > { %1574 = vmatpush.bf16.msrb.mxu1 %v1536_v62  ;;  %1600 = vmatpush.bf16.msrb.mxu3 %v1540_v63  ;;  %v1750_v63 = vand.u32 %v1733_v53, %v2561_v4 }
  0xf1   : > { %v780_v2 = vpop.f32.mrf.mxu2 }
  0xf2   : > { %v793_v3 = vpop.f32.mrf.mxu3  ;;  %879 = vrot.lane.b32.xlu1 %v780_v2, %s2500_s19  ;;  %v756_v5 = vpop.f32.mrf.mxu0  ;;  %v1754_v2 = vand.u32 %v1735_v57, %v2561_v4 }
  0xf3   : > { %v769_v6 = vpop.f32.mrf.mxu1  ;;  %881 = vrot.lane.b32.xlu2 %v793_v3, %s2500_s19 }
  0xf9   : > { %v782_v12 = vpop.f32.mrf.mxu2 }
  0xfa   : > { %v795_v13 = vpop.f32.mrf.mxu3  ;;  %v806_v14 = vpop.f32.mrf.mxu0 }
  0xfb   : > { %v819_v15 = vpop.f32.mrf.mxu1  ;;  %883 = vrot.lane.b32.xlu0 %v806_v14, %s2500_s19 }
  0xfc   : > { %885 = vrot.lane.b32.xlu1 %v819_v15, %s2500_s19 }
  0xfd   : > { %2427 = vmatmul.msk.bf16.vlgmr.msra.gmra.mxu0 %vm295_vm2, %v2747_v43  ;;  %2428 = vmatmul.msk.bf16.vlgmr.msra.gmra.mxu1 %vm295_vm2, %v2747_v43 }
  0xfe   : > { %2429 = vmatmul.msk.bf16.vlgmr.msra.gmra.mxu2 %vm295_vm2, %v2747_v43  ;;  %1613 = vmatpush.bf16.msra.mxu0 %v1542_v17 }
  0xff   : > { %2430 = vmatmul.msk.bf16.vlgmr.msra.gmra.mxu3 %vm295_vm2, %v2747_v43  ;;  %1639 = vmatpush.bf16.msra.mxu2 %v1546_v18  ;;  %v1736_v18 = vld.sshfl [vmem:[#allocation1 + $0x30] sm:$0xff pattern:$0x73625140] }
 0x100   : > { %1626 = vmatpush.bf16.msra.mxu1 %v1544_v19  ;;  %1652 = vmatpush.bf16.msra.mxu3 %v1548_v20  ;;  %v1739_v19 = vld.sshfl [vmem:[#allocation1] sm:$0xff pattern:$0x73625140]  ;;  %v1740_v20 = vld.sshfl [vmem:[#allocation1 + $0x8] sm:$0xff pattern:$0x73625140]  ;;  %v1756_v27 = vand.u32 %v1736_v18, %v2561_v4 }
 0x101   : > { %v832_v23 = vpop.f32.mrf.mxu2  ;;  %1937 = vst [vmem:[#allocation1] ss:$4 sm:$0xff] %v2555_v0  ;;  %v1760_v0 = vand.u32 %v1739_v19, %v2561_v4  ;;  %v1762_v30 = vand.u32 %v1740_v20, %v2561_v4 }
 0x102   : > { %v845_v24 = vpop.f32.mrf.mxu3  ;;  %v808_v25 = vpop.f32.mrf.mxu0  ;;  %887 = vrot.lane.b32.xlu2 %v832_v23, %s2500_s19  ;;  %1939 = vst [vmem:[#allocation1 + $0x20] ss:$4 sm:$0xff] %v2557_v1  ;;  %v1758_v1 = vand.u32 %v1737_v21, %v2561_v4 }
 0x103   : > { %v821_v26 = vpop.f32.mrf.mxu1  ;;  %889 = vrot.lane.b32.xlu0 %v845_v24, %s2500_s19 }
 0x104   : > { %v2884_v26 = vld [vmem:[%s3388_s1 + $0x1c] sm:$0xf] }
 0x105   : > { %v462_v28 = vpop.permute.xlu2 %461 }
 0x109   : > { %v834_v31 = vpop.f32.mrf.mxu2 }
 0x10a   : > { %v847_v32 = vpop.f32.mrf.mxu3  ;;  %v858_v34 = vpop.f32.mrf.mxu0 }
 0x10b   : > { %v871_v35 = vpop.f32.mrf.mxu1  ;;  %891 = vrot.lane.b32.xlu1 %v858_v34, %s2500_s19 }
 0x10c   : > { %893 = vrot.lane.b32.xlu2 %v871_v35, %s2500_s19 }
 0x10d   : > { %v2815_v41 = vpop.permute.xlu0 %453  ;;  %v464_v42 = vpop.permute.xlu2 %463  ;;  %2432 = vmatmul.msk.bf16.vlgmr.msrb.gmra.mxu0 %vm295_vm2, %v2806_v36  ;;  %2433 = vmatmul.msk.bf16.vlgmr.msrb.gmra.mxu1 %vm295_vm2, %v2806_v36 }
 0x10e   : > { %v2823_v43 = vsel %vm475_vm3, %v462_v28, %v464_v42  ;;  %2434 = vmatmul.msk.bf16.vlgmr.msrb.gmra.mxu2 %vm295_vm2, %v2806_v36  ;;  %1665 = vmatpush.bf16.msrb.mxu0 %v1550_v37 }
 0x10f   : > { %2435 = vmatmul.msk.bf16.vlgmr.msrb.gmra.mxu3 %vm295_vm2, %v2806_v36  ;;  %1771 = vmatpush.bf16.msrb.mxu2 %v1744_v38 }
 0x110   : > { %1678 = vmatpush.bf16.msrb.mxu1 %v1552_v39  ;;  %1784 = vmatpush.bf16.msrb.mxu3 %v1746_v40 }
 0x111   : > { %v964_v44 = vpop.f32.mrf.mxu2 }
 0x112   : > { %v977_v45 = vpop.f32.mrf.mxu3  ;;  %v860_v46 = vpop.f32.mrf.mxu0  ;;  %1085 = vrot.lane.b32.xlu0 %v964_v44, %s2501_s24  ;;  %v1942_v44 = vld.sshfl [vmem:[#allocation1 + $0x10] sm:$0xff pattern:$0x73625140] }
 0x113   : > { %v873_v47 = vpop.f32.mrf.mxu1  ;;  %1087 = vrot.lane.b32.xlu1 %v977_v45, %s2501_s24  ;;  %v1943_v45 = vld.sshfl [vmem:[#allocation1 + $0x18] sm:$0xff pattern:$0x73625140]  ;;  %v1941_v46 = vld.sshfl [vmem:[#allocation1 + $0x8] sm:$0xff pattern:$0x73625140]  ;;  %v1958_v54 = vand.u32 %v1942_v44, %v2561_v4 }
 0x114   : > { %v458_v48 = vpop.permute.xlu1 %457 }
 0x115   : > { %v456_v49 = vpop.permute.xlu0 %455  ;;  %v470_v11 = vpop.permute.xlu2 %469 }
 0x116   : > { %v2833_v50 = vsel %vm475_vm3, %v456_v49, %v458_v48  ;;  %v2838_v51 = vsel %vm475_vm3, %v2815_v41, %v456_v49 }
 0x119   : > { %v966_v55 = vpop.f32.mrf.mxu2 }
 0x11a   : > { %v979_v56 = vpop.f32.mrf.mxu3  ;;  %v990_v58 = vpop.f32.mrf.mxu0  ;;  %v1960_v55 = vand.u32 %v1943_v45, %v2561_v4 }
 0x11b   : > { %v1003_v59 = vpop.f32.mrf.mxu1  ;;  %1089 = vrot.lane.b32.xlu2 %v990_v58, %s2501_s24 }
 0x11c   : > { %1091 = vrot.lane.b32.xlu0 %v1003_v59, %s2501_s24  ;;  %v460_v62 = vpop.permute.xlu1 %459 }
 0x11d   : > { %v2849_v3 = vsel %vm475_vm3, %v460_v62, %v462_v28  ;;  %v2853_v5 = vsel %vm475_vm3, %v458_v48, %v460_v62  ;;  %2436 = vmatmul.msk.bf16.vlgmr.msra.gmra.mxu0 %vm295_vm2, %v2806_v36  ;;  %2437 = vmatmul.msk.bf16.vlgmr.msra.gmra.mxu1 %vm295_vm2, %v2806_v36  ;;  %v668_v28 = vpop.permute.xlu2 %667 }
 0x11e   : > { %2438 = vmatmul.msk.bf16.vlgmr.msra.gmra.mxu2 %vm295_vm2, %v2806_v36  ;;  %1797 = vmatpush.bf16.msra.mxu0 %v1748_v60 }
 0x11f   : > { %2439 = vmatmul.msk.bf16.vlgmr.msra.gmra.mxu3 %vm295_vm2, %v2806_v36  ;;  %1823 = vmatpush.bf16.msra.mxu2 %v1752_v61 }
 0x120   : > { %1810 = vmatpush.bf16.msra.mxu1 %v1750_v63  ;;  %1836 = vmatpush.bf16.msra.mxu3 %v1754_v2 }
 0x121   : > { %v1016_v6 = vpop.f32.mrf.mxu2 }
 0x122   : > { %v1029_v8 = vpop.f32.mrf.mxu3  ;;  %1093 = vrot.lane.b32.xlu1 %v1016_v6, %s2501_s24  ;;  %v992_v9 = vpop.f32.mrf.mxu0 }
 0x123   : > { %v1005_v10 = vpop.f32.mrf.mxu1  ;;  %1095 = vrot.lane.b32.xlu2 %v1029_v8, %s2501_s24 }
 0x124   : > { %v466_v13 = vpop.permute.xlu0 %465 }
 0x125   : > { %v468_v12 = vpop.permute.xlu1 %467  ;;  %v2875_v17 = vsel %vm475_vm3, %v464_v42, %v466_v13  ;;  %v1940_v42 = vld.sshfl [vmem:[#allocation1] sm:$0xff pattern:$0x73625140] }
 0x126   : > { %v2867_v14 = vsel %vm475_vm3, %v468_v12, %v470_v11  ;;  %v2871_v15 = vsel %vm475_vm3, %v466_v13, %v468_v12  ;;  %1948 = vst [vmem:[#allocation1] ss:$4 sm:$0xff] %v2563_v7  ;;  %v1954_v53 = vand.u32 %v1940_v42, %v2561_v4 }
 0x129   : > { %v1018_v22 = vpop.f32.mrf.mxu2 }
 0x12a   : > { %v1031_v23 = vpop.f32.mrf.mxu3  ;;  %v1042_v24 = vpop.f32.mrf.mxu0 }
 0x12b   : > { %v1055_v25 = vpop.f32.mrf.mxu1  ;;  %1097 = vrot.lane.b32.xlu0 %v1042_v24, %s2501_s24 }
 0x12c   : > { %1099 = vrot.lane.b32.xlu1 %v1055_v25, %s2501_s24  ;;  %v674_v40 = vpop.permute.xlu2 %673  ;;  %v1945_v25 = vld.sshfl [vmem:[#allocation1 + $0x28] sm:$0xff pattern:$0x73625140] }
 0x12d   : > { %2441 = vmatmul.msk.bf16.vlgmr.msrb.gmra.mxu1 %vm295_vm2, %v2806_v36  ;;  %2440 = vmatmul.msk.bf16.vlgmr.msrb.gmra.mxu0 %vm295_vm2, %v2806_v36  ;;  %v1949_v44 = vld.sshfl [vmem:[#allocation1] sm:$0xff pattern:$0x73625140] }
 0x12e   : > { %v472_v31 = vpop.permute.xlu0 %471  ;;  %2443 = vmatmul.msk.bf16.vlgmr.msrb.gmra.mxu2 %vm295_vm2, %v2884_v26  ;;  %1849 = vmatpush.bf16.msrb.mxu0 %v1756_v27 }
 0x12f   : > { %v2896_v32 = vsel %vm475_vm3, %v470_v11, %v472_v31  ;;  %v2901_v33 = vsel %vm475_vm3, %v472_v31, %v2815_v41  ;;  %2444 = vmatmul.msk.bf16.vlgmr.msrb.gmra.mxu3 %vm295_vm2, %v2884_v26  ;;  %1875 = vmatpush.bf16.msrb.mxu2 %v1760_v0  ;;  %v1964_v0 = vand.u32 %v1945_v25, %v2561_v4 }
 0x130   : > { %1888 = vmatpush.bf16.msrb.mxu3 %v1762_v30  ;;  %1862 = vmatpush.bf16.msrb.mxu1 %v1758_v1  ;;  %v1946_v1 = vld.sshfl [vmem:[#allocation1 + $0x30] sm:$0xff pattern:$0x73625140] }
 0x131   : > { %v1068_v34 = vpop.f32.mrf.mxu2 }
 0x132   : > { %v1081_v35 = vpop.f32.mrf.mxu3  ;;  %v1044_v36 = vpop.f32.mrf.mxu0  ;;  %1101 = vrot.lane.b32.xlu2 %v1068_v34, %s2501_s24 }
 0x133   : > { %v1057_v37 = vpop.f32.mrf.mxu1  ;;  %1103 = vrot.lane.b32.xlu0 %v1081_v35, %s2501_s24 }
 0x134   : > { %v2910_v38 = vpop.permute.xlu1 %665 }
 0x135   : > { %v694_v39 = vsel %vm685_vm4, %v2910_v38, %v668_v28 }
 0x136   : > { %v2916_v41 = vadd.f32 %v694_v39, %v2838_v51  ;;  %v1956_v51 = vand.u32 %v1941_v46, %v2561_v4  ;;  %v680_v58 = vpop.permute.xlu2 %679 }
 0x139   : > { %v1070_v47 = vpop.f32.mrf.mxu2 }
 0x13a   : > { %v1083_v48 = vpop.f32.mrf.mxu3  ;;  %v2919_v49 = vpop.f32.mrf.mxu0  ;;  %v1947_v47 = vld.sshfl [vmem:[#allocation1 + $0x38] sm:$0xff pattern:$0x73625140] }
 0x13b   : > { %v2921_v52 = vpop.f32.mrf.mxu1 }
 0x13d   : > { %2446 = vmatmul.msk.bf16.vlgmr.msra.gmra.mxu1 %vm295_vm2, %v2884_v26  ;;  %v670_v57 = vpop.permute.xlu0 %669  ;;  %2445 = vmatmul.msk.bf16.vlgmr.msra.gmra.mxu0 %vm295_vm2, %v2884_v26 }
 0x13e   : > { %v672_v56 = vpop.permute.xlu1 %671  ;;  %2447 = vmatmul.msk.bf16.vlgmr.msra.gmra.mxu2 %vm295_vm2, %v2884_v26  ;;  %v693_v60 = vsel %vm685_vm4, %v668_v28, %v670_v57  ;;  %1981 = vmatpush.bf16.msra.mxu0 %v1954_v53  ;;  %v3013_v53 = vld [vmem:[%s3388_s1 + $0x20] sm:$0xf] }
 0x13f   : > { %v691_v7 = vsel %vm685_vm4, %v672_v56, %v674_v40  ;;  %v692_v59 = vsel %vm685_vm4, %v670_v57, %v672_v56  ;;  %2448 = vmatmul.msk.bf16.vlgmr.msra.gmra.mxu3 %vm295_vm2, %v2884_v26  ;;  %v2945_v62 = vadd.f32 %v693_v60, %v2833_v50  ;;  %2007 = vmatpush.bf16.msra.mxu2 %v1958_v54 }
 0x140   : > { %v2942_v61 = vadd.f32 %v691_v7, %v2849_v3  ;;  %v2948_v63 = vadd.f32 %v692_v59, %v2853_v5  ;;  %2020 = vmatpush.bf16.msra.mxu3 %v1960_v55  ;;  %1994 = vmatpush.bf16.msra.mxu1 %v1956_v51  ;;  %v1944_v5 = vld.sshfl [vmem:[#allocation1 + $0x20] sm:$0xff pattern:$0x73625140] }
 0x141   : > { %v2950_v2 = vpop.f32.mrf.mxu2  ;;  %v1962_v20 = vand.u32 %v1944_v5, %v2561_v4 }
 0x142   : > { %v2952_v6 = vpop.f32.mrf.mxu3  ;;  %v1176_v8 = vpop.f32.mrf.mxu0 }
 0x143   : > { %v1189_v9 = vpop.f32.mrf.mxu1 }
 0x145   : > { %v676_v10 = vpop.permute.xlu0 %675  ;;  %v2959_v11 = vpop.permute.xlu2 %875 }
 0x146   : > { %v690_v3 = vsel %vm685_vm4, %v674_v40, %v676_v10 }
 0x147   : > { %v2957_v50 = vadd.f32 %v690_v3, %v2823_v43 }
 0x149   : > { %v1202_v12 = vpop.f32.mrf.mxu2 }
 0x14a   : > { %v1215_v13 = vpop.f32.mrf.mxu3  ;;  %v2961_v18 = vpop.f32.mrf.mxu0  ;;  %v1950_v12 = vld.sshfl [vmem:[#allocation1 + $0x8] sm:$0xff pattern:$0x73625140] }
 0x14b   : > { %v2963_v19 = vpop.f32.mrf.mxu1  ;;  %v1972_v13 = vand.u32 %v1950_v12, %v2561_v4 }
 0x14d   : > { %2450 = vmatmul.msk.bf16.vlgmr.msrb.gmra.mxu1 %vm295_vm2, %v2884_v26  ;;  %v678_v21 = vpop.permute.xlu1 %677  ;;  %2449 = vmatmul.msk.bf16.vlgmr.msrb.gmra.mxu0 %vm295_vm2, %v2884_v26  ;;  %v2984_v27 = vpop.permute.xlu2 %881 }
 0x14e   : > { %2451 = vmatmul.msk.bf16.vlgmr.msrb.gmra.mxu2 %vm295_vm2, %v2884_v26  ;;  %v688_v43 = vsel %vm685_vm4, %v678_v21, %v680_v58  ;;  %v689_v22 = vsel %vm685_vm4, %v676_v10, %v678_v21  ;;  %2033 = vmatpush.bf16.msrb.mxu0 %v1962_v20 }
 0x14f   : > { %2452 = vmatmul.msk.bf16.vlgmr.msrb.gmra.mxu3 %vm295_vm2, %v2884_v26  ;;  %v2979_v23 = vadd.f32 %v689_v22, %v2875_v17  ;;  %v2982_v24 = vadd.f32 %v688_v43, %v2871_v15  ;;  %2046 = vmatpush.bf16.msrb.mxu1 %v1964_v0  ;;  %v1966_v17 = vand.u32 %v1946_v1, %v2561_v4 }
 0x151   : > { %v2987_v28 = vpop.f32.mrf.mxu2  ;;  %2059 = vmatpush.bf16.msrb.mxu2 %v1966_v17 }
 0x152   : > { %v2989_v30 = vpop.f32.mrf.mxu3  ;;  %v1228_v31 = vpop.f32.mrf.mxu0 }
 0x153   : > { %v1241_v34 = vpop.f32.mrf.mxu1 }
 0x154   : > { %v682_v26 = vpop.permute.xlu0 %681 }
 0x155   : > { %v687_v15 = vsel %vm685_vm4, %v680_v58, %v682_v26  ;;  %v684_v35 = vpop.permute.xlu1 %683 }
 0x156   : > { %v2995_v36 = vadd.f32 %v687_v15, %v2867_v14  ;;  %v686_v37 = vsel %vm685_vm4, %v682_v26, %v684_v35  ;;  %v695_v39 = vsel %vm685_vm4, %v684_v35, %v2910_v38  ;;  %v1968_v38 = vand.u32 %v1947_v47, %v2561_v4 }
 0x157   : > { %v696_v40 = vadd.f32 %v695_v39, %v2901_v33  ;;  %v3004_v42 = vadd.f32 %v686_v37, %v2896_v32  ;;  %v1970_v32 = vand.u32 %v1949_v44, %v2561_v4 }
 0x158   : > { %2072 = vmatpush.bf16.msrb.mxu3 %v1968_v38 }
 0x159   : > { %v1254_v45 = vpop.f32.mrf.mxu2 }
 0x15a   : > { %v1267_v46 = vpop.f32.mrf.mxu3  ;;  %v3006_v48 = vpop.f32.mrf.mxu0 }
 0x15b   : > { %v3008_v14 = vpop.f32.mrf.mxu1 }
 0x15c   : > { %v888_v33 = vpop.permute.xlu2 %887 }
 0x15d   : > { %2455 = vmatmul.msk.bf16.vlgmr.msra.gmra.mxu1 %vm295_vm2, %v3013_v53  ;;  %2454 = vmatmul.msk.bf16.vlgmr.msra.gmra.mxu0 %vm295_vm2, %v3013_v53 }
 0x15e   : > { %v878_v54 = vpop.permute.xlu0 %877  ;;  %2456 = vmatmul.msk.bf16.vlgmr.msra.gmra.mxu2 %vm295_vm2, %v3013_v53  ;;  %2085 = vmatpush.bf16.msra.mxu0 %v1970_v32 }
 0x15f   : > { %v904_v55 = vsel %vm895_vm5, %v2959_v11, %v878_v54  ;;  %2457 = vmatmul.msk.bf16.vlgmr.msra.gmra.mxu3 %vm295_vm2, %v3013_v53  ;;  %2098 = vmatpush.bf16.msra.mxu1 %v1972_v13 }
 0x160   : > { %v3030_v51 = vadd.f32 %v904_v55, %v2916_v41 }
 0x161   : > { %v1353_v56 = vpop.f32.mrf.mxu2 }
 0x162   : > { %v1366_v57 = vpop.f32.mrf.mxu3  ;;  %1474 = vrot.lane.b32.xlu1 %v1353_v56, %s2502_s29  ;;  %v1280_v7 = vpop.f32.mrf.mxu0 }
 0x163   : > { %v1293_v58 = vpop.f32.mrf.mxu1  ;;  %1476 = vrot.lane.b32.xlu2 %v1366_v57, %s2502_s29 }
 0x164   : > { %v880_v59 = vpop.permute.xlu1 %879 }
 0x165   : > { %v902_v60 = vsel %vm895_vm5, %v880_v59, %v2984_v27  ;;  %v903_v8 = vsel %vm895_vm5, %v878_v54, %v880_v59 }
 0x166   : > { %v894_v41 = vpop.permute.xlu2 %893  ;;  %v908_v9 = vadd.f32 %v903_v8, %v2945_v62  ;;  %v3041_v10 = vadd.f32 %v902_v60, %v2948_v63 }
 0x167   : > { %v905_v3 = vsel %vm895_vm5, %v894_v41, %v2959_v11 }
 0x168   : > { %v3046_v5 = vadd.f32 %v905_v3, %v696_v40 }
 0x169   : > { %v1355_v20 = vpop.f32.mrf.mxu2 }
 0x16a   : > { %v1368_v21 = vpop.f32.mrf.mxu3  ;;  %v1379_v43 = vpop.f32.mrf.mxu0 }
 0x16b   : > { %v1392_v22 = vpop.f32.mrf.mxu1  ;;  %1478 = vrot.lane.b32.xlu0 %v1379_v43, %s2502_s29 }
 0x16c   : > { %1480 = vrot.lane.b32.xlu1 %v1392_v22, %s2502_s29 }
 0x16d   : > { %v884_v63 = vpop.permute.xlu0 %883  ;;  %2458 = vmatmul.msk.bf16.vlgmr.msrb.gmra.mxu0 %vm295_vm2, %v3013_v53  ;;  %2459 = vmatmul.msk.bf16.vlgmr.msrb.gmra.mxu1 %vm295_vm2, %v3013_v53 }
 0x16e   : > { %v886_v62 = vpop.permute.xlu1 %885  ;;  %v901_v25 = vsel %vm895_vm5, %v2984_v27, %v884_v63  ;;  %2460 = vmatmul.msk.bf16.vlgmr.msrb.gmra.mxu2 %vm295_vm2, %v3013_v53 }
 0x16f   : > { %v899_v4 = vsel %vm895_vm5, %v886_v62, %v888_v33  ;;  %v900_v11 = vsel %vm895_vm5, %v884_v63, %v886_v62  ;;  %2461 = vmatmul.msk.bf16.vlgmr.msrb.gmra.mxu3 %vm295_vm2, %v3013_v53  ;;  %v910_v1 = vadd.f32 %v901_v25, %v2942_v61 }
 0x170   : > { %v3067_v0 = vadd.f32 %v899_v4, %v2979_v23  ;;  %v911_v31 = vadd.f32 %v900_v11, %v2957_v50 }
 0x171   : > { %v1405_v34 = vpop.f32.mrf.mxu2 }
 0x172   : > { %v1418_v17 = vpop.f32.mrf.mxu3  ;;  %v1381_v26 = vpop.f32.mrf.mxu0  ;;  %1482 = vrot.lane.b32.xlu2 %v1405_v34, %s2502_s29 }
 0x173   : > { %v1394_v15 = vpop.f32.mrf.mxu1  ;;  %1484 = vrot.lane.b32.xlu0 %v1418_v17, %s2502_s29 }
 0x175   : > { %v890_v27 = vpop.permute.xlu0 %889  ;;  %v1090_v54 = vpop.permute.xlu2 %1089 }
 0x176   : > { %v898_v35 = vsel %vm895_vm5, %v888_v33, %v890_v27 }
 0x177   : > { %v3076_v37 = vadd.f32 %v898_v35, %v2982_v24 }
 0x179   : > { %v1407_v23 = vpop.f32.mrf.mxu2 }
 0x17a   : > { %v1420_v39 = vpop.f32.mrf.mxu3  ;;  %v1431_v61 = vpop.f32.mrf.mxu0 }
 0x17b   : > { %v1444_v40 = vpop.f32.mrf.mxu1  ;;  %1486 = vrot.lane.b32.xlu1 %v1431_v61, %s2502_s29 }
 0x17c   : > { %1488 = vrot.lane.b32.xlu2 %v1444_v40, %s2502_s29 }
 0x17d   : > { %v892_v50 = vpop.permute.xlu1 %891  ;;  %2462 = vmatmul.msk.bf16.vlgmr.msra.gmra.mxu0 %vm295_vm2, %v3013_v53  ;;  %2463 = vmatmul.msk.bf16.vlgmr.msra.gmra.mxu1 %vm295_vm2, %v3013_v53 }
 0x17e   : > { %v896_v44 = vsel %vm895_vm5, %v892_v50, %v894_v41  ;;  %v897_v24 = vsel %vm895_vm5, %v890_v27, %v892_v50 }
 0x17f   : > { %v914_v45 = vadd.f32 %v897_v24, %v2995_v36  ;;  %v3090_v46 = vadd.f32 %v896_v44, %v3004_v42 }
 0x181   : > { %v1457_v47 = vpop.f32.mrf.mxu2 }
 0x182   : > { %v1470_v38 = vpop.f32.mrf.mxu3  ;;  %1490 = vrot.lane.b32.xlu0 %v1457_v47, %s2502_s29  ;;  %v1433_v32 = vpop.f32.mrf.mxu0 }
 0x183   : > { %v1446_v33 = vpop.f32.mrf.mxu1  ;;  %1492 = vrot.lane.b32.xlu1 %v1470_v38, %s2502_s29 }
 0x184   : > { %v1086_v53 = vpop.permute.xlu0 %1085 }
 0x185   : > { %v1088_v55 = vpop.permute.xlu1 %1087 }
 0x186   : > { %v1113_v56 = vsel %vm1105_vm6, %v1088_v55, %v1090_v54  ;;  %v1114_v36 = vsel %vm1105_vm6, %v1086_v53, %v1088_v55 }
 0x187   : > { %v3100_v42 = vadd.f32 %v1114_v36, %v3030_v51  ;;  %v1118_v57 = vadd.f32 %v1113_v56, %v908_v9  ;;  %v1096_v9 = vpop.permute.xlu2 %1095 }
 0x189   : > { %v1459_v7 = vpop.f32.mrf.mxu2  ;;  %v3103_v59 = vadd.f32 %v2950_v2, %v1118_v57 }
 0x18a   : > { %v1472_v58 = vpop.f32.mrf.mxu3  ;;  %v1563_v60 = vpop.f32.mrf.mxu0 }
 0x18b   : > { %v1576_v8 = vpop.f32.mrf.mxu1  ;;  %1684 = vrot.lane.b32.xlu2 %v1563_v60, %s2503_s30 }
 0x18c   : > { %1686 = vrot.lane.b32.xlu0 %v1576_v8, %s2503_s30 }
 0x18e   : > { %v1092_v41 = vpop.permute.xlu0 %1091 }
 0x18f   : > { %v1112_v3 = vsel %vm1105_vm6, %v1090_v54, %v1092_v41  ;;  %v1102_v34 = vpop.permute.xlu2 %1101 }
 0x190   : > { %v3110_v51 = vadd.f32 %v1112_v3, %v3041_v10 }
 0x191   : > { %v1589_v12 = vpop.f32.mrf.mxu2 }
 0x192   : > { %v1602_v13 = vpop.f32.mrf.mxu3  ;;  %1688 = vrot.lane.b32.xlu1 %v1589_v12, %s2503_s30  ;;  %v1565_v2 = vpop.f32.mrf.mxu0 }
 0x193   : > { %v1578_v20 = vpop.f32.mrf.mxu1  ;;  %1690 = vrot.lane.b32.xlu2 %v1602_v13, %s2503_s30 }
 0x194   : > { %v1094_v21 = vpop.permute.xlu1 %1093 }
 0x195   : > { %v1110_v43 = vsel %vm1105_vm6, %v1094_v21, %v1096_v9  ;;  %v1111_v22 = vsel %vm1105_vm6, %v1092_v41, %v1094_v21 }
 0x196   : > { %v3118_v62 = vadd.f32 %v1111_v22, %v910_v1  ;;  %v3120_v10 = vadd.f32 %v1110_v43, %v911_v31 }
 0x199   : > { %v1591_v63 = vpop.f32.mrf.mxu2 }
 0x19a   : > { %v1604_v4 = vpop.f32.mrf.mxu3  ;;  %v1615_v11 = vpop.f32.mrf.mxu0 }
 0x19b   : > { %v1628_v25 = vpop.f32.mrf.mxu1  ;;  %1692 = vrot.lane.b32.xlu0 %v1615_v11, %s2503_s30 }
 0x19c   : > { %1694 = vrot.lane.b32.xlu2 %v1628_v25, %s2503_s30 }
 0x19d   : > { %v1098_v26 = vpop.permute.xlu0 %1097 }
 0x19e   : > { %v1100_v17 = vpop.permute.xlu1 %1099  ;;  %v1109_v31 = vsel %vm1105_vm6, %v1096_v9, %v1098_v26 }
 0x19f   : > { %v1107_v15 = vsel %vm1105_vm6, %v1100_v17, %v1102_v34  ;;  %v1108_v1 = vsel %vm1105_vm6, %v1098_v26, %v1100_v17  ;;  %v3131_v35 = vadd.f32 %v1109_v31, %v3067_v0  ;;  %v1298_v31 = vadd.f32 %v2952_v6, %v3110_v51 }
 0x1a0   : > { %v1124_v27 = vadd.f32 %v1107_v15, %v914_v45  ;;  %v3134_v23 = vadd.f32 %v1108_v1, %v3076_v37 }
 0x1a1   : > { %v1641_v39 = vpop.f32.mrf.mxu2 }
 0x1a2   : > { %v1654_v61 = vpop.f32.mrf.mxu3  ;;  %v3137_v40 = vadd.f32 %v3006_v48, %v1124_v27  ;;  %v1617_v50 = vpop.f32.mrf.mxu0 }
 0x1a3   : > { %v1630_v44 = vpop.f32.mrf.mxu1  ;;  %1696 = vrot.lane.b32.xlu0 %v1641_v39, %s2503_s30 }
 0x1a5   : > { %v1104_v24 = vpop.permute.xlu0 %1103 }
 0x1a6   : > { %v1106_v47 = vsel %vm1105_vm6, %v1102_v34, %v1104_v24  ;;  %v1115_v0 = vsel %vm1105_vm6, %v1104_v24, %v1086_v53 }
 0x1a7   : > { %v1116_v45 = vadd.f32 %v1115_v0, %v3046_v5  ;;  %v3146_v37 = vadd.f32 %v1106_v47, %v3090_v46  ;;  %v1299_v0 = vadd.f32 %v2961_v18, %v3118_v62  ;;  %v1300_v18 = vadd.f32 %v2963_v19, %v3120_v10 }
 0x1a8   : > { %v1301_v62 = vadd.f32 %v2987_v28, %v3131_v35  ;;  %v1302_v28 = vadd.f32 %v2989_v30, %v3134_v23 }
 0x1a9   : > { %v1643_v38 = vpop.f32.mrf.mxu2  ;;  %v1295_v63 = vadd.f32 %v2919_v49, %v1116_v45  ;;  %v1296_v49 = vadd.f32 %v2921_v52, %v3100_v42 }
 0x1aa   : > { %v1656_v32 = vpop.f32.mrf.mxu3  ;;  %v1667_v48 = vpop.f32.mrf.mxu0 }
 0x1ab   : > { %v1680_v33 = vpop.f32.mrf.mxu1  ;;  %1698 = vrot.lane.b32.xlu0 %v1654_v61, %s2503_s30 }
 0x1b1   : > { %v1773_v54 = vpop.f32.mrf.mxu2 }
 0x1b2   : > { %v1786_v55 = vpop.f32.mrf.mxu3  ;;  %v1669_v56 = vpop.f32.mrf.mxu0 }
 0x1b3   : > { %1896 = vrot.lane.b32.xlu1 %v1786_v55, %s2504_s7  ;;  %v1682_v36 = vpop.f32.mrf.mxu1  ;;  %1700 = vrot.lane.b32.xlu0 %v1667_v48, %s2503_s30 }
 0x1b9   : > { %v1775_v53 = vpop.f32.mrf.mxu2 }
 0x1ba   : > { %v1788_v5 = vpop.f32.mrf.mxu3  ;;  %v1799_v57 = vpop.f32.mrf.mxu0 }
 0x1bb   : > { %v1812_v46 = vpop.f32.mrf.mxu1  ;;  %1894 = vrot.lane.b32.xlu0 %v1773_v54, %s2504_s7  ;;  %1898 = vrot.lane.b32.xlu2 %v1799_v57, %s2504_s7 }
 0x1bc   : > { %1900 = vrot.lane.b32.xlu1 %v1812_v46, %s2504_s7 }
 0x1bd   : > { %v1477_v13 = vpop.permute.xlu2 %1476 }
 0x1c1   : > { %v1825_v7 = vpop.f32.mrf.mxu2 }
 0x1c2   : > { %v1838_v58 = vpop.f32.mrf.mxu3  ;;  %v1801_v60 = vpop.f32.mrf.mxu0 }
 0x1c3   : > { %v1814_v8 = vpop.f32.mrf.mxu1  ;;  %1902 = vrot.lane.b32.xlu0 %v1825_v7, %s2504_s7  ;;  %v1304_v60 = vadd.f32 %v3008_v14, %v3146_v37 }
 0x1c4   : > { %1904 = vrot.lane.b32.xlu1 %v1838_v58, %s2504_s7 }
 0x1c9   : > { %v1827_v41 = vpop.f32.mrf.mxu2 }
 0x1ca   : > { %v1840_v3 = vpop.f32.mrf.mxu3  ;;  %v1851_v9 = vpop.f32.mrf.mxu0 }
 0x1cb   : > { %v1864_v12 = vpop.f32.mrf.mxu1 }
 0x1cc   : > { %1906 = vrot.lane.b32.xlu1 %v1851_v9, %s2504_s7  ;;  %v1483_v15 = vpop.permute.xlu2 %1482 }
 0x1d1   : > { %v1877_v2 = vpop.f32.mrf.mxu2 }
 0x1d2   : > { %v1890_v20 = vpop.f32.mrf.mxu3  ;;  %v1853_v21 = vpop.f32.mrf.mxu0 }
 0x1d3   : > { %v1866_v43 = vpop.f32.mrf.mxu1 }
 0x1d4   : > { %1908 = vrot.lane.b32.xlu1 %v1864_v12, %s2504_s7  ;;  %v1475_v22 = vpop.permute.xlu1 %1474 }
 0x1d5   : > { %v1503_v4 = vsel %vm1494_vm7, %v1475_v22, %v1477_v13 }
 0x1d6   : > { %v3162_v11 = vadd.f32 %v1503_v4, %v1295_v63 }
 0x1d9   : > { %v1879_v25 = vpop.f32.mrf.mxu2 }
 0x1da   : > { %v1892_v34 = vpop.f32.mrf.mxu3  ;;  %v1983_v17 = vpop.f32.mrf.mxu0 }
 0x1db   : > { %v1996_v26 = vpop.f32.mrf.mxu1  ;;  %2104 = vrot.lane.b32.xlu2 %v1983_v17, %s2505_s8 }
 0x1dc   : > { %2106 = vrot.lane.b32.xlu0 %v1996_v26, %s2505_s8 }
 0x1dd   : > { %v1479_v27 = vpop.permute.xlu0 %1478 }
 0x1de   : > { %v1481_v1 = vpop.permute.xlu1 %1480  ;;  %v1502_v50 = vsel %vm1494_vm7, %v1477_v13, %v1479_v27 }
 0x1df   : > { %v1500_v39 = vsel %vm1494_vm7, %v1481_v1, %v1483_v15  ;;  %v1501_v61 = vsel %vm1494_vm7, %v1479_v27, %v1481_v1  ;;  %v3178_v24 = vadd.f32 %v1502_v50, %v1296_v49 }
 0x1e0   : > { %v3176_v44 = vadd.f32 %v1500_v39, %v1298_v31  ;;  %v3181_v47 = vadd.f32 %v1501_v61, %v3103_v59 }
 0x1e1   : > { %v2009_v6 = vpop.f32.mrf.mxu2 }
 0x1e2   : > { %v2022_v51 = vpop.f32.mrf.mxu3  ;;  %2108 = vrot.lane.b32.xlu1 %v2009_v6, %s2505_s8  ;;  %v1985_v52 = vpop.f32.mrf.mxu0 }
 0x1e3   : > { %v1998_v42 = vpop.f32.mrf.mxu1 }
 0x1e4   : > { %1702 = vrot.lane.b32.xlu0 %v1680_v33, %s2503_s30  ;;  %v1489_v33 = vpop.permute.xlu2 %1488 }
 0x1e5   : > { %v1485_v45 = vpop.permute.xlu0 %1484 }
 0x1e6   : > { %v1499_v38 = vsel %vm1494_vm7, %v1483_v15, %v1485_v45 }
 0x1e7   : > { %v3189_v32 = vadd.f32 %v1499_v38, %v1299_v0 }
 0x1e9   : > { %v2011_v48 = vpop.f32.mrf.mxu2 }
 0x1ea   : > { %v2024_v59 = vpop.f32.mrf.mxu3  ;;  %2110 = vrot.lane.b32.xlu1 %v2022_v51, %s2505_s8  ;;  %v2035_v54 = vpop.f32.mrf.mxu0 }
 0x1eb   : > { %v2048_v55 = vpop.f32.mrf.mxu1  ;;  %2112 = vrot.lane.b32.xlu2 %v2035_v54, %s2505_s8 }
 0x1ec   : > { %1912 = vrot.lane.b32.xlu0 %v1890_v20, %s2504_s7 }
 0x1ed   : > { %v1487_v56 = vpop.permute.xlu1 %1486 }
 0x1ee   : > { %v1497_v36 = vsel %vm1494_vm7, %v1487_v56, %v1489_v33  ;;  %v1498_v53 = vsel %vm1494_vm7, %v1485_v45, %v1487_v56 }
 0x1ef   : > { %v3202_v5 = vadd.f32 %v1498_v53, %v1300_v18  ;;  %v3204_v57 = vadd.f32 %v1497_v36, %v1301_v62  ;;  %v3276_v53 = vld [vmem:[%s3390_s3] sm:$0xff] }
 0x1f1   : > { %v2061_v46 = vpop.f32.mrf.mxu2 }
 0x1f2   : > { %v2074_v7 = vpop.f32.mrf.mxu3  ;;  %1910 = vrot.lane.b32.xlu1 %v1877_v2, %s2504_s7  ;;  %v2037_v58 = vpop.f32.mrf.mxu0 }
 0x1f3   : > { %v2050_v19 = vpop.f32.mrf.mxu1  ;;  %2114 = vrot.lane.b32.xlu2 %v2048_v55, %s2505_s8 }
 0x1f4   : > { %v1491_v10 = vpop.permute.xlu0 %1490 }
 0x1f5   : > { %v1496_v35 = vsel %vm1494_vm7, %v1489_v33, %v1491_v10  ;;  %v1493_v8 = vpop.permute.xlu1 %1492 }
 0x1f6   : > { %v3214_v41 = vadd.f32 %v1496_v35, %v1302_v28  ;;  %v1495_v3 = vsel %vm1494_vm7, %v1491_v10, %v1493_v8  ;;  %v1504_v9 = vsel %vm1494_vm7, %v1493_v8, %v1475_v22  ;;  %v2175_v35 = vperm.slane %v3276_v53, 0 }
 0x1f7   : > { %v3221_v12 = vadd.f32 %v1495_v3, %v3137_v40  ;;  %v3223_v30 = vadd.f32 %v1504_v9, %v1304_v60  ;;  %v1685_v40 = vpop.permute.xlu2 %1684 }
 0x1f9   : > { %v2063_v23 = vpop.f32.mrf.mxu2 }
 0x1fa   : > { %v2076_v13 = vpop.f32.mrf.mxu3  ;;  %v2087_v2 = vpop.f32.mrf.mxu0 }
 0x1fb   : > { %v2100_v20 = vpop.f32.mrf.mxu1  ;;  %2116 = vrot.lane.b32.xlu2 %v2061_v46, %s2505_s8  ;;  %2120 = vrot.lane.b32.xlu1 %v2087_v2, %s2505_s8 }
 0x1fe   : > { %v1687_v21 = vpop.permute.xlu0 %1686 }
 0x1ff   : > { %v1691_v4 = vpop.permute.xlu2 %1690  ;;  %v1713_v6 = vsel %vm1704_vm8, %v1685_v40, %v1687_v21 }
 0x200   : > { %v1715_v0 = vadd.f32 %v1713_v6, %v3162_v11 }
 0x202   : > { %v2089_v14 = vpop.f32.mrf.mxu0 }
 0x203   : > { %v2102_v37 = vpop.f32.mrf.mxu1  ;;  %2118 = vrot.lane.b32.xlu2 %v2074_v7, %s2505_s8 }
 0x204   : > { %v1689_v63 = vpop.permute.xlu1 %1688 }
 0x205   : > { %v1712_v11 = vsel %vm1704_vm8, %v1687_v21, %v1689_v63  ;;  %v1711_v8 = vsel %vm1704_vm8, %v1689_v63, %v1691_v4 }
 0x206   : > { %v1716_v58 = vadd.f32 %v1712_v11, %v3178_v24 }
 0x207   : > { %v1695_v17 = vpop.permute.xlu2 %1694 }
 0x20b   : > { %2122 = vrot.lane.b32.xlu2 %v2100_v20, %s2505_s8 }
 0x20d   : > { %v1693_v43 = vpop.permute.xlu0 %1692 }
 0x20e   : > { %v1709_v51 = vsel %vm1704_vm8, %v1693_v43, %v1695_v17  ;;  %v1710_v14 = vsel %vm1704_vm8, %v1691_v4, %v1693_v43 }
 0x20f   : > { %v1719_v45 = vadd.f32 %v1709_v51, %v3189_v32 }
 0x215   : > { %v1697_v22 = vpop.permute.xlu0 %1696  ;;  %v1899_v1 = vpop.permute.xlu2 %1898 }
 0x216   : > { %v1708_v56 = vsel %vm1704_vm8, %v1695_v17, %v1697_v22 }
 0x217   : > { %v1720_v28 = vadd.f32 %v1708_v56, %v3202_v5  ;;  %v2176_v5 = vperm.slane %v3276_v53, 1  ;;  %v2180_v56 = vperm.slane %v3276_v53, 5 }
 0x21d   : > { %v3229_v34 = vpop.permute.xlu0 %1698 }
 0x21e   : > { %v1707_v63 = vsel %vm1704_vm8, %v1697_v22, %v3229_v34 }
 0x21f   : > { %v1721_v51 = vadd.f32 %v1707_v63, %v3204_v57 }
 0x225   : > { %v1897_v25 = vpop.permute.xlu1 %1896  ;;  %v3231_v15 = vpop.permute.xlu0 %1700 }
 0x226   : > { %v1922_v36 = vsel %vm1914_vm9, %v1897_v25, %v1899_v1 }
 0x227   : > { %v1926_v10 = vadd.f32 %v1922_v36, %v1716_v58 }
 0x22d   : > { %v3233_v49 = vpop.permute.xlu0 %1894 }
 0x22e   : > { %v1901_v26 = vpop.permute.xlu1 %1900  ;;  %v1923_v52 = vsel %vm1914_vm9, %v3233_v49, %v1897_v25 }
 0x22f   : > { %v1925_v48 = vadd.f32 %v1923_v52, %v1715_v0  ;;  %v1921_v25 = vsel %vm1914_vm9, %v1899_v1, %v1901_v26 }
 0x235   : > { %v3235_v27 = vpop.permute.xlu2 %2104  ;;  %v1903_v61 = vpop.permute.xlu0 %1902 }
 0x236   : > { %v1905_v31 = vpop.permute.xlu1 %1904  ;;  %v1920_v6 = vsel %vm1914_vm9, %v1901_v26, %v1903_v61  ;;  %v2177_v26 = vperm.slane %v3276_v53, 2 }
 0x237   : > { %v1919_v42 = vsel %vm1914_vm9, %v1903_v61, %v1905_v31 }
 0x238   : > { %v1929_v59 = vadd.f32 %v1919_v42, %v1719_v45 }
 0x23e   : > { %v1907_v39 = vpop.permute.xlu1 %1906 }
 0x23f   : > { %v1918_v19 = vsel %vm1914_vm9, %v1905_v31, %v1907_v39  ;;  %v1717_v31 = vadd.f32 %v1711_v8, %v3181_v47 }
 0x240   : > { %v1930_v3 = vadd.f32 %v1918_v19, %v1720_v28 }
 0x241   : > { %v1927_v22 = vadd.f32 %v1921_v25, %v1717_v31 }
 0x245   : > { %v3238_v50 = vpop.permute.xlu2 %2112 }
 0x246   : > { %v3253_v38 = vpop.permute.xlu1 %1908 }
 0x247   : > { %v1917_v1 = vsel %vm1914_vm9, %v1907_v39, %v3253_v38 }
 0x248   : > { %v1931_v39 = vadd.f32 %v1917_v1, %v1721_v51 }
 0x24d   : > { %v2115_v55 = vpop.permute.xlu2 %2114 }
 0x24e   : > { %v2107_v54 = vpop.permute.xlu0 %2106  ;;  %v2129_v18 = vsel %vm2124_vm10, %v3238_v50, %v2115_v55 }
 0x24f   : > { %v2133_v33 = vsel %vm2124_vm10, %v3235_v27, %v2107_v54  ;;  %v2139_v62 = vadd.f32 %v2129_v18, %v1929_v59 }
 0x250   : > { %v2135_v32 = vadd.f32 %v2133_v33, %v1925_v48  ;;  %v2179_v33 = vperm.slane %v3276_v53, 4 }
 0x251   : > { %v3280_v7 = vadd.f32 %v2784_v16, %v2139_v62 }
 0x252   : > { %v2151_v46 = vadd.f32 %v2784_v16, %v2135_v32 }
 0x253   : > { %2167 = vst [vmem:[%s3269_s12 + $0x20] sm:$0xff] %v3280_v7  ;;  %v2199_v19 = vmul.f32 %v2179_v33, %v3280_v7 }
 0x254   : > { %2163 = vst [vmem:[%s3269_s12] sm:$0xff] %v2151_v46  ;;  %v2109_v60 = vpop.permute.xlu1 %2108  ;;  %v2195_v17 = vmul.f32 %v2175_v35, %v2151_v46 }
 0x255   : > { %v2132_v9 = vsel %vm2124_vm10, %v2107_v54, %v2109_v60  ;;  %v2117_v23 = vpop.permute.xlu2 %2116 }
 0x256   : > { %v3294_v24 = vpop.permute.xlu0 %1702  ;;  %v2136_v13 = vadd.f32 %v2132_v9, %v1926_v10  ;;  %v2128_v20 = vsel %vm2124_vm10, %v2115_v55, %v2117_v23  ;;  %v2218_v42 = vmul.f32 %v2195_v17, %v2151_v46 }
 0x257   : > { %v1714_v2 = vsel %vm1704_vm8, %v3294_v24, %v1685_v40  ;;  %v2140_v21 = vadd.f32 %v2128_v20, %v1930_v3  ;;  %v1706_v20 = vsel %vm1704_vm8, %v3229_v34, %v3231_v15 }
 0x258   : > { %v1724_v37 = vadd.f32 %v1714_v2, %v3223_v30  ;;  %v2152_v40 = vadd.f32 %v2784_v16, %v2136_v13  ;;  %v1718_v30 = vadd.f32 %v1710_v14, %v3176_v44  ;;  %v2178_v44 = vperm.slane %v3276_v53, 3 }
 0x259   : > { %v2156_v43 = vadd.f32 %v2784_v16, %v2140_v21  ;;  %v2222_v14 = vmul.f32 %v2199_v19, %v3280_v7 }
 0x25a   : > { %2164 = vst [vmem:[%s3269_s12 + $0x8] sm:$0xff] %v2152_v40  ;;  %v2196_v4 = vmul.f32 %v2176_v5, %v2152_v40  ;;  %v1928_v52 = vadd.f32 %v1920_v6, %v1718_v30 }
 0x25b   : > { %2168 = vst [vmem:[%s3269_s12 + $0x28] sm:$0xff] %v2156_v43  ;;  %v2200_v8 = vmul.f32 %v2180_v56, %v2156_v43 }
 0x25c   : > { %v2205_v47 = vadd.f32 %v2196_v4, %v2195_v17  ;;  %v2219_v0 = vmul.f32 %v2196_v4, %v2152_v40  ;;  %v2111_v45 = vpop.permute.xlu1 %2110 }
 0x25d   : > { %v2130_v57 = vsel %vm2124_vm10, %v2111_v45, %v3238_v50  ;;  %v2131_v61 = vsel %vm2124_vm10, %v2109_v60, %v2111_v45  ;;  %v2119_v48 = vpop.permute.xlu2 %2118  ;;  %v2181_v60 = vperm.slane %v3276_v53, 6  ;;  %v2223_v40 = vmul.f32 %v2200_v8, %v2156_v43 }
 0x25e   : > { %v2228_v59 = vadd.f32 %v2219_v0, %v2218_v42  ;;  %v2137_v54 = vadd.f32 %v2131_v61, %v1927_v22  ;;  %v2138_v55 = vadd.f32 %v2130_v57, %v1928_v52  ;;  %v2127_v18 = vsel %vm2124_vm10, %v2117_v23, %v2119_v48  ;;  %v1913_v50 = vpop.permute.xlu0 %1912 }
 0x25f   : > { %v2141_v62 = vadd.f32 %v2127_v18, %v1931_v39  ;;  %v1924_v28 = vsel %vm1914_vm9, %v1913_v50, %v3233_v49  ;;  %v1705_v49 = vsel %vm1704_vm8, %v3231_v15, %v3294_v24  ;;  %v1722_v24 = vadd.f32 %v1706_v20, %v3214_v41  ;;  %v2162_v41 = vld [vmem:[%s3390_s3 + $0x8] sm:$0x3] }
 0x260   : > { %v2153_v11 = vadd.f32 %v2784_v16, %v2137_v54  ;;  %v2154_v32 = vadd.f32 %v2784_v16, %v2138_v55  ;;  %v1934_v2 = vadd.f32 %v1924_v28, %v1724_v37  ;;  %v2182_v0 = vperm.slane %v3276_v53, 7 }
 0x261   : > { %v2157_v58 = vadd.f32 %v2784_v16, %v2141_v62  ;;  %v2183_v45 = vperm.slane %v2162_v41, 0  ;;  %v2184_v57 = vperm.slane %v2162_v41, 1 }
 0x262   : > { %2165 = vst [vmem:[%s3269_s12 + $0x10] sm:$0xff] %v2153_v11  ;;  %v2197_v36 = vmul.f32 %v2177_v26, %v2153_v11  ;;  %v2198_v46 = vmul.f32 %v2178_v44, %v2154_v32 }
 0x263   : > { %2166 = vst [vmem:[%s3269_s12 + $0x18] sm:$0xff] %v2154_v32  ;;  %v2201_v25 = vmul.f32 %v2181_v60, %v2157_v58 }
 0x264   : > { %v2206_v10 = vadd.f32 %v2205_v47, %v2197_v36  ;;  %v2220_v35 = vmul.f32 %v2197_v36, %v2153_v11  ;;  %2169 = vst [vmem:[%s3269_s12 + $0x30] sm:$0xff] %v2157_v58  ;;  %v1911_v3 = vpop.permute.xlu1 %1910  ;;  %v2221_v5 = vmul.f32 %v2198_v46, %v2154_v32 }
 0x265   : > { %v2123_v9 = vpop.permute.xlu2 %2122  ;;  %v1915_v34 = vsel %vm1914_vm9, %v1911_v3, %v1913_v50  ;;  %v1916_v7 = vsel %vm1914_vm9, %v3253_v38, %v1911_v3  ;;  %v2224_v30 = vmul.f32 %v2201_v25, %v2157_v58 }
 0x266   : > { %v2207_v23 = vadd.f32 %v2206_v10, %v2198_v46  ;;  %v2229_v13 = vadd.f32 %v2228_v59, %v2220_v35  ;;  %v2134_v21 = vsel %vm2124_vm10, %v2123_v9, %v3235_v27  ;;  %v1723_v27 = vadd.f32 %v1705_v49, %v3221_v12 }
 0x267   : > { %v2144_v37 = vadd.f32 %v2134_v21, %v1934_v2  ;;  %v1932_v51 = vadd.f32 %v1916_v7, %v1722_v24 }
 0x268   : > { %v2230_v63 = vadd.f32 %v2229_v13, %v2221_v5  ;;  %v2208_v17 = vadd.f32 %v2207_v23, %v2199_v19  ;;  %v1933_v22 = vadd.f32 %v1915_v34, %v1723_v27 }
 0x269   : > { %v2160_v31 = vadd.f32 %v2784_v16, %v2144_v37 }
 0x26a   : > { %v2209_v6 = vadd.f32 %v2208_v17, %v2200_v8  ;;  %v2231_v15 = vadd.f32 %v2230_v63, %v2222_v14 }
 0x26b   : > { %2172 = vst [vmem:[%s3269_s12 + $0x48] sm:$0xff] %v2160_v31 }
 0x26c   : > { %v2210_v4 = vadd.f32 %v2209_v6, %v2201_v25  ;;  %v2232_v43 = vadd.f32 %v2231_v15, %v2223_v40 }
 0x26d   : > { %v2121_v1 = vpop.permute.xlu1 %2120 }
 0x26e   : > { %v2125_v38 = vsel %vm2124_vm10, %v2121_v1, %v2123_v9  ;;  %v2126_v52 = vsel %vm2124_vm10, %v2119_v48, %v2121_v1  ;;  %v2233_v12 = vadd.f32 %v2232_v43, %v2224_v30  ;;  %v2204_v48 = vmul.f32 %v2184_v57, %v2160_v31 }
 0x26f   : > { %v2142_v42 = vadd.f32 %v2126_v52, %v1932_v51  ;;  %v2143_v47 = vadd.f32 %v2125_v38, %v1933_v22 }
 0x270   : > { %v2227_v11 = vmul.f32 %v2204_v48, %v2160_v31 }
 0x271   : > { %v2158_v26 = vadd.f32 %v2784_v16, %v2142_v42  ;;  %v2159_v44 = vadd.f32 %v2784_v16, %v2143_v47 }
 0x273   : > { %2170 = vst [vmem:[%s3269_s12 + $0x38] sm:$0xff] %v2158_v26  ;;  %v2202_v61 = vmul.f32 %v2182_v0, %v2158_v26  ;;  %v2203_v29 = vmul.f32 %v2183_v45, %v2159_v44 }
 0x274   : > { %2171 = vst [vmem:[%s3269_s12 + $0x40] sm:$0xff] %v2159_v44 }
 0x275   : > { %v2211_v39 = vadd.f32 %v2210_v4, %v2202_v61  ;;  %v2225_v59 = vmul.f32 %v2202_v61, %v2158_v26  ;;  %v2226_v55 = vmul.f32 %v2203_v29, %v2159_v44 }
 0x277   : > { %v2212_v54 = vadd.f32 %v2211_v39, %v2203_v29  ;;  %v2234_v33 = vadd.f32 %v2233_v12, %v2225_v59 }
 0x279   : > { %v2213_v18 = vadd.f32 %v2212_v54, %v2204_v48  ;;  %v2235_v53 = vadd.f32 %v2234_v33, %v2226_v55 }
 0x27b   : > { %2214 = vadd.xlane.f32.xlu0 %v2213_v18  ;;  %v2236_v32 = vadd.f32 %v2235_v53, %v2227_v11 }
 0x27d   : > { %2237 = vadd.xlane.f32.xlu1 %v2236_v32 }
 0x2ee   : > { %v2215_v16 = vpop.xlane.xlu0 %2214 }
 0x2ef   : > { %2217 = vst.msk [vmem:[%s268_s20] sm:$0xff] %vm2216_vm11, %v2215_v16 }
 0x2f0   : > { %v2238_v50 = vpop.xlane.xlu1 %2237 }
 0x2f1   : > { %2239 = vst.msk [vmem:[%s272_s25] sm:$0xff] %vm2216_vm11, %v2238_v50 }
 0x2f2 PF: > { %s17_s21 = sadd.s32 1, %s2494_s21  }
 0x2f3   : > { %p14_p4 = scmp.ge.s32.totalorder %s17_s21, 4  }
 0x2f5   :  { %16 = sbr.rel (!%p14_p4) target bundleno = 1 (0x1), region = 107 }

// kernel: model_d_forward.19
= control target key start
LH: loop header
LB: loop body
LE: loop exit
PB: predicated region body
PF: predicated region fallthrough
CT: control target
= control target key end

     0   :  { %s420_s18 = smov 0   ;;  %s457_s0 = inlined_call_operand.vmem [shape: f32[2,8,384], index: 0, kind: input, shape index: {}]   ;;  %s458_s1 = inlined_call_operand.vmem [shape: f32[8,1], index: 1, kind: input, shape index: {}]   ;;  %s459_s2 = inlined_call_operand.vmem [shape: f32[8,1], index: 2, kind: input, shape index: {}]   ;;  %s460_s3 = inlined_call_operand.vmem [shape: bf16[2,8,384], index: 3, kind: input, shape index: {}]   ;;  %s461_s4 = inlined_call_operand.vmem [shape: f32[1,384], index: 4, kind: input, shape index: {}]   ;;  %s462_s5 = inlined_call_operand.vmem [shape: bf16[2,8,384], index: 5, kind: output, shape index: {}]  }
   0x1 LB: > { %s359_s19 = sadd.s32 4294967295, %s387_s18   ;;  %p363_p0 = scmp.ge.s32.totalorder %s387_s18, 1  ;;  %s387_s18 = sphi %s420_s18, %s15_s18  }
   0x2   : > { %p197_p1 = scmp.lt.s32.totalorder %s387_s18, 3 }
   0x4   : > { %p198_p2 = pnand %p363_p0, %p197_p1 }
   0x5   : > { %p230_p3 = scmp.lt.s32.totalorder (!%p198_p2), %s359_s19, 1 }
   0x6   : > { %201 = sbr.rel (%p198_p2) target bundleno = 148 (0x94), region = 40 }
   0xb   : > { %v248_v0 = vld [vmem:[%s458_s1] sm:$0xff]  ;;  %v389_v1 = vmov 0   ;;  %s464_s19 = smov (!%p230_p3, %s359_s19), 1 }
   0xc   : > { %380 = vset.pattern.permute.xlu0 %v389_v1  ;;  %v257_v2 = vld [vmem:[%s459_s2] sm:$0xff]  ;;  %s369_s24 = smul.u32 24, %s464_s19 }
   0xd   : > { %251 = vperm.xlu0 %380, %v248_v0   ;;  %s370_s25 = smul.u32 12, %s464_s19  ;;  %v277_v12 = vld [vmem:[%s461_s4] sm:$0x7] }
   0xe   : > { %s234_s28 = scalar_lea.vmem %s457_s0, %s369_s24  ;;  %v279_v20 = vperm.slane %v277_v12, 0  ;;  %v280_v21 = vperm.slane %v277_v12, 1  ;;  %v281_v22 = vperm.slane %v277_v12, 2 }
   0xf   : > { %s239_s6 = scalar_lea.vmem %s460_s3, %s370_s25  ;;  %v245_v4 = vld [vmem:[%s234_s28] sm:$0xff]  ;;  %v246_v5 = vld [vmem:[%s234_s28 + $0x8] sm:$0xff]  ;;  %v247_v6 = vld [vmem:[%s234_s28 + $0x10] sm:$0xff]  ;;  %s244_s11 = scalar_lea.vmem %s462_s5, %s370_s25 }
  0x10   : > { %v269_v7 = vld [vmem:[%s239_s6] sm:$0xff]  ;;  %v270_v8 = vld [vmem:[%s239_s6 + $0x8] sm:$0xf] }
  0x11   : > { %v271_v14 = vunpack.c.l.bf16 %v269_v7  ;;  %v272_v15 = vunpack.c.h.bf16 %v269_v7  ;;  %v273_v19 = vunpack.c.l.bf16 %v270_v8 }
  0x15   : > { %260 = vperm.xlu0 %380, %v257_v2  }
  0x7f   : > { %v252_v3 = vpop.permute.xlu0 %251 }
  0x80   : > { %v254_v9 = vmul.f32 %v252_v3, %v245_v4  ;;  %v255_v10 = vmul.f32 %v252_v3, %v246_v5  ;;  %v256_v11 = vmul.f32 %v252_v3, %v247_v6 }
  0x87   : > { %v261_v13 = vpop.permute.xlu0 %260 }
  0x88   : > { %v263_v16 = vadd.f32 %v261_v13, %v254_v9  ;;  %v264_v17 = vadd.f32 %v261_v13, %v255_v10  ;;  %v265_v18 = vadd.f32 %v261_v13, %v256_v11 }
  0x8a   : > { %v266_v23 = vmax.f32 %v263_v16, 0.0  ;;  %v267_v24 = vmax.f32 %v264_v17, 0.0  ;;  %v268_v25 = vmax.f32 %v265_v18, 0.0 }
  0x8c   : > { %v274_v26 = vadd.f32 %v271_v14, %v266_v23  ;;  %v275_v27 = vadd.f32 %v272_v15, %v267_v24  ;;  %v276_v28 = vadd.f32 %v273_v19, %v268_v25 }
  0x8e   : > { %v285_v29 = vmul.f32 %v279_v20, %v274_v26  ;;  %v286_v30 = vmul.f32 %v280_v21, %v275_v27  ;;  %v287_v31 = vmul.f32 %v281_v22, %v276_v28 }
  0x90   : > { %v288_v32 = vpack.c.bf16 %v286_v30, %v285_v29  ;;  %v289_v33 = vpack.c.bf16 %v287_v31, %v287_v31 }
  0x92   : > { %290 = vst [vmem:[%s244_s11] sm:$0xff] %v288_v32 }
  0x93   : > { %291 = vst [vmem:[%s244_s11 + $0x8] sm:$0xf] %v289_v33 }
  0x94 PF: > { %s15_s18 = sadd.s32 1, %s387_s18  }
  0x95   : > { %p12_p4 = scmp.ge.s32.totalorder %s15_s18, 4  }
  0x97   :  { %14 = sbr.rel (!%p12_p4) target bundleno = 1 (0x1), region = 73 }

// kernel: model_d_forward.17
= control target key start
LH: loop header
LB: loop body
LE: loop exit
PB: predicated region body
PF: predicated region fallthrough
CT: control target
= control target key end

     0   :  { %s1071_s21 = smov 0   ;;  %s1168_s0 = inlined_call_operand.vmem [shape: bf16[2,8,384], index: 0, kind: input, shape index: {}]   ;;  %s1169_s1 = inlined_call_operand.vmem [shape: bf16[9,8,8], index: 1, kind: input, shape index: {}]   ;;  %s1170_s2 = inlined_call_operand.vmem [shape: f32[8,1], index: 2, kind: input, shape index: {}]   ;;  %s1171_s3 = inlined_call_operand.vmem [shape: f32[1,384], index: 3, kind: input, shape index: {}]   ;;  %s1172_s4 = inlined_call_operand.vmem [shape: f32[2,8,384], index: 4, kind: output, shape index: {0}]   ;;  %s1173_s5 = inlined_call_operand.vmem [shape: f32[2,8,1], index: 5, kind: output, shape index: {1}]   ;;  %s1174_s6 = inlined_call_operand.vmem [shape: f32[2,8,1], index: 6, kind: output, shape index: {2}]  }
   0x1 LB: > { %s953_s22 = sadd.s32 4294967295, %s1025_s21   ;;  %p957_p0 = scmp.ge.s32.totalorder %s1025_s21, 1  ;;  %s1025_s21 = sphi %s1071_s21, %s17_s21  }
   0x2   : > { %p217_p1 = scmp.lt.s32.totalorder %s1025_s21, 3 }
   0x4   : > { %p218_p2 = pnand %p957_p0, %p217_p1 }
   0x5   : > { %p255_p3 = scmp.lt.s32.totalorder (!%p218_p2), %s953_s22, 1  ;;  %s1028_s24 = smov (!%p218_p2), 18  }
   0x6   : > { %221 = sbr.rel (%p218_p2) target bundleno = 497 (0x1f1), region = 36  ;;  %s1029_s25 = smov (!%p218_p2), 17  }
   0x7   : > { %s1031_s27 = smov (!%p218_p2), 127   ;;  %s1033_s28 = smov (!%p218_p2), 111  }
   0x8   : > { %s1034_s29 = smov (!%p218_p2), 110   ;;  %s1035_s30 = smov (!%p218_p2), 109  }
   0xb   : > { %s1176_s22 = smov (!%p255_p3, %s953_s22), 1  ;;  %vm289_vm0 = vcmask 1043456   ;;  %v276_v11 = vld [vmem:[%s1169_s1] sm:$0xf]  ;;  %vm285_vm1 = vcmask 64512   ;;  %v1032_v54 = vmov 0  }
   0xc   : > { %s999_s23 = smul.u32 12, %s1176_s22  ;;  %v965_v12 = vld [vmem:[%s1169_s1 + $0x4] sm:$0xf]  ;;  %v969_v13 = vld [vmem:[%s1169_s1 + $0x8] sm:$0xf]  ;;  %1018 = vset.pattern.permute.xlu0 %v1032_v54  ;;  %s960_s15 = sshll.u32 %s1176_s22, 3 }
   0xd   : > { %v973_v14 = vld [vmem:[%s1169_s1 + $0xc] sm:$0xf]  ;;  %v977_v15 = vld [vmem:[%s1169_s1 + $0x10] sm:$0xf]  ;;  %v981_v16 = vld [vmem:[%s1169_s1 + $0x14] sm:$0xf]  ;;  %s268_s18 = scalar_lea.vmem %s1173_s5, %s960_s15 }
   0xe   : > { %s259_s26 = scalar_lea.vmem %s1168_s0, %s999_s23  ;;  %v985_v17 = vld [vmem:[%s1169_s1 + $0x18] sm:$0xf]  ;;  %v989_v18 = vld [vmem:[%s1169_s1 + $0x1c] sm:$0xf]  ;;  %v993_v19 = vld [vmem:[%s1169_s1 + $0x20] sm:$0xf] }
   0xf   : > { %v274_v0 = vld [vmem:[%s259_s26] sm:$0xff]  ;;  %v275_v1 = vld [vmem:[%s259_s26 + $0x8] sm:$0xf]  ;;  %s1027_s23 = smov 19   ;;  %s1030_s26 = smov 1   ;;  %vm826_vm10 = vcmask 7168  }
  0x10   : > { %v279_v2 = vunpack.c.l.b16 %v274_v0  ;;  %v280_v3 = vunpack.c.h.b16 %v274_v0  ;;  %v281_v4 = vunpack.c.l.b16 %v275_v1  ;;  %s1000_s11 = smul.u32 24, %s1176_s22 }
  0x12   : > { %v282_v5 = vpack.c.b16 %v279_v2, %v279_v2  ;;  %v283_v6 = vpack.c.b16 %v280_v3, %v280_v3  ;;  %v284_v7 = vpack.c.b16 %v281_v4, %v281_v4  ;;  %s264_s14 = scalar_lea.vmem %s1172_s4, %s1000_s11 }
  0x14   : > { %v291_v8 = vsel %vm289_vm0, %v282_v5, 0  ;;  %v294_v9 = vsel %vm289_vm0, %v283_v6, 0  ;;  %v297_v10 = vsel %vm289_vm0, %v284_v7, 0  ;;  %v799_v7 = vld [vmem:[%s1170_s2] sm:$0xff] }
  0x15   : > { %306 = vmatpush.bf16.msra.mxu0 %v291_v8  ;;  %319 = vmatpush.bf16.msra.mxu1 %v294_v9 }
  0x16   : > { %332 = vmatpush.bf16.msra.mxu2 %v297_v10  ;;  %365 = vmatpush.bf16.msra.mxu3 %v291_v8 }
  0x18   : > { %962 = vmatmul.msk.bf16.vlgmr.msra.gmra.mxu0 %vm285_vm1, %v276_v11  ;;  %963 = vmatmul.msk.bf16.vlgmr.msra.gmra.mxu1 %vm285_vm1, %v276_v11 }
  0x19   : > { %378 = vmatpush.bf16.msrb.mxu0 %v294_v9  ;;  %391 = vmatpush.bf16.msrb.mxu1 %v297_v10 }
  0x1a   : > { %964 = vmatmul.msk.bf16.vlgmr.msra.gmra.mxu2 %vm285_vm1, %v276_v11  ;;  %966 = vmatmul.msk.bf16.vlgmr.msra.gmra.mxu3 %vm285_vm1, %v965_v12 }
  0x1b   : > { %422 = vmatpush.bf16.msrb.mxu2 %v291_v8  ;;  %435 = vmatpush.bf16.msrb.mxu3 %v294_v9 }
  0x1d   : > { %448 = vmatpush.bf16.msra.mxu0 %v297_v10  ;;  %479 = vmatpush.bf16.msra.mxu1 %v291_v8 }
  0x1f   : > { %492 = vmatpush.bf16.msra.mxu2 %v294_v9  ;;  %505 = vmatpush.bf16.msra.mxu3 %v297_v10 }
  0x28   : > { %967 = vmatmul.msk.bf16.vlgmr.msrb.gmra.mxu0 %vm285_vm1, %v965_v12  ;;  %968 = vmatmul.msk.bf16.vlgmr.msrb.gmra.mxu1 %vm285_vm1, %v965_v12 }
  0x29   : > { %536 = vmatpush.bf16.msrb.mxu0 %v291_v8  ;;  %549 = vmatpush.bf16.msrb.mxu1 %v294_v9 }
  0x2a   : > { %970 = vmatmul.msk.bf16.vlgmr.msrb.gmra.mxu2 %vm285_vm1, %v969_v13  ;;  %971 = vmatmul.msk.bf16.vlgmr.msrb.gmra.mxu3 %vm285_vm1, %v969_v13 }
  0x2b   : > { %562 = vmatpush.bf16.msrb.mxu2 %v297_v10  ;;  %583 = vmatpush.bf16.msrb.mxu3 %v291_v8 }
  0x38   : > { %972 = vmatmul.msk.bf16.vlgmr.msra.gmra.mxu0 %vm285_vm1, %v969_v13  ;;  %974 = vmatmul.msk.bf16.vlgmr.msra.gmra.mxu1 %vm285_vm1, %v973_v14 }
  0x39   : > { %596 = vmatpush.bf16.msra.mxu0 %v294_v9  ;;  %609 = vmatpush.bf16.msra.mxu1 %v297_v10 }
  0x3a   : > { %975 = vmatmul.msk.bf16.vlgmr.msra.gmra.mxu2 %vm285_vm1, %v973_v14  ;;  %976 = vmatmul.msk.bf16.vlgmr.msra.gmra.mxu3 %vm285_vm1, %v973_v14 }
  0x3b   : > { %640 = vmatpush.bf16.msra.mxu2 %v291_v8  ;;  %653 = vmatpush.bf16.msra.mxu3 %v294_v9 }
  0x48   : > { %978 = vmatmul.msk.bf16.vlgmr.msrb.gmra.mxu0 %vm285_vm1, %v977_v15  ;;  %979 = vmatmul.msk.bf16.vlgmr.msrb.gmra.mxu1 %vm285_vm1, %v977_v15 }
  0x49   : > { %666 = vmatpush.bf16.msrb.mxu0 %v297_v10  ;;  %697 = vmatpush.bf16.msrb.mxu1 %v291_v8 }
  0x4a   : > { %980 = vmatmul.msk.bf16.vlgmr.msrb.gmra.mxu2 %vm285_vm1, %v977_v15  ;;  %982 = vmatmul.msk.bf16.vlgmr.msrb.gmra.mxu3 %vm285_vm1, %v981_v16 }
  0x4b   : > { %710 = vmatpush.bf16.msrb.mxu2 %v294_v9  ;;  %723 = vmatpush.bf16.msrb.mxu3 %v297_v10 }
  0x58   : > { %983 = vmatmul.msk.bf16.vlgmr.msra.gmra.mxu0 %vm285_vm1, %v981_v16  ;;  %984 = vmatmul.msk.bf16.vlgmr.msra.gmra.mxu1 %vm285_vm1, %v981_v16 }
  0x59   : > { %754 = vmatpush.bf16.msra.mxu0 %v291_v8  ;;  %767 = vmatpush.bf16.msra.mxu1 %v294_v9 }
  0x5a   : > { %986 = vmatmul.msk.bf16.vlgmr.msra.gmra.mxu2 %vm285_vm1, %v985_v17  ;;  %987 = vmatmul.msk.bf16.vlgmr.msra.gmra.mxu3 %vm285_vm1, %v985_v17 }
  0x5b   : > { %780 = vmatpush.bf16.msra.mxu2 %v297_v10 }
  0x68   : > { %988 = vmatmul.msk.bf16.vlgmr.msrb.gmra.mxu0 %vm285_vm1, %v985_v17  ;;  %990 = vmatmul.msk.bf16.vlgmr.msrb.gmra.mxu1 %vm285_vm1, %v989_v18 }
  0x6a   : > { %991 = vmatmul.msk.bf16.vlgmr.msrb.gmra.mxu2 %vm285_vm1, %v989_v18  ;;  %992 = vmatmul.msk.bf16.vlgmr.msrb.gmra.mxu3 %vm285_vm1, %v989_v18 }
  0x78   : > { %994 = vmatmul.msk.bf16.vlgmr.msra.gmra.mxu0 %vm285_vm1, %v993_v19  ;;  %995 = vmatmul.msk.bf16.vlgmr.msra.gmra.mxu1 %vm285_vm1, %v993_v19 }
  0x7a   : > { %996 = vmatmul.msk.bf16.vlgmr.msra.gmra.mxu2 %vm285_vm1, %v993_v19 }
  0x95   : > { %v308_v20 = vpop.f32.mrf.mxu0  ;;  %v321_v21 = vpop.f32.mrf.mxu1 }
  0x96   : > { %338 = vrot.lane.b32.xlu0 %v308_v20, %s1027_s23 }
  0x9d   : > { %v334_v22 = vpop.f32.mrf.mxu2  ;;  %v367_v23 = vpop.f32.mrf.mxu3 }
  0x9e   : > { %342 = vrot.lane.b32.xlu1 %v334_v22, %s1027_s23  ;;  %v310_v24 = vpop.f32.mrf.mxu0  ;;  %v323_v25 = vpop.f32.mrf.mxu1  ;;  %340 = vrot.lane.b32.xlu0 %v321_v21, %s1027_s23  ;;  %s272_s23 = scalar_lea.vmem %s1174_s6, %s960_s15 }
  0xa5   : > { %v336_v26 = vpop.f32.mrf.mxu2  ;;  %v369_v27 = vpop.f32.mrf.mxu3 }
  0xa6   : > { %397 = vrot.lane.b32.xlu1 %v367_v23, %s1028_s24  ;;  %v380_v28 = vpop.f32.mrf.mxu0  ;;  %v393_v29 = vpop.f32.mrf.mxu1  ;;  %v344_v27 = vlaneseq }
  0xa7   : > { %399 = vrot.lane.b32.xlu2 %v380_v28, %s1028_s24 }
  0xa8   : > { %v345_v28 = vand.u32 127, %v344_v27 }
  0xaa   : > { %vm403_vm2 = vcmp.lt.s32.totalorder %v345_v28, 18  ;;  %vm346_vm3 = vcmp.lt.s32.totalorder %v345_v28, 19  ;;  %vm460_vm4 = vcmp.lt.s32.totalorder %v345_v28, 17  ;;  %vm517_vm5 = vcmp.lt.s32.totalorder %v345_v28, 1 }
  0xab   : > { %vm621_vm6 = vcmp.lt.s32.totalorder %v345_v28, 127  ;;  %vm678_vm7 = vcmp.lt.s32.totalorder %v345_v28, 111  ;;  %vm735_vm8 = vcmp.lt.s32.totalorder %v345_v28, 110  ;;  %vm792_vm9 = vcmp.lt.s32.totalorder %v345_v28, 109 }
  0xad   : > { %v424_v30 = vpop.f32.mrf.mxu2  ;;  %v437_v31 = vpop.f32.mrf.mxu3 }
  0xae   : > { %456 = vrot.lane.b32.xlu1 %v437_v31, %s1029_s25  ;;  %454 = vrot.lane.b32.xlu0 %v424_v30, %s1029_s25  ;;  %v382_v32 = vpop.f32.mrf.mxu0  ;;  %v395_v33 = vpop.f32.mrf.mxu1 }
  0xaf   : > { %401 = vrot.lane.b32.xlu2 %v393_v29, %s1028_s24 }
  0xb5   : > { %v426_v34 = vpop.f32.mrf.mxu2  ;;  %v439_v35 = vpop.f32.mrf.mxu3 }
  0xb6   : > { %v450_v36 = vpop.f32.mrf.mxu0  ;;  %v481_v37 = vpop.f32.mrf.mxu1 }
  0xb7   : > { %511 = vrot.lane.b32.xlu0 %v481_v37, %s1030_s26  ;;  %458 = vrot.lane.b32.xlu2 %v450_v36, %s1029_s25 }
  0xbd   : > { %v494_v38 = vpop.f32.mrf.mxu2  ;;  %v507_v39 = vpop.f32.mrf.mxu3 }
  0xbe   : > { %513 = vrot.lane.b32.xlu1 %v494_v38, %s1030_s26  ;;  %v452_v40 = vpop.f32.mrf.mxu0  ;;  %v483_v41 = vpop.f32.mrf.mxu1 }
  0xbf   : > { %515 = vrot.lane.b32.xlu2 %v507_v39, %s1030_s26 }
  0xc5   : > { %v496_v42 = vpop.f32.mrf.mxu2  ;;  %v509_v43 = vpop.f32.mrf.mxu3 }
  0xc6   : > { %v1139_v44 = vpop.f32.mrf.mxu0  ;;  %v1141_v45 = vpop.f32.mrf.mxu1 }
  0xcd   : > { %v1143_v46 = vpop.f32.mrf.mxu2  ;;  %v585_v47 = vpop.f32.mrf.mxu3 }
  0xce   : > { %615 = vrot.lane.b32.xlu0 %v585_v47, %s1031_s27  ;;  %v540_v48 = vpop.f32.mrf.mxu0  ;;  %v553_v49 = vpop.f32.mrf.mxu1 }
  0xd5   : > { %v566_v50 = vpop.f32.mrf.mxu2  ;;  %v587_v51 = vpop.f32.mrf.mxu3 }
  0xd6   : > { %v598_v52 = vpop.f32.mrf.mxu0  ;;  %v611_v53 = vpop.f32.mrf.mxu1 }
  0xd7   : > { %617 = vrot.lane.b32.xlu1 %v598_v52, %s1031_s27  ;;  %619 = vrot.lane.b32.xlu2 %v611_v53, %s1031_s27 }
  0xdd   : > { %v642_v55 = vpop.f32.mrf.mxu2  ;;  %v655_v56 = vpop.f32.mrf.mxu3 }
  0xde   : > { %672 = vrot.lane.b32.xlu0 %v642_v55, %s1033_s28  ;;  %v600_v57 = vpop.f32.mrf.mxu0  ;;  %v613_v58 = vpop.f32.mrf.mxu1 }
  0xdf   : > { %674 = vrot.lane.b32.xlu1 %v655_v56, %s1033_s28 }
  0xe5   : > { %v644_v59 = vpop.f32.mrf.mxu2  ;;  %v657_v60 = vpop.f32.mrf.mxu3 }
  0xe6   : > { %v668_v61 = vpop.f32.mrf.mxu0  ;;  %v699_v62 = vpop.f32.mrf.mxu1 }
  0xe7   : > { %729 = vrot.lane.b32.xlu0 %v699_v62, %s1034_s29  ;;  %676 = vrot.lane.b32.xlu2 %v668_v61, %s1033_s28 }
  0xed   : > { %v712_v63 = vpop.f32.mrf.mxu2  ;;  %v725_v0 = vpop.f32.mrf.mxu3 }
  0xee   : > { %731 = vrot.lane.b32.xlu1 %v712_v63, %s1034_s29  ;;  %v670_v1 = vpop.f32.mrf.mxu0  ;;  %v701_v2 = vpop.f32.mrf.mxu1 }
  0xef   : > { %733 = vrot.lane.b32.xlu2 %v725_v0, %s1034_s29 }
  0xf5   : > { %v714_v3 = vpop.f32.mrf.mxu2  ;;  %v727_v4 = vpop.f32.mrf.mxu3 }
  0xf6   : > { %v756_v5 = vpop.f32.mrf.mxu0  ;;  %v769_v6 = vpop.f32.mrf.mxu1 }
  0xf7   : > { %788 = vrot.lane.b32.xlu1 %v769_v6, %s1035_s30  ;;  %786 = vrot.lane.b32.xlu0 %v756_v5, %s1035_s30 }
  0xfd   : > { %v782_v8 = vpop.f32.mrf.mxu2 }
  0xfe   : > { %v758_v9 = vpop.f32.mrf.mxu0  ;;  %v771_v10 = vpop.f32.mrf.mxu1  ;;  %790 = vrot.lane.b32.xlu2 %v782_v8, %s1035_s30 }
  0xff   : > { %802 = vperm.xlu0 %1018, %v799_v7  }
 0x101   : > { %v400_v13 = vpop.permute.xlu2 %399 }
 0x105   : > { %v784_v11 = vpop.f32.mrf.mxu2 }
 0x108   : > { %v339_v14 = vpop.permute.xlu0 %338 }
 0x109   : > { %v402_v16 = vpop.permute.xlu2 %401 }
 0x10a   : > { %v404_v35 = vsel %vm403_vm2, %v400_v13, %v402_v16 }
 0x110   : > { %v343_v12 = vpop.permute.xlu1 %342  ;;  %v341_v17 = vpop.permute.xlu0 %340 }
 0x111   : > { %v459_v20 = vpop.permute.xlu2 %458  ;;  %v347_v32 = vsel %vm346_vm3, %v341_v17, %v343_v12  ;;  %v349_v36 = vsel %vm346_vm3, %v343_v12, %v339_v14  ;;  %v348_v37 = vsel %vm346_vm3, %v339_v14, %v341_v17 }
 0x112   : > { %v409_v41 = vadd.f32 %v404_v35, %v347_v32 }
 0x118   : > { %v398_v15 = vpop.permute.xlu1 %397 }
 0x119   : > { %v516_v23 = vpop.permute.xlu2 %515  ;;  %v405_v33 = vsel %vm403_vm2, %v398_v15, %v400_v13  ;;  %v406_v34 = vsel %vm403_vm2, %v402_v16, %v398_v15 }
 0x11a   : > { %v407_v42 = vadd.f32 %v406_v34, %v349_v36  ;;  %v408_v43 = vadd.f32 %v405_v33, %v348_v37 }
 0x120   : > { %v457_v18 = vpop.permute.xlu1 %456  ;;  %v455_v19 = vpop.permute.xlu0 %454 }
 0x121   : > { %v461_v38 = vsel %vm460_vm4, %v457_v18, %v459_v20  ;;  %v462_v39 = vsel %vm460_vm4, %v455_v19, %v457_v18  ;;  %v463_v40 = vsel %vm460_vm4, %v459_v20, %v455_v19 }
 0x122   : > { %v466_v51 = vadd.f32 %v461_v38, %v409_v41  ;;  %v464_v52 = vadd.f32 %v463_v40, %v407_v42  ;;  %v465_v53 = vadd.f32 %v462_v39, %v408_v43 }
 0x129   : > { %v512_v22 = vpop.permute.xlu0 %511 }
 0x12a   : > { %v520_v47 = vsel %vm517_vm5, %v516_v23, %v512_v22 }
 0x12b   : > { %v521_v56 = vadd.f32 %v520_v47, %v464_v52 }
 0x12d   : > { %v568_v63 = vadd.f32 %v1139_v44, %v521_v56 }
 0x130   : > { %v514_v21 = vpop.permute.xlu1 %513 }
 0x131   : > { %v620_v26 = vpop.permute.xlu2 %619  ;;  %v518_v48 = vsel %vm517_vm5, %v514_v21, %v516_v23  ;;  %v519_v49 = vsel %vm517_vm5, %v512_v22, %v514_v21 }
 0x132   : > { %v522_v57 = vadd.f32 %v519_v49, %v465_v53  ;;  %v523_v58 = vadd.f32 %v518_v48, %v466_v51 }
 0x134   : > { %v570_v62 = vadd.f32 %v1143_v46, %v523_v58  ;;  %v569_v0 = vadd.f32 %v1141_v45, %v522_v57  ;;  %v808_v45 = vld [vmem:[%s1171_s3] sm:$0x7] }
 0x135   : > { %v813_v20 = vperm.slane %v808_v45, 0  ;;  %v814_v21 = vperm.slane %v808_v45, 1 }
 0x140   : > { %v616_v25 = vpop.permute.xlu0 %615 }
 0x141   : > { %v677_v30 = vpop.permute.xlu2 %676  ;;  %v624_v59 = vsel %vm621_vm6, %v620_v26, %v616_v25 }
 0x142   : > { %v627_v5 = vadd.f32 %v624_v59, %v570_v62 }
 0x149   : > { %v618_v24 = vpop.permute.xlu1 %617  ;;  %v734_v54 = vpop.permute.xlu2 %733 }
 0x14a   : > { %v622_v60 = vsel %vm621_vm6, %v618_v24, %v620_v26  ;;  %v623_v61 = vsel %vm621_vm6, %v616_v25, %v618_v24  ;;  %v815_v25 = vperm.slane %v808_v45, 2 }
 0x14b   : > { %v625_v6 = vadd.f32 %v623_v61, %v568_v63  ;;  %v626_v7 = vadd.f32 %v622_v60, %v569_v0 }
 0x150   : > { %v673_v29 = vpop.permute.xlu0 %672 }
 0x151   : > { %v675_v31 = vpop.permute.xlu1 %674  ;;  %v681_v1 = vsel %vm678_vm7, %v677_v30, %v673_v29 }
 0x152   : > { %v679_v2 = vsel %vm678_vm7, %v675_v31, %v677_v30  ;;  %v680_v3 = vsel %vm678_vm7, %v673_v29, %v675_v31  ;;  %v684_v46 = vadd.f32 %v681_v1, %v627_v5 }
 0x153   : > { %v682_v13 = vadd.f32 %v680_v3, %v625_v6  ;;  %v683_v44 = vadd.f32 %v679_v2, %v626_v7 }
 0x158   : > { %v791_v9 = vpop.permute.xlu2 %790 }
 0x159   : > { %v730_v50 = vpop.permute.xlu0 %729 }
 0x15a   : > { %v738_v10 = vsel %vm735_vm8, %v734_v54, %v730_v50 }
 0x15b   : > { %v741_v17 = vadd.f32 %v738_v10, %v684_v46 }
 0x160   : > { %v732_v55 = vpop.permute.xlu1 %731 }
 0x161   : > { %v736_v11 = vsel %vm735_vm8, %v732_v55, %v734_v54  ;;  %v737_v12 = vsel %vm735_vm8, %v730_v50, %v732_v55 }
 0x162   : > { %v739_v18 = vadd.f32 %v737_v12, %v682_v13  ;;  %v740_v19 = vadd.f32 %v736_v11, %v683_v44 }
 0x169   : > { %v787_v4 = vpop.permute.xlu0 %786  ;;  %v789_v8 = vpop.permute.xlu1 %788 }
 0x16a   : > { %v793_v14 = vsel %vm792_vm9, %v789_v8, %v791_v9  ;;  %v794_v15 = vsel %vm792_vm9, %v787_v4, %v789_v8  ;;  %v795_v16 = vsel %vm792_vm9, %v791_v9, %v787_v4 }
 0x16b   : > { %v797_v22 = vadd.f32 %v793_v14, %v740_v19  ;;  %v796_v23 = vadd.f32 %v794_v15, %v739_v18  ;;  %v798_v24 = vadd.f32 %v795_v16, %v741_v17 }
 0x171   : > { %v803_v26 = vpop.permute.xlu0 %802 }
 0x172   : > { %v805_v27 = vadd.f32 %v803_v26, %v796_v23  ;;  %v806_v28 = vadd.f32 %v803_v26, %v797_v22  ;;  %v807_v29 = vadd.f32 %v803_v26, %v798_v24 }
 0x174   : > { %809 = vst [vmem:[%s264_s14] sm:$0xff] %v805_v27  ;;  %v819_v30 = vmul.f32 %v813_v20, %v805_v27  ;;  %v820_v31 = vmul.f32 %v814_v21, %v806_v28  ;;  %v821_v32 = vmul.f32 %v815_v25, %v807_v29 }
 0x175   : > { %810 = vst [vmem:[%s264_s14 + $0x8] sm:$0xff] %v806_v28 }
 0x176   : > { %811 = vst [vmem:[%s264_s14 + $0x10] sm:$0xff] %v807_v29  ;;  %v822_v33 = vadd.f32 %v820_v31, %v819_v30  ;;  %v828_v34 = vmul.f32 %v819_v30, %v805_v27  ;;  %v829_v35 = vmul.f32 %v820_v31, %v806_v28  ;;  %v830_v37 = vmul.f32 %v821_v32, %v807_v29 }
 0x178   : > { %v823_v36 = vadd.f32 %v822_v33, %v821_v32  ;;  %v831_v38 = vadd.f32 %v829_v35, %v828_v34 }
 0x17a   : > { %824 = vadd.xlane.f32.xlu1 %v823_v36  ;;  %v832_v39 = vadd.f32 %v831_v38, %v830_v37 }
 0x17c   : > { %833 = vadd.xlane.f32.xlu2 %v832_v39 }
 0x1ed   : > { %v825_v40 = vpop.xlane.xlu1 %824 }
 0x1ee   : > { %827 = vst.msk [vmem:[%s268_s18] sm:$0xff] %vm826_vm10, %v825_v40 }
 0x1ef   : > { %v834_v41 = vpop.xlane.xlu2 %833 }
 0x1f0   : > { %835 = vst.msk [vmem:[%s272_s23] sm:$0xff] %vm826_vm10, %v834_v41 }
 0x1f1 PF: > { %s17_s21 = sadd.s32 1, %s1025_s21  }
 0x1f2   : > { %p14_p4 = scmp.ge.s32.totalorder %s17_s21, 4  }
 0x1f4   :  { %16 = sbr.rel (!%p14_p4) target bundleno = 1 (0x1), region = 98 }

// kernel: model_d_forward.18
= control target key start
LH: loop header
LB: loop body
LE: loop exit
PB: predicated region body
PF: predicated region fallthrough
CT: control target
= control target key end

     0   :  { %s1155_s27 = smov 0   ;;  %s1330_s0 = inlined_call_operand.vmem [shape: f32[2,8,384], index: 0, kind: input, shape index: {}]   ;;  %s1331_s1 = inlined_call_operand.vmem [shape: f32[8,1], index: 1, kind: input, shape index: {}]   ;;  %s1332_s2 = inlined_call_operand.vmem [shape: f32[8,1], index: 2, kind: input, shape index: {}]   ;;  %s1333_s3 = inlined_call_operand.vmem [shape: bf16[9,8,8], index: 3, kind: input, shape index: {}]   ;;  %s1334_s4 = inlined_call_operand.vmem [shape: f32[8,1], index: 4, kind: input, shape index: {}]   ;;  %s1335_s5 = inlined_call_operand.vmem [shape: f32[1,384], index: 5, kind: input, shape index: {}]   ;;  %s1336_s6 = inlined_call_operand.vmem [shape: f32[2,8,384], index: 6, kind: output, shape index: {0}]   ;;  %s1337_s7 = inlined_call_operand.vmem [shape: f32[2,8,1], index: 7, kind: output, shape index: {1}]   ;;  %s1338_s8 = inlined_call_operand.vmem [shape: f32[2,8,1], index: 8, kind: output, shape index: {2}]  }
   0x1 LB: > { %s1027_s28 = sadd.s32 4294967295, %s1099_s27   ;;  %p1031_p0 = scmp.ge.s32.totalorder %s1099_s27, 1  ;;  %s1099_s27 = sphi %s1155_s27, %s19_s27  }
   0x2   : > { %p267_p1 = scmp.lt.s32.totalorder %s1099_s27, 3 }
   0x4   : > { %p268_p2 = pnand %p1031_p0, %p267_p1 }
   0x5   : > { %p309_p3 = scmp.lt.s32.totalorder (!%p268_p2), %s1027_s28, 1  ;;  %s1102_s16 = smov (!%p268_p2), 19  }
   0x6   : > { %271 = sbr.rel (%p268_p2) target bundleno = 624 (0x270), region = 44  ;;  %s1103_s17 = smov (!%p268_p2), 18  }
   0x7   : > { %s1104_s18 = smov (!%p268_p2), 17   ;;  %s1105_s19 = smov (!%p268_p2), 1  }
   0x8   : > { %s1106_s20 = smov (!%p268_p2), 127   ;;  %s1107_s21 = smov (!%p268_p2), 111  }
   0x9   : > { %s1108_s22 = smov (!%p268_p2), 110   ;;  %s1109_s23 = smov (!%p268_p2), 109  }
   0xb   : > { %v331_v0 = vld [vmem:[%s1331_s1] sm:$0xff]  ;;  %v1101_v1 = vmov 0   ;;  %s1340_s28 = smov (!%p309_p3, %s1027_s28), 1  ;;  %vm371_vm0 = vcmask 1043456   ;;  %vm367_vm1 = vcmask 64512   ;;  %vm900_vm10 = vcmask 7168  }
   0xc   : > { %1091 = vset.pattern.permute.xlu0 %v1101_v1  ;;  %1092 = vset.pattern.permute.xlu2 %v1101_v1  ;;  %v340_v2 = vld [vmem:[%s1332_s2] sm:$0xff]  ;;  %s1073_s11 = smul.u32 24, %s1340_s28  ;;  %v1043_v32 = vld [vmem:[%s1333_s3 + $0x8] sm:$0xf]  ;;  %v1047_v33 = vld [vmem:[%s1333_s3 + $0xc] sm:$0xf] }
   0xd   : > { %334 = vperm.xlu0 %1091, %v331_v0   ;;  %v1180_v7 = vld [vmem:[%s1335_s5] sm:$0x7]  ;;  %v1039_v31 = vld [vmem:[%s1333_s3 + $0x4] sm:$0xf]  ;;  %v1051_v34 = vld [vmem:[%s1333_s3 + $0x10] sm:$0xf] }
   0xe   : > { %s313_s14 = scalar_lea.vmem %s1330_s0, %s1073_s11  ;;  %v354_v11 = vperm.slane %v1180_v7, 0  ;;  %v355_v12 = vperm.slane %v1180_v7, 1  ;;  %v356_v14 = vperm.slane %v1180_v7, 2  ;;  %v366_v30 = vld [vmem:[%s1333_s3] sm:$0xf]  ;;  %s318_s30 = scalar_lea.vmem %s1336_s6, %s1073_s11 }
   0xf   : > { %v328_v4 = vld [vmem:[%s313_s14] sm:$0xff]  ;;  %v329_v5 = vld [vmem:[%s313_s14 + $0x8] sm:$0xff]  ;;  %v330_v6 = vld [vmem:[%s313_s14 + $0x10] sm:$0xff]  ;;  %s1034_s11 = sshll.u32 %s1340_s28, 3 }
  0x10   : > { %v1055_v35 = vld [vmem:[%s1333_s3 + $0x14] sm:$0xf]  ;;  %v1059_v36 = vld [vmem:[%s1333_s3 + $0x18] sm:$0xf]  ;;  %v1063_v37 = vld [vmem:[%s1333_s3 + $0x1c] sm:$0xf]  ;;  %s322_s12 = scalar_lea.vmem %s1337_s7, %s1034_s11  ;;  %s326_s15 = scalar_lea.vmem %s1338_s8, %s1034_s11 }
  0x11   : > { %v1067_v38 = vld [vmem:[%s1333_s3 + $0x20] sm:$0xf] }
  0x15   : > { %343 = vperm.xlu0 %1091, %v340_v2  }
  0x7f   : > { %v335_v3 = vpop.permute.xlu0 %334 }
  0x80   : > { %v337_v8 = vmul.f32 %v335_v3, %v328_v4  ;;  %v338_v9 = vmul.f32 %v335_v3, %v329_v5  ;;  %v339_v10 = vmul.f32 %v335_v3, %v330_v6 }
  0x87   : > { %v344_v13 = vpop.permute.xlu0 %343 }
  0x88   : > { %v346_v15 = vadd.f32 %v344_v13, %v337_v8  ;;  %v347_v16 = vadd.f32 %v344_v13, %v338_v9  ;;  %v348_v17 = vadd.f32 %v344_v13, %v339_v10 }
  0x8a   : > { %v349_v18 = vmax.f32 %v346_v15, 0.0  ;;  %v350_v19 = vmax.f32 %v347_v16, 0.0  ;;  %v351_v20 = vmax.f32 %v348_v17, 0.0 }
  0x8c   : > { %v360_v21 = vmul.f32 %v354_v11, %v349_v18  ;;  %v361_v22 = vmul.f32 %v355_v12, %v350_v19  ;;  %v362_v23 = vmul.f32 %v356_v14, %v351_v20 }
  0x8e   : > { %v363_v24 = vpack.c.bf16 %v360_v21, %v360_v21  ;;  %v364_v25 = vpack.c.bf16 %v361_v22, %v361_v22  ;;  %v365_v26 = vpack.c.bf16 %v362_v23, %v362_v23 }
  0x90   : > { %v373_v27 = vsel %vm371_vm0, %v363_v24, 0  ;;  %v376_v28 = vsel %vm371_vm0, %v364_v25, 0  ;;  %v379_v29 = vsel %vm371_vm0, %v365_v26, 0 }
  0x91   : > { %388 = vmatpush.bf16.msra.mxu0 %v373_v27  ;;  %401 = vmatpush.bf16.msra.mxu1 %v376_v28 }
  0x92   : > { %414 = vmatpush.bf16.msra.mxu2 %v379_v29  ;;  %447 = vmatpush.bf16.msra.mxu3 %v373_v27 }
  0x94   : > { %1036 = vmatmul.msk.bf16.vlgmr.msra.gmra.mxu0 %vm367_vm1, %v366_v30  ;;  %1037 = vmatmul.msk.bf16.vlgmr.msra.gmra.mxu1 %vm367_vm1, %v366_v30 }
  0x95   : > { %460 = vmatpush.bf16.msrb.mxu0 %v376_v28  ;;  %473 = vmatpush.bf16.msrb.mxu1 %v379_v29 }
  0x96   : > { %504 = vmatpush.bf16.msrb.mxu2 %v373_v27  ;;  %517 = vmatpush.bf16.msrb.mxu3 %v376_v28 }
  0x97   : > { %1038 = vmatmul.msk.bf16.vlgmr.msra.gmra.mxu2 %vm367_vm1, %v366_v30  ;;  %1040 = vmatmul.msk.bf16.vlgmr.msra.gmra.mxu3 %vm367_vm1, %v1039_v31 }
  0x99   : > { %530 = vmatpush.bf16.msra.mxu0 %v379_v29  ;;  %561 = vmatpush.bf16.msra.mxu1 %v373_v27 }
  0x9a   : > { %574 = vmatpush.bf16.msra.mxu2 %v376_v28  ;;  %587 = vmatpush.bf16.msra.mxu3 %v379_v29 }
  0xa4   : > { %1041 = vmatmul.msk.bf16.vlgmr.msrb.gmra.mxu0 %vm367_vm1, %v1039_v31  ;;  %1042 = vmatmul.msk.bf16.vlgmr.msrb.gmra.mxu1 %vm367_vm1, %v1039_v31 }
  0xa5   : > { %618 = vmatpush.bf16.msrb.mxu0 %v373_v27  ;;  %631 = vmatpush.bf16.msrb.mxu1 %v376_v28 }
  0xa7   : > { %1044 = vmatmul.msk.bf16.vlgmr.msrb.gmra.mxu2 %vm367_vm1, %v1043_v32  ;;  %1045 = vmatmul.msk.bf16.vlgmr.msrb.gmra.mxu3 %vm367_vm1, %v1043_v32 }
  0xa8   : > { %644 = vmatpush.bf16.msrb.mxu2 %v379_v29  ;;  %665 = vmatpush.bf16.msrb.mxu3 %v373_v27 }
  0xb4   : > { %1046 = vmatmul.msk.bf16.vlgmr.msra.gmra.mxu0 %vm367_vm1, %v1043_v32  ;;  %1048 = vmatmul.msk.bf16.vlgmr.msra.gmra.mxu1 %vm367_vm1, %v1047_v33 }
  0xb5   : > { %678 = vmatpush.bf16.msra.mxu0 %v376_v28  ;;  %691 = vmatpush.bf16.msra.mxu1 %v379_v29 }
  0xb7   : > { %1049 = vmatmul.msk.bf16.vlgmr.msra.gmra.mxu2 %vm367_vm1, %v1047_v33  ;;  %1050 = vmatmul.msk.bf16.vlgmr.msra.gmra.mxu3 %vm367_vm1, %v1047_v33 }
  0xb8   : > { %722 = vmatpush.bf16.msra.mxu2 %v373_v27  ;;  %735 = vmatpush.bf16.msra.mxu3 %v376_v28 }
  0xc4   : > { %1052 = vmatmul.msk.bf16.vlgmr.msrb.gmra.mxu0 %vm367_vm1, %v1051_v34  ;;  %1053 = vmatmul.msk.bf16.vlgmr.msrb.gmra.mxu1 %vm367_vm1, %v1051_v34 }
  0xc5   : > { %748 = vmatpush.bf16.msrb.mxu0 %v379_v29  ;;  %779 = vmatpush.bf16.msrb.mxu1 %v373_v27 }
  0xc7   : > { %1054 = vmatmul.msk.bf16.vlgmr.msrb.gmra.mxu2 %vm367_vm1, %v1051_v34  ;;  %1056 = vmatmul.msk.bf16.vlgmr.msrb.gmra.mxu3 %vm367_vm1, %v1055_v35 }
  0xc8   : > { %792 = vmatpush.bf16.msrb.mxu2 %v376_v28  ;;  %805 = vmatpush.bf16.msrb.mxu3 %v379_v29 }
  0xd4   : > { %1057 = vmatmul.msk.bf16.vlgmr.msra.gmra.mxu0 %vm367_vm1, %v1055_v35  ;;  %1058 = vmatmul.msk.bf16.vlgmr.msra.gmra.mxu1 %vm367_vm1, %v1055_v35 }
  0xd5   : > { %836 = vmatpush.bf16.msra.mxu0 %v373_v27  ;;  %849 = vmatpush.bf16.msra.mxu1 %v376_v28 }
  0xd7   : > { %1060 = vmatmul.msk.bf16.vlgmr.msra.gmra.mxu2 %vm367_vm1, %v1059_v36  ;;  %1061 = vmatmul.msk.bf16.vlgmr.msra.gmra.mxu3 %vm367_vm1, %v1059_v36 }
  0xd8   : > { %862 = vmatpush.bf16.msra.mxu2 %v379_v29  ;;  %v881_v29 = vld [vmem:[%s1334_s4] sm:$0xff] }
  0xe4   : > { %1062 = vmatmul.msk.bf16.vlgmr.msrb.gmra.mxu0 %vm367_vm1, %v1059_v36  ;;  %1064 = vmatmul.msk.bf16.vlgmr.msrb.gmra.mxu1 %vm367_vm1, %v1063_v37 }
  0xe7   : > { %1065 = vmatmul.msk.bf16.vlgmr.msrb.gmra.mxu2 %vm367_vm1, %v1063_v37  ;;  %1066 = vmatmul.msk.bf16.vlgmr.msrb.gmra.mxu3 %vm367_vm1, %v1063_v37 }
  0xf4   : > { %1069 = vmatmul.msk.bf16.vlgmr.msra.gmra.mxu1 %vm367_vm1, %v1067_v38  ;;  %1068 = vmatmul.msk.bf16.vlgmr.msra.gmra.mxu0 %vm367_vm1, %v1067_v38 }
  0xf7   : > { %1070 = vmatmul.msk.bf16.vlgmr.msra.gmra.mxu2 %vm367_vm1, %v1067_v38 }
 0x111   : > { %v390_v39 = vpop.f32.mrf.mxu0  ;;  %v403_v40 = vpop.f32.mrf.mxu1 }
 0x112   : > { %420 = vrot.lane.b32.xlu1 %v390_v39, %s1102_s16 }
 0x119   : > { %v392_v43 = vpop.f32.mrf.mxu0  ;;  %v405_v44 = vpop.f32.mrf.mxu1 }
 0x11a   : > { %v416_v41 = vpop.f32.mrf.mxu2  ;;  %v449_v42 = vpop.f32.mrf.mxu3  ;;  %422 = vrot.lane.b32.xlu1 %v403_v40, %s1102_s16 }
 0x11b   : > { %424 = vrot.lane.b32.xlu2 %v416_v41, %s1102_s16 }
 0x121   : > { %v462_v47 = vpop.f32.mrf.mxu0  ;;  %v475_v48 = vpop.f32.mrf.mxu1 }
 0x122   : > { %v418_v45 = vpop.f32.mrf.mxu2  ;;  %v451_v46 = vpop.f32.mrf.mxu3  ;;  %483 = vrot.lane.b32.xlu1 %v475_v48, %s1103_s17  ;;  %481 = vrot.lane.b32.xlu0 %v462_v47, %s1103_s17  ;;  %v426_v47 = vlaneseq }
 0x123   : > { %479 = vrot.lane.b32.xlu2 %v449_v42, %s1103_s17 }
 0x129   : > { %v464_v51 = vpop.f32.mrf.mxu0  ;;  %v477_v52 = vpop.f32.mrf.mxu1 }
 0x12a   : > { %v506_v49 = vpop.f32.mrf.mxu2  ;;  %v519_v50 = vpop.f32.mrf.mxu3 }
 0x12b   : > { %536 = vrot.lane.b32.xlu2 %v506_v49, %s1104_s18  ;;  %538 = vrot.lane.b32.xlu0 %v519_v50, %s1104_s18  ;;  %v1254_v50 = vand.u32 127, %v426_v47 }
 0x12d   : > { %vm485_vm2 = vcmp.lt.s32.totalorder %v1254_v50, 18  ;;  %vm428_vm3 = vcmp.lt.s32.totalorder %v1254_v50, 19  ;;  %vm542_vm4 = vcmp.lt.s32.totalorder %v1254_v50, 17  ;;  %vm599_vm5 = vcmp.lt.s32.totalorder %v1254_v50, 1 }
 0x12e   : > { %vm703_vm6 = vcmp.lt.s32.totalorder %v1254_v50, 127  ;;  %vm760_vm7 = vcmp.lt.s32.totalorder %v1254_v50, 111  ;;  %vm817_vm8 = vcmp.lt.s32.totalorder %v1254_v50, 110  ;;  %vm874_vm9 = vcmp.lt.s32.totalorder %v1254_v50, 109 }
 0x131   : > { %v532_v55 = vpop.f32.mrf.mxu0  ;;  %v563_v56 = vpop.f32.mrf.mxu1 }
 0x132   : > { %v508_v53 = vpop.f32.mrf.mxu2  ;;  %v521_v54 = vpop.f32.mrf.mxu3  ;;  %540 = vrot.lane.b32.xlu1 %v532_v55, %s1104_s18 }
 0x133   : > { %593 = vrot.lane.b32.xlu2 %v563_v56, %s1105_s19 }
 0x139   : > { %v534_v59 = vpop.f32.mrf.mxu0  ;;  %v565_v60 = vpop.f32.mrf.mxu1 }
 0x13a   : > { %v576_v57 = vpop.f32.mrf.mxu2  ;;  %v589_v58 = vpop.f32.mrf.mxu3 }
 0x13b   : > { %595 = vrot.lane.b32.xlu0 %v576_v57, %s1105_s19  ;;  %597 = vrot.lane.b32.xlu1 %v589_v58, %s1105_s19 }
 0x141   : > { %v1245_v63 = vpop.f32.mrf.mxu0  ;;  %v1247_v0 = vpop.f32.mrf.mxu1 }
 0x142   : > { %v578_v61 = vpop.f32.mrf.mxu2  ;;  %v591_v62 = vpop.f32.mrf.mxu3 }
 0x149   : > { %v622_v3 = vpop.f32.mrf.mxu0  ;;  %v635_v4 = vpop.f32.mrf.mxu1 }
 0x14a   : > { %v1249_v1 = vpop.f32.mrf.mxu2  ;;  %v667_v2 = vpop.f32.mrf.mxu3 }
 0x14b   : > { %697 = vrot.lane.b32.xlu2 %v667_v2, %s1106_s20 }
 0x151   : > { %v680_v8 = vpop.f32.mrf.mxu0  ;;  %v693_v9 = vpop.f32.mrf.mxu1 }
 0x152   : > { %v648_v5 = vpop.f32.mrf.mxu2  ;;  %v669_v6 = vpop.f32.mrf.mxu3  ;;  %701 = vrot.lane.b32.xlu1 %v693_v9, %s1106_s20  ;;  %699 = vrot.lane.b32.xlu0 %v680_v8, %s1106_s20 }
 0x159   : > { %v682_v15 = vpop.f32.mrf.mxu0  ;;  %v695_v16 = vpop.f32.mrf.mxu1 }
 0x15a   : > { %v724_v10 = vpop.f32.mrf.mxu2  ;;  %v737_v13 = vpop.f32.mrf.mxu3 }
 0x15b   : > { %754 = vrot.lane.b32.xlu2 %v724_v10, %s1107_s21  ;;  %756 = vrot.lane.b32.xlu0 %v737_v13, %s1107_s21 }
 0x161   : > { %v750_v19 = vpop.f32.mrf.mxu0  ;;  %v781_v20 = vpop.f32.mrf.mxu1 }
 0x162   : > { %v726_v17 = vpop.f32.mrf.mxu2  ;;  %v739_v18 = vpop.f32.mrf.mxu3  ;;  %758 = vrot.lane.b32.xlu1 %v750_v19, %s1107_s21 }
 0x163   : > { %811 = vrot.lane.b32.xlu2 %v781_v20, %s1108_s22 }
 0x169   : > { %v752_v23 = vpop.f32.mrf.mxu0  ;;  %v783_v24 = vpop.f32.mrf.mxu1 }
 0x16a   : > { %v794_v21 = vpop.f32.mrf.mxu2  ;;  %v807_v22 = vpop.f32.mrf.mxu3 }
 0x16b   : > { %813 = vrot.lane.b32.xlu0 %v794_v21, %s1108_s22  ;;  %815 = vrot.lane.b32.xlu1 %v807_v22, %s1108_s22 }
 0x171   : > { %v851_v27 = vpop.f32.mrf.mxu1  ;;  %v838_v28 = vpop.f32.mrf.mxu0 }
 0x172   : > { %v796_v25 = vpop.f32.mrf.mxu2  ;;  %v809_v26 = vpop.f32.mrf.mxu3  ;;  %868 = vrot.lane.b32.xlu2 %v838_v28, %s1109_s23 }
 0x173   : > { %870 = vrot.lane.b32.xlu0 %v851_v27, %s1109_s23 }
 0x175   : > { %v425_v34 = vpop.permute.xlu2 %424 }
 0x179   : > { %v853_v31 = vpop.f32.mrf.mxu1  ;;  %v840_v32 = vpop.f32.mrf.mxu0 }
 0x17a   : > { %v864_v30 = vpop.f32.mrf.mxu2  ;;  %884 = vperm.xlu2 %1092, %v881_v29  }
 0x17b   : > { %872 = vrot.lane.b32.xlu1 %v864_v30, %s1109_s23 }
 0x17d   : > { %v480_v36 = vpop.permute.xlu2 %479 }
 0x182   : > { %v866_v33 = vpop.f32.mrf.mxu2 }
 0x184   : > { %v421_v35 = vpop.permute.xlu1 %420 }
 0x185   : > { %v537_v39 = vpop.permute.xlu2 %536  ;;  %v431_v55 = vsel %vm428_vm3, %v425_v34, %v421_v35 }
 0x18c   : > { %v423_v37 = vpop.permute.xlu1 %422 }
 0x18d   : > { %v594_v41 = vpop.permute.xlu2 %593  ;;  %v429_v3 = vsel %vm428_vm3, %v423_v37, %v425_v34  ;;  %v430_v5 = vsel %vm428_vm3, %v421_v35, %v423_v37 }
 0x194   : > { %v482_v38 = vpop.permute.xlu0 %481  ;;  %v484_v40 = vpop.permute.xlu1 %483 }
 0x195   : > { %v488_v52 = vsel %vm485_vm2, %v484_v40, %v480_v36  ;;  %v486_v61 = vsel %vm485_vm2, %v482_v38, %v484_v40  ;;  %v487_v62 = vsel %vm485_vm2, %v480_v36, %v482_v38 }
 0x196   : > { %v489_v57 = vadd.f32 %v488_v52, %v431_v55  ;;  %v490_v10 = vadd.f32 %v487_v62, %v430_v5  ;;  %v491_v13 = vadd.f32 %v486_v61, %v429_v3 }
 0x19d   : > { %v539_v42 = vpop.permute.xlu0 %538 }
 0x19e   : > { %v544_v6 = vsel %vm542_vm4, %v537_v39, %v539_v42 }
 0x19f   : > { %v547_v19 = vadd.f32 %v544_v6, %v490_v10 }
 0x1a4   : > { %v541_v43 = vpop.permute.xlu1 %540 }
 0x1a5   : > { %v698_v44 = vpop.permute.xlu2 %697  ;;  %v545_v56 = vsel %vm542_vm4, %v541_v43, %v537_v39  ;;  %v543_v8 = vsel %vm542_vm4, %v539_v42, %v541_v43 }
 0x1a6   : > { %v546_v59 = vadd.f32 %v545_v56, %v489_v57  ;;  %v548_v20 = vadd.f32 %v543_v8, %v491_v13 }
 0x1ad   : > { %v596_v45 = vpop.permute.xlu0 %595  ;;  %v598_v46 = vpop.permute.xlu1 %597 }
 0x1ae   : > { %v602_v58 = vsel %vm599_vm5, %v598_v46, %v594_v41  ;;  %v601_v16 = vsel %vm599_vm5, %v594_v41, %v596_v45  ;;  %v600_v17 = vsel %vm599_vm5, %v596_v45, %v598_v46 }
 0x1af   : > { %v603_v2 = vadd.f32 %v602_v58, %v546_v59  ;;  %v604_v23 = vadd.f32 %v601_v16, %v547_v19  ;;  %v605_v24 = vadd.f32 %v600_v17, %v548_v20 }
 0x1b1   : > { %v650_v18 = vadd.f32 %v1245_v63, %v603_v2  ;;  %v652_v31 = vadd.f32 %v1249_v1, %v605_v24  ;;  %v651_v32 = vadd.f32 %v1247_v0, %v604_v23 }
 0x1b5   : > { %v755_v49 = vpop.permute.xlu2 %754 }
 0x1bd   : > { %v812_v53 = vpop.permute.xlu2 %811 }
 0x1c4   : > { %v700_v48 = vpop.permute.xlu0 %699  ;;  %v702_v51 = vpop.permute.xlu1 %701 }
 0x1c5   : > { %v705_v15 = vsel %vm703_vm6, %v698_v44, %v700_v48  ;;  %v706_v63 = vsel %vm703_vm6, %v702_v51, %v698_v44  ;;  %v704_v28 = vsel %vm703_vm6, %v700_v48, %v702_v51 }
 0x1c6   : > { %v707_v22 = vadd.f32 %v705_v15, %v650_v18  ;;  %v709_v38 = vadd.f32 %v706_v63, %v652_v31  ;;  %v708_v39 = vadd.f32 %v704_v28, %v651_v32 }
 0x1cc   : > { %v869_v4 = vpop.permute.xlu2 %868 }
 0x1cd   : > { %v757_v54 = vpop.permute.xlu0 %756 }
 0x1ce   : > { %v762_v21 = vsel %vm760_vm7, %v755_v49, %v757_v54 }
 0x1cf   : > { %v764_v26 = vadd.f32 %v762_v21, %v707_v22 }
 0x1d4   : > { %v759_v60 = vpop.permute.xlu1 %758  ;;  %v885_v34 = vpop.permute.xlu2 %884 }
 0x1d5   : > { %v761_v35 = vsel %vm760_vm7, %v757_v54, %v759_v60  ;;  %v763_v36 = vsel %vm760_vm7, %v759_v60, %v755_v49 }
 0x1d6   : > { %v765_v41 = vadd.f32 %v761_v35, %v708_v39  ;;  %v766_v42 = vadd.f32 %v763_v36, %v709_v38 }
 0x1dd   : > { %v814_v9 = vpop.permute.xlu0 %813  ;;  %v816_v27 = vpop.permute.xlu1 %815 }
 0x1de   : > { %v819_v25 = vsel %vm817_vm8, %v812_v53, %v814_v9  ;;  %v818_v0 = vsel %vm817_vm8, %v814_v9, %v816_v27  ;;  %v820_v1 = vsel %vm817_vm8, %v816_v27, %v812_v53 }
 0x1df   : > { %v821_v29 = vadd.f32 %v819_v25, %v764_v26  ;;  %v822_v43 = vadd.f32 %v818_v0, %v765_v41  ;;  %v823_v44 = vadd.f32 %v820_v1, %v766_v42 }
 0x1e5   : > { %v871_v30 = vpop.permute.xlu0 %870 }
 0x1e6   : > { %v876_v33 = vsel %vm874_vm9, %v869_v4, %v871_v30 }
 0x1e7   : > { %v878_v37 = vadd.f32 %v876_v33, %v821_v29 }
 0x1e9   : > { %v887_v40 = vadd.f32 %v885_v34, %v878_v37 }
 0x1eb   : > { %890 = vst [vmem:[%s318_s30] sm:$0xff] %v887_v40  ;;  %v893_v53 = vmul.f32 %v887_v40, %v354_v11 }
 0x1ed   : > { %v873_v45 = vpop.permute.xlu1 %872  ;;  %v902_v57 = vmul.f32 %v893_v53, %v887_v40 }
 0x1ee   : > { %v875_v46 = vsel %vm874_vm9, %v871_v30, %v873_v45  ;;  %v877_v47 = vsel %vm874_vm9, %v873_v45, %v869_v4 }
 0x1ef   : > { %v879_v48 = vadd.f32 %v875_v46, %v822_v43  ;;  %v880_v49 = vadd.f32 %v877_v47, %v823_v44 }
 0x1f1   : > { %v888_v51 = vadd.f32 %v885_v34, %v879_v48  ;;  %v889_v52 = vadd.f32 %v885_v34, %v880_v49 }
 0x1f3   : > { %891 = vst [vmem:[%s318_s30 + $0x8] sm:$0xff] %v888_v51  ;;  %v894_v54 = vmul.f32 %v888_v51, %v355_v12  ;;  %v895_v55 = vmul.f32 %v889_v52, %v356_v14 }
 0x1f4   : > { %892 = vst [vmem:[%s318_s30 + $0x10] sm:$0xff] %v889_v52 }
 0x1f5   : > { %v896_v56 = vadd.f32 %v894_v54, %v893_v53  ;;  %v903_v50 = vmul.f32 %v894_v54, %v888_v51  ;;  %v904_v59 = vmul.f32 %v895_v55, %v889_v52 }
 0x1f7   : > { %v897_v58 = vadd.f32 %v896_v56, %v895_v55  ;;  %v905_v60 = vadd.f32 %v903_v50, %v902_v57 }
 0x1f9   : > { %898 = vadd.xlane.f32.xlu0 %v897_v58  ;;  %v906_v61 = vadd.f32 %v905_v60, %v904_v59 }
 0x1fb   : > { %907 = vadd.xlane.f32.xlu1 %v906_v61 }
 0x26c   : > { %v899_v11 = vpop.xlane.xlu0 %898 }
 0x26d   : > { %901 = vst.msk [vmem:[%s322_s12] sm:$0xff] %vm900_vm10, %v899_v11 }
 0x26e   : > { %v908_v7 = vpop.xlane.xlu1 %907 }
 0x26f   : > { %909 = vst.msk [vmem:[%s326_s15] sm:$0xff] %vm900_vm10, %v908_v7 }
 0x270 PF: > { %s19_s27 = sadd.s32 1, %s1099_s27  }
 0x271   : > { %p16_p4 = scmp.ge.s32.totalorder %s19_s27, 4  }
 0x273   :  { %18 = sbr.rel (!%p16_p4) target bundleno = 1 (0x1), region = 106 }

// kernel: model_d_forward.20
= control target key start
LH: loop header
LB: loop body
LE: loop exit
PB: predicated region body
PF: predicated region fallthrough
CT: control target
= control target key end

     0   :  { %s327_s12 = smov 0   ;;  %s353_s0 = inlined_call_operand.vmem [shape: bf16[2,8,64], index: 0, kind: input, shape index: {}]   ;;  %s354_s1 = inlined_call_operand.vmem [shape: bf16[16,8], index: 1, kind: input, shape index: {}]   ;;  %s355_s2 = inlined_call_operand.vmem [shape: f32[16,1], index: 2, kind: input, shape index: {}]   ;;  %s356_s3 = inlined_call_operand.vmem [shape: bf16[2,16,64], index: 3, kind: output, shape index: {}]  }
   0x1 LB: > { %s271_s13 = sadd.s32 4294967295, %s304_s12   ;;  %p275_p0 = scmp.ge.s32.totalorder %s304_s12, 1  ;;  %s304_s12 = sphi %s327_s12, %s13_s12  }
   0x2   : > { %p136_p1 = scmp.lt.s32.totalorder %s304_s12, 3 }
   0x4   : > { %p137_p2 = pnand %p275_p0, %p136_p1 }
   0x5   : > { %p159_p3 = scmp.lt.s32.totalorder (!%p137_p2), %s271_s13, 1 }
   0x6   : > { %140 = sbr.rel (%p137_p2) target bundleno = 158 (0x9e), region = 32 }
   0xb   : > { %v172_v0 = vld [vmem:[%s355_s2] sm:$0xff]  ;;  %v306_v1 = vmov 0   ;;  %s358_s13 = smov (!%p159_p3, %s271_s13), 1  ;;  %vm193_vm0 = vcmask 1043456   ;;  %v173_v5 = vld [vmem:[%s355_s2 + $0x8] sm:$0xff]  ;;  %vm189_vm1 = vcmask 64512  }
   0xc   : > { %297 = vset.pattern.permute.xlu0 %v306_v1  ;;  %s276_s16 = sshll.u32 %s358_s13, 2  ;;  %v287_v4 = vld [vmem:[%s354_s1] sm:$0xff]  ;;  %s286_s24 = sshll.u32 %s358_s13, 3  ;;  %vm213_vm2 = vcmask 519168  }
   0xd   : > { %176 = vperm.xlu0 %297, %v172_v0   ;;  %s162_s19 = scalar_lea.vmem %s353_s0, %s276_s16  ;;  %s167_s27 = scalar_lea.vmem %s356_s3, %s286_s24 }
   0xe   : > { %v171_v2 = vld [vmem:[%s162_s19] sm:$0xf] }
   0xf   : > { %v195_v3 = vsel %vm193_vm0, %v171_v2, 0 }
  0x10   : > { %204 = vmatpush.bf16.msra.mxu0 %v195_v3 }
  0x13   : > { %283 = vmatmul.msk.bf16.vlgmr.msra.gmra.mxu0 %vm189_vm1, %v287_v4 }
  0x15   : > { %181 = vperm.xlu0 %297, %v173_v5  }
  0x7f   : > { %v177_v6 = vpop.permute.xlu0 %176 }
  0x87   : > { %v182_v10 = vpop.permute.xlu0 %181 }
  0x90   : > { %v206_v7 = vpop.f32.mrf.mxu0 }
  0x91   : > { %v207_v8 = vadd.f32 %v206_v7, %v177_v6 }
  0x93   : > { %v211_v9 = vpack.c.bf16 %v207_v8, %v207_v8 }
  0x95   : > { %214 = vst.msk [vmem:[%s167_s27] sm:$0xf] %vm213_vm2, %v211_v9 }
  0x98   : > { %v208_v11 = vpop.f32.mrf.mxu0 }
  0x99   : > { %v209_v12 = vadd.f32 %v208_v11, %v182_v10 }
  0x9b   : > { %v212_v13 = vpack.c.bf16 %v209_v12, %v209_v12 }
  0x9d   : > { %215 = vst.msk [vmem:[%s167_s27 + $0x4] sm:$0xf] %vm213_vm2, %v212_v13 }
  0x9e PF: > { %s13_s12 = sadd.s32 1, %s304_s12  }
  0x9f   : > { %p10_p4 = scmp.ge.s32.totalorder %s13_s12, 4  }
  0xa1   :  { %12 = sbr.rel (!%p10_p4) target bundleno = 1 (0x1), region = 62 }

// kernel: model_d_forward.21
= control target key start
LH: loop header
LB: loop body
LE: loop exit
PB: predicated region body
PF: predicated region fallthrough
CT: control target
= control target key end

     0   :  { %s886_s21 = smov 0   ;;  %s958_s0 = inlined_call_operand.vmem [shape: bf16[2,16,128], index: 0, kind: input, shape index: {}]   ;;  %s959_s1 = inlined_call_operand.vmem [shape: bf16[9,16,16], index: 1, kind: input, shape index: {}]   ;;  %s960_s2 = inlined_call_operand.vmem [shape: f32[16,1], index: 2, kind: input, shape index: {}]   ;;  %s961_s3 = inlined_call_operand.vmem [shape: f32[1,128], index: 3, kind: input, shape index: {}]   ;;  %s962_s4 = inlined_call_operand.vmem [shape: f32[2,16,128], index: 4, kind: output, shape index: {0}]   ;;  %s963_s5 = inlined_call_operand.vmem [shape: f32[2,16,1], index: 5, kind: output, shape index: {1}]   ;;  %s964_s6 = inlined_call_operand.vmem [shape: f32[2,16,1], index: 6, kind: output, shape index: {2}]  }
   0x1 LB: > { %s719_s22 = sadd.s32 4294967295, %s840_s21   ;;  %p723_p0 = scmp.ge.s32.totalorder %s840_s21, 1  ;;  %s840_s21 = sphi %s886_s21, %s17_s21  }
   0x2   : > { %p217_p1 = scmp.lt.s32.totalorder %s840_s21, 3 }
   0x4   : > { %p218_p2 = pnand %p723_p0, %p217_p1 }
   0x5   : > { %p257_p3 = scmp.lt.s32.totalorder (!%p218_p2), %s719_s22, 1  ;;  %s843_s24 = smov (!%p218_p2), 11  }
   0x6   : > { %221 = sbr.rel (%p218_p2) target bundleno = 430 (0x1ae), region = 36  ;;  %s844_s25 = smov (!%p218_p2), 9  }
   0x7   : > { %s847_s27 = smov (!%p218_p2), 127   ;;  %s848_s28 = smov (!%p218_p2), 119  }
   0x8   : > { %s849_s29 = smov (!%p218_p2), 118   ;;  %s850_s8 = smov (!%p218_p2), 117  }
   0xb   : > { %s966_s22 = smov (!%p257_p3, %s719_s22), 1  ;;  %v804_v1 = vld [vmem:[%s959_s1] sm:$0xff]  ;;  %v805_v2 = vld [vmem:[%s959_s1 + $0x8] sm:$0xff]  ;;  %vm293_vm0 = vcmask 130048   ;;  %v806_v3 = vld [vmem:[%s959_s1 + $0x10] sm:$0xff]  ;;  %v846_v16 = vmov 0  }
   0xc   : > { %s799_s23 = sshll.u32 %s966_s22, 3  ;;  %v807_v4 = vld [vmem:[%s959_s1 + $0x18] sm:$0xff]  ;;  %v808_v5 = vld [vmem:[%s959_s1 + $0x20] sm:$0xff]  ;;  %v809_v6 = vld [vmem:[%s959_s1 + $0x28] sm:$0xff]  ;;  %830 = vset.pattern.permute.xlu1 %v846_v16  ;;  %831 = vset.pattern.permute.xlu2 %v846_v16  ;;  %s800_s11 = sshll.u32 %s966_s22, 4  ;;  %vm587_vm1 = vcmask 7168  }
   0xd   : > { %s261_s26 = scalar_lea.vmem %s958_s0, %s799_s23  ;;  %v810_v7 = vld [vmem:[%s959_s1 + $0x30] sm:$0xff]  ;;  %v811_v8 = vld [vmem:[%s959_s1 + $0x38] sm:$0xff]  ;;  %v812_v9 = vld [vmem:[%s959_s1 + $0x40] sm:$0xff]  ;;  %s842_s23 = smov 10   ;;  %832 = vset.pattern.permute.xlu0 %v846_v16 }
   0xe   : > { %v803_v0 = vld [vmem:[%s261_s26] sm:$0xff]  ;;  %s845_s26 = smov 1   ;;  %v562_v30 = vld [vmem:[%s960_s2 + $0x8] sm:$0xff]  ;;  %s266_s16 = scalar_lea.vmem %s962_s4, %s800_s11 }
   0xf   : > { %304 = vmatpush.bf16.msra.mxu0 %v803_v0  ;;  %335 = vmatpush.bf16.msra.mxu1 %v803_v0  ;;  %v561_v28 = vld [vmem:[%s960_s2] sm:$0xff]  ;;  %s271_s18 = scalar_lea.vmem %s963_s5, %s800_s11 }
  0x10   : > { %366 = vmatpush.bf16.msra.mxu2 %v803_v0  ;;  %397 = vmatpush.bf16.msra.mxu3 %v803_v0  ;;  %v833_v62 = vld [vmem:[%s961_s3] ss:$0 sm:$0xff] }
  0x12   : > { %740 = vmatmul.msk.bf16.vlgmr.msra.gmra.mxu0 %vm293_vm0, %v804_v1  ;;  %747 = vmatmul.msk.bf16.vlgmr.msra.gmra.mxu1 %vm293_vm0, %v805_v2 }
  0x13   : > { %754 = vmatmul.msk.bf16.vlgmr.msra.gmra.mxu2 %vm293_vm0, %v806_v3  ;;  %761 = vmatmul.msk.bf16.vlgmr.msra.gmra.mxu3 %vm293_vm0, %v807_v4 }
  0x14   : > { %486 = vmatpush.bf16.msrb.mxu2 %v803_v0  ;;  %517 = vmatpush.bf16.msrb.mxu3 %v803_v0 }
  0x15   : > { %428 = vmatpush.bf16.msrb.mxu0 %v803_v0  ;;  %455 = vmatpush.bf16.msrb.mxu1 %v803_v0 }
  0x19   : > { %548 = vmatpush.bf16.msra.mxu0 %v803_v0 }
  0x22   : > { %768 = vmatmul.msk.bf16.vlgmr.msrb.gmra.mxu0 %vm293_vm0, %v808_v5  ;;  %775 = vmatmul.msk.bf16.vlgmr.msrb.gmra.mxu1 %vm293_vm0, %v809_v6 }
  0x23   : > { %782 = vmatmul.msk.bf16.vlgmr.msrb.gmra.mxu2 %vm293_vm0, %v810_v7  ;;  %789 = vmatmul.msk.bf16.vlgmr.msrb.gmra.mxu3 %vm293_vm0, %v811_v8 }
  0x32   : > { %796 = vmatmul.msk.bf16.vlgmr.msra.gmra.mxu0 %vm293_vm0, %v812_v9 }
  0x8f   : > { %v306_v10 = vpop.f32.mrf.mxu0  ;;  %v337_v11 = vpop.f32.mrf.mxu1 }
  0x90   : > { %342 = vrot.lane.b32.xlu1 %v337_v11, %s842_s23  ;;  %311 = vrot.lane.b32.xlu0 %v306_v10, %s843_s24 }
  0x96   : > { %v368_v12 = vpop.f32.mrf.mxu2  ;;  %v399_v13 = vpop.f32.mrf.mxu3 }
  0x97   : > { %373 = vrot.lane.b32.xlu2 %v368_v12, %s844_s25  ;;  %v308_v14 = vpop.f32.mrf.mxu0  ;;  %v339_v15 = vpop.f32.mrf.mxu1 }
  0x98   : > { %344 = vrot.lane.b32.xlu1 %v339_v15, %s842_s23  ;;  %404 = vrot.lane.b32.xlu0 %v399_v13, %s845_s26  ;;  %s276_s23 = scalar_lea.vmem %s964_s6, %s800_s11 }
  0x9e   : > { %v370_v17 = vpop.f32.mrf.mxu2  ;;  %v401_v18 = vpop.f32.mrf.mxu3 }
  0x9f   : > { %375 = vrot.lane.b32.xlu2 %v370_v17, %s844_s25  ;;  %v430_v19 = vpop.f32.mrf.mxu0  ;;  %v457_v20 = vpop.f32.mrf.mxu1 }
  0xa0   : > { %406 = vrot.lane.b32.xlu1 %v401_v18, %s845_s26  ;;  %313 = vrot.lane.b32.xlu0 %v308_v14, %s843_s24 }
  0xa6   : > { %v488_v21 = vpop.f32.mrf.mxu2  ;;  %v519_v22 = vpop.f32.mrf.mxu3 }
  0xa7   : > { %462 = vrot.lane.b32.xlu2 %v457_v20, %s847_s27  ;;  %v432_v23 = vpop.f32.mrf.mxu0  ;;  %v459_v24 = vpop.f32.mrf.mxu1 }
  0xa8   : > { %493 = vrot.lane.b32.xlu1 %v488_v21, %s848_s28  ;;  %524 = vrot.lane.b32.xlu0 %v519_v22, %s849_s29 }
  0xae   : > { %v490_v25 = vpop.f32.mrf.mxu2  ;;  %v521_v26 = vpop.f32.mrf.mxu3 }
  0xaf   : > { %495 = vrot.lane.b32.xlu2 %v490_v25, %s848_s28  ;;  %v550_v27 = vpop.f32.mrf.mxu0 }
  0xb0   : > { %526 = vrot.lane.b32.xlu1 %v521_v26, %s849_s29  ;;  %464 = vrot.lane.b32.xlu0 %v459_v24, %s847_s27 }
  0xb7   : > { %555 = vrot.lane.b32.xlu2 %v550_v27, %s850_s8  ;;  %v552_v29 = vpop.f32.mrf.mxu0 }
  0xb8   : > { %565 = vperm.xlu1 %830, %v561_v28   ;;  %557 = vrot.lane.b32.xlu0 %v552_v29, %s850_s8 }
  0xbf   : > { %570 = vperm.xlu2 %831, %v562_v30  }
  0xf1   : > { %v374_v31 = vpop.permute.xlu2 %373 }
  0xf9   : > { %v376_v34 = vpop.permute.xlu2 %375 }
 0x101   : > { %v463_v37 = vpop.permute.xlu2 %462 }
 0x102   : > { %v343_v32 = vpop.permute.xlu1 %342  ;;  %v312_v33 = vpop.permute.xlu0 %311 }
 0x103   : > { %v346_v38 = vadd.f32 %v343_v32, %v312_v33 }
 0x105   : > { %v377_v41 = vadd.f32 %v374_v31, %v346_v38 }
 0x109   : > { %v496_v43 = vpop.permute.xlu2 %495 }
 0x10a   : > { %v345_v35 = vpop.permute.xlu1 %344  ;;  %v405_v36 = vpop.permute.xlu0 %404 }
 0x10b   : > { %v408_v44 = vadd.f32 %v405_v36, %v377_v41 }
 0x10d   : > { %v435_v48 = vadd.f32 %v430_v19, %v408_v44 }
 0x10f   : > { %v466_v50 = vadd.f32 %v463_v37, %v435_v48 }
 0x111   : > { %v556_v51 = vpop.permute.xlu2 %555 }
 0x112   : > { %v407_v39 = vpop.permute.xlu1 %406  ;;  %v314_v40 = vpop.permute.xlu0 %313 }
 0x113   : > { %v347_v42 = vadd.f32 %v345_v35, %v314_v40 }
 0x115   : > { %v378_v45 = vadd.f32 %v376_v34, %v347_v42 }
 0x117   : > { %v409_v49 = vadd.f32 %v407_v39, %v378_v45 }
 0x119   : > { %v436_v53 = vadd.f32 %v432_v23, %v409_v49  ;;  %v571_v61 = vpop.permute.xlu2 %570 }
 0x11a   : > { %v494_v46 = vpop.permute.xlu1 %493  ;;  %v525_v47 = vpop.permute.xlu0 %524 }
 0x11b   : > { %v497_v52 = vadd.f32 %v494_v46, %v466_v50 }
 0x11d   : > { %v528_v57 = vadd.f32 %v525_v47, %v497_v52 }
 0x11f   : > { %v559_v59 = vadd.f32 %v556_v51, %v528_v57 }
 0x122   : > { %v527_v54 = vpop.permute.xlu1 %526  ;;  %v465_v55 = vpop.permute.xlu0 %464 }
 0x123   : > { %v467_v56 = vadd.f32 %v465_v55, %v436_v53 }
 0x125   : > { %v498_v58 = vadd.f32 %v496_v43, %v467_v56 }
 0x127   : > { %v529_v60 = vadd.f32 %v527_v54, %v498_v58 }
 0x12a   : > { %v566_v63 = vpop.permute.xlu1 %565  ;;  %v558_v0 = vpop.permute.xlu0 %557 }
 0x12b   : > { %v573_v1 = vadd.f32 %v566_v63, %v559_v59  ;;  %v560_v2 = vadd.f32 %v558_v0, %v529_v60 }
 0x12d   : > { %576 = vst [vmem:[%s266_s16] sm:$0xff] %v573_v1  ;;  %v574_v3 = vadd.f32 %v571_v61, %v560_v2  ;;  %v581_v4 = vmul.f32 %v833_v62, %v573_v1 }
 0x12f   : > { %577 = vst [vmem:[%s266_s16 + $0x8] sm:$0xff] %v574_v3  ;;  %583 = vadd.xlane.f32.xlu0 %v581_v4  ;;  %v590_v5 = vmul.f32 %v581_v4, %v573_v1  ;;  %v582_v6 = vmul.f32 %v833_v62, %v574_v3 }
 0x131   : > { %592 = vadd.xlane.f32.xlu2 %v590_v5  ;;  %585 = vadd.xlane.f32.xlu1 %v582_v6  ;;  %v591_v7 = vmul.f32 %v582_v6, %v574_v3 }
 0x139   : > { %594 = vadd.xlane.f32.xlu2 %v591_v7 }
 0x1a2   : > { %v584_v8 = vpop.xlane.xlu0 %583 }
 0x1a3   : > { %588 = vst.msk [vmem:[%s271_s18] sm:$0xff] %vm587_vm1, %v584_v8 }
 0x1a4   : > { %v593_v9 = vpop.xlane.xlu2 %592  ;;  %v586_v10 = vpop.xlane.xlu1 %585 }
 0x1a5   : > { %596 = vst.msk [vmem:[%s276_s23] sm:$0xff] %vm587_vm1, %v593_v9 }
 0x1a6   : > { %589 = vst.msk [vmem:[%s271_s18 + $0x8] sm:$0xff] %vm587_vm1, %v586_v10 }
 0x1ac   : > { %v595_v11 = vpop.xlane.xlu2 %594 }
 0x1ad   : > { %597 = vst.msk [vmem:[%s276_s23 + $0x8] sm:$0xff] %vm587_vm1, %v595_v11 }
 0x1ae PF: > { %s17_s21 = sadd.s32 1, %s840_s21  }
 0x1af   : > { %p14_p4 = scmp.ge.s32.totalorder %s17_s21, 4  }
 0x1b1   :  { %16 = sbr.rel (!%p14_p4) target bundleno = 1 (0x1), region = 98 }

// kernel: model_d_forward.22
= control target key start
LH: loop header
LB: loop body
LE: loop exit
PB: predicated region body
PF: predicated region fallthrough
CT: control target
= control target key end

     0   :  { %s972_s27 = smov 0   ;;  %s1064_s0 = inlined_call_operand.vmem [shape: f32[2,16,128], index: 0, kind: input, shape index: {}]   ;;  %s1065_s1 = inlined_call_operand.vmem [shape: f32[16,1], index: 1, kind: input, shape index: {}]   ;;  %s1066_s2 = inlined_call_operand.vmem [shape: f32[16,1], index: 2, kind: input, shape index: {}]   ;;  %s1067_s3 = inlined_call_operand.vmem [shape: bf16[9,16,16], index: 3, kind: input, shape index: {}]   ;;  %s1068_s4 = inlined_call_operand.vmem [shape: f32[16,1], index: 4, kind: input, shape index: {}]   ;;  %s1069_s5 = inlined_call_operand.vmem [shape: f32[1,128], index: 5, kind: input, shape index: {}]   ;;  %s1070_s6 = inlined_call_operand.vmem [shape: f32[2,16,128], index: 6, kind: output, shape index: {0}]   ;;  %s1071_s7 = inlined_call_operand.vmem [shape: f32[2,16,1], index: 7, kind: output, shape index: {1}]   ;;  %s1072_s8 = inlined_call_operand.vmem [shape: f32[2,16,1], index: 8, kind: output, shape index: {2}]  }
   0x1 LB: > { %s800_s28 = sadd.s32 4294967295, %s916_s27   ;;  %p804_p0 = scmp.ge.s32.totalorder %s916_s27, 1  ;;  %s916_s27 = sphi %s972_s27, %s19_s27  }
   0x2   : > { %p267_p1 = scmp.lt.s32.totalorder %s916_s27, 3 }
   0x4   : > { %p268_p2 = pnand %p804_p0, %p267_p1 }
   0x5   : > { %p311_p3 = scmp.lt.s32.totalorder (!%p268_p2), %s800_s28, 1  ;;  %s919_s19 = smov (!%p268_p2), 10  }
   0x6   : > { %271 = sbr.rel (%p268_p2) target bundleno = 568 (0x238), region = 44  ;;  %s920_s20 = smov (!%p268_p2), 11  }
   0x7   : > { %s921_s21 = smov (!%p268_p2), 1   ;;  %s922_s22 = smov (!%p268_p2), 9  }
   0x8   : > { %s923_s23 = smov (!%p268_p2), 118   ;;  %s924_s24 = smov (!%p268_p2), 127  }
   0x9   : > { %s925_s25 = smov (!%p268_p2), 119   ;;  %s926_s26 = smov (!%p268_p2), 117  }
   0xb   : > { %v348_v0 = vld [vmem:[%s1066_s2] sm:$0xff]  ;;  %v918_v2 = vmov 0   ;;  %v349_v3 = vld [vmem:[%s1066_s2 + $0x8] sm:$0xff]  ;;  %s1074_s28 = smov (!%p311_p3, %s800_s28), 1  ;;  %vm378_vm0 = vcmask 130048   ;;  %v882_v23 = vld [vmem:[%s1067_s3 + $0x10] sm:$0xff] }
   0xc   : > { %v334_v1 = vld [vmem:[%s1065_s1] sm:$0xff]  ;;  %907 = vset.pattern.permute.xlu1 %v918_v2  ;;  %906 = vset.pattern.permute.xlu0 %v918_v2  ;;  %v335_v4 = vld [vmem:[%s1065_s1 + $0x8] sm:$0xff]  ;;  %s992_s15 = sshll.u32 %s1074_s28, 4  ;;  %v883_v24 = vld [vmem:[%s1067_s3 + $0x18] sm:$0xff]  ;;  %vm668_vm1 = vcmask 7168  }
   0xd   : > { %352 = vperm.xlu1 %907, %v348_v0   ;;  %338 = vperm.xlu0 %906, %v334_v1   ;;  %s315_s18 = scalar_lea.vmem %s1064_s0, %s992_s15  ;;  %v1001_v14 = vld [vmem:[%s1069_s5] ss:$0 sm:$0xff]  ;;  %v881_v22 = vld [vmem:[%s1067_s3 + $0x8] sm:$0xff]  ;;  %v886_v27 = vld [vmem:[%s1067_s3 + $0x30] sm:$0xff]  ;;  %s320_s12 = scalar_lea.vmem %s1070_s6, %s992_s15 }
   0xe   : > { %908 = vset.pattern.permute.xlu2 %v918_v2  ;;  %v332_v7 = vld [vmem:[%s315_s18] sm:$0xff]  ;;  %v333_v9 = vld [vmem:[%s315_s18 + $0x8] sm:$0xff]  ;;  %v887_v28 = vld [vmem:[%s1067_s3 + $0x38] sm:$0xff]  ;;  %s325_s16 = scalar_lea.vmem %s1071_s7, %s992_s15 }
   0xf   : > { %v880_v21 = vld [vmem:[%s1067_s3] sm:$0xff]  ;;  %v885_v26 = vld [vmem:[%s1067_s3 + $0x28] sm:$0xff] }
  0x10   : > { %v884_v25 = vld [vmem:[%s1067_s3 + $0x20] sm:$0xff]  ;;  %v647_v48 = vld [vmem:[%s1068_s4 + $0x8] sm:$0xff] }
  0x11   : > { %v888_v29 = vld [vmem:[%s1067_s3 + $0x40] sm:$0xff] }
  0x12   : > { %v646_v49 = vld [vmem:[%s1068_s4] sm:$0xff] }
  0x15   : > { %357 = vperm.xlu1 %907, %v349_v3   ;;  %343 = vperm.xlu0 %906, %v335_v4  }
  0x7f   : > { %v353_v5 = vpop.permute.xlu1 %352  ;;  %v339_v6 = vpop.permute.xlu0 %338 }
  0x80   : > { %v346_v8 = vmul.f32 %v339_v6, %v332_v7 }
  0x82   : > { %v360_v10 = vadd.f32 %v353_v5, %v346_v8 }
  0x84   : > { %v362_v15 = vmax.f32 %v360_v10, 0.0 }
  0x86   : > { %v368_v18 = vmul.f32 %v1001_v14, %v362_v15 }
  0x87   : > { %v344_v11 = vpop.permute.xlu0 %343  ;;  %v358_v13 = vpop.permute.xlu1 %357 }
  0x88   : > { %v347_v12 = vmul.f32 %v344_v11, %v333_v9 }
  0x8a   : > { %v361_v16 = vadd.f32 %v358_v13, %v347_v12 }
  0x8c   : > { %v363_v17 = vmax.f32 %v361_v16, 0.0 }
  0x8e   : > { %v369_v19 = vmul.f32 %v1001_v14, %v363_v17 }
  0x90   : > { %v370_v20 = vpack.c.bf16 %v369_v19, %v368_v18 }
  0x92   : > { %389 = vmatpush.bf16.msra.mxu0 %v370_v20  ;;  %420 = vmatpush.bf16.msra.mxu1 %v370_v20 }
  0x93   : > { %451 = vmatpush.bf16.msra.mxu2 %v370_v20  ;;  %482 = vmatpush.bf16.msra.mxu3 %v370_v20 }
  0x95   : > { %817 = vmatmul.msk.bf16.vlgmr.msra.gmra.mxu0 %vm378_vm0, %v880_v21  ;;  %824 = vmatmul.msk.bf16.vlgmr.msra.gmra.mxu1 %vm378_vm0, %v881_v22 }
  0x96   : > { %513 = vmatpush.bf16.msrb.mxu0 %v370_v20  ;;  %540 = vmatpush.bf16.msrb.mxu1 %v370_v20 }
  0x97   : > { %571 = vmatpush.bf16.msrb.mxu2 %v370_v20  ;;  %602 = vmatpush.bf16.msrb.mxu3 %v370_v20 }
  0x98   : > { %831 = vmatmul.msk.bf16.vlgmr.msra.gmra.mxu2 %vm378_vm0, %v882_v23  ;;  %838 = vmatmul.msk.bf16.vlgmr.msra.gmra.mxu3 %vm378_vm0, %v883_v24 }
  0x9a   : > { %633 = vmatpush.bf16.msra.mxu0 %v370_v20 }
  0xa5   : > { %845 = vmatmul.msk.bf16.vlgmr.msrb.gmra.mxu0 %vm378_vm0, %v884_v25  ;;  %852 = vmatmul.msk.bf16.vlgmr.msrb.gmra.mxu1 %vm378_vm0, %v885_v26 }
  0xa8   : > { %859 = vmatmul.msk.bf16.vlgmr.msrb.gmra.mxu2 %vm378_vm0, %v886_v27  ;;  %866 = vmatmul.msk.bf16.vlgmr.msrb.gmra.mxu3 %vm378_vm0, %v887_v28 }
  0xb5   : > { %873 = vmatmul.msk.bf16.vlgmr.msra.gmra.mxu0 %vm378_vm0, %v888_v29 }
 0x112   : > { %v391_v30 = vpop.f32.mrf.mxu0  ;;  %v422_v31 = vpop.f32.mrf.mxu1 }
 0x113   : > { %427 = vrot.lane.b32.xlu0 %v422_v31, %s919_s19  ;;  %396 = vrot.lane.b32.xlu2 %v391_v30, %s920_s20 }
 0x11a   : > { %v393_v34 = vpop.f32.mrf.mxu0  ;;  %v424_v35 = vpop.f32.mrf.mxu1 }
 0x11b   : > { %v453_v32 = vpop.f32.mrf.mxu2  ;;  %v484_v33 = vpop.f32.mrf.mxu3 }
 0x11c   : > { %489 = vrot.lane.b32.xlu1 %v484_v33, %s921_s21  ;;  %458 = vrot.lane.b32.xlu2 %v453_v32, %s922_s22 }
 0x122   : > { %v515_v38 = vpop.f32.mrf.mxu0  ;;  %v542_v39 = vpop.f32.mrf.mxu1 }
 0x123   : > { %v455_v36 = vpop.f32.mrf.mxu2  ;;  %v486_v37 = vpop.f32.mrf.mxu3 }
 0x124   : > { %460 = vrot.lane.b32.xlu0 %v455_v36, %s922_s22  ;;  %429 = vrot.lane.b32.xlu1 %v424_v35, %s919_s19  ;;  %s330_s19 = scalar_lea.vmem %s1072_s8, %s992_s15 }
 0x125   : > { %398 = vrot.lane.b32.xlu2 %v393_v34, %s920_s20 }
 0x12a   : > { %v517_v42 = vpop.f32.mrf.mxu0  ;;  %v544_v43 = vpop.f32.mrf.mxu1 }
 0x12b   : > { %v573_v40 = vpop.f32.mrf.mxu2  ;;  %v604_v41 = vpop.f32.mrf.mxu3 }
 0x12c   : > { %609 = vrot.lane.b32.xlu1 %v604_v41, %s923_s23  ;;  %547 = vrot.lane.b32.xlu0 %v542_v39, %s924_s24 }
 0x12d   : > { %491 = vrot.lane.b32.xlu2 %v486_v37, %s921_s21 }
 0x132   : > { %v635_v45 = vpop.f32.mrf.mxu0 }
 0x133   : > { %v575_v44 = vpop.f32.mrf.mxu2  ;;  %v606_v46 = vpop.f32.mrf.mxu3 }
 0x134   : > { %580 = vrot.lane.b32.xlu0 %v575_v44, %s925_s25  ;;  %549 = vrot.lane.b32.xlu1 %v544_v43, %s924_s24 }
 0x135   : > { %578 = vrot.lane.b32.xlu2 %v573_v40, %s925_s25 }
 0x13a   : > { %v637_v47 = vpop.f32.mrf.mxu0 }
 0x13c   : > { %640 = vrot.lane.b32.xlu0 %v635_v45, %s926_s26  ;;  %642 = vrot.lane.b32.xlu1 %v637_v47, %s926_s26 }
 0x13d   : > { %611 = vrot.lane.b32.xlu2 %v606_v46, %s923_s23 }
 0x144   : > { %655 = vperm.xlu0 %906, %v647_v48  }
 0x145   : > { %650 = vperm.xlu2 %908, %v646_v49  }
 0x16d   : > { %v397_v50 = vpop.permute.xlu2 %396 }
 0x176   : > { %v459_v51 = vpop.permute.xlu2 %458 }
 0x17f   : > { %v399_v52 = vpop.permute.xlu2 %398 }
 0x185   : > { %v428_v53 = vpop.permute.xlu0 %427 }
 0x186   : > { %v431_v58 = vadd.f32 %v428_v53, %v397_v50 }
 0x187   : > { %v492_v55 = vpop.permute.xlu2 %491 }
 0x188   : > { %v462_v60 = vadd.f32 %v459_v51, %v431_v58 }
 0x18e   : > { %v490_v54 = vpop.permute.xlu1 %489 }
 0x18f   : > { %v579_v59 = vpop.permute.xlu2 %578  ;;  %v493_v0 = vadd.f32 %v490_v54, %v462_v60 }
 0x191   : > { %v520_v2 = vadd.f32 %v515_v38, %v493_v0 }
 0x196   : > { %v461_v56 = vpop.permute.xlu0 %460  ;;  %v430_v57 = vpop.permute.xlu1 %429 }
 0x197   : > { %v432_v61 = vadd.f32 %v430_v57, %v399_v52  ;;  %v612_v5 = vpop.permute.xlu2 %611 }
 0x199   : > { %v463_v1 = vadd.f32 %v461_v56, %v432_v61 }
 0x19b   : > { %v494_v4 = vadd.f32 %v492_v55, %v463_v1 }
 0x19d   : > { %v521_v9 = vadd.f32 %v517_v42, %v494_v4 }
 0x19e   : > { %v610_v62 = vpop.permute.xlu1 %609  ;;  %v548_v63 = vpop.permute.xlu0 %547 }
 0x19f   : > { %v551_v3 = vadd.f32 %v548_v63, %v520_v2  ;;  %v651_v13 = vpop.permute.xlu2 %650 }
 0x1a1   : > { %v582_v8 = vadd.f32 %v579_v59, %v551_v3 }
 0x1a3   : > { %v613_v11 = vadd.f32 %v610_v62, %v582_v8 }
 0x1a6   : > { %v581_v6 = vpop.permute.xlu0 %580  ;;  %v550_v7 = vpop.permute.xlu1 %549 }
 0x1a7   : > { %v552_v10 = vadd.f32 %v550_v7, %v521_v9 }
 0x1a9   : > { %v583_v15 = vadd.f32 %v581_v6, %v552_v10 }
 0x1ab   : > { %v614_v19 = vadd.f32 %v612_v5, %v583_v15 }
 0x1ae   : > { %v641_v12 = vpop.permute.xlu0 %640  ;;  %v643_v18 = vpop.permute.xlu1 %642 }
 0x1af   : > { %v644_v16 = vadd.f32 %v641_v12, %v613_v11  ;;  %v645_v21 = vadd.f32 %v643_v18, %v614_v19 }
 0x1b1   : > { %v658_v17 = vadd.f32 %v651_v13, %v644_v16 }
 0x1b3   : > { %660 = vst [vmem:[%s320_s12] sm:$0xff] %v658_v17  ;;  %v662_v20 = vmul.f32 %v1001_v14, %v658_v17 }
 0x1b5   : > { %664 = vadd.xlane.f32.xlu1 %v662_v20  ;;  %v671_v22 = vmul.f32 %v662_v20, %v658_v17 }
 0x1b6   : > { %v656_v23 = vpop.permute.xlu0 %655 }
 0x1b7   : > { %v659_v24 = vadd.f32 %v656_v23, %v645_v21  ;;  %673 = vadd.xlane.f32.xlu0 %v671_v22 }
 0x1b9   : > { %661 = vst [vmem:[%s320_s12 + $0x8] sm:$0xff] %v659_v24  ;;  %v663_v25 = vmul.f32 %v1001_v14, %v659_v24 }
 0x1bb   : > { %666 = vadd.xlane.f32.xlu2 %v663_v25  ;;  %v672_v26 = vmul.f32 %v663_v25, %v659_v24 }
 0x1c3   : > { %675 = vadd.xlane.f32.xlu2 %v672_v26 }
 0x228   : > { %v665_v27 = vpop.xlane.xlu1 %664 }
 0x229   : > { %669 = vst.msk [vmem:[%s325_s16] sm:$0xff] %vm668_vm1, %v665_v27 }
 0x22a   : > { %v674_v28 = vpop.xlane.xlu0 %673 }
 0x22b   : > { %677 = vst.msk [vmem:[%s330_s19] sm:$0xff] %vm668_vm1, %v674_v28 }
 0x22e   : > { %v667_v29 = vpop.xlane.xlu2 %666 }
 0x22f   : > { %670 = vst.msk [vmem:[%s325_s16 + $0x8] sm:$0xff] %vm668_vm1, %v667_v29 }
 0x236   : > { %v676_v30 = vpop.xlane.xlu2 %675 }
 0x237   : > { %678 = vst.msk [vmem:[%s330_s19 + $0x8] sm:$0xff] %vm668_vm1, %v676_v30 }
 0x238 PF: > { %s19_s27 = sadd.s32 1, %s916_s27  }
 0x239   : > { %p16_p4 = scmp.ge.s32.totalorder %s19_s27, 4  }
 0x23b   :  { %18 = sbr.rel (!%p16_p4) target bundleno = 1 (0x1), region = 106 }

// kernel: model_d_forward.23
= control target key start
LH: loop header
LB: loop body
LE: loop exit
PB: predicated region body
PF: predicated region fallthrough
CT: control target
= control target key end

     0   :  { %s436_s18 = smov 0   ;;  %s471_s0 = inlined_call_operand.vmem [shape: f32[2,16,128], index: 0, kind: input, shape index: {}]   ;;  %s472_s1 = inlined_call_operand.vmem [shape: f32[16,1], index: 1, kind: input, shape index: {}]   ;;  %s473_s2 = inlined_call_operand.vmem [shape: f32[16,1], index: 2, kind: input, shape index: {}]   ;;  %s474_s3 = inlined_call_operand.vmem [shape: bf16[2,16,128], index: 3, kind: input, shape index: {}]   ;;  %s475_s4 = inlined_call_operand.vmem [shape: f32[1,128], index: 4, kind: input, shape index: {}]   ;;  %s476_s5 = inlined_call_operand.vmem [shape: bf16[2,16,128], index: 5, kind: output, shape index: {}]  }
   0x1 LB: > { %s360_s19 = sadd.s32 4294967295, %s403_s18   ;;  %p364_p0 = scmp.ge.s32.totalorder %s403_s18, 1  ;;  %s403_s18 = sphi %s436_s18, %s15_s18  }
   0x2   : > { %p197_p1 = scmp.lt.s32.totalorder %s403_s18, 3 }
   0x4   : > { %p198_p2 = pnand %p364_p0, %p197_p1 }
   0x5   : > { %p230_p3 = scmp.lt.s32.totalorder (!%p198_p2), %s360_s19, 1 }
   0x6   : > { %201 = sbr.rel (%p198_p2) target bundleno = 149 (0x95), region = 40 }
   0xb   : > { %v261_v0 = vld [vmem:[%s473_s2] sm:$0xff]  ;;  %v405_v2 = vmov 0   ;;  %v262_v3 = vld [vmem:[%s473_s2 + $0x8] sm:$0xff]  ;;  %s478_s19 = smov (!%p230_p3, %s360_s19), 1 }
   0xc   : > { %v247_v1 = vld [vmem:[%s472_s1] sm:$0xff]  ;;  %395 = vset.pattern.permute.xlu1 %v405_v2  ;;  %394 = vset.pattern.permute.xlu0 %v405_v2  ;;  %v248_v4 = vld [vmem:[%s472_s1 + $0x8] sm:$0xff]  ;;  %s373_s28 = sshll.u32 %s478_s19, 4  ;;  %s374_s7 = sshll.u32 %s478_s19, 3 }
   0xd   : > { %265 = vperm.xlu1 %395, %v261_v0   ;;  %251 = vperm.xlu0 %394, %v247_v1   ;;  %s234_s6 = scalar_lea.vmem %s471_s0, %s373_s28  ;;  %s239_s10 = scalar_lea.vmem %s474_s3, %s374_s7  ;;  %v396_v19 = vld [vmem:[%s475_s4] ss:$0 sm:$0xff] }
   0xe   : > { %v245_v5 = vld [vmem:[%s234_s6] sm:$0xff]  ;;  %v246_v11 = vld [vmem:[%s234_s6 + $0x8] sm:$0xff]  ;;  %s244_s15 = scalar_lea.vmem %s476_s5, %s374_s7 }
   0xf   : > { %v377_v10 = vld [vmem:[%s239_s10] sm:$0xff]  }
  0x10   : > { %v378_v14 = vunpack.c.l.bf16 %v377_v10  ;;  %v379_v18 = vunpack.c.h.bf16 %v377_v10 }
  0x15   : > { %270 = vperm.xlu1 %395, %v262_v3   ;;  %256 = vperm.xlu0 %394, %v248_v4  }
  0x7f   : > { %v266_v6 = vpop.permute.xlu1 %265  ;;  %v252_v7 = vpop.permute.xlu0 %251 }
  0x80   : > { %v259_v8 = vmul.f32 %v252_v7, %v245_v5 }
  0x82   : > { %v273_v9 = vadd.f32 %v266_v6, %v259_v8 }
  0x84   : > { %v275_v13 = vmax.f32 %v273_v9, 0.0 }
  0x86   : > { %v281_v20 = vadd.f32 %v378_v14, %v275_v13 }
  0x87   : > { %v257_v12 = vpop.permute.xlu0 %256  ;;  %v271_v16 = vpop.permute.xlu1 %270 }
  0x88   : > { %v260_v15 = vmul.f32 %v257_v12, %v246_v11  ;;  %v287_v23 = vmul.f32 %v396_v19, %v281_v20 }
  0x8a   : > { %v274_v17 = vadd.f32 %v271_v16, %v260_v15 }
  0x8c   : > { %v276_v21 = vmax.f32 %v274_v17, 0.0 }
  0x8e   : > { %v282_v22 = vadd.f32 %v379_v18, %v276_v21 }
  0x90   : > { %v288_v24 = vmul.f32 %v396_v19, %v282_v22 }
  0x92   : > { %v383_v25 = vpack.c.bf16 %v288_v24, %v287_v23 }
  0x94   : > { %384 = vst [vmem:[%s244_s15] sm:$0xff] %v383_v25  }
  0x95 PF: > { %s15_s18 = sadd.s32 1, %s403_s18  }
  0x96   : > { %p12_p4 = scmp.ge.s32.totalorder %s15_s18, 4  }
  0x98   :  { %14 = sbr.rel (!%p12_p4) target bundleno = 1 (0x1), region = 73 }

// kernel: model_d_forward.24
= control target key start
LH: loop header
LB: loop body
LE: loop exit
PB: predicated region body
PF: predicated region fallthrough
CT: control target
= control target key end

     0   :  { %s379_s12 = smov 0   ;;  %s414_s0 = inlined_call_operand.vmem [shape: bf16[2,16,16], index: 0, kind: input, shape index: {}]   ;;  %s415_s1 = inlined_call_operand.vmem [shape: bf16[32,16], index: 1, kind: input, shape index: {}]   ;;  %s416_s2 = inlined_call_operand.vmem [shape: f32[32,1], index: 2, kind: input, shape index: {}]   ;;  %s417_s3 = inlined_call_operand.vmem [shape: bf16[2,32,16], index: 3, kind: output, shape index: {}]  }
   0x1 LB: > { %s308_s13 = sadd.s32 4294967295, %s356_s12   ;;  %p312_p0 = scmp.ge.s32.totalorder %s356_s12, 1  ;;  %s356_s12 = sphi %s379_s12, %s13_s12  }
   0x2   : > { %p137_p1 = scmp.lt.s32.totalorder %s356_s12, 3 }
   0x4   : > { %p138_p2 = pnand %p312_p0, %p137_p1 }
   0x5   : > { %p161_p3 = scmp.lt.s32.totalorder (!%p138_p2), %s308_s13, 1 }
   0x6   : > { %141 = sbr.rel (%p138_p2) target bundleno = 158 (0x9e), region = 32 }
   0xb   : > { %v180_v0 = vld [vmem:[%s416_s2 + $0x10] sm:$0xff]  ;;  %v358_v1 = vmov 0   ;;  %v178_v2 = vld [vmem:[%s416_s2] sm:$0xff]  ;;  %s419_s13 = smov (!%p161_p3, %s308_s13), 1  ;;  %v336_v5 = vld [vmem:[%s415_s1 + $0x8] sm:$0xff]  ;;  %vm218_vm0 = vcmask 130048  }
   0xc   : > { %349 = vset.pattern.permute.xlu1 %v358_v1  ;;  %348 = vset.pattern.permute.xlu0 %v358_v1  ;;  %s333_s18 = sshll.u32 %s419_s13, 3  ;;  %v335_v4 = vld [vmem:[%s415_s1] sm:$0xff]  ;;  %v181_v6 = vld [vmem:[%s416_s2 + $0x18] sm:$0xff]  ;;  %v179_v7 = vld [vmem:[%s416_s2 + $0x8] sm:$0xff]  ;;  %s334_s30 = sshll.u32 %s419_s13, 4  ;;  %vm248_vm1 = vcmask 125952  }
   0xd   : > { %194 = vperm.xlu1 %349, %v180_v0   ;;  %184 = vperm.xlu0 %348, %v178_v2   ;;  %s165_s21 = scalar_lea.vmem %s414_s0, %s333_s18  ;;  %s170_s6 = scalar_lea.vmem %s417_s3, %s334_s30 }
   0xe   : > { %v337_v3 = vld [vmem:[%s165_s21] sm:$0xff] }
   0xf   : > { %232 = vmatpush.bf16.msra.mxu0 %v337_v3  ;;  %338 = vmatpush.bf16.msra.mxu1 %v337_v3 }
  0x12   : > { %329 = vmatmul.msk.bf16.vlgmr.msra.gmra.mxu0 %vm218_vm0, %v335_v4  ;;  %330 = vmatmul.msk.bf16.vlgmr.msra.gmra.mxu1 %vm218_vm0, %v336_v5 }
  0x15   : > { %199 = vperm.xlu1 %349, %v181_v6   ;;  %189 = vperm.xlu0 %348, %v179_v7  }
  0x7f   : > { %v195_v8 = vpop.permute.xlu1 %194  ;;  %v185_v9 = vpop.permute.xlu0 %184 }
  0x87   : > { %v200_v16 = vpop.permute.xlu1 %199  ;;  %v190_v17 = vpop.permute.xlu0 %189 }
  0x8f   : > { %v234_v10 = vpop.f32.mrf.mxu0  ;;  %v239_v11 = vpop.f32.mrf.mxu1 }
  0x90   : > { %v235_v12 = vadd.f32 %v234_v10, %v185_v9  ;;  %v240_v13 = vadd.f32 %v239_v11, %v195_v8 }
  0x92   : > { %v244_v14 = vpack.c.bf16 %v235_v12, %v235_v12  ;;  %v246_v15 = vpack.c.bf16 %v240_v13, %v240_v13 }
  0x94   : > { %249 = vst.msk [vmem:[%s170_s6] sm:$0xf] %vm248_vm1, %v244_v14 }
  0x95   : > { %251 = vst.msk [vmem:[%s170_s6 + $0x8] sm:$0xf] %vm248_vm1, %v246_v15 }
  0x97   : > { %v236_v18 = vpop.f32.mrf.mxu0  ;;  %v241_v19 = vpop.f32.mrf.mxu1 }
  0x98   : > { %v237_v20 = vadd.f32 %v236_v18, %v190_v17  ;;  %v242_v21 = vadd.f32 %v241_v19, %v200_v16 }
  0x9a   : > { %v245_v22 = vpack.c.bf16 %v237_v20, %v237_v20  ;;  %v247_v23 = vpack.c.bf16 %v242_v21, %v242_v21 }
  0x9c   : > { %250 = vst.msk [vmem:[%s170_s6 + $0x4] sm:$0xf] %vm248_vm1, %v245_v22 }
  0x9d   : > { %252 = vst.msk [vmem:[%s170_s6 + $0xc] sm:$0xf] %vm248_vm1, %v247_v23 }
  0x9e PF: > { %s13_s12 = sadd.s32 1, %s356_s12  }
  0x9f   : > { %p10_p4 = scmp.ge.s32.totalorder %s13_s12, 4  }
  0xa1   :  { %12 = sbr.rel (!%p10_p4) target bundleno = 1 (0x1), region = 62 }

// kernel: model_d_forward.27
= control target key start
LH: loop header
LB: loop body
LE: loop exit
PB: predicated region body
PF: predicated region fallthrough
CT: control target
= control target key end

     0   :  { %s492_s18 = smov 0   ;;  %s547_s0 = inlined_call_operand.vmem [shape: f32[2,32,128], index: 0, kind: input, shape index: {}]   ;;  %s548_s1 = inlined_call_operand.vmem [shape: f32[32,1], index: 1, kind: input, shape index: {}]   ;;  %s549_s2 = inlined_call_operand.vmem [shape: f32[32,1], index: 2, kind: input, shape index: {}]   ;;  %s550_s3 = inlined_call_operand.vmem [shape: bf16[2,32,128], index: 3, kind: input, shape index: {}]   ;;  %s551_s4 = inlined_call_operand.vmem [shape: f32[1,128], index: 4, kind: input, shape index: {}]   ;;  %s552_s5 = inlined_call_operand.vmem [shape: bf16[2,32,128], index: 5, kind: output, shape index: {}]  }
   0x1 LB: > { %s404_s19 = sadd.s32 4294967295, %s459_s18   ;;  %p408_p0 = scmp.ge.s32.totalorder %s459_s18, 1  ;;  %s459_s18 = sphi %s492_s18, %s15_s18  }
   0x2   : > { %p197_p1 = scmp.lt.s32.totalorder %s459_s18, 3 }
   0x4   : > { %p198_p2 = pnand %p408_p0, %p197_p1 }
   0x5   : > { %p230_p3 = scmp.lt.s32.totalorder (!%p198_p2), %s404_s19, 1 }
   0x6   : > { %201 = sbr.rel (%p198_p2) target bundleno = 155 (0x9b), region = 40 }
   0xb   : > { %v251_v0 = vld [vmem:[%s548_s1 + $0x10] sm:$0xff]  ;;  %v249_v1 = vld [vmem:[%s548_s1] sm:$0xff]  ;;  %v461_v2 = vmov 0   ;;  %v252_v4 = vld [vmem:[%s548_s1 + $0x18] sm:$0xff]  ;;  %s554_s19 = smov (!%p230_p3, %s404_s19), 1 }
   0xc   : > { %450 = vset.pattern.permute.xlu1 %v461_v2  ;;  %449 = vset.pattern.permute.xlu0 %v461_v2  ;;  %v277_v3 = vld [vmem:[%s549_s2] sm:$0xff]  ;;  %v250_v5 = vld [vmem:[%s548_s1 + $0x8] sm:$0xff]  ;;  %v280_v7 = vld [vmem:[%s549_s2 + $0x18] sm:$0xff]  ;;  %s417_s11 = sshll.u32 %s554_s19, 5  ;;  %s418_s15 = sshll.u32 %s554_s19, 4 }
   0xd   : > { %265 = vperm.xlu1 %450, %v251_v0   ;;  %255 = vperm.xlu0 %449, %v249_v1   ;;  %v278_v6 = vld [vmem:[%s549_s2 + $0x8] sm:$0xff]  ;;  %v279_v8 = vld [vmem:[%s549_s2 + $0x10] sm:$0xff]  ;;  %s234_s14 = scalar_lea.vmem %s547_s0, %s417_s11  ;;  %s239_s20 = scalar_lea.vmem %s550_s3, %s418_s15  ;;  %v452_v27 = vld [vmem:[%s551_s4] ss:$0 sm:$0xff] }
   0xe   : > { %451 = vset.pattern.permute.xlu2 %v461_v2  ;;  %v245_v9 = vld [vmem:[%s234_s14] sm:$0xff]  ;;  %v246_v16 = vld [vmem:[%s234_s14 + $0x8] sm:$0xff]  ;;  %v247_v25 = vld [vmem:[%s234_s14 + $0x10] sm:$0xff]  ;;  %s244_s25 = scalar_lea.vmem %s552_s5, %s418_s15 }
   0xf   : > { %283 = vperm.xlu2 %451, %v277_v3   ;;  %v421_v15 = vld [vmem:[%s239_s20] sm:$0xff]   ;;  %v248_v26 = vld [vmem:[%s234_s14 + $0x18] sm:$0xff]  ;;  %v438_v30 = vld [vmem:[%s239_s20 + $0x8] sm:$0xff]  }
  0x10   : > { %v422_v20 = vunpack.c.l.bf16 %v421_v15  ;;  %v423_v24 = vunpack.c.h.bf16 %v421_v15  ;;  %v427_v35 = vunpack.c.h.bf16 %v438_v30  ;;  %v426_v37 = vunpack.c.l.bf16 %v438_v30 }
  0x15   : > { %270 = vperm.xlu1 %450, %v252_v4   ;;  %260 = vperm.xlu0 %449, %v250_v5  }
  0x17   : > { %288 = vperm.xlu2 %451, %v278_v6  }
  0x1d   : > { %298 = vperm.xlu1 %450, %v280_v7   ;;  %293 = vperm.xlu0 %449, %v279_v8  }
  0x69   : > { %v284_v10 = vpop.permute.xlu2 %283 }
  0x71   : > { %v289_v22 = vpop.permute.xlu2 %288 }
  0x7f   : > { %v266_v11 = vpop.permute.xlu1 %265  ;;  %v256_v12 = vpop.permute.xlu0 %255 }
  0x80   : > { %v273_v13 = vmul.f32 %v256_v12, %v245_v9  ;;  %v275_v31 = vmul.f32 %v266_v11, %v247_v25 }
  0x82   : > { %v301_v14 = vadd.f32 %v284_v10, %v273_v13 }
  0x84   : > { %v305_v19 = vmax.f32 %v301_v14, 0.0 }
  0x86   : > { %v317_v28 = vadd.f32 %v422_v20, %v305_v19 }
  0x87   : > { %v271_v17 = vpop.permute.xlu1 %270  ;;  %v261_v18 = vpop.permute.xlu0 %260 }
  0x88   : > { %v274_v21 = vmul.f32 %v261_v18, %v246_v16  ;;  %v276_v32 = vmul.f32 %v271_v17, %v248_v26  ;;  %v325_v38 = vmul.f32 %v452_v27, %v317_v28 }
  0x8a   : > { %v302_v23 = vadd.f32 %v289_v22, %v274_v21 }
  0x8c   : > { %v306_v29 = vmax.f32 %v302_v23, 0.0 }
  0x8e   : > { %v318_v33 = vadd.f32 %v423_v24, %v306_v29 }
  0x8f   : > { %v299_v34 = vpop.permute.xlu1 %298  ;;  %v294_v36 = vpop.permute.xlu0 %293 }
  0x90   : > { %v326_v39 = vmul.f32 %v452_v27, %v318_v33  ;;  %v304_v40 = vadd.f32 %v299_v34, %v276_v32  ;;  %v303_v41 = vadd.f32 %v294_v36, %v275_v31 }
  0x92   : > { %v431_v42 = vpack.c.bf16 %v326_v39, %v325_v38  ;;  %v308_v43 = vmax.f32 %v304_v40, 0.0  ;;  %v307_v44 = vmax.f32 %v303_v41, 0.0 }
  0x94   : > { %v320_v45 = vadd.f32 %v427_v35, %v308_v43  ;;  %v319_v46 = vadd.f32 %v426_v37, %v307_v44  ;;  %432 = vst [vmem:[%s244_s25] sm:$0xff] %v431_v42  }
  0x96   : > { %v328_v47 = vmul.f32 %v452_v27, %v320_v45  ;;  %v327_v48 = vmul.f32 %v452_v27, %v319_v46 }
  0x98   : > { %v436_v49 = vpack.c.bf16 %v328_v47, %v327_v48 }
  0x9a   : > { %439 = vst [vmem:[%s244_s25 + $0x8] sm:$0xff] %v436_v49  }
  0x9b PF: > { %s15_s18 = sadd.s32 1, %s459_s18  }
  0x9c   : > { %p12_p4 = scmp.ge.s32.totalorder %s15_s18, 4  }
  0x9e   :  { %14 = sbr.rel (!%p12_p4) target bundleno = 1 (0x1), region = 73 }

// kernel: model_d_forward.25
= control target key start
LH: loop header
LB: loop body
LE: loop exit
PB: predicated region body
PF: predicated region fallthrough
CT: control target
= control target key end

     0   :  { %s1188_s21 = smov 0   ;;  %s1333_s0 = inlined_call_operand.vmem [shape: bf16[2,32,128], index: 0, kind: input, shape index: {}]   ;;  %s1334_s1 = inlined_call_operand.vmem [shape: bf16[9,32,32], index: 1, kind: input, shape index: {}]   ;;  %s1335_s2 = inlined_call_operand.vmem [shape: f32[32,1], index: 2, kind: input, shape index: {}]   ;;  %s1336_s3 = inlined_call_operand.vmem [shape: f32[1,128], index: 3, kind: input, shape index: {}]   ;;  %s1337_s4 = inlined_call_operand.vmem [shape: f32[2,32,128], index: 4, kind: output, shape index: {0}]   ;;  %s1338_s5 = inlined_call_operand.vmem [shape: f32[2,32,1], index: 5, kind: output, shape index: {1}]   ;;  %s1339_s6 = inlined_call_operand.vmem [shape: f32[2,32,1], index: 6, kind: output, shape index: {2}]  }
   0x1 LB: > { %s944_s22 = sadd.s32 4294967295, %s1142_s21   ;;  %p948_p0 = scmp.ge.s32.totalorder %s1142_s21, 1  ;;  %s1142_s21 = sphi %s1188_s21, %s17_s21  }
   0x2   : > { %p217_p1 = scmp.lt.s32.totalorder %s1142_s21, 3 }
   0x4   : > { %p218_p2 = pnand %p948_p0, %p217_p1 }
   0x5   : > { %p257_p3 = scmp.lt.s32.totalorder (!%p218_p2), %s944_s22, 1  ;;  %s1145_s19 = smov (!%p218_p2), 7  }
   0x6   : > { %221 = sbr.rel (%p218_p2) target bundleno = 489 (0x1e9), region = 36  ;;  %s1146_s20 = smov (!%p218_p2), 5  }
   0x7   : > { %s1148_s24 = smov (!%p218_p2), 6   ;;  %s1149_s25 = smov (!%p218_p2), 123  }
   0x8   : > { %s1151_s27 = smov (!%p218_p2), 127   ;;  %s1152_s28 = smov (!%p218_p2), 121  }
   0xb   : > { %s1341_s22 = smov (!%p257_p3, %s944_s22), 1  ;;  %v1095_v2 = vld [vmem:[%s1334_s1] sm:$0xff]  ;;  %v1096_v3 = vld [vmem:[%s1334_s1 + $0x8] sm:$0xff]  ;;  %vm308_vm0 = vcmask 261120   ;;  %v1101_v4 = vld [vmem:[%s1334_s1 + $0x30] sm:$0xff]  ;;  %v1144_v14 = vmov 0  }
   0xc   : > { %s1089_s23 = sshll.u32 %s1341_s22, 4  ;;  %v1099_v5 = vld [vmem:[%s1334_s1 + $0x20] sm:$0xff]  ;;  %v1097_v6 = vld [vmem:[%s1334_s1 + $0x10] sm:$0xff]  ;;  %v1102_v8 = vld [vmem:[%s1334_s1 + $0x38] sm:$0xff]  ;;  %1132 = vset.pattern.permute.xlu2 %v1144_v14  ;;  %1133 = vset.pattern.permute.xlu0 %v1144_v14  ;;  %s1296_s11 = sshll.u32 %s1341_s22, 5  ;;  %vm802_vm1 = vcmask 7168  }
   0xd   : > { %s261_s26 = scalar_lea.vmem %s1333_s0, %s1089_s23  ;;  %v1103_v7 = vld [vmem:[%s1334_s1 + $0x40] sm:$0xff]  ;;  %v1100_v9 = vld [vmem:[%s1334_s1 + $0x28] sm:$0xff]  ;;  %v1098_v10 = vld [vmem:[%s1334_s1 + $0x18] sm:$0xff]  ;;  %1134 = vset.pattern.permute.xlu1 %v1144_v14  ;;  %s1147_s23 = smov 1  }
   0xe   : > { %v1094_v0 = vld [vmem:[%s261_s26 + $0x8] sm:$0xff]  ;;  %v1093_v1 = vld [vmem:[%s261_s26] sm:$0xff]  ;;  %v1109_v12 = vld [vmem:[%s1334_s1 + $0x70] sm:$0xff]  ;;  %s1150_s26 = smov 122   ;;  %s1305_s16 = scalar_lea.vmem %s1337_s4, %s1296_s11 }
   0xf   : > { %321 = vmatpush.bf16.msra.mxu0 %v1094_v0  ;;  %1113 = vmatpush.bf16.msra.mxu1 %v1094_v0  ;;  %v1104_v11 = vld [vmem:[%s1334_s1 + $0x48] sm:$0xff]  ;;  %v1107_v13 = vld [vmem:[%s1334_s1 + $0x60] sm:$0xff]  ;;  %v1105_v15 = vld [vmem:[%s1334_s1 + $0x50] sm:$0xff]  ;;  %s271_s18 = scalar_lea.vmem %s1338_s5, %s1296_s11 }
  0x10   : > { %477 = vmatpush.bf16.msra.mxu3 %v1094_v0  ;;  %425 = vmatpush.bf16.msra.mxu2 %v1094_v0  ;;  %v1111_v16 = vld [vmem:[%s1334_s1 + $0x80] sm:$0xff]  ;;  %v1110_v17 = vld [vmem:[%s1334_s1 + $0x78] sm:$0xff]  ;;  %v1108_v18 = vld [vmem:[%s1334_s1 + $0x68] sm:$0xff] }
  0x11   : > { %v1106_v19 = vld [vmem:[%s1334_s1 + $0x58] sm:$0xff]  ;;  %v1112_v20 = vld [vmem:[%s1334_s1 + $0x88] sm:$0xff]  ;;  %v754_v21 = vld [vmem:[%s1335_s2] sm:$0xff] }
  0x12   : > { %760 = vperm.xlu2 %1132, %v754_v21   ;;  %v757_v57 = vld [vmem:[%s1335_s2 + $0x18] sm:$0xff]  ;;  %v755_v58 = vld [vmem:[%s1335_s2 + $0x8] sm:$0xff]  ;;  %v756_v60 = vld [vmem:[%s1335_s2 + $0x10] sm:$0xff] }
  0x13   : > { %322 = vmatpush.bf16.msra.mxu0 %v1093_v1  ;;  %1114 = vmatpush.bf16.msra.mxu1 %v1093_v1 }
  0x14   : > { %478 = vmatpush.bf16.msra.mxu3 %v1093_v1  ;;  %426 = vmatpush.bf16.msra.mxu2 %v1093_v1 }
  0x16   : > { %973 = vmatmul.msk.bf16.vlgmr.msra.gmra.mxu0 %vm308_vm0, %v1095_v2  ;;  %974 = vmatmul.msk.bf16.vlgmr.msra.gmra.mxu1 %vm308_vm0, %v1096_v3 }
  0x17   : > { %373 = vmatpush.bf16.msrb.mxu1 %v1094_v0  ;;  %1015 = vmatmul.msk.bf16.vlgmr.msra.gmra.mxu3 %vm308_vm0, %v1101_v4 }
  0x18   : > { %677 = vmatpush.bf16.msrb.mxu3 %v1094_v0  ;;  %1001 = vmatmul.msk.bf16.vlgmr.msra.gmra.mxu2 %vm308_vm0, %v1099_v5 }
  0x19   : > { %625 = vmatpush.bf16.msrb.mxu2 %v1094_v0  ;;  %529 = vmatpush.bf16.msrb.mxu0 %v1094_v0 }
  0x1b   : > { %374 = vmatpush.bf16.msrb.mxu1 %v1093_v1 }
  0x1c   : > { %678 = vmatpush.bf16.msrb.mxu3 %v1093_v1 }
  0x1d   : > { %530 = vmatpush.bf16.msrb.mxu0 %v1093_v1  ;;  %626 = vmatpush.bf16.msrb.mxu2 %v1093_v1 }
  0x1f   : > { %573 = vmatpush.bf16.msra.mxu1 %v1094_v0 }
  0x21   : > { %729 = vmatpush.bf16.msra.mxu0 %v1094_v0 }
  0x23   : > { %574 = vmatpush.bf16.msra.mxu1 %v1093_v1 }
  0x25   : > { %730 = vmatpush.bf16.msra.mxu0 %v1093_v1 }
  0x26   : > { %987 = vmatmul.msk.bf16.vlgmr.msrb.gmra.mxu1 %vm308_vm0, %v1097_v6  ;;  %1029 = vmatmul.msk.bf16.vlgmr.msrb.gmra.mxu0 %vm308_vm0, %v1103_v7 }
  0x27   : > { %1016 = vmatmul.msk.bf16.gmra.mxu3 %vm308_vm0, %v1102_v8 }
  0x28   : > { %1002 = vmatmul.msk.bf16.gmra.mxu2 %vm308_vm0, %v1100_v9 }
  0x36   : > { %988 = vmatmul.msk.bf16.gmra.mxu1 %vm308_vm0, %v1098_v10  ;;  %1030 = vmatmul.msk.bf16.gmra.mxu0 %vm308_vm0, %v1104_v11 }
  0x37   : > { %1071 = vmatmul.msk.bf16.vlgmr.msrb.gmra.mxu3 %vm308_vm0, %v1109_v12 }
  0x38   : > { %1057 = vmatmul.msk.bf16.vlgmr.msrb.gmra.mxu2 %vm308_vm0, %v1107_v13 }
  0x46   : > { %1043 = vmatmul.msk.bf16.vlgmr.msra.gmra.mxu1 %vm308_vm0, %v1105_v15  ;;  %1085 = vmatmul.msk.bf16.vlgmr.msra.gmra.mxu0 %vm308_vm0, %v1111_v16 }
  0x47   : > { %1072 = vmatmul.msk.bf16.gmra.mxu3 %vm308_vm0, %v1110_v17 }
  0x48   : > { %1058 = vmatmul.msk.bf16.gmra.mxu2 %vm308_vm0, %v1108_v18 }
  0x56   : > { %1044 = vmatmul.msk.bf16.gmra.mxu1 %vm308_vm0, %v1106_v19  ;;  %1086 = vmatmul.msk.bf16.gmra.mxu0 %vm308_vm0, %v1112_v20 }
  0x6c   : > { %v761_v61 = vpop.permute.xlu2 %760 }
  0x93   : > { %v324_v22 = vpop.f32.mrf.mxu0  ;;  %v329_v23 = vpop.f32.mrf.mxu1 }
  0x94   : > { %338 = vrot.lane.b32.xlu1 %v329_v23, %s1145_s19  ;;  %334 = vrot.lane.b32.xlu0 %v324_v22, %s1145_s19 }
  0x9a   : > { %v480_v24 = vpop.f32.mrf.mxu3 }
  0x9b   : > { %v428_v25 = vpop.f32.mrf.mxu2  ;;  %v331_v26 = vpop.f32.mrf.mxu1 }
  0x9c   : > { %438 = vrot.lane.b32.xlu2 %v428_v25, %s1146_s20  ;;  %340 = vrot.lane.b32.xlu1 %v331_v26, %s1145_s19  ;;  %v326_v27 = vpop.f32.mrf.mxu0 }
  0x9d   : > { %490 = vrot.lane.b32.xlu0 %v480_v24, %s1147_s23 }
  0xa2   : > { %v482_v28 = vpop.f32.mrf.mxu3 }
  0xa3   : > { %v430_v29 = vpop.f32.mrf.mxu2  ;;  %v376_v30 = vpop.f32.mrf.mxu1 }
  0xa4   : > { %492 = vrot.lane.b32.xlu1 %v482_v28, %s1147_s23  ;;  %386 = vrot.lane.b32.xlu2 %v376_v30, %s1148_s24  ;;  %v1277_v31 = vpop.f32.mrf.mxu0 }
  0xa5   : > { %336 = vrot.lane.b32.xlu0 %v326_v27, %s1145_s19 }
  0xaa   : > { %v485_v32 = vpop.f32.mrf.mxu3 }
  0xab   : > { %v378_v33 = vpop.f32.mrf.mxu1  ;;  %v433_v34 = vpop.f32.mrf.mxu2 }
  0xac   : > { %494 = vrot.lane.b32.xlu2 %v485_v32, %s1147_s23  ;;  %442 = vrot.lane.b32.xlu1 %v433_v34, %s1146_s20  ;;  %v1279_v35 = vpop.f32.mrf.mxu0  ;;  %v1135_v32 = vld [vmem:[%s1336_s3] ss:$0 sm:$0xff] }
  0xad   : > { %440 = vrot.lane.b32.xlu0 %v430_v29, %s1146_s20 }
  0xb2   : > { %v487_v36 = vpop.f32.mrf.mxu3 }
  0xb3   : > { %v381_v37 = vpop.f32.mrf.mxu1  ;;  %v435_v38 = vpop.f32.mrf.mxu2 }
  0xb4   : > { %388 = vrot.lane.b32.xlu2 %v378_v33, %s1148_s24  ;;  %v1281_v39 = vpop.f32.mrf.mxu0 }
  0xb5   : > { %496 = vrot.lane.b32.xlu0 %v487_v36, %s1147_s23  ;;  %s276_s23 = scalar_lea.vmem %s1339_s6, %s1296_s11 }
  0xba   : > { %v680_v40 = vpop.f32.mrf.mxu3 }
  0xbb   : > { %v383_v41 = vpop.f32.mrf.mxu1  ;;  %v628_v42 = vpop.f32.mrf.mxu2 }
  0xbc   : > { %444 = vrot.lane.b32.xlu2 %v435_v38, %s1146_s20  ;;  %392 = vrot.lane.b32.xlu1 %v383_v41, %s1148_s24  ;;  %v1283_v44 = vpop.f32.mrf.mxu0 }
  0xbd   : > { %390 = vrot.lane.b32.xlu0 %v381_v37, %s1148_s24 }
  0xc2   : > { %v682_v43 = vpop.f32.mrf.mxu3 }
  0xc3   : > { %v576_v45 = vpop.f32.mrf.mxu1  ;;  %v630_v47 = vpop.f32.mrf.mxu2 }
  0xc4   : > { %638 = vrot.lane.b32.xlu2 %v628_v42, %s1149_s25  ;;  %692 = vrot.lane.b32.xlu1 %v682_v43, %s1150_s26  ;;  %v732_v48 = vpop.f32.mrf.mxu0 }
  0xc5   : > { %690 = vrot.lane.b32.xlu0 %v680_v40, %s1150_s26 }
  0xca   : > { %v685_v46 = vpop.f32.mrf.mxu3 }
  0xcb   : > { %v578_v49 = vpop.f32.mrf.mxu1  ;;  %v633_v53 = vpop.f32.mrf.mxu2 }
  0xcc   : > { %694 = vrot.lane.b32.xlu2 %v685_v46, %s1150_s26  ;;  %586 = vrot.lane.b32.xlu1 %v576_v45, %s1151_s27  ;;  %v734_v51 = vpop.f32.mrf.mxu0 }
  0xcd   : > { %640 = vrot.lane.b32.xlu0 %v630_v47, %s1149_s25 }
  0xd2   : > { %v687_v50 = vpop.f32.mrf.mxu3 }
  0xd3   : > { %v581_v52 = vpop.f32.mrf.mxu1  ;;  %v635_v56 = vpop.f32.mrf.mxu2 }
  0xd4   : > { %588 = vrot.lane.b32.xlu2 %v578_v49, %s1151_s27  ;;  %742 = vrot.lane.b32.xlu1 %v732_v48, %s1152_s28  ;;  %v737_v54 = vpop.f32.mrf.mxu0 }
  0xd5   : > { %696 = vrot.lane.b32.xlu0 %v687_v50, %s1150_s26 }
  0xdb   : > { %v583_v55 = vpop.f32.mrf.mxu1 }
  0xdc   : > { %642 = vrot.lane.b32.xlu1 %v633_v53, %s1149_s25  ;;  %744 = vrot.lane.b32.xlu2 %v734_v51, %s1152_s28  ;;  %v739_v59 = vpop.f32.mrf.mxu0 }
  0xdd   : > { %590 = vrot.lane.b32.xlu0 %v581_v52, %s1151_s27 }
  0xe4   : > { %592 = vrot.lane.b32.xlu1 %v583_v55, %s1151_s27  ;;  %644 = vrot.lane.b32.xlu2 %v635_v56, %s1149_s25 }
  0xe5   : > { %746 = vrot.lane.b32.xlu0 %v737_v54, %s1152_s28 }
  0xec   : > { %775 = vperm.xlu2 %1132, %v757_v57   ;;  %748 = vrot.lane.b32.xlu1 %v739_v59, %s1152_s28 }
  0xed   : > { %765 = vperm.xlu0 %1133, %v755_v58  }
  0xf4   : > { %770 = vperm.xlu1 %1134, %v756_v60  }
  0xf6   : > { %v439_v62 = vpop.permute.xlu2 %438 }
  0xfe   : > { %v387_v63 = vpop.permute.xlu2 %386 }
 0x106   : > { %v335_v0 = vpop.permute.xlu0 %334  ;;  %v339_v1 = vpop.permute.xlu1 %338 }
 0x107   : > { %v495_v3 = vpop.permute.xlu2 %494  ;;  %v394_v15 = vadd.f32 %v387_v63, %v335_v0 }
 0x109   : > { %v446_v17 = vadd.f32 %v439_v62, %v394_v15 }
 0x10e   : > { %v341_v4 = vpop.permute.xlu1 %340 }
 0x10f   : > { %v491_v2 = vpop.permute.xlu0 %490  ;;  %v389_v6 = vpop.permute.xlu2 %388 }
 0x110   : > { %v498_v20 = vadd.f32 %v491_v2, %v446_v17 }
 0x112   : > { %v542_v21 = vadd.f32 %v1277_v31, %v498_v20 }
 0x116   : > { %v493_v7 = vpop.permute.xlu1 %492 }
 0x117   : > { %v337_v5 = vpop.permute.xlu0 %336  ;;  %v445_v9 = vpop.permute.xlu2 %444 }
 0x118   : > { %v395_v33 = vadd.f32 %v389_v6, %v337_v5 }
 0x11e   : > { %v443_v10 = vpop.permute.xlu1 %442 }
 0x11f   : > { %v441_v8 = vpop.permute.xlu0 %440  ;;  %v639_v12 = vpop.permute.xlu2 %638 }
 0x120   : > { %v447_v36 = vadd.f32 %v441_v8, %v395_v33 }
 0x122   : > { %v499_v42 = vadd.f32 %v493_v7, %v447_v36 }
 0x124   : > { %v543_v48 = vadd.f32 %v1279_v35, %v499_v42 }
 0x127   : > { %v497_v11 = vpop.permute.xlu0 %496  ;;  %v695_v19 = vpop.permute.xlu2 %694 }
 0x12e   : > { %v393_v13 = vpop.permute.xlu1 %392 }
 0x12f   : > { %v391_v14 = vpop.permute.xlu0 %390  ;;  %v589_v26 = vpop.permute.xlu2 %588  ;;  %v397_v31 = vadd.f32 %v393_v13, %v341_v4 }
 0x130   : > { %v396_v41 = vadd.f32 %v391_v14, %v339_v1  ;;  %v595_v50 = vadd.f32 %v589_v26, %v543_v48 }
 0x131   : > { %v449_v40 = vadd.f32 %v445_v9, %v397_v31 }
 0x132   : > { %v448_v46 = vadd.f32 %v443_v10, %v396_v41 }
 0x133   : > { %v501_v47 = vadd.f32 %v497_v11, %v449_v40 }
 0x134   : > { %v500_v51 = vadd.f32 %v495_v3, %v448_v46 }
 0x135   : > { %v545_v52 = vadd.f32 %v1283_v44, %v501_v47 }
 0x136   : > { %v693_v16 = vpop.permute.xlu1 %692  ;;  %v544_v58 = vadd.f32 %v1281_v39, %v500_v51 }
 0x137   : > { %v691_v18 = vpop.permute.xlu0 %690  ;;  %v745_v38 = vpop.permute.xlu2 %744 }
 0x13e   : > { %v587_v22 = vpop.permute.xlu1 %586 }
 0x13f   : > { %v594_v23 = vadd.f32 %v587_v22, %v542_v21  ;;  %v641_v24 = vpop.permute.xlu0 %640  ;;  %v645_v54 = vpop.permute.xlu2 %644 }
 0x140   : > { %v647_v53 = vadd.f32 %v641_v24, %v595_v50 }
 0x141   : > { %v646_v25 = vadd.f32 %v639_v12, %v594_v23 }
 0x142   : > { %v699_v60 = vadd.f32 %v693_v16, %v647_v53 }
 0x143   : > { %v698_v27 = vadd.f32 %v691_v18, %v646_v25 }
 0x144   : > { %v751_v35 = vadd.f32 %v745_v38, %v699_v60 }
 0x146   : > { %v743_v28 = vpop.permute.xlu1 %742 }
 0x147   : > { %v697_v29 = vpop.permute.xlu0 %696  ;;  %v750_v30 = vadd.f32 %v743_v28, %v698_v27  ;;  %v776_v44 = vpop.permute.xlu2 %775 }
 0x149   : > { %v778_v34 = vadd.f32 %v761_v61, %v750_v30 }
 0x14b   : > { %783 = vst [vmem:[%s1305_s16] sm:$0xff] %v778_v34  ;;  %v790_v37 = vmul.f32 %v1135_v32, %v778_v34 }
 0x14d   : > { %794 = vadd.xlane.f32.xlu1 %v790_v37  ;;  %v807_v49 = vmul.f32 %v790_v37, %v778_v34 }
 0x14e   : > { %v643_v43 = vpop.permute.xlu1 %642 }
 0x14f   : > { %v591_v45 = vpop.permute.xlu0 %590 }
 0x150   : > { %v596_v61 = vadd.f32 %v591_v45, %v544_v58 }
 0x152   : > { %v648_v0 = vadd.f32 %v643_v43, %v596_v61 }
 0x154   : > { %v700_v6 = vadd.f32 %v695_v19, %v648_v0 }
 0x155   : > { %811 = vadd.xlane.f32.xlu1 %v807_v49 }
 0x156   : > { %v593_v55 = vpop.permute.xlu1 %592 }
 0x157   : > { %v597_v56 = vadd.f32 %v593_v55, %v545_v52  ;;  %v747_v57 = vpop.permute.xlu0 %746 }
 0x158   : > { %v752_v7 = vadd.f32 %v747_v57, %v700_v6 }
 0x159   : > { %v649_v59 = vadd.f32 %v645_v54, %v597_v56 }
 0x15b   : > { %v701_v62 = vadd.f32 %v697_v29, %v649_v59 }
 0x15e   : > { %v749_v63 = vpop.permute.xlu1 %748 }
 0x15f   : > { %v766_v1 = vpop.permute.xlu0 %765  ;;  %v753_v2 = vadd.f32 %v749_v63, %v701_v62 }
 0x160   : > { %v779_v3 = vadd.f32 %v766_v1, %v751_v35 }
 0x161   : > { %v781_v4 = vadd.f32 %v776_v44, %v753_v2 }
 0x162   : > { %784 = vst [vmem:[%s1305_s16 + $0x8] sm:$0xff] %v779_v3  ;;  %v791_v5 = vmul.f32 %v1135_v32, %v779_v3 }
 0x163   : > { %786 = vst [vmem:[%s1305_s16 + $0x18] sm:$0xff] %v781_v4  ;;  %v793_v39 = vmul.f32 %v1135_v32, %v781_v4 }
 0x164   : > { %796 = vadd.xlane.f32.xlu2 %v791_v5  ;;  %v808_v13 = vmul.f32 %v791_v5, %v779_v3 }
 0x165   : > { %v810_v8 = vmul.f32 %v793_v39, %v781_v4 }
 0x166   : > { %v771_v9 = vpop.permute.xlu1 %770 }
 0x167   : > { %v780_v10 = vadd.f32 %v771_v9, %v752_v7  ;;  %817 = vadd.xlane.f32.xlu1 %v810_v8 }
 0x169   : > { %785 = vst [vmem:[%s1305_s16 + $0x10] sm:$0xff] %v780_v10  ;;  %v792_v11 = vmul.f32 %v1135_v32, %v780_v10 }
 0x16b   : > { %798 = vadd.xlane.f32.xlu0 %v792_v11  ;;  %v809_v12 = vmul.f32 %v792_v11, %v780_v10 }
 0x16c   : > { %800 = vadd.xlane.f32.xlu2 %v793_v39 }
 0x173   : > { %815 = vadd.xlane.f32.xlu0 %v809_v12 }
 0x174   : > { %813 = vadd.xlane.f32.xlu2 %v808_v13 }
 0x1c0   : > { %v795_v14 = vpop.xlane.xlu1 %794 }
 0x1c1   : > { %803 = vst.msk [vmem:[%s271_s18] sm:$0xff] %vm802_vm1, %v795_v14 }
 0x1c8   : > { %v812_v15 = vpop.xlane.xlu1 %811 }
 0x1c9   : > { %819 = vst.msk [vmem:[%s276_s23] sm:$0xff] %vm802_vm1, %v812_v15 }
 0x1d7   : > { %v797_v16 = vpop.xlane.xlu2 %796 }
 0x1d8   : > { %804 = vst.msk [vmem:[%s271_s18 + $0x8] sm:$0xff] %vm802_vm1, %v797_v16 }
 0x1da   : > { %v818_v17 = vpop.xlane.xlu1 %817 }
 0x1db   : > { %822 = vst.msk [vmem:[%s276_s23 + $0x18] sm:$0xff] %vm802_vm1, %v818_v17 }
 0x1de   : > { %v799_v18 = vpop.xlane.xlu0 %798 }
 0x1df   : > { %805 = vst.msk [vmem:[%s271_s18 + $0x10] sm:$0xff] %vm802_vm1, %v799_v18  ;;  %v801_v19 = vpop.xlane.xlu2 %800 }
 0x1e0   : > { %806 = vst.msk [vmem:[%s271_s18 + $0x18] sm:$0xff] %vm802_vm1, %v801_v19 }
 0x1e6   : > { %v816_v20 = vpop.xlane.xlu0 %815 }
 0x1e7   : > { %821 = vst.msk [vmem:[%s276_s23 + $0x10] sm:$0xff] %vm802_vm1, %v816_v20  ;;  %v814_v21 = vpop.xlane.xlu2 %813 }
 0x1e8   : > { %820 = vst.msk [vmem:[%s276_s23 + $0x8] sm:$0xff] %vm802_vm1, %v814_v21 }
 0x1e9 PF: > { %s17_s21 = sadd.s32 1, %s1142_s21  }
 0x1ea   : > { %p14_p4 = scmp.ge.s32.totalorder %s17_s21, 4  }
 0x1ec   :  { %16 = sbr.rel (!%p14_p4) target bundleno = 1 (0x1), region = 98 }

// kernel: model_d_forward.26
= control target key start
LH: loop header
LB: loop body
LE: loop exit
PB: predicated region body
PF: predicated region fallthrough
CT: control target
= control target key end

     0   :  { %s1296_s27 = smov 0   ;;  %s1476_s0 = inlined_call_operand.vmem [shape: f32[2,32,128], index: 0, kind: input, shape index: {}]   ;;  %s1477_s1 = inlined_call_operand.vmem [shape: f32[32,1], index: 1, kind: input, shape index: {}]   ;;  %s1478_s2 = inlined_call_operand.vmem [shape: f32[32,1], index: 2, kind: input, shape index: {}]   ;;  %s1479_s3 = inlined_call_operand.vmem [shape: bf16[9,32,32], index: 3, kind: input, shape index: {}]   ;;  %s1480_s4 = inlined_call_operand.vmem [shape: f32[32,1], index: 4, kind: input, shape index: {}]   ;;  %s1481_s5 = inlined_call_operand.vmem [shape: f32[1,128], index: 5, kind: input, shape index: {}]   ;;  %s1482_s6 = inlined_call_operand.vmem [shape: f32[2,32,128], index: 6, kind: output, shape index: {0}]   ;;  %s1483_s7 = inlined_call_operand.vmem [shape: f32[2,32,1], index: 7, kind: output, shape index: {1}]   ;;  %s1484_s8 = inlined_call_operand.vmem [shape: f32[2,32,1], index: 8, kind: output, shape index: {2}]  }
   0x1 LB: > { %s1052_s28 = sadd.s32 4294967295, %s1240_s27   ;;  %p1056_p0 = scmp.ge.s32.totalorder %s1240_s27, 1  ;;  %s1240_s27 = sphi %s1296_s27, %s19_s27  }
   0x2   : > { %p267_p1 = scmp.lt.s32.totalorder %s1240_s27, 3 }
   0x4   : > { %p268_p2 = pnand %p1056_p0, %p267_p1 }
   0x5   : > { %p311_p3 = scmp.lt.s32.totalorder (!%p268_p2), %s1052_s28, 1  ;;  %s1243_s9 = smov (!%p268_p2), 7  }
   0x6   : > { %271 = sbr.rel (%p268_p2) target bundleno = 623 (0x26f), region = 44  ;;  %s1245_s11 = smov (!%p268_p2), 5  }
   0x7   : > { %s1246_s12 = smov (!%p268_p2), 6   ;;  %s1248_s13 = smov (!%p268_p2), 122  }
   0x8   : > { %s1249_s14 = smov (!%p268_p2), 127   ;;  %s1250_s15 = smov (!%p268_p2), 121  }
   0xb   : > { %v366_v0 = vld [vmem:[%s1478_s2 + $0x10] sm:$0xff]  ;;  %v1242_v2 = vmov 0   ;;  %v336_v3 = vld [vmem:[%s1477_s1] sm:$0xff]  ;;  %v367_v4 = vld [vmem:[%s1478_s2 + $0x18] sm:$0xff]  ;;  %s1486_s28 = smov (!%p311_p3, %s1052_s28), 1  ;;  %vm420_vm0 = vcmask 261120  }
   0xc   : > { %v338_v1 = vld [vmem:[%s1477_s1 + $0x10] sm:$0xff]  ;;  %1231 = vset.pattern.permute.xlu1 %v1242_v2  ;;  %1230 = vset.pattern.permute.xlu0 %v1242_v2  ;;  %v339_v5 = vld [vmem:[%s1477_s1 + $0x18] sm:$0xff]  ;;  %v337_v6 = vld [vmem:[%s1477_s1 + $0x8] sm:$0xff]  ;;  %s1338_s29 = sshll.u32 %s1486_s28, 5  ;;  %s1247_s28 = smov 123   ;;  %vm910_vm1 = vcmask 7168  }
   0xd   : > { %380 = vperm.xlu1 %1231, %v366_v0   ;;  %352 = vperm.xlu0 %1230, %v338_v1   ;;  %v365_v7 = vld [vmem:[%s1478_s2 + $0x8] sm:$0xff]  ;;  %v364_v8 = vld [vmem:[%s1478_s2] sm:$0xff]  ;;  %s315_s10 = scalar_lea.vmem %s1476_s0, %s1338_s29  ;;  %v1199_v44 = vld [vmem:[%s1479_s3 + $0x30] sm:$0xff]  ;;  %s1445_s22 = scalar_lea.vmem %s1482_s6, %s1338_s29 }
   0xe   : > { %1232 = vset.pattern.permute.xlu2 %v1242_v2  ;;  %v867_v9 = vld [vmem:[%s1480_s4 + $0x8] sm:$0xff]  ;;  %v866_v10 = vld [vmem:[%s1480_s4] sm:$0xff]  ;;  %v334_v13 = vld [vmem:[%s315_s10 + $0x10] sm:$0xff]  ;;  %s325_s25 = scalar_lea.vmem %s1483_s7, %s1338_s29 }
   0xf   : > { %342 = vperm.xlu2 %1232, %v336_v3   ;;  %v335_v16 = vld [vmem:[%s315_s10 + $0x18] sm:$0xff]  ;;  %v1347_v21 = vld [vmem:[%s1481_s5] ss:$0 sm:$0xff]  ;;  %v333_v25 = vld [vmem:[%s315_s10 + $0x8] sm:$0xff] }
  0x10   : > { %v332_v24 = vld [vmem:[%s315_s10] sm:$0xff]  ;;  %v1194_v43 = vld [vmem:[%s1479_s3 + $0x8] sm:$0xff]  ;;  %v1195_v46 = vld [vmem:[%s1479_s3 + $0x10] sm:$0xff]  ;;  %s1244_s10 = smov 1  }
  0x11   : > { %v1193_v42 = vld [vmem:[%s1479_s3] sm:$0xff]  ;;  %v1200_v48 = vld [vmem:[%s1479_s3 + $0x38] sm:$0xff]  ;;  %v1198_v49 = vld [vmem:[%s1479_s3 + $0x28] sm:$0xff] }
  0x12   : > { %v1197_v45 = vld [vmem:[%s1479_s3 + $0x20] sm:$0xff]  ;;  %v1196_v50 = vld [vmem:[%s1479_s3 + $0x18] sm:$0xff]  ;;  %v1202_v51 = vld [vmem:[%s1479_s3 + $0x48] sm:$0xff] }
  0x13   : > { %v1201_v47 = vld [vmem:[%s1479_s3 + $0x40] sm:$0xff]  ;;  %v1207_v52 = vld [vmem:[%s1479_s3 + $0x70] sm:$0xff]  ;;  %v1208_v56 = vld [vmem:[%s1479_s3 + $0x78] sm:$0xff] }
  0x14   : > { %v1205_v53 = vld [vmem:[%s1479_s3 + $0x60] sm:$0xff]  ;;  %v1203_v54 = vld [vmem:[%s1479_s3 + $0x50] sm:$0xff]  ;;  %v1206_v57 = vld [vmem:[%s1479_s3 + $0x68] sm:$0xff] }
  0x15   : > { %385 = vperm.xlu1 %1231, %v367_v4   ;;  %357 = vperm.xlu0 %1230, %v339_v5   ;;  %v1209_v55 = vld [vmem:[%s1479_s3 + $0x80] sm:$0xff]  ;;  %v1204_v58 = vld [vmem:[%s1479_s3 + $0x58] sm:$0xff]  ;;  %v1210_v59 = vld [vmem:[%s1479_s3 + $0x88] sm:$0xff] }
  0x17   : > { %347 = vperm.xlu2 %1232, %v337_v6  }
  0x1d   : > { %375 = vperm.xlu1 %1231, %v365_v7   ;;  %370 = vperm.xlu0 %1230, %v364_v8  }
  0x1f   : > { %877 = vperm.xlu2 %1232, %v867_v9  }
  0x25   : > { %872 = vperm.xlu1 %1231, %v866_v10  }
  0x69   : > { %v343_v15 = vpop.permute.xlu2 %342 }
  0x6a   : > { %v360_v28 = vmul.f32 %v343_v15, %v332_v24 }
  0x71   : > { %v348_v27 = vpop.permute.xlu2 %347 }
  0x72   : > { %v361_v29 = vmul.f32 %v348_v27, %v333_v25 }
  0x7f   : > { %v381_v11 = vpop.permute.xlu1 %380  ;;  %v353_v12 = vpop.permute.xlu0 %352 }
  0x80   : > { %v362_v14 = vmul.f32 %v353_v12, %v334_v13 }
  0x82   : > { %v390_v17 = vadd.f32 %v381_v11, %v362_v14 }
  0x84   : > { %v394_v22 = vmax.f32 %v390_v17, 0.0 }
  0x86   : > { %v402_v30 = vmul.f32 %v1347_v21, %v394_v22 }
  0x87   : > { %v386_v18 = vpop.permute.xlu1 %385  ;;  %v358_v19 = vpop.permute.xlu0 %357 }
  0x88   : > { %v363_v20 = vmul.f32 %v358_v19, %v335_v16 }
  0x8a   : > { %v391_v23 = vadd.f32 %v386_v18, %v363_v20 }
  0x8c   : > { %v395_v26 = vmax.f32 %v391_v23, 0.0 }
  0x8e   : > { %v403_v31 = vmul.f32 %v1347_v21, %v395_v26 }
  0x8f   : > { %v376_v32 = vpop.permute.xlu1 %375  ;;  %v371_v33 = vpop.permute.xlu0 %370 }
  0x90   : > { %v405_v34 = vpack.c.bf16 %v403_v31, %v402_v30  ;;  %v389_v35 = vadd.f32 %v376_v32, %v361_v29  ;;  %v388_v36 = vadd.f32 %v371_v33, %v360_v28  ;;  %v869_v32 = vld [vmem:[%s1480_s4 + $0x18] sm:$0xff] }
  0x92   : > { %v393_v37 = vmax.f32 %v389_v35, 0.0  ;;  %v392_v38 = vmax.f32 %v388_v36, 0.0  ;;  %433 = vmatpush.bf16.msra.mxu0 %v405_v34  ;;  %1211 = vmatpush.bf16.msra.mxu1 %v405_v34  ;;  %v878_v35 = vpop.permute.xlu2 %877 }
  0x93   : > { %537 = vmatpush.bf16.msra.mxu2 %v405_v34  ;;  %589 = vmatpush.bf16.msra.mxu3 %v405_v34 }
  0x94   : > { %v401_v39 = vmul.f32 %v1347_v21, %v393_v37  ;;  %v400_v40 = vmul.f32 %v1347_v21, %v392_v38 }
  0x96   : > { %v404_v41 = vpack.c.bf16 %v401_v39, %v400_v40 }
  0x97   : > { %v873_v37 = vpop.permute.xlu1 %872 }
  0x98   : > { %434 = vmatpush.bf16.msra.mxu0 %v404_v41  ;;  %1212 = vmatpush.bf16.msra.mxu1 %v404_v41 }
  0x99   : > { %538 = vmatpush.bf16.msra.mxu2 %v404_v41  ;;  %590 = vmatpush.bf16.msra.mxu3 %v404_v41 }
  0x9b   : > { %1073 = vmatmul.msk.bf16.vlgmr.msra.gmra.mxu0 %vm420_vm0, %v1193_v42  ;;  %1074 = vmatmul.msk.bf16.vlgmr.msra.gmra.mxu1 %vm420_vm0, %v1194_v43 }
  0x9c   : > { %485 = vmatpush.bf16.msrb.mxu1 %v405_v34  ;;  %641 = vmatpush.bf16.msrb.mxu0 %v405_v34 }
  0x9d   : > { %737 = vmatpush.bf16.msrb.mxu2 %v405_v34  ;;  %789 = vmatpush.bf16.msrb.mxu3 %v405_v34 }
  0x9e   : > { %1115 = vmatmul.msk.bf16.vlgmr.msra.gmra.mxu3 %vm420_vm0, %v1199_v44  ;;  %1101 = vmatmul.msk.bf16.vlgmr.msra.gmra.mxu2 %vm420_vm0, %v1197_v45 }
  0xa0   : > { %486 = vmatpush.bf16.msrb.mxu1 %v404_v41  ;;  %642 = vmatpush.bf16.msrb.mxu0 %v404_v41 }
  0xa1   : > { %738 = vmatpush.bf16.msrb.mxu2 %v404_v41  ;;  %790 = vmatpush.bf16.msrb.mxu3 %v404_v41 }
  0xa4   : > { %685 = vmatpush.bf16.msra.mxu1 %v405_v34  ;;  %841 = vmatpush.bf16.msra.mxu0 %v405_v34  ;;  %v868_v34 = vld [vmem:[%s1480_s4 + $0x10] sm:$0xff] }
  0xa8   : > { %686 = vmatpush.bf16.msra.mxu1 %v404_v41  ;;  %842 = vmatpush.bf16.msra.mxu0 %v404_v41 }
  0xab   : > { %1087 = vmatmul.msk.bf16.vlgmr.msrb.gmra.mxu1 %vm420_vm0, %v1195_v46  ;;  %1129 = vmatmul.msk.bf16.vlgmr.msrb.gmra.mxu0 %vm420_vm0, %v1201_v47 }
  0xae   : > { %1116 = vmatmul.msk.bf16.gmra.mxu3 %vm420_vm0, %v1200_v48  ;;  %1102 = vmatmul.msk.bf16.gmra.mxu2 %vm420_vm0, %v1198_v49 }
  0xbb   : > { %1088 = vmatmul.msk.bf16.gmra.mxu1 %vm420_vm0, %v1196_v50  ;;  %1130 = vmatmul.msk.bf16.gmra.mxu0 %vm420_vm0, %v1202_v51 }
  0xbe   : > { %1171 = vmatmul.msk.bf16.vlgmr.msrb.gmra.mxu3 %vm420_vm0, %v1207_v52  ;;  %1157 = vmatmul.msk.bf16.vlgmr.msrb.gmra.mxu2 %vm420_vm0, %v1205_v53 }
  0xcb   : > { %1143 = vmatmul.msk.bf16.vlgmr.msra.gmra.mxu1 %vm420_vm0, %v1203_v54  ;;  %1185 = vmatmul.msk.bf16.vlgmr.msra.gmra.mxu0 %vm420_vm0, %v1209_v55 }
  0xce   : > { %1172 = vmatmul.msk.bf16.gmra.mxu3 %vm420_vm0, %v1208_v56  ;;  %1158 = vmatmul.msk.bf16.gmra.mxu2 %vm420_vm0, %v1206_v57 }
  0xdb   : > { %1144 = vmatmul.msk.bf16.gmra.mxu1 %vm420_vm0, %v1204_v58  ;;  %1186 = vmatmul.msk.bf16.gmra.mxu0 %vm420_vm0, %v1210_v59 }
 0x118   : > { %v436_v60 = vpop.f32.mrf.mxu0  ;;  %v441_v61 = vpop.f32.mrf.mxu1 }
 0x119   : > { %450 = vrot.lane.b32.xlu1 %v441_v61, %s1243_s9  ;;  %446 = vrot.lane.b32.xlu2 %v436_v60, %s1243_s9 }
 0x120   : > { %v438_v0 = vpop.f32.mrf.mxu0  ;;  %v443_v1 = vpop.f32.mrf.mxu1 }
 0x121   : > { %v592_v62 = vpop.f32.mrf.mxu3  ;;  %v540_v63 = vpop.f32.mrf.mxu2  ;;  %448 = vrot.lane.b32.xlu0 %v438_v0, %s1243_s9 }
 0x122   : > { %602 = vrot.lane.b32.xlu2 %v592_v62, %s1244_s10  ;;  %550 = vrot.lane.b32.xlu1 %v540_v63, %s1245_s11 }
 0x128   : > { %v488_v3 = vpop.f32.mrf.mxu1  ;;  %v1425_v5 = vpop.f32.mrf.mxu0 }
 0x129   : > { %v594_v2 = vpop.f32.mrf.mxu3  ;;  %v542_v4 = vpop.f32.mrf.mxu2 }
 0x12a   : > { %452 = vrot.lane.b32.xlu2 %v443_v1, %s1243_s9  ;;  %604 = vrot.lane.b32.xlu0 %v594_v2, %s1244_s10  ;;  %s330_s9 = scalar_lea.vmem %s1484_s8, %s1338_s29 }
 0x130   : > { %v490_v7 = vpop.f32.mrf.mxu1  ;;  %v1427_v9 = vpop.f32.mrf.mxu0 }
 0x131   : > { %v597_v6 = vpop.f32.mrf.mxu3  ;;  %v545_v8 = vpop.f32.mrf.mxu2 }
 0x132   : > { %606 = vrot.lane.b32.xlu1 %v597_v6, %s1244_s10  ;;  %552 = vrot.lane.b32.xlu2 %v542_v4, %s1245_s11 }
 0x133   : > { %498 = vrot.lane.b32.xlu0 %v488_v3, %s1246_s12 }
 0x138   : > { %v493_v11 = vpop.f32.mrf.mxu1  ;;  %v1429_v13 = vpop.f32.mrf.mxu0 }
 0x139   : > { %v599_v10 = vpop.f32.mrf.mxu3  ;;  %v547_v12 = vpop.f32.mrf.mxu2 }
 0x13a   : > { %500 = vrot.lane.b32.xlu1 %v490_v7, %s1246_s12  ;;  %608 = vrot.lane.b32.xlu2 %v599_v10, %s1244_s10 }
 0x13b   : > { %554 = vrot.lane.b32.xlu0 %v545_v8, %s1245_s11 }
 0x140   : > { %v495_v15 = vpop.f32.mrf.mxu1  ;;  %v1431_v18 = vpop.f32.mrf.mxu0 }
 0x141   : > { %v792_v14 = vpop.f32.mrf.mxu3  ;;  %v740_v16 = vpop.f32.mrf.mxu2 }
 0x142   : > { %556 = vrot.lane.b32.xlu1 %v547_v12, %s1245_s11  ;;  %502 = vrot.lane.b32.xlu2 %v493_v11, %s1246_s12 }
 0x143   : > { %504 = vrot.lane.b32.xlu0 %v495_v15, %s1246_s12 }
 0x148   : > { %v688_v19 = vpop.f32.mrf.mxu1  ;;  %v844_v23 = vpop.f32.mrf.mxu0 }
 0x149   : > { %v794_v17 = vpop.f32.mrf.mxu3  ;;  %v742_v20 = vpop.f32.mrf.mxu2 }
 0x14a   : > { %750 = vrot.lane.b32.xlu1 %v740_v16, %s1247_s28  ;;  %802 = vrot.lane.b32.xlu2 %v792_v14, %s1248_s13 }
 0x14b   : > { %804 = vrot.lane.b32.xlu0 %v794_v17, %s1248_s13 }
 0x150   : > { %v690_v24 = vpop.f32.mrf.mxu1  ;;  %v846_v26 = vpop.f32.mrf.mxu0 }
 0x151   : > { %v797_v22 = vpop.f32.mrf.mxu3  ;;  %v745_v27 = vpop.f32.mrf.mxu2 }
 0x152   : > { %806 = vrot.lane.b32.xlu1 %v797_v22, %s1248_s13  ;;  %752 = vrot.lane.b32.xlu2 %v742_v20, %s1247_s28 }
 0x153   : > { %698 = vrot.lane.b32.xlu0 %v688_v19, %s1249_s14 }
 0x158   : > { %v693_v28 = vpop.f32.mrf.mxu1  ;;  %v849_v29 = vpop.f32.mrf.mxu0 }
 0x159   : > { %v799_v25 = vpop.f32.mrf.mxu3  ;;  %v747_v30 = vpop.f32.mrf.mxu2 }
 0x15a   : > { %700 = vrot.lane.b32.xlu1 %v690_v24, %s1249_s14  ;;  %808 = vrot.lane.b32.xlu2 %v799_v25, %s1248_s13 }
 0x15b   : > { %854 = vrot.lane.b32.xlu0 %v844_v23, %s1250_s15 }
 0x160   : > { %v695_v31 = vpop.f32.mrf.mxu1  ;;  %v851_v33 = vpop.f32.mrf.mxu0 }
 0x162   : > { %856 = vrot.lane.b32.xlu1 %v846_v26, %s1250_s15  ;;  %702 = vrot.lane.b32.xlu2 %v693_v28, %s1249_s14 }
 0x163   : > { %754 = vrot.lane.b32.xlu0 %v745_v27, %s1247_s28 }
 0x16a   : > { %756 = vrot.lane.b32.xlu1 %v747_v30, %s1247_s28  ;;  %858 = vrot.lane.b32.xlu2 %v849_v29, %s1250_s15 }
 0x16b   : > { %704 = vrot.lane.b32.xlu0 %v695_v31, %s1249_s14 }
 0x172   : > { %887 = vperm.xlu1 %1231, %v869_v32  }
 0x173   : > { %860 = vrot.lane.b32.xlu0 %v851_v33, %s1250_s15  ;;  %v447_v36 = vpop.permute.xlu2 %446 }
 0x17b   : > { %882 = vperm.xlu0 %1230, %v868_v34  }
 0x17c   : > { %v603_v38 = vpop.permute.xlu2 %602 }
 0x184   : > { %v453_v41 = vpop.permute.xlu2 %452 }
 0x18b   : > { %v451_v39 = vpop.permute.xlu1 %450 }
 0x18c   : > { %v553_v44 = vpop.permute.xlu2 %552 }
 0x193   : > { %v449_v40 = vpop.permute.xlu0 %448 }
 0x194   : > { %v551_v42 = vpop.permute.xlu1 %550  ;;  %v609_v48 = vpop.permute.xlu2 %608 }
 0x19c   : > { %v605_v43 = vpop.permute.xlu0 %604  ;;  %v503_v52 = vpop.permute.xlu2 %502 }
 0x19d   : > { %v508_v23 = vadd.f32 %v503_v52, %v451_v39 }
 0x1a4   : > { %v607_v45 = vpop.permute.xlu1 %606  ;;  %v803_v59 = vpop.permute.xlu2 %802 }
 0x1a5   : > { %v499_v46 = vpop.permute.xlu0 %498 }
 0x1a6   : > { %v506_v53 = vadd.f32 %v499_v46, %v447_v36 }
 0x1a8   : > { %v558_v54 = vadd.f32 %v551_v42, %v506_v53 }
 0x1aa   : > { %v610_v58 = vadd.f32 %v603_v38, %v558_v54 }
 0x1ac   : > { %v501_v47 = vpop.permute.xlu1 %500  ;;  %v654_v62 = vadd.f32 %v1425_v5, %v610_v58  ;;  %v753_v3 = vpop.permute.xlu2 %752 }
 0x1ad   : > { %v555_v49 = vpop.permute.xlu0 %554  ;;  %v507_v57 = vadd.f32 %v501_v47, %v449_v40 }
 0x1ae   : > { %v560_v25 = vadd.f32 %v555_v49, %v508_v23 }
 0x1af   : > { %v559_v60 = vadd.f32 %v553_v44, %v507_v57 }
 0x1b0   : > { %v612_v29 = vadd.f32 %v607_v45, %v560_v25 }
 0x1b1   : > { %v611_v1 = vadd.f32 %v605_v43, %v559_v60 }
 0x1b2   : > { %v656_v36 = vadd.f32 %v1429_v13, %v612_v29 }
 0x1b3   : > { %v655_v4 = vadd.f32 %v1427_v9, %v611_v1 }
 0x1b4   : > { %v557_v50 = vpop.permute.xlu1 %556  ;;  %v809_v19 = vpop.permute.xlu2 %808 }
 0x1b5   : > { %v505_v51 = vpop.permute.xlu0 %504 }
 0x1b6   : > { %v509_v5 = vadd.f32 %v505_v51, %v453_v41 }
 0x1b8   : > { %v561_v9 = vadd.f32 %v557_v50, %v509_v5 }
 0x1ba   : > { %v613_v26 = vadd.f32 %v609_v48, %v561_v9 }
 0x1bc   : > { %v751_v55 = vpop.permute.xlu1 %750  ;;  %v657_v30 = vadd.f32 %v1431_v18, %v613_v26  ;;  %v703_v34 = vpop.permute.xlu2 %702 }
 0x1bd   : > { %v805_v56 = vpop.permute.xlu0 %804  ;;  %v708_v38 = vadd.f32 %v703_v34, %v656_v36 }
 0x1c4   : > { %v807_v61 = vpop.permute.xlu1 %806  ;;  %v859_v46 = vpop.permute.xlu2 %858 }
 0x1c5   : > { %v699_v63 = vpop.permute.xlu0 %698 }
 0x1c6   : > { %v706_v0 = vadd.f32 %v699_v63, %v654_v62 }
 0x1c8   : > { %v758_v2 = vadd.f32 %v751_v55, %v706_v0 }
 0x1ca   : > { %v810_v7 = vadd.f32 %v803_v59, %v758_v2 }
 0x1cc   : > { %v701_v6 = vpop.permute.xlu1 %700 }
 0x1cd   : > { %v707_v8 = vadd.f32 %v701_v6, %v655_v4  ;;  %v855_v10 = vpop.permute.xlu0 %854 }
 0x1ce   : > { %v862_v11 = vadd.f32 %v855_v10, %v810_v7 }
 0x1cf   : > { %v759_v12 = vadd.f32 %v753_v3, %v707_v8 }
 0x1d0   : > { %v890_v14 = vadd.f32 %v873_v37, %v862_v11 }
 0x1d1   : > { %v811_v16 = vadd.f32 %v805_v56, %v759_v12 }
 0x1d2   : > { %894 = vst [vmem:[%s1445_s22] sm:$0xff] %v890_v14  ;;  %v898_v15 = vmul.f32 %v1347_v21, %v890_v14 }
 0x1d4   : > { %v857_v17 = vpop.permute.xlu1 %856  ;;  %902 = vadd.xlane.f32.xlu2 %v898_v15  ;;  %v915_v28 = vmul.f32 %v898_v15, %v890_v14 }
 0x1d5   : > { %v863_v20 = vadd.f32 %v857_v17, %v811_v16  ;;  %v755_v22 = vpop.permute.xlu0 %754 }
 0x1d6   : > { %v760_v39 = vadd.f32 %v755_v22, %v708_v38 }
 0x1d7   : > { %v891_v24 = vadd.f32 %v878_v35, %v863_v20 }
 0x1d8   : > { %v812_v44 = vadd.f32 %v807_v61, %v760_v39 }
 0x1d9   : > { %895 = vst [vmem:[%s1445_s22 + $0x8] sm:$0xff] %v891_v24  ;;  %v899_v27 = vmul.f32 %v1347_v21, %v891_v24 }
 0x1da   : > { %v864_v13 = vadd.f32 %v859_v46, %v812_v44 }
 0x1db   : > { %904 = vadd.xlane.f32.xlu0 %v899_v27  ;;  %v916_v35 = vmul.f32 %v899_v27, %v891_v24 }
 0x1dc   : > { %919 = vadd.xlane.f32.xlu2 %v915_v28  ;;  %v757_v31 = vpop.permute.xlu1 %756 }
 0x1dd   : > { %v705_v32 = vpop.permute.xlu0 %704 }
 0x1de   : > { %v709_v33 = vadd.f32 %v705_v32, %v657_v30 }
 0x1e0   : > { %v761_v37 = vadd.f32 %v757_v31, %v709_v33 }
 0x1e2   : > { %v813_v40 = vadd.f32 %v809_v19, %v761_v37 }
 0x1e3   : > { %921 = vadd.xlane.f32.xlu0 %v916_v35 }
 0x1e4   : > { %v888_v43 = vpop.permute.xlu1 %887 }
 0x1e5   : > { %v861_v41 = vpop.permute.xlu0 %860 }
 0x1e6   : > { %v865_v42 = vadd.f32 %v861_v41, %v813_v40 }
 0x1e8   : > { %v893_v18 = vadd.f32 %v888_v43, %v865_v42 }
 0x1ea   : > { %897 = vst [vmem:[%s1445_s22 + $0x18] sm:$0xff] %v893_v18  ;;  %v901_v45 = vmul.f32 %v1347_v21, %v893_v18 }
 0x1ec   : > { %908 = vadd.xlane.f32.xlu2 %v901_v45  ;;  %v918_v50 = vmul.f32 %v901_v45, %v893_v18 }
 0x1ed   : > { %v883_v47 = vpop.permute.xlu0 %882 }
 0x1ee   : > { %v892_v48 = vadd.f32 %v883_v47, %v864_v13 }
 0x1f0   : > { %896 = vst [vmem:[%s1445_s22 + $0x10] sm:$0xff] %v892_v48  ;;  %v900_v49 = vmul.f32 %v1347_v21, %v892_v48 }
 0x1f2   : > { %906 = vadd.xlane.f32.xlu1 %v900_v49  ;;  %v917_v51 = vmul.f32 %v900_v49, %v892_v48 }
 0x1f4   : > { %925 = vadd.xlane.f32.xlu2 %v918_v50 }
 0x1fa   : > { %923 = vadd.xlane.f32.xlu1 %v917_v51 }
 0x247   : > { %v903_v52 = vpop.xlane.xlu2 %902 }
 0x248   : > { %911 = vst.msk [vmem:[%s325_s25] sm:$0xff] %vm910_vm1, %v903_v52 }
 0x24e   : > { %v905_v53 = vpop.xlane.xlu0 %904 }
 0x24f   : > { %912 = vst.msk [vmem:[%s325_s25 + $0x8] sm:$0xff] %vm910_vm1, %v905_v53  ;;  %v920_v21 = vpop.xlane.xlu2 %919 }
 0x250   : > { %927 = vst.msk [vmem:[%s330_s9] sm:$0xff] %vm910_vm1, %v920_v21 }
 0x256   : > { %v922_v54 = vpop.xlane.xlu0 %921 }
 0x257   : > { %928 = vst.msk [vmem:[%s330_s9 + $0x8] sm:$0xff] %vm910_vm1, %v922_v54 }
 0x25f   : > { %v909_v55 = vpop.xlane.xlu2 %908 }
 0x260   : > { %914 = vst.msk [vmem:[%s325_s25 + $0x18] sm:$0xff] %vm910_vm1, %v909_v55 }
 0x265   : > { %v907_v56 = vpop.xlane.xlu1 %906 }
 0x266   : > { %913 = vst.msk [vmem:[%s325_s25 + $0x10] sm:$0xff] %vm910_vm1, %v907_v56 }
 0x267   : > { %v926_v57 = vpop.xlane.xlu2 %925 }
 0x268   : > { %930 = vst.msk [vmem:[%s330_s9 + $0x18] sm:$0xff] %vm910_vm1, %v926_v57 }
 0x26d   : > { %v924_v58 = vpop.xlane.xlu1 %923 }
 0x26e   : > { %929 = vst.msk [vmem:[%s330_s9 + $0x10] sm:$0xff] %vm910_vm1, %v924_v58 }
 0x26f PF: > { %s19_s27 = sadd.s32 1, %s1240_s27  }
 0x270   : > { %p16_p4 = scmp.ge.s32.totalorder %s19_s27, 4  }
 0x272   :  { %18 = sbr.rel (!%p16_p4) target bundleno = 1 (0x1), region = 106 }

// kernel: model_d_forward.28
= control target key start
LH: loop header
LB: loop body
LE: loop exit
PB: predicated region body
PF: predicated region fallthrough
CT: control target
= control target key end

     0   :  { %s472_s12 = smov 0   ;;  %s547_s0 = inlined_call_operand.vmem [shape: bf16[2,32,4], index: 0, kind: input, shape index: {}]   ;;  %s548_s1 = inlined_call_operand.vmem [shape: bf16[64,32], index: 1, kind: input, shape index: {}]   ;;  %s549_s2 = inlined_call_operand.vmem [shape: f32[64,1], index: 2, kind: input, shape index: {}]   ;;  %s550_s3 = inlined_call_operand.vmem [shape: bf16[2,64,4], index: 3, kind: output, shape index: {}]  }
   0x1 LB: > { %s378_s13 = sadd.s32 4294967295, %s449_s12   ;;  %p382_p0 = scmp.ge.s32.totalorder %s449_s12, 1  ;;  %s449_s12 = sphi %s472_s12, %s13_s12  }
   0x2   : > { %p137_p1 = scmp.lt.s32.totalorder %s449_s12, 3 }
   0x4   : > { %p138_p2 = pnand %p382_p0, %p137_p1 }
   0x5   : > { %p161_p3 = scmp.lt.s32.totalorder (!%p138_p2), %s378_s13, 1 }
   0x6   : > { %141 = sbr.rel (%p138_p2) target bundleno = 170 (0xaa), region = 32 }
   0xb   : > { %v186_v0 = vld [vmem:[%s549_s2 + $0x10] sm:$0xff]  ;;  %v184_v1 = vld [vmem:[%s549_s2] sm:$0xff]  ;;  %v451_v2 = vmov 0   ;;  %s552_s13 = smov (!%p161_p3, %s378_s13), 1  ;;  %v187_v5 = vld [vmem:[%s549_s2 + $0x18] sm:$0xff]  ;;  %vm264_vm0 = vcmask 261120  }
   0xc   : > { %441 = vset.pattern.permute.xlu1 %v451_v2  ;;  %440 = vset.pattern.permute.xlu0 %v451_v2  ;;  %v188_v3 = vld [vmem:[%s549_s2 + $0x20] sm:$0xff]  ;;  %s417_s20 = sshll.u32 %s552_s13, 4  ;;  %v185_v6 = vld [vmem:[%s549_s2 + $0x8] sm:$0xff]  ;;  %v421_v11 = vld [vmem:[%s548_s1 + $0x10] sm:$0xff]  ;;  %s418_s17 = sshll.u32 %s552_s13, 5  ;;  %vm314_vm1 = vcmask 27648  }
   0xd   : > { %204 = vperm.xlu1 %441, %v186_v0   ;;  %194 = vperm.xlu0 %440, %v184_v1   ;;  %s165_s23 = scalar_lea.vmem %s547_s0, %s417_s20  ;;  %v419_v8 = vld [vmem:[%s548_s1] sm:$0xff]  ;;  %v420_v9 = vld [vmem:[%s548_s1 + $0x8] sm:$0xff]  ;;  %v422_v12 = vld [vmem:[%s548_s1 + $0x18] sm:$0xff]  ;;  %s526_s20 = scalar_lea.vmem %s550_s3, %s418_s17 }
   0xe   : > { %442 = vset.pattern.permute.xlu2 %v451_v2  ;;  %v424_v4 = vld [vmem:[%s165_s23 + $0x8] sm:$0xff]  ;;  %v423_v7 = vld [vmem:[%s165_s23] sm:$0xff]  ;;  %v191_v13 = vld [vmem:[%s549_s2 + $0x38] sm:$0xff] }
   0xf   : > { %214 = vperm.xlu2 %442, %v188_v3   ;;  %283 = vmatpush.bf16.msra.mxu0 %v424_v4  ;;  %v189_v10 = vld [vmem:[%s549_s2 + $0x28] sm:$0xff]  ;;  %v190_v14 = vld [vmem:[%s549_s2 + $0x30] sm:$0xff] }
  0x10   : > { %425 = vmatpush.bf16.msra.mxu1 %v424_v4  ;;  %426 = vmatpush.bf16.msra.mxu2 %v424_v4 }
  0x11   : > { %427 = vmatpush.bf16.msra.mxu3 %v424_v4 }
  0x13   : > { %284 = vmatpush.bf16.msra.mxu0 %v423_v7 }
  0x14   : > { %428 = vmatpush.bf16.msra.mxu1 %v423_v7  ;;  %429 = vmatpush.bf16.msra.mxu2 %v423_v7 }
  0x15   : > { %209 = vperm.xlu1 %441, %v187_v5   ;;  %199 = vperm.xlu0 %440, %v185_v6  }
  0x16   : > { %430 = vmatpush.bf16.msra.mxu3 %v423_v7  ;;  %411 = vmatmul.msk.bf16.vlgmr.msra.gmra.mxu0 %vm264_vm0, %v419_v8 }
  0x17   : > { %219 = vperm.xlu2 %442, %v189_v10   ;;  %412 = vmatmul.msk.bf16.vlgmr.msra.gmra.mxu1 %vm264_vm0, %v420_v9 }
  0x18   : > { %413 = vmatmul.msk.bf16.vlgmr.msra.gmra.mxu2 %vm264_vm0, %v421_v11 }
  0x19   : > { %414 = vmatmul.msk.bf16.vlgmr.msra.gmra.mxu3 %vm264_vm0, %v422_v12 }
  0x1d   : > { %229 = vperm.xlu1 %441, %v191_v13   ;;  %224 = vperm.xlu0 %440, %v190_v14  }
  0x69   : > { %v215_v25 = vpop.permute.xlu2 %214 }
  0x71   : > { %v220_v40 = vpop.permute.xlu2 %219 }
  0x7f   : > { %v195_v15 = vpop.permute.xlu0 %194  ;;  %v205_v16 = vpop.permute.xlu1 %204 }
  0x87   : > { %v200_v17 = vpop.permute.xlu0 %199  ;;  %v210_v24 = vpop.permute.xlu1 %209 }
  0x8f   : > { %v225_v26 = vpop.permute.xlu0 %224  ;;  %v230_v39 = vpop.permute.xlu1 %229 }
  0x93   : > { %v286_v18 = vpop.f32.mrf.mxu0 }
  0x94   : > { %v291_v19 = vpop.f32.mrf.mxu1  ;;  %v287_v20 = vadd.f32 %v286_v18, %v195_v15 }
  0x95   : > { %v292_v21 = vadd.f32 %v291_v19, %v205_v16 }
  0x96   : > { %v306_v22 = vpack.c.bf16 %v287_v20, %v287_v20 }
  0x97   : > { %v308_v23 = vpack.c.bf16 %v292_v21, %v292_v21 }
  0x98   : > { %315 = vst.msk [vmem:[%s526_s20] sm:$0xf] %vm314_vm1, %v306_v22 }
  0x99   : > { %317 = vst.msk [vmem:[%s526_s20 + $0x8] sm:$0xf] %vm314_vm1, %v308_v23 }
  0x9b   : > { %v296_v27 = vpop.f32.mrf.mxu2  ;;  %v288_v31 = vpop.f32.mrf.mxu0 }
  0x9c   : > { %v301_v28 = vpop.f32.mrf.mxu3  ;;  %v297_v29 = vadd.f32 %v296_v27, %v215_v25  ;;  %v293_v32 = vpop.f32.mrf.mxu1  ;;  %v289_v33 = vadd.f32 %v288_v31, %v200_v17 }
  0x9d   : > { %v302_v30 = vadd.f32 %v301_v28, %v225_v26  ;;  %v294_v34 = vadd.f32 %v293_v32, %v210_v24 }
  0x9e   : > { %v310_v35 = vpack.c.bf16 %v297_v29, %v297_v29  ;;  %v307_v37 = vpack.c.bf16 %v289_v33, %v289_v33 }
  0x9f   : > { %v312_v36 = vpack.c.bf16 %v302_v30, %v302_v30  ;;  %v309_v38 = vpack.c.bf16 %v294_v34, %v294_v34 }
  0xa0   : > { %319 = vst.msk [vmem:[%s526_s20 + $0x10] sm:$0xf] %vm314_vm1, %v310_v35 }
  0xa1   : > { %321 = vst.msk [vmem:[%s526_s20 + $0x18] sm:$0xf] %vm314_vm1, %v312_v36 }
  0xa2   : > { %316 = vst.msk [vmem:[%s526_s20 + $0x4] sm:$0xf] %vm314_vm1, %v307_v37 }
  0xa3   : > { %318 = vst.msk [vmem:[%s526_s20 + $0xc] sm:$0xf] %vm314_vm1, %v309_v38  ;;  %v298_v41 = vpop.f32.mrf.mxu2 }
  0xa4   : > { %v303_v42 = vpop.f32.mrf.mxu3  ;;  %v299_v43 = vadd.f32 %v298_v41, %v220_v40 }
  0xa5   : > { %v304_v44 = vadd.f32 %v303_v42, %v230_v39 }
  0xa6   : > { %v311_v45 = vpack.c.bf16 %v299_v43, %v299_v43 }
  0xa7   : > { %v313_v46 = vpack.c.bf16 %v304_v44, %v304_v44 }
  0xa8   : > { %320 = vst.msk [vmem:[%s526_s20 + $0x14] sm:$0xf] %vm314_vm1, %v311_v45 }
  0xa9   : > { %322 = vst.msk [vmem:[%s526_s20 + $0x1c] sm:$0xf] %vm314_vm1, %v313_v46 }
  0xaa PF: > { %s13_s12 = sadd.s32 1, %s449_s12  }
  0xab   : > { %p10_p4 = scmp.ge.s32.totalorder %s13_s12, 4  }
  0xad   :  { %12 = sbr.rel (!%p10_p4) target bundleno = 1 (0x1), region = 62 }

// kernel: model_d_forward.29
= control target key start
LH: loop header
LB: loop body
LE: loop exit
PB: predicated region body
PF: predicated region fallthrough
CT: control target
= control target key end

     0   :  { %s403_s0 = inlined_call_operand.vmem [shape: bf16[2,256], index: 0, kind: input, shape index: {}]   ;;  %s404_s1 = inlined_call_operand.vmem [shape: bf16[256,6], index: 1, kind: input, shape index: {}]   ;;  %s405_s2 = inlined_call_operand.vmem [shape: f32[1,6], index: 2, kind: input, shape index: {}]   ;;  %s406_s3 = inlined_call_operand.hbm [shape: f32[2,6], index: 3, kind: output, shape index: {}]  }
   0x1   :  { %v281_v0 = vld [vmem:[%s404_s1 + $0x38] sm:$0xff]  ;;  %v280_v2 = vld [vmem:[%s404_s1 + $0x30] sm:$0xff]  ;;  %v15_v4 = vld [vmem:[%s403_s0] sm:$0x3] }
   0x2   :  { %v289_v1 = vld [vmem:[%s404_s1 + $0x78] sm:$0xff]  ;;  %154 = vmatpush.bf16.msra.mxu0 %v281_v0  ;;  %v288_v3 = vld [vmem:[%s404_s1 + $0x70] sm:$0xff]  ;;  %v279_v5 = vld [vmem:[%s404_s1 + $0x28] sm:$0xff]  ;;  %53 = vst [vmem:[#allocation1] ss:$9 sm:$0xff] %v15_v4 }
   0x3   :  { %167 = vmatpush.bf16.msra.mxu1 %v289_v1  ;;  %v287_v6 = vld [vmem:[%s404_s1 + $0x68] sm:$0xff] }
   0x6   :  { %155 = vmatpush.bf16.msra.mxu0 %v280_v2 }
   0x7   :  { %168 = vmatpush.bf16.msra.mxu1 %v288_v3 }
   0x8   :  { %8 = vsyncpa [#allocation3], 0  ;;  %v278_v7 = vld [vmem:[%s404_s1 + $0x20] sm:$0xff]  ;;  %v277_v9 = vld [vmem:[%s404_s1 + $0x18] sm:$0xff]  ;;  %vm180_vm0 = vcmask 41984   ;;  %s201_s22 = sshll.u32 %s406_s3, 4  ;;  %s202_s22 = int_to_ptr.hbm [resolvable:$true] %s201_s22 }
   0x9   :  { %v286_v8 = vld [vmem:[%s404_s1 + $0x60] sm:$0xff]  ;;  %v285_v10 = vld [vmem:[%s404_s1 + $0x58] sm:$0xff]  ;;  %v276_v11 = vld [vmem:[%s404_s1 + $0x10] sm:$0xff] }
   0xa   :  { %156 = vmatpush.bf16.msra.mxu0 %v279_v5  ;;  %v284_v12 = vld [vmem:[%s404_s1 + $0x50] sm:$0xff]  ;;  %v275_v13 = vld [vmem:[%s404_s1 + $0x8] sm:$0xff]  ;;  %v274_v15 = vld [vmem:[%s404_s1] sm:$0xff] }
   0xb   :  { %169 = vmatpush.bf16.msra.mxu1 %v287_v6  ;;  %v283_v14 = vld [vmem:[%s404_s1 + $0x48] sm:$0xff]  ;;  %v282_v16 = vld [vmem:[%s404_s1 + $0x40] sm:$0xff]  ;;  %s322_s1 = smov [#allocation2]  }
   0xc   :  { %v54_v17 = vld [vmem:[#allocation1] sm:$0xff]  ;;  %v55_v18 = vld [vmem:[#allocation1 + $0x9] sm:$0xff] }
   0xd   :  { %v291_v19 = vld [vmem:[%s405_s2] ss:$0 sm:$0xff]  ;;  %s199_s2 = sshll.u32 %s322_s1, 4  ;;  %s200_s2 = int_to_ptr.vmem [resolvable:$true] %s199_s2 }
   0xe   :  { %157 = vmatpush.bf16.msra.mxu0 %v278_v7 }
   0xf   :  { %170 = vmatpush.bf16.msra.mxu1 %v286_v8 }
  0x12   :  { %158 = vmatpush.bf16.msra.mxu0 %v277_v9 }
  0x13   :  { %171 = vmatpush.bf16.msra.mxu1 %v285_v10 }
  0x16   :  { %159 = vmatpush.bf16.msra.mxu0 %v276_v11 }
  0x17   :  { %172 = vmatpush.bf16.msra.mxu1 %v284_v12 }
  0x1a   :  { %160 = vmatpush.bf16.msra.mxu0 %v275_v13 }
  0x1b   :  { %173 = vmatpush.bf16.msra.mxu1 %v283_v14 }
  0x1e   :  { %161 = vmatpush.bf16.msra.mxu0 %v274_v15 }
  0x1f   :  { %174 = vmatpush.bf16.msra.mxu1 %v282_v16 }
  0x21   :  { %162 = vmatmul.bf16.vlgmr.msra.gmra.mxu0 %v54_v17 }
  0x22   :  { %175 = vmatmul.bf16.vlgmr.msra.gmra.mxu1 %v55_v18 }
  0x9e   :  { %v163_v20 = vpop.f32.mrf.mxu0 }
  0x9f   :  { %v176_v21 = vpop.f32.mrf.mxu1  ;;  %v164_v22 = vadd.f32 %v291_v19, %v163_v20 }
  0xa1   :  { %v177_v23 = vadd.f32 %v176_v21, %v164_v22 }
  0xa3   :  { %v181_v24 = vsel %vm180_vm0, %v177_v23, -inf }
  0xa4   :  { %182 = vmax.xlane.f32.xlu0 %v181_v24 }
  0xa6   :  { %v165_v25 = vpop.f32.mrf.mxu0 }
  0xa7   :  { %v178_v26 = vpop.f32.mrf.mxu1 }
 0x117   :  { %v183_v27 = vpop.xlane.xlu0 %182 }
 0x118   :  { %v184_v28 = vsub.f32 %v177_v23, %v183_v27 }
 0x11a   :  { %v185_v29 = vmul.f32 1.442695, %v184_v28 }
 0x11c   :  { %292 = vpow2.f32 %v185_v29 }
 0x122   :  { %v293_v30 = vpop.eup %292 }
 0x123   :  { %v187_v31 = vsel %vm180_vm0, %v293_v30, 0.0 }
 0x124   :  { %188 = vadd.xlane.f32.xlu0 %v187_v31 }
 0x197   :  { %v189_v32 = vpop.xlane.xlu0 %188 }
 0x198   :  { %294 = vlog2.f32 %v189_v32 }
 0x19e   :  { %v295_v33 = vpop.eup %294 }
 0x19f   :  { %v191_v34 = vmul.f32 0.6931472, %v295_v33 }
 0x1a1   :  { %v192_v35 = vsub.f32 %v184_v28, %v191_v34 }
 0x1a3   :  { %193 = vst.msk [vmem:[#allocation2] sm:$0x3] %vm180_vm0, %v192_v35 }
 0x1a4   :  { %204 = dma.vmem_to_hbm [thread:$0]  %s200_s2, 32, %s202_s22, [#allocation3]  }
 0x1a5   :  { %320 = dma.done.wait [#allocation3], 32  }
 0x1a6   :  { %321 = vsyncadd [#allocation3], 4294967264 }
 0x1a7   :  { %209 = vsyncpa [#allocation3], 1 }

</bundles_post_ra>
